<compile_context>
chip_gen: v7x
topology: tpu7x:2x2x1
jax: 0.10.0
libtpu: 0.0.40
codegen_flags: <defaults>
</compile_context>

<pallas_src>
import functools

import jax
import jax.numpy as jnp
from jax.experimental import pallas as pl
from jax.experimental.pallas import tpu as pltpu

BN_EPS = 1e-5
K1_TRUE = 512 + 128 + 10 + 1     # 651
K1_PAD = 768                     # padded to a multiple of 128


# ----------------------------------------------------------------------------
# helpers
# ----------------------------------------------------------------------------
def _round_up(x, m):
    return (x + m - 1) // m * m


def _vmem_cap_bytes():
    try:
        return int(pltpu.get_tpu_info().vmem_capacity_bytes)
    except Exception:
        return 64 * 1024 * 1024  # conservative (v7x per-core)


_VMEM_CAP = _vmem_cap_bytes()
if _VMEM_CAP >= 128 * 1024 * 1024:      # v5e / v6e: big VMEM -> bigger tiles
    _TILE_CAP, _TILE_BUDGET = 1024, 24 * 1024 * 1024
else:                                    # v7x: 64 MiB VMEM -> conservative
    _TILE_CAP, _TILE_BUDGET = 512, 12 * 1024 * 1024
_VMEM_LIMIT_CAP = min(40 * 1024 * 1024, int(0.6 * _VMEM_CAP))


def _gemm_need_bytes(t, k, c):
    # dbl-buffered bf16 X tile + bf16 W block + f32 out tile + f32 intermediates
    return 2 * t * k * 2 + 2 * k * c * 2 + 2 * t * c * 4 + 2 * t * c * 4


def _pick_row_tile(rows, k_dim, c_dim):
    """Row tile: multiple of 16 (bf16 sublane pack), fits VMEM budget, and
    divides the row count when possible so no im2col row-padding is needed."""
    cap = _TILE_CAP
    while cap > 16 and _gemm_need_bytes(cap, k_dim, c_dim) > _TILE_BUDGET:
        cap //= 2
    if rows <= cap:
        return _round_up(rows, 16)
    t = cap - cap % 16
    while t >= 16:                       # prefer multiple-of-16 exact divisor
        if rows % t == 0:
            return t
        t -= 16
    t = cap - cap % 8
    while t >= 8:                        # fall back to multiple-of-8 divisor
        if rows % t == 0:
            return t
        t -= 8
    return cap                           # last resort: pad rows to the tile


# ----------------------------------------------------------------------------
# Kernel 1: single-K-block GEMM (bf16 in, f32 out), optional fused tanh,
#           optional fused BatchNorm statistics (per-tile partial sum / ssq).
# ----------------------------------------------------------------------------
def _gemm_kernel(x_ref, w_ref, o_ref, *, act):
    y = jnp.dot(x_ref[...], w_ref[...], preferred_element_type=jnp.float32)
    if act == "tanh":
        y = jnp.tanh(y)
    o_ref[...] = y


def _gemm_stats_kernel(x_ref, w_ref, o_ref, st_ref, *, stat_groups):
    y = jnp.dot(x_ref[...], w_ref[...], preferred_element_type=jnp.float32)
    o_ref[...] = y
    cs = y.shape[-1] // stat_groups
    s = jnp.zeros((1, cs), jnp.float32)
    q = jnp.zeros((1, cs), jnp.float32)
    for gi in range(stat_groups):        # static unroll (<= 4 groups)
        yg = y[:, gi * cs:(gi + 1) * cs]
        s = s + jnp.sum(yg, axis=0, keepdims=True)
        q = q + jnp.sum(yg * yg, axis=0, keepdims=True)
    # rows 0/1 of the (8, cs) stats block carry sum / sum-of-squares.
    st_ref[...] = jnp.concatenate([s, q, jnp.zeros((6, cs), jnp.float32)], 0)


def gemm_fused(x_all, w_all, *, act=None, stat_groups=None):
    """(G, R, K)bf16 @ (G, K, C)bf16 -> (G, Rpad, C)f32 (+ per-channel stats).

    Single K block (all layers have K <= 2048); grid axes (phase, row-tiles)
    are both 'parallel'.  Zero row-padding (rare) does not perturb the stats.
    Returns (out, (sum, ssq) | None, row_tile).
    """
    g_dim, rows, k_dim = x_all.shape
    c_dim = w_all.shape[2]
    tr = _pick_row_tile(rows, k_dim, c_dim)
    r_pad = _round_up(rows, tr)
    if r_pad != rows:
        x_all = jnp.pad(x_all, ((0, 0), (0, r_pad - rows), (0, 0)))
    n_r = r_pad // tr

    need = _gemm_need_bytes(tr, k_dim, c_dim)
    vmem_limit = int(min(max(need + (4 << 20), 16 << 20), _VMEM_LIMIT_CAP))
    cp = pltpu.CompilerParams(
        dimension_semantics=("parallel", "parallel"),
        vmem_limit_bytes=vmem_limit)

    x_spec = pl.BlockSpec((None, tr, k_dim), lambda g, r: (g, r, 0))
    w_spec = pl.BlockSpec((None, k_dim, c_dim), lambda g, r: (g, 0, 0))
    o_spec = pl.BlockSpec((None, tr, c_dim), lambda g, r: (g, r, 0))

    if stat_groups is None:
        out = pl.pallas_call(
            functools.partial(_gemm_kernel, act=act),
            out_shape=jax.ShapeDtypeStruct((g_dim, r_pad, c_dim), jnp.float32),
            grid=(g_dim, n_r),
            in_specs=[x_spec, w_spec],
            out_specs=o_spec,
            compiler_params=cp,
        )(x_all, w_all)
        return out, None, tr

    cs = c_dim // stat_groups
    out, stats = pl.pallas_call(
        functools.partial(_gemm_stats_kernel, stat_groups=stat_groups),
        out_shape=(jax.ShapeDtypeStruct((g_dim, r_pad, c_dim), jnp.float32),
                   jax.ShapeDtypeStruct((g_dim, n_r * 8, cs), jnp.float32)),
        grid=(g_dim, n_r),
        in_specs=[x_spec, w_spec],
        out_specs=(o_spec,
                   pl.BlockSpec((None, 8, cs), lambda g, r: (g, r, 0))),
        compiler_params=cp,
    )(x_all, w_all)
    stats = stats.reshape(g_dim, n_r, 8, cs)
    s = jnp.sum(stats[:, :, 0, :], axis=(0, 1))          # (cs,)
    q = jnp.sum(stats[:, :, 1, :], axis=(0, 1))          # (cs,)
    return out, (s, q), tr


# ----------------------------------------------------------------------------
# Kernel 2: row-parallel affine (BN apply) + ReLU, bf16 output
# ----------------------------------------------------------------------------
def _affine_relu_kernel(y_ref, s_ref, b_ref, o_ref):
    o_ref[...] = jnp.maximum(y_ref[...] * s_ref[...] + b_ref[...],
                             0.0).astype(o_ref.dtype)


def affine_relu_bf16(y3d, scale, shift, tr):
    g_dim, r_pad, c_dim = y3d.shape
    n_r = r_pad // tr
    need = 2 * tr * c_dim * 4 + 2 * tr * c_dim * 2 + 4 * c_dim * 4
    vmem_limit = int(min(max(need + (2 << 20), 16 << 20), _VMEM_LIMIT_CAP))
    return pl.pallas_call(
        _affine_relu_kernel,
        out_shape=jax.ShapeDtypeStruct((g_dim, r_pad, c_dim), jnp.bfloat16),
        grid=(g_dim, n_r),
        in_specs=[pl.BlockSpec((None, tr, c_dim), lambda g, r: (g, r, 0)),
                  pl.BlockSpec((1, c_dim), lambda g, r: (0, 0)),
                  pl.BlockSpec((1, c_dim), lambda g, r: (0, 0))],
        out_specs=pl.BlockSpec((None, tr, c_dim), lambda g, r: (g, r, 0)),
        compiler_params=pltpu.CompilerParams(
            dimension_semantics=("parallel", "parallel"),
            vmem_limit_bytes=vmem_limit),
    )(y3d, scale.reshape(1, c_dim), shift.reshape(1, c_dim))


def _bn_scale_shift(s, q, count, gamma, beta):
    # Tiny per-channel math (<= 2048 elems) done in XLA.
    mean = s / count
    var = q / count - mean * mean
    rstd = jax.lax.rsqrt(var + BN_EPS)
    scale = gamma * rstd
    shift = beta - mean * scale
    return scale, shift


# ----------------------------------------------------------------------------
# Sub-pixel (phase) decomposition of ConvTranspose2d(k=4, s=2, p in {1,3})
# ----------------------------------------------------------------------------
def _subpixel_im2col(x_nhwc, spatial_pad, hp, wp):
    """Gather the 4 effective taps of each of the 4 output phases (bf16).

    Returns (4, N*hp*wp, 4*Cin); phase order (rh, rw), tap order (dh, dw, cin).
    """
    n, _, _, c = x_nhwc.shape
    if spatial_pad:
        x_nhwc = jnp.pad(x_nhwc, ((0, 0), (spatial_pad, spatial_pad),
                                  (spatial_pad, spatial_pad), (0, 0)))
    cols = []
    for rh in range(2):
        for rw in range(2):
            taps = jnp.stack(
                [x_nhwc[:, rh + dh:rh + dh + hp, rw + dw:rw + dw + wp, :]
                 for dh in range(2) for dw in range(2)],
                axis=3)                                   # (N, hp, wp, 4, Cin)
            cols.append(taps.reshape(n * hp * wp, 4 * c))
    return jnp.stack(cols, axis=0)


def _pixel_shuffle(y_phases, out_c):
    # y_phases: (4, N, hp, wp, Cpad), phase index = rh*2 + rw
    _, n, hp, wp, cpad = y_phases.shape
    y = y_phases.reshape(2, 2, n, hp, wp, cpad)
    y = jnp.transpose(y, (2, 3, 0, 4, 1, 5))              # (N, hp, rh, wp, rw, C)
    return y.reshape(n, 2 * hp, 2 * wp, cpad)[..., :out_c]


def deconv_subpixel(x_nhwc, conv_pad):
    h = x_nhwc.shape[1]
    h_out = (h - 1) * 2 - 2 * conv_pad + 4
    hp = h_out // 2
    spatial_pad = (3 - conv_pad) // 2                      # 1 for p=1, 0 for p=3
    return _subpixel_im2col(x_nhwc, spatial_pad, hp, hp), hp


# ----------------------------------------------------------------------------
# Layers
# ----------------------------------------------------------------------------
def dense1_bn_relu(x_cat, w1, gamma, beta):
    # ConvT(651->512, k2, s1, p0) from a 1x1 input == dense GEMM (K padded to 768).
    n = x_cat.shape[0]
    x = jnp.pad(x_cat, ((0, 0), (0, K1_PAD - K1_TRUE))).astype(jnp.bfloat16)
    y, (s, q), tr = gemm_fused(x[None], w1, stat_groups=4)   # cols: (kh,kw,oc)
    scale, shift = _bn_scale_shift(s, q, 4.0 * n, gamma, beta)
    yb = affine_relu_bf16(y, jnp.tile(scale, 4), jnp.tile(shift, 4), tr)
    return yb[0, :n].reshape(n, 2, 2, 512)                   # NHWC bf16


def deconv_bn_relu(x_nhwc, w_phases, gamma, beta, out_c):
    n = x_nhwc.shape[0]
    x_all, hp = deconv_subpixel(x_nhwc, conv_pad=1)           # (4, rows, 4*Cin)
    rows = x_all.shape[1]
    y, (s, q), tr = gemm_fused(x_all, w_phases, stat_groups=1)
    scale, shift = _bn_scale_shift(s, q, 4.0 * rows, gamma, beta)
    yb = affine_relu_bf16(y, scale, shift, tr)[:, :rows]
    return _pixel_shuffle(yb.reshape(4, n, hp, hp, yb.shape[-1]), out_c)


def deconv_tanh(x_nhwc, w_phases, out_c):
    n = x_nhwc.shape[0]
    x_all, hp = deconv_subpixel(x_nhwc, conv_pad=3)
    rows = x_all.shape[1]
    y, _, _ = gemm_fused(x_all, w_phases, act="tanh")
    y = y[:, :rows]                                           # f32
    return _pixel_shuffle(y.reshape(4, n, hp, hp, y.shape[-1]), out_c)


# ----------------------------------------------------------------------------
# Parameters (GEMM-layout weights precomputed at init)
# ----------------------------------------------------------------------------
def _gemm_weight_dense1(wt):
    # ConvT(k=2,s=1,p=0) from a 1x1 input == dense GEMM; cols ordered (kh,kw,oc)
    cin, cout = wt.shape[0], wt.shape[1]
    w = jnp.transpose(wt, (0, 2, 3, 1)).reshape(cin, 4 * cout)
    w = jnp.pad(w, ((0, K1_PAD - cin), (0, 0)))               # zero-pad K rows
    return w[None].astype(jnp.bfloat16)                        # (1, 768, 2048)


def _gemm_weights_subpixel(wt, c_pad):
    # wt: (Cin, Cout, 4, 4) torch ConvTranspose2d layout.  Phase (rh, rw) uses
    # the spatially-flipped 2x2 sub-kernel taps kh = 3 - rh - 2*dh.
    cin, cout = wt.shape[0], wt.shape[1]
    phases = []
    for rh in range(2):
        for rw in range(2):
            sub = wt[:, :, 3 - rh::-2, 3 - rw::-2]              # (Cin, Cout, 2, 2)
            phases.append(jnp.transpose(sub, (2, 3, 0, 1)).reshape(4 * cin, cout))
    w_all = jnp.stack(phases, axis=0)                           # (4, 4*Cin, Cout)
    if c_pad > cout:
        # NOTE: pad columns must stay exactly zero (BN/tanh of pad lanes -> 0).
        w_all = jnp.pad(w_all, ((0, 0), (0, 0), (0, c_pad - cout)))
    return w_all.astype(jnp.bfloat16)


def init_params(key):
    ks = jax.random.split(key, 5)

    def w(k_, shape):
        return 0.02 * jax.random.normal(k_, shape, jnp.float32)

    # Raw ConvTranspose2d weights, PyTorch layout (Cin, Cout, kH, kW), bias=False
    w1 = w(ks[0], (K1_TRUE, 64 * 8, 2, 2))
    w2 = w(ks[1], (64 * 8, 64 * 4, 4, 4))
    w3 = w(ks[2], (64 * 4, 64 * 2, 4, 4))
    w4 = w(ks[3], (64 * 2, 64, 4, 4))
    w5 = w(ks[4], (64, 3, 4, 4))

    return {
        "w1": _gemm_weight_dense1(w1),          # (1,  768, 2048) bf16
        "w2": _gemm_weights_subpixel(w2, 256),  # (4, 2048,  256)
        "w3": _gemm_weights_subpixel(w3, 128),  # (4, 1024,  128)
        "w4": _gemm_weights_subpixel(w4, 128),  # (4,  512,  128)  OC 64 -> 128 pad
        "w5": _gemm_weights_subpixel(w5, 128),  # (4,  256,  128)  OC  3 -> 128 pad
        # BatchNorm2d affine params (PyTorch default: gamma=1, beta=0), padded
        # to the GEMM output width; pad channels are sliced off after shuffle.
        "g1": jnp.ones((512,), jnp.float32), "b1": jnp.zeros((512,), jnp.float32),
        "g2": jnp.ones((256,), jnp.float32), "b2": jnp.zeros((256,), jnp.float32),
        "g3": jnp.ones((128,), jnp.float32), "b3": jnp.zeros((128,), jnp.float32),
        "g4": jnp.ones((128,), jnp.float32), "b4": jnp.zeros((128,), jnp.float32),
    }


# ----------------------------------------------------------------------------
# Forward pass
# ----------------------------------------------------------------------------
def generater_forward(params, inp, noise):
    n = inp.shape[0]
    x_cat = jnp.concatenate([inp.reshape(n, K1_TRUE - 512),
                             noise.reshape(n, 512)], axis=1)        # (N, 651)

    x = dense1_bn_relu(x_cat, params["w1"], params["g1"], params["b1"])
    x = deconv_bn_relu(x, params["w2"], params["g2"], params["b2"], out_c=256)
    x = deconv_bn_relu(x, params["w3"], params["g3"], params["b3"], out_c=128)
    x = deconv_bn_relu(x, params["w4"], params["g4"], params["b4"], out_c=64)
    x = deconv_tanh(x, params["w5"], out_c=3)                        # (N,28,28,3) f32

    return jnp.transpose(x, (0, 3, 1, 2))                            # NCHW f32


if __name__ == "__main__":
    key = jax.random.PRNGKey(0)
    kp, ki, kn = jax.random.split(key, 3)
    params = init_params(kp)

    n = 2
    inp = jax.random.normal(ki, (n, 128 + 10 + 1), jnp.float32)
    noise = jax.random.normal(kn, (n, 512), jnp.float32)

    out = jax.jit(generater_forward)(params, inp, noise)
    out = jax.block_until_ready(out)

    assert out.shape == (n, 3, 28, 28), out.shape
    assert out.dtype == jnp.float32
    assert bool(jnp.all(jnp.isfinite(out)))
    assert bool(jnp.all(jnp.abs(out) <= 1.0 + 1e-6))  # tanh range
    print("KERNEL_OK")
</pallas_src>

<mosaic_0001>
module attributes {stable_mosaic.version = 11 : i64} {
  func.func @_affine_relu_kernel(%arg0: i32, %arg1: i32, %arg2: memref<1x16x2048xf32, #tpu.memory_space<vmem>>, %arg3: memref<1x2048xf32, #tpu.memory_space<vmem>>, %arg4: memref<1x2048xf32, #tpu.memory_space<vmem>>, %arg5: memref<1x16x2048xbf16, #tpu.memory_space<vmem>>) attributes {dimension_semantics = [#tpu.dimension_semantics<parallel>, #tpu.dimension_semantics<parallel>], iteration_bounds = array<i64: 1, 1>, scalar_prefetch = 0 : i64, scratch_operands = 0 : i64, tpu.core_type = #tpu.core_type<tc>, window_params = [{transform_indices = @transform_0, window_bounds = array<i64: 1, 16, 2048>}, {pipeline_mode = #tpu.pipeline_mode<synchronous>, transform_indices = @transform_1, window_bounds = array<i64: 1, 2048>}, {pipeline_mode = #tpu.pipeline_mode<synchronous>, transform_indices = @transform_2, window_bounds = array<i64: 1, 2048>}, {transform_indices = @transform_3, window_bounds = array<i64: 1, 16, 2048>}]} {
    %c0 = arith.constant 0 : index
    %c0_0 = arith.constant 0 : index
    %c0_1 = arith.constant 0 : index
    %0 = vector.load %arg2[%c0, %c0_0, %c0_1] : memref<1x16x2048xf32, #tpu.memory_space<vmem>>, vector<1x16x2048xf32>
    %1 = vector.shape_cast %0 : vector<1x16x2048xf32> to vector<16x2048xf32>
    %c0_2 = arith.constant 0 : index
    %c0_3 = arith.constant 0 : index
    %2 = vector.load %arg3[%c0_2, %c0_3] : memref<1x2048xf32, #tpu.memory_space<vmem>>, vector<1x2048xf32>
    %3 = vector.broadcast %2 : vector<1x2048xf32> to vector<16x2048xf32>
    %4 = arith.mulf %1, %3 : vector<16x2048xf32>
    %c0_4 = arith.constant 0 : index
    %c0_5 = arith.constant 0 : index
    %5 = vector.load %arg4[%c0_4, %c0_5] : memref<1x2048xf32, #tpu.memory_space<vmem>>, vector<1x2048xf32>
    %6 = vector.broadcast %5 : vector<1x2048xf32> to vector<16x2048xf32>
    %7 = arith.addf %4, %6 : vector<16x2048xf32>
    %cst = arith.constant 0.000000e+00 : f32
    %8 = vector.broadcast %cst : f32 to vector<16x2048xf32>
    %9 = arith.maximumf %7, %8 : vector<16x2048xf32>
    %10 = arith.truncf %9 : vector<16x2048xf32> to vector<16x2048xbf16>
    %c0_6 = arith.constant 0 : index
    %c0_7 = arith.constant 0 : index
    %c0_8 = arith.constant 0 : index
    %11 = vector.load %arg5[%c0_6, %c0_7, %c0_8] : memref<1x16x2048xbf16, #tpu.memory_space<vmem>>, vector<1x16x2048xbf16>
    %12 = vector.shape_cast %11 : vector<1x16x2048xbf16> to vector<16x2048xbf16>
    %13 = vector.shape_cast %10 : vector<16x2048xbf16> to vector<1x16x2048xbf16>
    tpu.vector_store %arg5[%c0_6, %c0_7, %c0_8], %13 {strides = array<i32>} : memref<1x16x2048xbf16, #tpu.memory_space<vmem>>, vector<1x16x2048xbf16>,
    return
  }
  func.func @transform_0(%arg0: i32, %arg1: i32) -> (i32, i32, i32) {
    %c0_i32 = arith.constant 0 : i32
    %c0_i32_0 = arith.constant 0 : i32
    return %arg0, %arg1, %c0_i32 : i32, i32, i32
  }
  func.func @transform_1(%arg0: i32, %arg1: i32) -> (i32, i32) {
    %c0_i32 = arith.constant 0 : i32
    %c0_i32_0 = arith.constant 0 : i32
    %c0_i32_1 = arith.constant 0 : i32
    return %c0_i32, %c0_i32_0 : i32, i32
  }
  func.func @transform_2(%arg0: i32, %arg1: i32) -> (i32, i32) {
    %c0_i32 = arith.constant 0 : i32
    %c0_i32_0 = arith.constant 0 : i32
    %c0_i32_1 = arith.constant 0 : i32
    return %c0_i32, %c0_i32_0 : i32, i32
  }
  func.func @transform_3(%arg0: i32, %arg1: i32) -> (i32, i32, i32) {
    %c0_i32 = arith.constant 0 : i32
    %c0_i32_0 = arith.constant 0 : i32
    return %arg0, %arg1, %c0_i32 : i32, i32, i32
  }
}

module attributes {stable_mosaic.version = 11 : i64} {
  func.func @_gemm_stats_kernel(%arg0: i32, %arg1: i32, %arg2: memref<1x16x768xbf16, #tpu.memory_space<vmem>>, %arg3: memref<1x768x2048xbf16, #tpu.memory_space<vmem>>, %arg4: memref<1x16x2048xf32, #tpu.memory_space<vmem>>, %arg5: memref<1x8x512xf32, #tpu.memory_space<vmem>>) attributes {dimension_semantics = [#tpu.dimension_semantics<parallel>, #tpu.dimension_semantics<parallel>], iteration_bounds = array<i64: 1, 1>, scalar_prefetch = 0 : i64, scratch_operands = 0 : i64, tpu.core_type = #tpu.core_type<tc>, window_params = [{transform_indices = @transform_0, window_bounds = array<i64: 1, 16, 768>}, {transform_indices = @transform_1, window_bounds = array<i64: 1, 768, 2048>}, {transform_indices = @transform_2, window_bounds = array<i64: 1, 16, 2048>}, {transform_indices = @transform_3, window_bounds = array<i64: 1, 8, 512>}]} {
    %c0 = arith.constant 0 : index
    %c0_0 = arith.constant 0 : index
    %c0_1 = arith.constant 0 : index
    %0 = vector.load %arg2[%c0, %c0_0, %c0_1] : memref<1x16x768xbf16, #tpu.memory_space<vmem>>, vector<1x16x768xbf16>
    %1 = vector.shape_cast %0 : vector<1x16x768xbf16> to vector<16x768xbf16>
    %c0_2 = arith.constant 0 : index
    %c0_3 = arith.constant 0 : index
    %c0_4 = arith.constant 0 : index
    %2 = vector.load %arg3[%c0_2, %c0_3, %c0_4] : memref<1x768x2048xbf16, #tpu.memory_space<vmem>>, vector<1x768x2048xbf16>
    %3 = vector.shape_cast %2 : vector<1x768x2048xbf16> to vector<768x2048xbf16>
    %cst = arith.constant dense<0.000000e+00> : vector<16x2048xf32>
    %4 = tpu.matmul %1, %3, %cst {dimension_numbers = #tpu.dot_dimension_numbers<[1], [0], [0], [1], [0, 0, 1, 1], [], []>} : vector<16x768xbf16>, vector<768x2048xbf16>, vector<16x2048xf32> -> vector<16x2048xf32>
    %c0_5 = arith.constant 0 : index
    %c0_6 = arith.constant 0 : index
    %c0_7 = arith.constant 0 : index
    %5 = vector.load %arg4[%c0_5, %c0_6, %c0_7] : memref<1x16x2048xf32, #tpu.memory_space<vmem>>, vector<1x16x2048xf32>
    %6 = vector.shape_cast %5 : vector<1x16x2048xf32> to vector<16x2048xf32>
    %7 = vector.shape_cast %4 : vector<16x2048xf32> to vector<1x16x2048xf32>
    tpu.vector_store %arg4[%c0_5, %c0_6, %c0_7], %7 {strides = array<i32>} : memref<1x16x2048xf32, #tpu.memory_space<vmem>>, vector<1x16x2048xf32>,
    %cst_8 = arith.constant 0.000000e+00 : f32
    %8 = vector.broadcast %cst_8 : f32 to vector<1x512xf32>
    %cst_9 = arith.constant 0.000000e+00 : f32
    %9 = vector.broadcast %cst_9 : f32 to vector<1x512xf32>
    %10 = vector.extract_strided_slice %4 {offsets = [0, 0], sizes = [16, 512], strides = [1, 1]} : vector<16x2048xf32> to vector<16x512xf32>
    %cst_10 = arith.constant dense<0.000000e+00> : vector<512xf32>
    %11 = vector.multi_reduction <add>, %10, %cst_10 [0] : vector<16x512xf32> to vector<512xf32>
    %12 = vector.shape_cast %11 : vector<512xf32> to vector<1x512xf32>
    %13 = arith.addf %8, %12 : vector<1x512xf32>
    %14 = arith.mulf %10, %10 : vector<16x512xf32>
    %cst_11 = arith.constant dense<0.000000e+00> : vector<512xf32>
    %15 = vector.multi_reduction <add>, %14, %cst_11 [0] : vector<16x512xf32> to vector<512xf32>
    %16 = vector.shape_cast %15 : vector<512xf32> to vector<1x512xf32>
    %17 = arith.addf %9, %16 : vector<1x512xf32>
    %18 = vector.extract_strided_slice %4 {offsets = [0, 512], sizes = [16, 512], strides = [1, 1]} : vector<16x2048xf32> to vector<16x512xf32>
    %cst_12 = arith.constant dense<0.000000e+00> : vector<512xf32>
    %19 = vector.multi_reduction <add>, %18, %cst_12 [0] : vector<16x512xf32> to vector<512xf32>
    %20 = vector.shape_cast %19 : vector<512xf32> to vector<1x512xf32>
    %21 = arith.addf %13, %20 : vector<1x512xf32>
    %22 = arith.mulf %18, %18 : vector<16x512xf32>
    %cst_13 = arith.constant dense<0.000000e+00> : vector<512xf32>
    %23 = vector.multi_reduction <add>, %22, %cst_13 [0] : vector<16x512xf32> to vector<512xf32>
    %24 = vector.shape_cast %23 : vector<512xf32> to vector<1x512xf32>
    %25 = arith.addf %17, %24 : vector<1x512xf32>
    %26 = vector.extract_strided_slice %4 {offsets = [0, 1024], sizes = [16, 512], strides = [1, 1]} : vector<16x2048xf32> to vector<16x512xf32>
    %cst_14 = arith.constant dense<0.000000e+00> : vector<512xf32>
    %27 = vector.multi_reduction <add>, %26, %cst_14 [0] : vector<16x512xf32> to vector<512xf32>
    %28 = vector.shape_cast %27 : vector<512xf32> to vector<1x512xf32>
    %29 = arith.addf %21, %28 : vector<1x512xf32>
    %30 = arith.mulf %26, %26 : vector<16x512xf32>
    %cst_15 = arith.constant dense<0.000000e+00> : vector<512xf32>
    %31 = vector.multi_reduction <add>, %30, %cst_15 [0] : vector<16x512xf32> to vector<512xf32>
    %32 = vector.shape_cast %31 : vector<512xf32> to vector<1x512xf32>
    %33 = arith.addf %25, %32 : vector<1x512xf32>
    %34 = vector.extract_strided_slice %4 {offsets = [0, 1536], sizes = [16, 512], strides = [1, 1]} : vector<16x2048xf32> to vector<16x512xf32>
    %cst_16 = arith.constant dense<0.000000e+00> : vector<512xf32>
    %35 = vector.multi_reduction <add>, %34, %cst_16 [0] : vector<16x512xf32> to vector<512xf32>
    %36 = vector.shape_cast %35 : vector<512xf32> to vector<1x512xf32>
    %37 = arith.addf %29, %36 : vector<1x512xf32>
    %38 = arith.mulf %34, %34 : vector<16x512xf32>
    %cst_17 = arith.constant dense<0.000000e+00> : vector<512xf32>
    %39 = vector.multi_reduction <add>, %38, %cst_17 [0] : vector<16x512xf32> to vector<512xf32>
    %40 = vector.shape_cast %39 : vector<512xf32> to vector<1x512xf32>
    %41 = arith.addf %33, %40 : vector<1x512xf32>
    %cst_18 = arith.constant 0.000000e+00 : f32
    %42 = vector.broadcast %cst_18 : f32 to vector<6x512xf32>
    %43 = tpu.concatenate %37, %41, %42 in 0 : vector<1x512xf32>, vector<1x512xf32>, vector<6x512xf32> -> vector<8x512xf32>
    %c0_19 = arith.constant 0 : index
    %c0_20 = arith.constant 0 : index
    %c0_21 = arith.constant 0 : index
    %44 = vector.load %arg5[%c0_19, %c0_20, %c0_21] : memref<1x8x512xf32, #tpu.memory_space<vmem>>, vector<1x8x512xf32>
    %45 = vector.shape_cast %44 : vector<1x8x512xf32> to vector<8x512xf32>
    %46 = vector.shape_cast %43 : vector<8x512xf32> to vector<1x8x512xf32>
    tpu.vector_store %arg5[%c0_19, %c0_20, %c0_21], %46 {strides = array<i32>} : memref<1x8x512xf32, #tpu.memory_space<vmem>>, vector<1x8x512xf32>,
    return
  }
  func.func @transform_0(%arg0: i32, %arg1: i32) -> (i32, i32, i32) {
    %c0_i32 = arith.constant 0 : i32
    %c0_i32_0 = arith.constant 0 : i32
    return %arg0, %arg1, %c0_i32 : i32, i32, i32
  }
  func.func @transform_1(%arg0: i32, %arg1: i32) -> (i32, i32, i32) {
    %c0_i32 = arith.constant 0 : i32
    %c0_i32_0 = arith.constant 0 : i32
    %c0_i32_1 = arith.constant 0 : i32
    return %arg0, %c0_i32, %c0_i32_0 : i32, i32, i32
  }
  func.func @transform_2(%arg0: i32, %arg1: i32) -> (i32, i32, i32) {
    %c0_i32 = arith.constant 0 : i32
    %c0_i32_0 = arith.constant 0 : i32
    return %arg0, %arg1, %c0_i32 : i32, i32, i32
  }
  func.func @transform_3(%arg0: i32, %arg1: i32) -> (i32, i32, i32) {
    %c0_i32 = arith.constant 0 : i32
    %c0_i32_0 = arith.constant 0 : i32
    return %arg0, %arg1, %c0_i32 : i32, i32, i32
  }
}

module attributes {stable_mosaic.version = 11 : i64} {
  func.func @_gemm_stats_kernel(%arg0: i32, %arg1: i32, %arg2: memref<1x16x2048xbf16, #tpu.memory_space<vmem>>, %arg3: memref<1x2048x256xbf16, #tpu.memory_space<vmem>>, %arg4: memref<1x16x256xf32, #tpu.memory_space<vmem>>, %arg5: memref<1x8x256xf32, #tpu.memory_space<vmem>>) attributes {dimension_semantics = [#tpu.dimension_semantics<parallel>, #tpu.dimension_semantics<parallel>], iteration_bounds = array<i64: 4, 1>, scalar_prefetch = 0 : i64, scratch_operands = 0 : i64, tpu.core_type = #tpu.core_type<tc>, window_params = [{transform_indices = @transform_0, window_bounds = array<i64: 1, 16, 2048>}, {transform_indices = @transform_1, window_bounds = array<i64: 1, 2048, 256>}, {transform_indices = @transform_2, window_bounds = array<i64: 1, 16, 256>}, {transform_indices = @transform_3, window_bounds = array<i64: 1, 8, 256>}]} {
    %c0 = arith.constant 0 : index
    %c0_0 = arith.constant 0 : index
    %c0_1 = arith.constant 0 : index
    %0 = vector.load %arg2[%c0, %c0_0, %c0_1] : memref<1x16x2048xbf16, #tpu.memory_space<vmem>>, vector<1x16x2048xbf16>
    %1 = vector.shape_cast %0 : vector<1x16x2048xbf16> to vector<16x2048xbf16>
    %c0_2 = arith.constant 0 : index
    %c0_3 = arith.constant 0 : index
    %c0_4 = arith.constant 0 : index
    %2 = vector.load %arg3[%c0_2, %c0_3, %c0_4] : memref<1x2048x256xbf16, #tpu.memory_space<vmem>>, vector<1x2048x256xbf16>
    %3 = vector.shape_cast %2 : vector<1x2048x256xbf16> to vector<2048x256xbf16>
    %cst = arith.constant dense<0.000000e+00> : vector<16x256xf32>
    %4 = tpu.matmul %1, %3, %cst {dimension_numbers = #tpu.dot_dimension_numbers<[1], [0], [0], [1], [0, 0, 1, 1], [], []>} : vector<16x2048xbf16>, vector<2048x256xbf16>, vector<16x256xf32> -> vector<16x256xf32>
    %c0_5 = arith.constant 0 : index
    %c0_6 = arith.constant 0 : index
    %c0_7 = arith.constant 0 : index
    %5 = vector.load %arg4[%c0_5, %c0_6, %c0_7] : memref<1x16x256xf32, #tpu.memory_space<vmem>>, vector<1x16x256xf32>
    %6 = vector.shape_cast %5 : vector<1x16x256xf32> to vector<16x256xf32>
    %7 = vector.shape_cast %4 : vector<16x256xf32> to vector<1x16x256xf32>
    tpu.vector_store %arg4[%c0_5, %c0_6, %c0_7], %7 {strides = array<i32>} : memref<1x16x256xf32, #tpu.memory_space<vmem>>, vector<1x16x256xf32>,
    %cst_8 = arith.constant 0.000000e+00 : f32
    %8 = vector.broadcast %cst_8 : f32 to vector<1x256xf32>
    %cst_9 = arith.constant 0.000000e+00 : f32
    %9 = vector.broadcast %cst_9 : f32 to vector<1x256xf32>
    %cst_10 = arith.constant dense<0.000000e+00> : vector<256xf32>
    %10 = vector.multi_reduction <add>, %4, %cst_10 [0] : vector<16x256xf32> to vector<256xf32>
    %11 = vector.shape_cast %10 : vector<256xf32> to vector<1x256xf32>
    %12 = arith.addf %8, %11 : vector<1x256xf32>
    %13 = arith.mulf %4, %4 : vector<16x256xf32>
    %cst_11 = arith.constant dense<0.000000e+00> : vector<256xf32>
    %14 = vector.multi_reduction <add>, %13, %cst_11 [0] : vector<16x256xf32> to vector<256xf32>
    %15 = vector.shape_cast %14 : vector<256xf32> to vector<1x256xf32>
    %16 = arith.addf %9, %15 : vector<1x256xf32>
    %cst_12 = arith.constant 0.000000e+00 : f32
    %17 = vector.broadcast %cst_12 : f32 to vector<6x256xf32>
    %18 = tpu.concatenate %12, %16, %17 in 0 : vector<1x256xf32>, vector<1x256xf32>, vector<6x256xf32> -> vector<8x256xf32>
    %c0_13 = arith.constant 0 : index
    %c0_14 = arith.constant 0 : index
    %c0_15 = arith.constant 0 : index
    %19 = vector.load %arg5[%c0_13, %c0_14, %c0_15] : memref<1x8x256xf32, #tpu.memory_space<vmem>>, vector<1x8x256xf32>
    %20 = vector.shape_cast %19 : vector<1x8x256xf32> to vector<8x256xf32>
    %21 = vector.shape_cast %18 : vector<8x256xf32> to vector<1x8x256xf32>
    tpu.vector_store %arg5[%c0_13, %c0_14, %c0_15], %21 {strides = array<i32>} : memref<1x8x256xf32, #tpu.memory_space<vmem>>, vector<1x8x256xf32>,
    return
  }
  func.func @transform_0(%arg0: i32, %arg1: i32) -> (i32, i32, i32) {
    %c0_i32 = arith.constant 0 : i32
    %c0_i32_0 = arith.constant 0 : i32
    return %arg0, %arg1, %c0_i32 : i32, i32, i32
  }
  func.func @transform_1(%arg0: i32, %arg1: i32) -> (i32, i32, i32) {
    %c0_i32 = arith.constant 0 : i32
    %c0_i32_0 = arith.constant 0 : i32
    %c0_i32_1 = arith.constant 0 : i32
    return %arg0, %c0_i32, %c0_i32_0 : i32, i32, i32
  }
  func.func @transform_2(%arg0: i32, %arg1: i32) -> (i32, i32, i32) {
    %c0_i32 = arith.constant 0 : i32
    %c0_i32_0 = arith.constant 0 : i32
    return %arg0, %arg1, %c0_i32 : i32, i32, i32
  }
  func.func @transform_3(%arg0: i32, %arg1: i32) -> (i32, i32, i32) {
    %c0_i32 = arith.constant 0 : i32
    %c0_i32_0 = arith.constant 0 : i32
    return %arg0, %arg1, %c0_i32 : i32, i32, i32
  }
}

module attributes {stable_mosaic.version = 11 : i64} {
  func.func @_affine_relu_kernel(%arg0: i32, %arg1: i32, %arg2: memref<1x16x256xf32, #tpu.memory_space<vmem>>, %arg3: memref<1x256xf32, #tpu.memory_space<vmem>>, %arg4: memref<1x256xf32, #tpu.memory_space<vmem>>, %arg5: memref<1x16x256xbf16, #tpu.memory_space<vmem>>) attributes {dimension_semantics = [#tpu.dimension_semantics<parallel>, #tpu.dimension_semantics<parallel>], iteration_bounds = array<i64: 4, 1>, scalar_prefetch = 0 : i64, scratch_operands = 0 : i64, tpu.core_type = #tpu.core_type<tc>, window_params = [{transform_indices = @transform_0, window_bounds = array<i64: 1, 16, 256>}, {pipeline_mode = #tpu.pipeline_mode<synchronous>, transform_indices = @transform_1, window_bounds = array<i64: 1, 256>}, {pipeline_mode = #tpu.pipeline_mode<synchronous>, transform_indices = @transform_2, window_bounds = array<i64: 1, 256>}, {transform_indices = @transform_3, window_bounds = array<i64: 1, 16, 256>}]} {
    %c0 = arith.constant 0 : index
    %c0_0 = arith.constant 0 : index
    %c0_1 = arith.constant 0 : index
    %0 = vector.load %arg2[%c0, %c0_0, %c0_1] : memref<1x16x256xf32, #tpu.memory_space<vmem>>, vector<1x16x256xf32>
    %1 = vector.shape_cast %0 : vector<1x16x256xf32> to vector<16x256xf32>
    %c0_2 = arith.constant 0 : index
    %c0_3 = arith.constant 0 : index
    %2 = vector.load %arg3[%c0_2, %c0_3] : memref<1x256xf32, #tpu.memory_space<vmem>>, vector<1x256xf32>
    %3 = vector.broadcast %2 : vector<1x256xf32> to vector<16x256xf32>
    %4 = arith.mulf %1, %3 : vector<16x256xf32>
    %c0_4 = arith.constant 0 : index
    %c0_5 = arith.constant 0 : index
    %5 = vector.load %arg4[%c0_4, %c0_5] : memref<1x256xf32, #tpu.memory_space<vmem>>, vector<1x256xf32>
    %6 = vector.broadcast %5 : vector<1x256xf32> to vector<16x256xf32>
    %7 = arith.addf %4, %6 : vector<16x256xf32>
    %cst = arith.constant 0.000000e+00 : f32
    %8 = vector.broadcast %cst : f32 to vector<16x256xf32>
    %9 = arith.maximumf %7, %8 : vector<16x256xf32>
    %10 = arith.truncf %9 : vector<16x256xf32> to vector<16x256xbf16>
    %c0_6 = arith.constant 0 : index
    %c0_7 = arith.constant 0 : index
    %c0_8 = arith.constant 0 : index
    %11 = vector.load %arg5[%c0_6, %c0_7, %c0_8] : memref<1x16x256xbf16, #tpu.memory_space<vmem>>, vector<1x16x256xbf16>
    %12 = vector.shape_cast %11 : vector<1x16x256xbf16> to vector<16x256xbf16>
    %13 = vector.shape_cast %10 : vector<16x256xbf16> to vector<1x16x256xbf16>
    tpu.vector_store %arg5[%c0_6, %c0_7, %c0_8], %13 {strides = array<i32>} : memref<1x16x256xbf16, #tpu.memory_space<vmem>>, vector<1x16x256xbf16>,
    return
  }
  func.func @transform_0(%arg0: i32, %arg1: i32) -> (i32, i32, i32) {
    %c0_i32 = arith.constant 0 : i32
    %c0_i32_0 = arith.constant 0 : i32
    return %arg0, %arg1, %c0_i32 : i32, i32, i32
  }
  func.func @transform_1(%arg0: i32, %arg1: i32) -> (i32, i32) {
    %c0_i32 = arith.constant 0 : i32
    %c0_i32_0 = arith.constant 0 : i32
    %c0_i32_1 = arith.constant 0 : i32
    return %c0_i32, %c0_i32_0 : i32, i32
  }
  func.func @transform_2(%arg0: i32, %arg1: i32) -> (i32, i32) {
    %c0_i32 = arith.constant 0 : i32
    %c0_i32_0 = arith.constant 0 : i32
    %c0_i32_1 = arith.constant 0 : i32
    return %c0_i32, %c0_i32_0 : i32, i32
  }
  func.func @transform_3(%arg0: i32, %arg1: i32) -> (i32, i32, i32) {
    %c0_i32 = arith.constant 0 : i32
    %c0_i32_0 = arith.constant 0 : i32
    return %arg0, %arg1, %c0_i32 : i32, i32, i32
  }
}

module attributes {stable_mosaic.version = 11 : i64} {
  func.func @_gemm_stats_kernel(%arg0: i32, %arg1: i32, %arg2: memref<1x32x1024xbf16, #tpu.memory_space<vmem>>, %arg3: memref<1x1024x128xbf16, #tpu.memory_space<vmem>>, %arg4: memref<1x32x128xf32, #tpu.memory_space<vmem>>, %arg5: memref<1x8x128xf32, #tpu.memory_space<vmem>>) attributes {dimension_semantics = [#tpu.dimension_semantics<parallel>, #tpu.dimension_semantics<parallel>], iteration_bounds = array<i64: 4, 1>, scalar_prefetch = 0 : i64, scratch_operands = 0 : i64, tpu.core_type = #tpu.core_type<tc>, window_params = [{transform_indices = @transform_0, window_bounds = array<i64: 1, 32, 1024>}, {transform_indices = @transform_1, window_bounds = array<i64: 1, 1024, 128>}, {transform_indices = @transform_2, window_bounds = array<i64: 1, 32, 128>}, {transform_indices = @transform_3, window_bounds = array<i64: 1, 8, 128>}]} {
    %c0 = arith.constant 0 : index
    %c0_0 = arith.constant 0 : index
    %c0_1 = arith.constant 0 : index
    %0 = vector.load %arg2[%c0, %c0_0, %c0_1] : memref<1x32x1024xbf16, #tpu.memory_space<vmem>>, vector<1x32x1024xbf16>
    %1 = vector.shape_cast %0 : vector<1x32x1024xbf16> to vector<32x1024xbf16>
    %c0_2 = arith.constant 0 : index
    %c0_3 = arith.constant 0 : index
    %c0_4 = arith.constant 0 : index
    %2 = vector.load %arg3[%c0_2, %c0_3, %c0_4] : memref<1x1024x128xbf16, #tpu.memory_space<vmem>>, vector<1x1024x128xbf16>
    %3 = vector.shape_cast %2 : vector<1x1024x128xbf16> to vector<1024x128xbf16>
    %cst = arith.constant dense<0.000000e+00> : vector<32x128xf32>
    %4 = tpu.matmul %1, %3, %cst {dimension_numbers = #tpu.dot_dimension_numbers<[1], [0], [0], [1], [0, 0, 1, 1], [], []>} : vector<32x1024xbf16>, vector<1024x128xbf16>, vector<32x128xf32> -> vector<32x128xf32>
    %c0_5 = arith.constant 0 : index
    %c0_6 = arith.constant 0 : index
    %c0_7 = arith.constant 0 : index
    %5 = vector.load %arg4[%c0_5, %c0_6, %c0_7] : memref<1x32x128xf32, #tpu.memory_space<vmem>>, vector<1x32x128xf32>
    %6 = vector.shape_cast %5 : vector<1x32x128xf32> to vector<32x128xf32>
    %7 = vector.shape_cast %4 : vector<32x128xf32> to vector<1x32x128xf32>
    tpu.vector_store %arg4[%c0_5, %c0_6, %c0_7], %7 {strides = array<i32>} : memref<1x32x128xf32, #tpu.memory_space<vmem>>, vector<1x32x128xf32>,
    %cst_8 = arith.constant 0.000000e+00 : f32
    %8 = vector.broadcast %cst_8 : f32 to vector<1x128xf32>
    %cst_9 = arith.constant 0.000000e+00 : f32
    %9 = vector.broadcast %cst_9 : f32 to vector<1x128xf32>
    %cst_10 = arith.constant dense<0.000000e+00> : vector<128xf32>
    %10 = vector.multi_reduction <add>, %4, %cst_10 [0] : vector<32x128xf32> to vector<128xf32>
    %11 = vector.shape_cast %10 : vector<128xf32> to vector<1x128xf32>
    %12 = arith.addf %8, %11 : vector<1x128xf32>
    %13 = arith.mulf %4, %4 : vector<32x128xf32>
    %cst_11 = arith.constant dense<0.000000e+00> : vector<128xf32>
    %14 = vector.multi_reduction <add>, %13, %cst_11 [0] : vector<32x128xf32> to vector<128xf32>
    %15 = vector.shape_cast %14 : vector<128xf32> to vector<1x128xf32>
    %16 = arith.addf %9, %15 : vector<1x128xf32>
    %cst_12 = arith.constant 0.000000e+00 : f32
    %17 = vector.broadcast %cst_12 : f32 to vector<6x128xf32>
    %18 = tpu.concatenate %12, %16, %17 in 0 : vector<1x128xf32>, vector<1x128xf32>, vector<6x128xf32> -> vector<8x128xf32>
    %c0_13 = arith.constant 0 : index
    %c0_14 = arith.constant 0 : index
    %c0_15 = arith.constant 0 : index
    %19 = vector.load %arg5[%c0_13, %c0_14, %c0_15] : memref<1x8x128xf32, #tpu.memory_space<vmem>>, vector<1x8x128xf32>
    %20 = vector.shape_cast %19 : vector<1x8x128xf32> to vector<8x128xf32>
    %21 = vector.shape_cast %18 : vector<8x128xf32> to vector<1x8x128xf32>
    tpu.vector_store %arg5[%c0_13, %c0_14, %c0_15], %21 {strides = array<i32>} : memref<1x8x128xf32, #tpu.memory_space<vmem>>, vector<1x8x128xf32>,
    return
  }
  func.func @transform_0(%arg0: i32, %arg1: i32) -> (i32, i32, i32) {
    %c0_i32 = arith.constant 0 : i32
    %c0_i32_0 = arith.constant 0 : i32
    return %arg0, %arg1, %c0_i32 : i32, i32, i32
  }
  func.func @transform_1(%arg0: i32, %arg1: i32) -> (i32, i32, i32) {
    %c0_i32 = arith.constant 0 : i32
    %c0_i32_0 = arith.constant 0 : i32
    %c0_i32_1 = arith.constant 0 : i32
    return %arg0, %c0_i32, %c0_i32_0 : i32, i32, i32
  }
  func.func @transform_2(%arg0: i32, %arg1: i32) -> (i32, i32, i32) {
    %c0_i32 = arith.constant 0 : i32
    %c0_i32_0 = arith.constant 0 : i32
    return %arg0, %arg1, %c0_i32 : i32, i32, i32
  }
  func.func @transform_3(%arg0: i32, %arg1: i32) -> (i32, i32, i32) {
    %c0_i32 = arith.constant 0 : i32
    %c0_i32_0 = arith.constant 0 : i32
    return %arg0, %arg1, %c0_i32 : i32, i32, i32
  }
}

module attributes {stable_mosaic.version = 11 : i64} {
  func.func @_affine_relu_kernel(%arg0: i32, %arg1: i32, %arg2: memref<1x32x128xf32, #tpu.memory_space<vmem>>, %arg3: memref<1x128xf32, #tpu.memory_space<vmem>>, %arg4: memref<1x128xf32, #tpu.memory_space<vmem>>, %arg5: memref<1x32x128xbf16, #tpu.memory_space<vmem>>) attributes {dimension_semantics = [#tpu.dimension_semantics<parallel>, #tpu.dimension_semantics<parallel>], iteration_bounds = array<i64: 4, 1>, scalar_prefetch = 0 : i64, scratch_operands = 0 : i64, tpu.core_type = #tpu.core_type<tc>, window_params = [{transform_indices = @transform_0, window_bounds = array<i64: 1, 32, 128>}, {pipeline_mode = #tpu.pipeline_mode<synchronous>, transform_indices = @transform_1, window_bounds = array<i64: 1, 128>}, {pipeline_mode = #tpu.pipeline_mode<synchronous>, transform_indices = @transform_2, window_bounds = array<i64: 1, 128>}, {transform_indices = @transform_3, window_bounds = array<i64: 1, 32, 128>}]} {
    %c0 = arith.constant 0 : index
    %c0_0 = arith.constant 0 : index
    %c0_1 = arith.constant 0 : index
    %0 = vector.load %arg2[%c0, %c0_0, %c0_1] : memref<1x32x128xf32, #tpu.memory_space<vmem>>, vector<1x32x128xf32>
    %1 = vector.shape_cast %0 : vector<1x32x128xf32> to vector<32x128xf32>
    %c0_2 = arith.constant 0 : index
    %c0_3 = arith.constant 0 : index
    %2 = vector.load %arg3[%c0_2, %c0_3] : memref<1x128xf32, #tpu.memory_space<vmem>>, vector<1x128xf32>
    %3 = vector.broadcast %2 : vector<1x128xf32> to vector<32x128xf32>
    %4 = arith.mulf %1, %3 : vector<32x128xf32>
    %c0_4 = arith.constant 0 : index
    %c0_5 = arith.constant 0 : index
    %5 = vector.load %arg4[%c0_4, %c0_5] : memref<1x128xf32, #tpu.memory_space<vmem>>, vector<1x128xf32>
    %6 = vector.broadcast %5 : vector<1x128xf32> to vector<32x128xf32>
    %7 = arith.addf %4, %6 : vector<32x128xf32>
    %cst = arith.constant 0.000000e+00 : f32
    %8 = vector.broadcast %cst : f32 to vector<32x128xf32>
    %9 = arith.maximumf %7, %8 : vector<32x128xf32>
    %10 = arith.truncf %9 : vector<32x128xf32> to vector<32x128xbf16>
    %c0_6 = arith.constant 0 : index
    %c0_7 = arith.constant 0 : index
    %c0_8 = arith.constant 0 : index
    %11 = vector.load %arg5[%c0_6, %c0_7, %c0_8] : memref<1x32x128xbf16, #tpu.memory_space<vmem>>, vector<1x32x128xbf16>
    %12 = vector.shape_cast %11 : vector<1x32x128xbf16> to vector<32x128xbf16>
    %13 = vector.shape_cast %10 : vector<32x128xbf16> to vector<1x32x128xbf16>
    tpu.vector_store %arg5[%c0_6, %c0_7, %c0_8], %13 {strides = array<i32>} : memref<1x32x128xbf16, #tpu.memory_space<vmem>>, vector<1x32x128xbf16>,
    return
  }
  func.func @transform_0(%arg0: i32, %arg1: i32) -> (i32, i32, i32) {
    %c0_i32 = arith.constant 0 : i32
    %c0_i32_0 = arith.constant 0 : i32
    return %arg0, %arg1, %c0_i32 : i32, i32, i32
  }
  func.func @transform_1(%arg0: i32, %arg1: i32) -> (i32, i32) {
    %c0_i32 = arith.constant 0 : i32
    %c0_i32_0 = arith.constant 0 : i32
    %c0_i32_1 = arith.constant 0 : i32
    return %c0_i32, %c0_i32_0 : i32, i32
  }
  func.func @transform_2(%arg0: i32, %arg1: i32) -> (i32, i32) {
    %c0_i32 = arith.constant 0 : i32
    %c0_i32_0 = arith.constant 0 : i32
    %c0_i32_1 = arith.constant 0 : i32
    return %c0_i32, %c0_i32_0 : i32, i32
  }
  func.func @transform_3(%arg0: i32, %arg1: i32) -> (i32, i32, i32) {
    %c0_i32 = arith.constant 0 : i32
    %c0_i32_0 = arith.constant 0 : i32
    return %arg0, %arg1, %c0_i32 : i32, i32, i32
  }
}

module attributes {stable_mosaic.version = 11 : i64} {
  func.func @_gemm_stats_kernel(%arg0: i32, %arg1: i32, %arg2: memref<1x128x512xbf16, #tpu.memory_space<vmem>>, %arg3: memref<1x512x128xbf16, #tpu.memory_space<vmem>>, %arg4: memref<1x128x128xf32, #tpu.memory_space<vmem>>, %arg5: memref<1x8x128xf32, #tpu.memory_space<vmem>>) attributes {dimension_semantics = [#tpu.dimension_semantics<parallel>, #tpu.dimension_semantics<parallel>], iteration_bounds = array<i64: 4, 1>, scalar_prefetch = 0 : i64, scratch_operands = 0 : i64, tpu.core_type = #tpu.core_type<tc>, window_params = [{transform_indices = @transform_0, window_bounds = array<i64: 1, 128, 512>}, {transform_indices = @transform_1, window_bounds = array<i64: 1, 512, 128>}, {transform_indices = @transform_2, window_bounds = array<i64: 1, 128, 128>}, {transform_indices = @transform_3, window_bounds = array<i64: 1, 8, 128>}]} {
    %c0 = arith.constant 0 : index
    %c0_0 = arith.constant 0 : index
    %c0_1 = arith.constant 0 : index
    %0 = vector.load %arg2[%c0, %c0_0, %c0_1] : memref<1x128x512xbf16, #tpu.memory_space<vmem>>, vector<1x128x512xbf16>
    %1 = vector.shape_cast %0 : vector<1x128x512xbf16> to vector<128x512xbf16>
    %c0_2 = arith.constant 0 : index
    %c0_3 = arith.constant 0 : index
    %c0_4 = arith.constant 0 : index
    %2 = vector.load %arg3[%c0_2, %c0_3, %c0_4] : memref<1x512x128xbf16, #tpu.memory_space<vmem>>, vector<1x512x128xbf16>
    %3 = vector.shape_cast %2 : vector<1x512x128xbf16> to vector<512x128xbf16>
    %cst = arith.constant dense<0.000000e+00> : vector<128x128xf32>
    %4 = tpu.matmul %1, %3, %cst {dimension_numbers = #tpu.dot_dimension_numbers<[1], [0], [0], [1], [0, 0, 1, 1], [], []>} : vector<128x512xbf16>, vector<512x128xbf16>, vector<128x128xf32> -> vector<128x128xf32>
    %c0_5 = arith.constant 0 : index
    %c0_6 = arith.constant 0 : index
    %c0_7 = arith.constant 0 : index
    %5 = vector.load %arg4[%c0_5, %c0_6, %c0_7] : memref<1x128x128xf32, #tpu.memory_space<vmem>>, vector<1x128x128xf32>
    %6 = vector.shape_cast %5 : vector<1x128x128xf32> to vector<128x128xf32>
    %7 = vector.shape_cast %4 : vector<128x128xf32> to vector<1x128x128xf32>
    tpu.vector_store %arg4[%c0_5, %c0_6, %c0_7], %7 {strides = array<i32>} : memref<1x128x128xf32, #tpu.memory_space<vmem>>, vector<1x128x128xf32>,
    %cst_8 = arith.constant 0.000000e+00 : f32
    %8 = vector.broadcast %cst_8 : f32 to vector<1x128xf32>
    %cst_9 = arith.constant 0.000000e+00 : f32
    %9 = vector.broadcast %cst_9 : f32 to vector<1x128xf32>
    %cst_10 = arith.constant dense<0.000000e+00> : vector<128xf32>
    %10 = vector.multi_reduction <add>, %4, %cst_10 [0] : vector<128x128xf32> to vector<128xf32>
    %11 = vector.shape_cast %10 : vector<128xf32> to vector<1x128xf32>
    %12 = arith.addf %8, %11 : vector<1x128xf32>
    %13 = arith.mulf %4, %4 : vector<128x128xf32>
    %cst_11 = arith.constant dense<0.000000e+00> : vector<128xf32>
    %14 = vector.multi_reduction <add>, %13, %cst_11 [0] : vector<128x128xf32> to vector<128xf32>
    %15 = vector.shape_cast %14 : vector<128xf32> to vector<1x128xf32>
    %16 = arith.addf %9, %15 : vector<1x128xf32>
    %cst_12 = arith.constant 0.000000e+00 : f32
    %17 = vector.broadcast %cst_12 : f32 to vector<6x128xf32>
    %18 = tpu.concatenate %12, %16, %17 in 0 : vector<1x128xf32>, vector<1x128xf32>, vector<6x128xf32> -> vector<8x128xf32>
    %c0_13 = arith.constant 0 : index
    %c0_14 = arith.constant 0 : index
    %c0_15 = arith.constant 0 : index
    %19 = vector.load %arg5[%c0_13, %c0_14, %c0_15] : memref<1x8x128xf32, #tpu.memory_space<vmem>>, vector<1x8x128xf32>
    %20 = vector.shape_cast %19 : vector<1x8x128xf32> to vector<8x128xf32>
    %21 = vector.shape_cast %18 : vector<8x128xf32> to vector<1x8x128xf32>
    tpu.vector_store %arg5[%c0_13, %c0_14, %c0_15], %21 {strides = array<i32>} : memref<1x8x128xf32, #tpu.memory_space<vmem>>, vector<1x8x128xf32>,
    return
  }
  func.func @transform_0(%arg0: i32, %arg1: i32) -> (i32, i32, i32) {
    %c0_i32 = arith.constant 0 : i32
    %c0_i32_0 = arith.constant 0 : i32
    return %arg0, %arg1, %c0_i32 : i32, i32, i32
  }
  func.func @transform_1(%arg0: i32, %arg1: i32) -> (i32, i32, i32) {
    %c0_i32 = arith.constant 0 : i32
    %c0_i32_0 = arith.constant 0 : i32
    %c0_i32_1 = arith.constant 0 : i32
    return %arg0, %c0_i32, %c0_i32_0 : i32, i32, i32
  }
  func.func @transform_2(%arg0: i32, %arg1: i32) -> (i32, i32, i32) {
    %c0_i32 = arith.constant 0 : i32
    %c0_i32_0 = arith.constant 0 : i32
    return %arg0, %arg1, %c0_i32 : i32, i32, i32
  }
  func.func @transform_3(%arg0: i32, %arg1: i32) -> (i32, i32, i32) {
    %c0_i32 = arith.constant 0 : i32
    %c0_i32_0 = arith.constant 0 : i32
    return %arg0, %arg1, %c0_i32 : i32, i32, i32
  }
}

module attributes {stable_mosaic.version = 11 : i64} {
  func.func @_affine_relu_kernel(%arg0: i32, %arg1: i32, %arg2: memref<1x128x128xf32, #tpu.memory_space<vmem>>, %arg3: memref<1x128xf32, #tpu.memory_space<vmem>>, %arg4: memref<1x128xf32, #tpu.memory_space<vmem>>, %arg5: memref<1x128x128xbf16, #tpu.memory_space<vmem>>) attributes {dimension_semantics = [#tpu.dimension_semantics<parallel>, #tpu.dimension_semantics<parallel>], iteration_bounds = array<i64: 4, 1>, scalar_prefetch = 0 : i64, scratch_operands = 0 : i64, tpu.core_type = #tpu.core_type<tc>, window_params = [{transform_indices = @transform_0, window_bounds = array<i64: 1, 128, 128>}, {pipeline_mode = #tpu.pipeline_mode<synchronous>, transform_indices = @transform_1, window_bounds = array<i64: 1, 128>}, {pipeline_mode = #tpu.pipeline_mode<synchronous>, transform_indices = @transform_2, window_bounds = array<i64: 1, 128>}, {transform_indices = @transform_3, window_bounds = array<i64: 1, 128, 128>}]} {
    %c0 = arith.constant 0 : index
    %c0_0 = arith.constant 0 : index
    %c0_1 = arith.constant 0 : index
    %0 = vector.load %arg2[%c0, %c0_0, %c0_1] : memref<1x128x128xf32, #tpu.memory_space<vmem>>, vector<1x128x128xf32>
    %1 = vector.shape_cast %0 : vector<1x128x128xf32> to vector<128x128xf32>
    %c0_2 = arith.constant 0 : index
    %c0_3 = arith.constant 0 : index
    %2 = vector.load %arg3[%c0_2, %c0_3] : memref<1x128xf32, #tpu.memory_space<vmem>>, vector<1x128xf32>
    %3 = vector.broadcast %2 : vector<1x128xf32> to vector<128x128xf32>
    %4 = arith.mulf %1, %3 : vector<128x128xf32>
    %c0_4 = arith.constant 0 : index
    %c0_5 = arith.constant 0 : index
    %5 = vector.load %arg4[%c0_4, %c0_5] : memref<1x128xf32, #tpu.memory_space<vmem>>, vector<1x128xf32>
    %6 = vector.broadcast %5 : vector<1x128xf32> to vector<128x128xf32>
    %7 = arith.addf %4, %6 : vector<128x128xf32>
    %cst = arith.constant 0.000000e+00 : f32
    %8 = vector.broadcast %cst : f32 to vector<128x128xf32>
    %9 = arith.maximumf %7, %8 : vector<128x128xf32>
    %10 = arith.truncf %9 : vector<128x128xf32> to vector<128x128xbf16>
    %c0_6 = arith.constant 0 : index
    %c0_7 = arith.constant 0 : index
    %c0_8 = arith.constant 0 : index
    %11 = vector.load %arg5[%c0_6, %c0_7, %c0_8] : memref<1x128x128xbf16, #tpu.memory_space<vmem>>, vector<1x128x128xbf16>
    %12 = vector.shape_cast %11 : vector<1x128x128xbf16> to vector<128x128xbf16>
    %13 = vector.shape_cast %10 : vector<128x128xbf16> to vector<1x128x128xbf16>
    tpu.vector_store %arg5[%c0_6, %c0_7, %c0_8], %13 {strides = array<i32>} : memref<1x128x128xbf16, #tpu.memory_space<vmem>>, vector<1x128x128xbf16>,
    return
  }
  func.func @transform_0(%arg0: i32, %arg1: i32) -> (i32, i32, i32) {
    %c0_i32 = arith.constant 0 : i32
    %c0_i32_0 = arith.constant 0 : i32
    return %arg0, %arg1, %c0_i32 : i32, i32, i32
  }
  func.func @transform_1(%arg0: i32, %arg1: i32) -> (i32, i32) {
    %c0_i32 = arith.constant 0 : i32
    %c0_i32_0 = arith.constant 0 : i32
    %c0_i32_1 = arith.constant 0 : i32
    return %c0_i32, %c0_i32_0 : i32, i32
  }
  func.func @transform_2(%arg0: i32, %arg1: i32) -> (i32, i32) {
    %c0_i32 = arith.constant 0 : i32
    %c0_i32_0 = arith.constant 0 : i32
    %c0_i32_1 = arith.constant 0 : i32
    return %c0_i32, %c0_i32_0 : i32, i32
  }
  func.func @transform_3(%arg0: i32, %arg1: i32) -> (i32, i32, i32) {
    %c0_i32 = arith.constant 0 : i32
    %c0_i32_0 = arith.constant 0 : i32
    return %arg0, %arg1, %c0_i32 : i32, i32, i32
  }
}

module attributes {stable_mosaic.version = 11 : i64} {
  func.func @_gemm_kernel(%arg0: i32, %arg1: i32, %arg2: memref<1x400x256xbf16, #tpu.memory_space<vmem>>, %arg3: memref<1x256x128xbf16, #tpu.memory_space<vmem>>, %arg4: memref<1x400x128xf32, #tpu.memory_space<vmem>>) attributes {dimension_semantics = [#tpu.dimension_semantics<parallel>, #tpu.dimension_semantics<parallel>], iteration_bounds = array<i64: 4, 1>, scalar_prefetch = 0 : i64, scratch_operands = 0 : i64, tpu.core_type = #tpu.core_type<tc>, window_params = [{transform_indices = @transform_0, window_bounds = array<i64: 1, 400, 256>}, {transform_indices = @transform_1, window_bounds = array<i64: 1, 256, 128>}, {transform_indices = @transform_2, window_bounds = array<i64: 1, 400, 128>}]} {
    %c0 = arith.constant 0 : index
    %c0_0 = arith.constant 0 : index
    %c0_1 = arith.constant 0 : index
    %0 = vector.load %arg2[%c0, %c0_0, %c0_1] : memref<1x400x256xbf16, #tpu.memory_space<vmem>>, vector<1x400x256xbf16>
    %1 = vector.shape_cast %0 : vector<1x400x256xbf16> to vector<400x256xbf16>
    %c0_2 = arith.constant 0 : index
    %c0_3 = arith.constant 0 : index
    %c0_4 = arith.constant 0 : index
    %2 = vector.load %arg3[%c0_2, %c0_3, %c0_4] : memref<1x256x128xbf16, #tpu.memory_space<vmem>>, vector<1x256x128xbf16>
    %3 = vector.shape_cast %2 : vector<1x256x128xbf16> to vector<256x128xbf16>
    %cst = arith.constant dense<0.000000e+00> : vector<400x128xf32>
    %4 = tpu.matmul %1, %3, %cst {dimension_numbers = #tpu.dot_dimension_numbers<[1], [0], [0], [1], [0, 0, 1, 1], [], []>} : vector<400x256xbf16>, vector<256x128xbf16>, vector<400x128xf32> -> vector<400x128xf32>
    %5 = math.tanh %4 : vector<400x128xf32>
    %c0_5 = arith.constant 0 : index
    %c0_6 = arith.constant 0 : index
    %c0_7 = arith.constant 0 : index
    %6 = vector.load %arg4[%c0_5, %c0_6, %c0_7] : memref<1x400x128xf32, #tpu.memory_space<vmem>>, vector<1x400x128xf32>
    %7 = vector.shape_cast %6 : vector<1x400x128xf32> to vector<400x128xf32>
    %8 = vector.shape_cast %5 : vector<400x128xf32> to vector<1x400x128xf32>
    tpu.vector_store %arg4[%c0_5, %c0_6, %c0_7], %8 {strides = array<i32>} : memref<1x400x128xf32, #tpu.memory_space<vmem>>, vector<1x400x128xf32>,
    return
  }
  func.func @transform_0(%arg0: i32, %arg1: i32) -> (i32, i32, i32) {
    %c0_i32 = arith.constant 0 : i32
    %c0_i32_0 = arith.constant 0 : i32
    return %arg0, %arg1, %c0_i32 : i32, i32, i32
  }
  func.func @transform_1(%arg0: i32, %arg1: i32) -> (i32, i32, i32) {
    %c0_i32 = arith.constant 0 : i32
    %c0_i32_0 = arith.constant 0 : i32
    %c0_i32_1 = arith.constant 0 : i32
    return %arg0, %c0_i32, %c0_i32_0 : i32, i32, i32
  }
  func.func @transform_2(%arg0: i32, %arg1: i32) -> (i32, i32, i32) {
    %c0_i32 = arith.constant 0 : i32
    %c0_i32_0 = arith.constant 0 : i32
    return %arg0, %arg1, %c0_i32 : i32, i32, i32
  }
}

</mosaic_0001>

<bundles_post_ra>
// kernel: squeeze.11
= control target key start
LH: loop header
LB: loop body
LE: loop exit
PB: predicated region body
PF: predicated region fallthrough
CT: control target
= control target key end

     0   :  { %v522_v53 = vmov 0.0   ;;  %s629_s0 = inlined_call_operand.vmem [shape: bf16[1,2,2048], index: 0, kind: input, shape index: {}]   ;;  %s630_s1 = inlined_call_operand.vmem [shape: bf16[2,2,2,512], index: 1, kind: output, shape index: {}]  }
   0x1   :  { %v491_v0 = vld [vmem:[%s629_s0 + $0xf] sm:$0x1]  ;;  %v492_v1 = vld [vmem:[%s629_s0 + $0xe] sm:$0x1]  ;;  %v493_v2 = vld [vmem:[%s629_s0 + $0xd] sm:$0x1] }
   0x2   :  { %v17_v3 = vunpack.c.l.bf16 %v491_v0  ;;  %v33_v4 = vunpack.c.l.bf16 %v492_v1  ;;  %v49_v5 = vunpack.c.l.bf16 %v493_v2  ;;  %v494_v6 = vld [vmem:[%s629_s0 + $0xc] sm:$0x1]  ;;  %v495_v7 = vld [vmem:[%s629_s0 + $0xb] sm:$0x1]  ;;  %v496_v8 = vld [vmem:[%s629_s0 + $0xa] sm:$0x1] }
   0x3   :  { %v65_v9 = vunpack.c.l.bf16 %v494_v6  ;;  %v81_v10 = vunpack.c.l.bf16 %v495_v7  ;;  %v97_v11 = vunpack.c.l.bf16 %v496_v8  ;;  %v497_v12 = vld [vmem:[%s629_s0 + $0x9] sm:$0x1]  ;;  %v498_v13 = vld [vmem:[%s629_s0 + $0x8] sm:$0x1]  ;;  %v499_v14 = vld [vmem:[%s629_s0 + $0x7] sm:$0x1] }
   0x4   :  { %20 = vst [vmem:[#allocation1 + $0x78] sm:$0x3] %v17_v3  ;;  %36 = vst [vmem:[#allocation1 + $0x70] sm:$0x3] %v33_v4  ;;  %v113_v15 = vunpack.c.l.bf16 %v497_v12  ;;  %v129_v16 = vunpack.c.l.bf16 %v498_v13  ;;  %v145_v17 = vunpack.c.l.bf16 %v499_v14  ;;  %v500_v18 = vld [vmem:[%s629_s0 + $0x6] sm:$0x1] }
   0x5   :  { %52 = vst [vmem:[#allocation1 + $0x68] sm:$0x3] %v49_v5  ;;  %v501_v19 = vld [vmem:[%s629_s0 + $0x5] sm:$0x1]  ;;  %v502_v20 = vld [vmem:[%s629_s0 + $0x4] sm:$0x1]  ;;  %v161_v21 = vunpack.c.l.bf16 %v500_v18 }
   0x6   :  { %68 = vst [vmem:[#allocation1 + $0x60] sm:$0x3] %v65_v9  ;;  %84 = vst [vmem:[#allocation1 + $0x58] sm:$0x3] %v81_v10  ;;  %v177_v22 = vunpack.c.l.bf16 %v501_v19  ;;  %v193_v23 = vunpack.c.l.bf16 %v502_v20  ;;  %v503_v24 = vld [vmem:[%s629_s0 + $0x3] sm:$0x1] }
   0x7   :  { %100 = vst [vmem:[#allocation1 + $0x50] sm:$0x3] %v97_v11  ;;  %v504_v25 = vld [vmem:[%s629_s0 + $0x2] sm:$0x1]  ;;  %v505_v26 = vld [vmem:[%s629_s0 + $0x1] sm:$0x1]  ;;  %v209_v27 = vunpack.c.l.bf16 %v503_v24 }
   0x8   :  { %116 = vst [vmem:[#allocation1 + $0x48] sm:$0x3] %v113_v15  ;;  %132 = vst [vmem:[#allocation1 + $0x40] sm:$0x3] %v129_v16  ;;  %v225_v28 = vunpack.c.l.bf16 %v504_v25  ;;  %v240_v29 = vunpack.c.l.bf16 %v505_v26  ;;  %v253_v30 = vld [vmem:[%s629_s0] sm:$0x1] }
   0x9   :  { %148 = vst [vmem:[#allocation1 + $0x38] sm:$0x3] %v145_v17  ;;  %164 = vst [vmem:[#allocation1 + $0x30] sm:$0x3] %v161_v21  ;;  %v254_v31 = vunpack.c.l.bf16 %v253_v30 }
   0xa   :  { %180 = vst [vmem:[#allocation1 + $0x28] sm:$0x3] %v177_v22  ;;  %196 = vst [vmem:[#allocation1 + $0x20] sm:$0x3] %v193_v23 }
   0xb   :  { %212 = vst [vmem:[#allocation1 + $0x18] sm:$0x3] %v209_v27  ;;  %228 = vst [vmem:[#allocation1 + $0x10] sm:$0x3] %v225_v28  ;;  %v340_v33 = vld [vmem:[#allocation1 + $0x70] sm:$0x3]  }
   0xc   :  { %243 = vst [vmem:[#allocation1 + $0x8] sm:$0x3] %v240_v29  ;;  %256 = vst [vmem:[#allocation1] sm:$0x3] %v254_v31  ;;  %v334_v32 = vld [vmem:[#allocation1 + $0x68] sm:$0x3]  }
   0xd   :  { %v346_v34 = vld [vmem:[#allocation1 + $0x78] sm:$0x3]   ;;  %v328_v37 = vld [vmem:[#allocation1 + $0x60] sm:$0x3]   ;;  %336 = vst [vmem:[#allocation0 + $0x29] sm:$0x1] %v334_v32  }
   0xe   :  { %v316_v35 = vld [vmem:[#allocation1 + $0x50] sm:$0x3]   ;;  %v322_v36 = vld [vmem:[#allocation1 + $0x58] sm:$0x3]   ;;  %338 = vst [vmem:[#allocation0 + $0x68] sm:$0x2] %v334_v32  }
   0xf   :  { %342 = vst [vmem:[#allocation0 + $0x31] sm:$0x1] %v340_v33   ;;  %344 = vst [vmem:[#allocation0 + $0x70] sm:$0x2] %v340_v33   ;;  %v304_v39 = vld [vmem:[#allocation1 + $0x40] sm:$0x3]  }
  0x10   :  { %348 = vst [vmem:[#allocation0 + $0x39] sm:$0x1] %v346_v34   ;;  %350 = vst [vmem:[#allocation0 + $0x78] sm:$0x2] %v346_v34   ;;  %v298_v38 = vld [vmem:[#allocation1 + $0x38] sm:$0x3]  }
  0x11   :  { %v310_v40 = vld [vmem:[#allocation1 + $0x48] sm:$0x3]   ;;  %318 = vst [vmem:[#allocation0 + $0x30] sm:$0x1] %v316_v35   ;;  %320 = vst [vmem:[#allocation0 + $0x6f] sm:$0x2] %v316_v35  }
  0x12   :  { %324 = vst [vmem:[#allocation0 + $0x38] sm:$0x1] %v322_v36   ;;  %326 = vst [vmem:[#allocation0 + $0x77] sm:$0x2] %v322_v36   ;;  %v280_v41 = vld [vmem:[#allocation1 + $0x20] sm:$0x3]  }
  0x13   :  { %330 = vst [vmem:[#allocation0 + $0x21] sm:$0x1] %v328_v37   ;;  %332 = vst [vmem:[#allocation0 + $0x60] sm:$0x2] %v328_v37   ;;  %v286_v42 = vld [vmem:[#allocation1 + $0x28] sm:$0x3]  }
  0x14   :  { %v292_v43 = vld [vmem:[#allocation1 + $0x30] sm:$0x3]   ;;  %300 = vst [vmem:[#allocation0 + $0x19] sm:$0x1] %v298_v38   ;;  %302 = vst [vmem:[#allocation0 + $0x58] sm:$0x2] %v298_v38  }
  0x15   :  { %306 = vst [vmem:[#allocation0 + $0x20] sm:$0x1] %v304_v39   ;;  %308 = vst [vmem:[#allocation0 + $0x5f] sm:$0x2] %v304_v39   ;;  %v262_v44 = vld [vmem:[#allocation1 + $0x8] sm:$0x3]  }
  0x16   :  { %312 = vst [vmem:[#allocation0 + $0x28] sm:$0x1] %v310_v40   ;;  %314 = vst [vmem:[#allocation0 + $0x67] sm:$0x2] %v310_v40   ;;  %v268_v45 = vld [vmem:[#allocation1 + $0x10] sm:$0x3]  }
  0x17   :  { %v274_v46 = vld [vmem:[#allocation1 + $0x18] sm:$0x3]   ;;  %282 = vst [vmem:[#allocation0 + $0x1] sm:$0x1] %v280_v41   ;;  %284 = vst [vmem:[#allocation0 + $0x40] sm:$0x2] %v280_v41  }
  0x18   :  { %288 = vst [vmem:[#allocation0 + $0x9] sm:$0x1] %v286_v42   ;;  %290 = vst [vmem:[#allocation0 + $0x48] sm:$0x2] %v286_v42   ;;  %v257_v47 = vld [vmem:[#allocation1] sm:$0x3]  }
  0x19   :  { %294 = vst [vmem:[#allocation0 + $0x11] sm:$0x1] %v292_v43   ;;  %296 = vst [vmem:[#allocation0 + $0x50] sm:$0x2] %v292_v43   ;;  %v394_v48 = vld [vmem:[#allocation0 + $0x30] sm:$0x3] }
  0x1a   :  { %264 = vst [vmem:[#allocation0 + $0x8] sm:$0x1] %v262_v44   ;;  %266 = vst [vmem:[#allocation0 + $0x47] sm:$0x2] %v262_v44   ;;  %v401_v49 = vld [vmem:[#allocation0 + $0x38] sm:$0x3]  ;;  %v395_v54 = vpack.c.bf16 %v522_v53, %v394_v48 }
  0x1b   :  { %270 = vst [vmem:[#allocation0 + $0x10] sm:$0x1] %v268_v45   ;;  %272 = vst [vmem:[#allocation0 + $0x4f] sm:$0x2] %v268_v45   ;;  %v450_v50 = vld [vmem:[#allocation0 + $0x70] sm:$0x3]  ;;  %v402_v55 = vpack.c.bf16 %v522_v53, %v401_v49 }
  0x1c   :  { %276 = vst [vmem:[#allocation0 + $0x18] sm:$0x1] %v274_v46   ;;  %278 = vst [vmem:[#allocation0 + $0x57] sm:$0x2] %v274_v46   ;;  %v380_v51 = vld [vmem:[#allocation0 + $0x20] sm:$0x3]  ;;  %v451_v57 = vpack.c.bf16 %v522_v53, %v450_v50 }
  0x1d   :  { %258 = vst [vmem:[#allocation0] sm:$0x1] %v257_v47   ;;  %260 = vst [vmem:[#allocation0 + $0x3f] sm:$0x2] %v257_v47   ;;  %v387_v52 = vld [vmem:[#allocation0 + $0x28] sm:$0x3]  ;;  %v381_v58 = vpack.c.bf16 %v522_v53, %v380_v51 }
  0x1e   :  { %v436_v56 = vld [vmem:[#allocation0 + $0x60] sm:$0x3]  ;;  %v388_v59 = vpack.c.bf16 %v522_v53, %v387_v52  ;;  %v443_v61 = vld [vmem:[#allocation0 + $0x68] sm:$0x3]  ;;  %v457_v62 = vld [vmem:[#allocation0 + $0x78] sm:$0x3] }
  0x1f   :  { %v437_v60 = vpack.c.bf16 %v522_v53, %v436_v56  ;;  %511 = vst [vmem:[%s630_s1 + $0x6] sm:$0x1] %v395_v54  ;;  %512 = vst [vmem:[%s630_s1 + $0x7] sm:$0x1] %v402_v55  ;;  %v444_v2 = vpack.c.bf16 %v522_v53, %v443_v61  ;;  %v458_v3 = vpack.c.bf16 %v522_v53, %v457_v62 }
  0x20   :  { %519 = vst [vmem:[%s630_s1 + $0xe] sm:$0x1] %v451_v57  ;;  %509 = vst [vmem:[%s630_s1 + $0x4] sm:$0x1] %v381_v58 }
  0x21   :  { %v360_v63 = vld [vmem:[#allocation0 + $0x8] sm:$0x3]  ;;  %510 = vst [vmem:[%s630_s1 + $0x5] sm:$0x1] %v388_v59  ;;  %517 = vst [vmem:[%s630_s1 + $0xc] sm:$0x1] %v437_v60 }
  0x22   :  { %v366_v0 = vld [vmem:[#allocation0 + $0x10] sm:$0x3]  ;;  %v361_v5 = vpack.c.bf16 %v522_v53, %v360_v63  ;;  %v415_v9 = vld [vmem:[#allocation0 + $0x48] sm:$0x3]  ;;  %518 = vst [vmem:[%s630_s1 + $0xd] sm:$0x1] %v444_v2 }
  0x23   :  { %v373_v1 = vld [vmem:[#allocation0 + $0x18] sm:$0x3]  ;;  %v367_v6 = vpack.c.bf16 %v522_v53, %v366_v0  ;;  %v416_v12 = vpack.c.bf16 %v522_v53, %v415_v9  ;;  %v422_v13 = vld [vmem:[#allocation0 + $0x50] sm:$0x3]  ;;  %520 = vst [vmem:[%s630_s1 + $0xf] sm:$0x1] %v458_v3 }
  0x24   :  { %v355_v4 = vld [vmem:[#allocation0] sm:$0x3]  ;;  %v374_v7 = vpack.c.bf16 %v522_v53, %v373_v1  ;;  %v429_v14 = vld [vmem:[#allocation0 + $0x58] sm:$0x3]  ;;  %506 = vst [vmem:[%s630_s1 + $0x1] sm:$0x1] %v361_v5  ;;  %v423_v15 = vpack.c.bf16 %v522_v53, %v422_v13 }
  0x25   :  { %v408_v8 = vld [vmem:[#allocation0 + $0x40] sm:$0x3]  ;;  %v356_v10 = vpack.c.bf16 %v522_v53, %v355_v4  ;;  %507 = vst [vmem:[%s630_s1 + $0x2] sm:$0x1] %v367_v6  ;;  %v430_v16 = vpack.c.bf16 %v522_v53, %v429_v14  ;;  %514 = vst [vmem:[%s630_s1 + $0x9] sm:$0x1] %v416_v12 }
  0x26   :  { %v409_v11 = vpack.c.bf16 %v522_v53, %v408_v8  ;;  %508 = vst [vmem:[%s630_s1 + $0x3] sm:$0x1] %v374_v7  ;;  %515 = vst [vmem:[%s630_s1 + $0xa] sm:$0x1] %v423_v15 }
  0x27   :  { %358 = vst [vmem:[%s630_s1] sm:$0x1] %v356_v10  ;;  %516 = vst [vmem:[%s630_s1 + $0xb] sm:$0x1] %v430_v16 }
  0x28   :  { %513 = vst [vmem:[%s630_s1 + $0x8] sm:$0x1] %v409_v11 }

// kernel: generater_forward.10
= control target key start
LH: loop header
LB: loop body
LE: loop exit
PB: predicated region body
PF: predicated region fallthrough
CT: control target
= control target key end

     0   :  { %v50_v0 = vlaneseq  ;;  %s820_s1 = inlined_call_operand.vmem [shape: f32[1,2048], index: 1, kind: input, shape index: {}]   ;;  %s821_s2 = inlined_call_operand.vmem [shape: f32[1,2048], index: 2, kind: input, shape index: {}]   ;;  %s822_s0 = inlined_call_operand.vmem [shape: f32[1,16,2048], index: 0, kind: input, shape index: {}]   ;;  %s823_s3 = inlined_call_operand.vmem [shape: bf16[1,16,2048], index: 3, kind: output, shape index: {}]  }
   0x1   :  { %v46_v2 = vld [vmem:[%s820_s1] sm:$0xff]  ;;  %v15_v9 = vld [vmem:[%s822_s0 + $0x8] sm:$0xff]  ;;  %v16_v18 = vld [vmem:[%s822_s0 + $0x10] sm:$0xff] }
   0x2   :  { %v51_v1 = vshrl.u32 %v50_v0, 7  ;;  %v162_v3 = vld [vmem:[%s821_s2] sm:$0xff]  ;;  %v17_v19 = vld [vmem:[%s822_s0 + $0x18] sm:$0xff]  ;;  %v19_v25 = vld [vmem:[%s822_s0 + $0x28] sm:$0xff] }
   0x3   :  { %v14_v8 = vld [vmem:[%s822_s0] sm:$0xff]  ;;  %v20_v38 = vld [vmem:[%s822_s0 + $0x30] sm:$0xff]  ;;  %v21_v39 = vld [vmem:[%s822_s0 + $0x38] sm:$0xff] }
   0x4   :  { %v484_v4 = vsub.s32 0, %v51_v1  ;;  %v486_v5 = vsub.s32 1, %v51_v1  ;;  %v488_v6 = vsub.s32 2, %v51_v1  ;;  %v490_v7 = vsub.s32 3, %v51_v1  ;;  %v18_v24 = vld [vmem:[%s822_s0 + $0x20] sm:$0xff]  ;;  %v47_v48 = vld [vmem:[%s820_s1 + $0x8] sm:$0xff] }
   0x5   :  { %v498_v10 = vsub.s32 4, %v51_v1  ;;  %v500_v11 = vsub.s32 5, %v51_v1  ;;  %v502_v12 = vsub.s32 6, %v51_v1  ;;  %v504_v13 = vsub.s32 7, %v51_v1  ;;  %v586_v53 = vld [vmem:[%s821_s2 + $0x8] sm:$0xff]  ;;  %v22_v58 = vld [vmem:[%s822_s0 + $0x40] sm:$0xff] }
   0x6   :  { %v507_v14 = vrot.slane %v46_v2, %v484_v4  ;;  %v510_v15 = vrot.slane %v46_v2, %v486_v5  ;;  %v513_v16 = vrot.slane %v162_v3, %v484_v4  ;;  %v516_v17 = vrot.slane %v162_v3, %v486_v5  ;;  %v23_v59 = vld [vmem:[%s822_s0 + $0x48] sm:$0xff] }
   0x7   :  { %v525_v20 = vrot.slane %v46_v2, %v488_v6  ;;  %v528_v21 = vrot.slane %v46_v2, %v490_v7  ;;  %v531_v22 = vrot.slane %v162_v3, %v488_v6  ;;  %v534_v23 = vrot.slane %v162_v3, %v490_v7 }
   0x8   :  { %v130_v26 = vmul.f32 %v507_v14, %v14_v8  ;;  %v131_v27 = vmul.f32 %v510_v15, %v15_v9  ;;  %v545_v28 = vrot.slane %v46_v2, %v498_v10  ;;  %v548_v29 = vrot.slane %v46_v2, %v500_v11  ;;  %v24_v8 = vld [vmem:[%s822_s0 + $0x50] sm:$0xff] }
   0x9   :  { %v132_v30 = vmul.f32 %v525_v20, %v16_v18  ;;  %v133_v31 = vmul.f32 %v528_v21, %v17_v19  ;;  %v553_v32 = vrot.slane %v162_v3, %v498_v10  ;;  %v556_v33 = vrot.slane %v162_v3, %v500_v11 }
   0xa   :  { %v246_v34 = vadd.f32 %v513_v16, %v130_v26  ;;  %v247_v35 = vadd.f32 %v516_v17, %v131_v27  ;;  %v134_v36 = vmul.f32 %v545_v28, %v18_v24  ;;  %v135_v37 = vmul.f32 %v548_v29, %v19_v25 }
   0xb   :  { %v248_v40 = vadd.f32 %v531_v22, %v132_v30  ;;  %v249_v41 = vadd.f32 %v534_v23, %v133_v31  ;;  %v571_v42 = vrot.slane %v46_v2, %v502_v12  ;;  %v574_v43 = vrot.slane %v46_v2, %v504_v13 }
   0xc   :  { %v278_v44 = vmax.f32 %v246_v34, 0.0  ;;  %v279_v45 = vmax.f32 %v247_v35, 0.0  ;;  %v250_v46 = vadd.f32 %v553_v32, %v134_v36  ;;  %v251_v47 = vadd.f32 %v556_v33, %v135_v37  ;;  %v26_v36 = vld [vmem:[%s822_s0 + $0x60] sm:$0xff] }
   0xd   :  { %v280_v49 = vmax.f32 %v248_v40, 0.0  ;;  %v281_v50 = vmax.f32 %v249_v41, 0.0  ;;  %v136_v51 = vmul.f32 %v571_v42, %v20_v38  ;;  %v137_v52 = vmul.f32 %v574_v43, %v21_v39 }
   0xe   :  { %v442_v54 = vpack.c.bf16 %v279_v45, %v278_v44  ;;  %v282_v55 = vmax.f32 %v250_v46, 0.0  ;;  %v283_v56 = vmax.f32 %v251_v47, 0.0  ;;  %v589_v57 = vrot.slane %v162_v3, %v502_v12 }
   0xf   :  { %v443_v60 = vpack.c.bf16 %v281_v50, %v280_v49  ;;  %v598_v61 = vrot.slane %v162_v3, %v504_v13  ;;  %v601_v62 = vrot.slane %v47_v48, %v484_v4  ;;  %v604_v63 = vrot.slane %v47_v48, %v486_v5 }
  0x10   :  { %406 = vst [vmem:[%s823_s3] sm:$0xff] %v442_v54  ;;  %v444_v0 = vpack.c.bf16 %v283_v56, %v282_v55  ;;  %v252_v1 = vadd.f32 %v589_v57, %v136_v51  ;;  %v612_v2 = vrot.slane %v586_v53, %v484_v4  ;;  %v616_v3 = vrot.slane %v586_v53, %v486_v5  ;;  %v25_v4 = vld [vmem:[%s822_s0 + $0x58] sm:$0xff] }
  0x11   :  { %407 = vst [vmem:[%s823_s3 + $0x8] sm:$0xff] %v443_v60  ;;  %v253_v9 = vadd.f32 %v598_v61, %v137_v52  ;;  %v138_v18 = vmul.f32 %v601_v62, %v22_v58  ;;  %v139_v19 = vmul.f32 %v604_v63, %v23_v59  ;;  %v631_v5 = vrot.slane %v47_v48, %v488_v6  ;;  %v29_v51 = vld [vmem:[%s822_s0 + $0x78] sm:$0xff]  ;;  %v30_v52 = vld [vmem:[%s822_s0 + $0x80] sm:$0xff]  ;;  %v31_v58 = vld [vmem:[%s822_s0 + $0x88] sm:$0xff] }
  0x12   :  { %408 = vst [vmem:[%s823_s3 + $0x10] sm:$0xff] %v444_v0  ;;  %v284_v24 = vmax.f32 %v252_v1, 0.0  ;;  %v637_v25 = vrot.slane %v47_v48, %v490_v7  ;;  %v641_v26 = vrot.slane %v586_v53, %v488_v6  ;;  %v645_v27 = vrot.slane %v586_v53, %v490_v7  ;;  %v27_v6 = vld [vmem:[%s822_s0 + $0x68] sm:$0xff] }
  0x13   :  { %v285_v30 = vmax.f32 %v253_v9, 0.0  ;;  %v254_v31 = vadd.f32 %v612_v2, %v138_v18  ;;  %v255_v34 = vadd.f32 %v616_v3, %v139_v19  ;;  %v140_v35 = vmul.f32 %v631_v5, %v24_v8  ;;  %v32_v8 = vld [vmem:[%s822_s0 + $0x90] sm:$0xff] }
  0x14   :  { %v141_v37 = vmul.f32 %v637_v25, %v25_v4  ;;  %v658_v7 = vrot.slane %v47_v48, %v498_v10  ;;  %v661_v38 = vrot.slane %v47_v48, %v500_v11  ;;  %v665_v39 = vrot.slane %v586_v53, %v498_v10  ;;  %v28_v10 = vld [vmem:[%s822_s0 + $0x70] sm:$0xff]  ;;  %v34_v4 = vld [vmem:[%s822_s0 + $0xa0] sm:$0xff] }
  0x15   :  { %v445_v40 = vpack.c.bf16 %v285_v30, %v284_v24  ;;  %v286_v41 = vmax.f32 %v254_v31, 0.0  ;;  %v287_v44 = vmax.f32 %v255_v34, 0.0  ;;  %v256_v45 = vadd.f32 %v641_v26, %v140_v35 }
  0x16   :  { %v257_v46 = vadd.f32 %v645_v27, %v141_v37  ;;  %v142_v47 = vmul.f32 %v658_v7, %v26_v36  ;;  %v143_v49 = vmul.f32 %v661_v38, %v27_v6  ;;  %v673_v50 = vrot.slane %v586_v53, %v500_v11  ;;  %v35_v36 = vld [vmem:[%s822_s0 + $0xa8] sm:$0xff] }
  0x17   :  { %409 = vst [vmem:[%s823_s3 + $0x18] sm:$0xff] %v445_v40  ;;  %v446_v54 = vpack.c.bf16 %v287_v44, %v286_v41  ;;  %v288_v55 = vmax.f32 %v256_v45, 0.0  ;;  %v688_v11 = vrot.slane %v47_v48, %v502_v12  ;;  %v691_v56 = vrot.slane %v47_v48, %v504_v13 }
  0x18   :  { %v289_v59 = vmax.f32 %v257_v46, 0.0  ;;  %v258_v60 = vadd.f32 %v665_v39, %v142_v47  ;;  %v259_v0 = vadd.f32 %v673_v50, %v143_v49  ;;  %v700_v1 = vrot.slane %v586_v53, %v502_v12  ;;  %v33_v12 = vld [vmem:[%s822_s0 + $0x98] sm:$0xff]  ;;  %v38_v49 = vld [vmem:[%s822_s0 + $0xc0] sm:$0xff] }
  0x19   :  { %410 = vst [vmem:[%s823_s3 + $0x20] sm:$0xff] %v446_v54  ;;  %v144_v48 = vmul.f32 %v688_v11, %v28_v10  ;;  %v145_v9 = vmul.f32 %v691_v56, %v29_v51  ;;  %v712_v18 = vrot.slane %v586_v53, %v504_v13  ;;  %v146_v19 = vmul.f32 %v507_v14, %v30_v52  ;;  %v39_v10 = vld [vmem:[%s822_s0 + $0xc8] sm:$0xff] }
  0x1a   :  { %v447_v24 = vpack.c.bf16 %v289_v59, %v288_v55  ;;  %v290_v30 = vmax.f32 %v258_v60, 0.0  ;;  %v291_v31 = vmax.f32 %v259_v0, 0.0  ;;  %v147_v34 = vmul.f32 %v510_v15, %v31_v58 }
  0x1b   :  { %v260_v35 = vadd.f32 %v700_v1, %v144_v48  ;;  %v261_v13 = vadd.f32 %v712_v18, %v145_v9  ;;  %v262_v53 = vadd.f32 %v513_v16, %v146_v19  ;;  %v148_v14 = vmul.f32 %v525_v20, %v32_v8  ;;  %v36_v16 = vld [vmem:[%s822_s0 + $0xb0] sm:$0xff]  ;;  %v37_v20 = vld [vmem:[%s822_s0 + $0xb8] sm:$0xff]  ;;  %v42_v8 = vld [vmem:[%s822_s0 + $0xe0] sm:$0xff] }
  0x1c   :  { %411 = vst [vmem:[%s823_s3 + $0x28] sm:$0xff] %v447_v24  ;;  %v448_v6 = vpack.c.bf16 %v291_v31, %v290_v30  ;;  %v263_v37 = vadd.f32 %v516_v17, %v147_v34  ;;  %v149_v15 = vmul.f32 %v528_v21, %v33_v12  ;;  %v150_v40 = vmul.f32 %v545_v28, %v34_v4  ;;  %v44_v4 = vld [vmem:[%s822_s0 + $0xf0] sm:$0xff] }
  0x1d   :  { %v292_v41 = vmax.f32 %v260_v35, 0.0  ;;  %v293_v44 = vmax.f32 %v261_v13, 0.0  ;;  %v294_v45 = vmax.f32 %v262_v53, 0.0  ;;  %v264_v46 = vadd.f32 %v531_v22, %v148_v14 }
  0x1e   :  { %412 = vst [vmem:[%s823_s3 + $0x30] sm:$0xff] %v448_v6  ;;  %v295_v17 = vmax.f32 %v263_v37, 0.0  ;;  %v265_v21 = vadd.f32 %v534_v23, %v149_v15  ;;  %v151_v28 = vmul.f32 %v548_v29, %v35_v36  ;;  %v266_v47 = vadd.f32 %v553_v32, %v150_v40  ;;  %v40_v23 = vld [vmem:[%s822_s0 + $0xd0] sm:$0xff]  ;;  %v41_v29 = vld [vmem:[%s822_s0 + $0xd8] sm:$0xff] }
  0x1f   :  { %v449_v22 = vpack.c.bf16 %v293_v44, %v292_v41  ;;  %v296_v51 = vmax.f32 %v264_v46, 0.0  ;;  %v152_v52 = vmul.f32 %v571_v42, %v36_v16  ;;  %v153_v54 = vmul.f32 %v574_v43, %v37_v20 }
  0x20   :  { %v450_v32 = vpack.c.bf16 %v295_v17, %v294_v45  ;;  %v297_v55 = vmax.f32 %v265_v21, 0.0  ;;  %v267_v58 = vadd.f32 %v556_v33, %v151_v28  ;;  %v298_v59 = vmax.f32 %v266_v47, 0.0 }
  0x21   :  { %413 = vst [vmem:[%s823_s3 + $0x38] sm:$0xff] %v449_v22  ;;  %v268_v42 = vadd.f32 %v589_v57, %v152_v52  ;;  %v269_v43 = vadd.f32 %v598_v61, %v153_v54  ;;  %v154_v60 = vmul.f32 %v601_v62, %v38_v49  ;;  %v155_v0 = vmul.f32 %v604_v63, %v39_v10  ;;  %v43_v61 = vld [vmem:[%s822_s0 + $0xe8] sm:$0xff] }
  0x22   :  { %414 = vst [vmem:[%s823_s3 + $0x40] sm:$0xff] %v450_v32  ;;  %v451_v33 = vpack.c.bf16 %v297_v55, %v296_v51  ;;  %v299_v48 = vmax.f32 %v267_v58, 0.0  ;;  %v156_v9 = vmul.f32 %v631_v5, %v40_v23  ;;  %v157_v57 = vmul.f32 %v637_v25, %v41_v29 }
  0x23   :  { %v300_v62 = vmax.f32 %v268_v42, 0.0  ;;  %v301_v63 = vmax.f32 %v269_v43, 0.0  ;;  %v270_v19 = vadd.f32 %v612_v2, %v154_v60  ;;  %v271_v12 = vadd.f32 %v616_v3, %v155_v0  ;;  %v45_v2 = vld [vmem:[%s822_s0 + $0xf8] sm:$0xff] }
  0x24   :  { %415 = vst [vmem:[%s823_s3 + $0x48] sm:$0xff] %v451_v33  ;;  %v452_v5 = vpack.c.bf16 %v299_v48, %v298_v59  ;;  %v272_v25 = vadd.f32 %v641_v26, %v156_v9  ;;  %v273_v24 = vadd.f32 %v645_v27, %v157_v57  ;;  %v158_v30 = vmul.f32 %v658_v7, %v42_v8 }
  0x25   :  { %v453_v3 = vpack.c.bf16 %v301_v63, %v300_v62  ;;  %v302_v31 = vmax.f32 %v270_v19, 0.0  ;;  %v303_v34 = vmax.f32 %v271_v12, 0.0  ;;  %v159_v35 = vmul.f32 %v661_v38, %v43_v61 }
  0x26   :  { %416 = vst [vmem:[%s823_s3 + $0x50] sm:$0xff] %v452_v5  ;;  %v304_v13 = vmax.f32 %v272_v25, 0.0  ;;  %v305_v53 = vmax.f32 %v273_v24, 0.0  ;;  %v274_v26 = vadd.f32 %v665_v39, %v158_v30  ;;  %v160_v27 = vmul.f32 %v688_v11, %v44_v4 }
  0x27   :  { %417 = vst [vmem:[%s823_s3 + $0x58] sm:$0xff] %v453_v3  ;;  %v454_v7 = vpack.c.bf16 %v303_v34, %v302_v31  ;;  %v275_v14 = vadd.f32 %v673_v50, %v159_v35  ;;  %v161_v36 = vmul.f32 %v691_v56, %v45_v2 }
  0x28   :  { %v455_v38 = vpack.c.bf16 %v305_v53, %v304_v13  ;;  %v306_v6 = vmax.f32 %v274_v26, 0.0  ;;  %v276_v37 = vadd.f32 %v700_v1, %v160_v27 }
  0x29   :  { %418 = vst [vmem:[%s823_s3 + $0x60] sm:$0xff] %v454_v7  ;;  %v307_v39 = vmax.f32 %v275_v14, 0.0  ;;  %v277_v11 = vadd.f32 %v712_v18, %v161_v36 }
  0x2a   :  { %419 = vst [vmem:[%s823_s3 + $0x68] sm:$0xff] %v455_v38  ;;  %v308_v15 = vmax.f32 %v276_v37, 0.0 }
  0x2b   :  { %v456_v40 = vpack.c.bf16 %v307_v39, %v306_v6  ;;  %v309_v50 = vmax.f32 %v277_v11, 0.0 }
  0x2d   :  { %420 = vst [vmem:[%s823_s3 + $0x70] sm:$0xff] %v456_v40  ;;  %v457_v56 = vpack.c.bf16 %v309_v50, %v308_v15 }
  0x2f   :  { %421 = vst [vmem:[%s823_s3 + $0x78] sm:$0xff] %v457_v56 }

// kernel: generater_forward.12
= control target key start
LH: loop header
LB: loop body
LE: loop exit
PB: predicated region body
PF: predicated region fallthrough
CT: control target
= control target key end

     0   :  { %s450_s12 = smov 0   ;;  %s452_s13 = smov 0   ;;  %s493_s0 = inlined_call_operand.vmem [shape: f32[4,16,256], index: 0, kind: input, shape index: {}]   ;;  %s494_s1 = inlined_call_operand.vmem [shape: f32[1,256], index: 1, kind: input, shape index: {}]   ;;  %s495_s2 = inlined_call_operand.vmem [shape: f32[1,256], index: 2, kind: input, shape index: {}]   ;;  %s496_s3 = inlined_call_operand.vmem [shape: bf16[4,16,256], index: 3, kind: output, shape index: {}]  }
   0x1   :  { %s454_s14 = smov 0  }
   0x2 LB: > { %s25_s15 = sadd.s32 1, %s424_s13  ;;  %p369_p0 = scmp.ge.s32.totalorder %s428_s14, 1  ;;  %s428_s14 = sphi %s454_s14, %s13_s14   ;;  %s424_s13 = sphi %s452_s13, %s498_s13   ;;  %s420_s12 = sphi %s450_s12, %s497_s12  }
   0x3   : > { %p27_p1 = scmp.ge.s32.totalorder %s25_s15, 4  ;;  %p159_p2 = scmp.lt.s32.totalorder %s428_s14, 5 }
   0x5   : > { %s500_s15 = smov (%p27_p1, %s25_s15), 0  ;;  %p160_p3 = pnand %p369_p0, %p159_p2 }
   0x6   : > { %p194_p4 = scmp.lt.s32.totalorder (!%p160_p3), %s420_s12, 3  ;;  %v221_v0 = vlaneseq (!%p160_p3)  ;;  %v219_v2 = vld [vmem:[%s494_s1] sm:$0x3] (!%p160_p3) }
   0x7   : > { %163 = sbr.rel (%p160_p3) target bundleno = 28 (0x1c), region = 32  ;;  %v235_v3 = vld [vmem:[%s495_s2] sm:$0x3] (!%p160_p3) }
   0x8   : > { %v222_v1 = vshrl.u32 (!%p160_p3), %v221_v0, 7 }
   0xa   : > { %v223_v4 = vsub.s32 (!%p160_p3), 0, %v222_v1  ;;  %v227_v5 = vsub.s32 (!%p160_p3), 1, %v222_v1 }
   0xc   : > { %v224_v8 = vrot.slane (!%p160_p3), %v219_v2, %v223_v4  ;;  %v228_v9 = vrot.slane (!%p160_p3), %v219_v2, %v227_v5  ;;  %v240_v10 = vrot.slane (!%p160_p3), %v235_v3, %v223_v4  ;;  %v244_v11 = vrot.slane (!%p160_p3), %v235_v3, %v227_v5 }
   0xe   : > { %s502_s12 = smov (!%p194_p4, %s420_s12), 3 }
   0xf   : > { %s378_s20 = sshll.u32 %s502_s12, 5  ;;  %s379_s24 = sshll.u32 %s502_s12, 4 }
  0x10   : > { %s202_s23 = scalar_lea.vmem %s493_s0, %s378_s20  ;;  %s213_s27 = scalar_lea.vmem %s496_s3, %s379_s24 }
  0x11   : > { %v215_v6 = vld [vmem:[%s202_s23] sm:$0xff]  ;;  %v216_v7 = vld [vmem:[%s202_s23 + $0x8] sm:$0xff]  ;;  %v217_v12 = vld [vmem:[%s202_s23 + $0x10] sm:$0xff] }
  0x12   : > { %v218_v13 = vld [vmem:[%s202_s23 + $0x18] sm:$0xff]  ;;  %v231_v14 = vmul.f32 %v224_v8, %v215_v6  ;;  %v232_v15 = vmul.f32 %v228_v9, %v216_v7  ;;  %v233_v16 = vmul.f32 %v224_v8, %v217_v12 }
  0x13   : > { %v234_v17 = vmul.f32 %v228_v9, %v218_v13 }
  0x14   : > { %v247_v18 = vadd.f32 %v240_v10, %v231_v14  ;;  %v248_v19 = vadd.f32 %v244_v11, %v232_v15  ;;  %v249_v20 = vadd.f32 %v240_v10, %v233_v16 }
  0x15   : > { %v250_v21 = vadd.f32 %v244_v11, %v234_v17 }
  0x16   : > { %v251_v22 = vmax.f32 %v247_v18, 0.0  ;;  %v252_v23 = vmax.f32 %v248_v19, 0.0  ;;  %v253_v24 = vmax.f32 %v249_v20, 0.0 }
  0x17   : > { %v254_v25 = vmax.f32 %v250_v21, 0.0 }
  0x18   : > { %v380_v26 = vpack.c.bf16 %v252_v23, %v251_v22 }
  0x19   : > { %v381_v27 = vpack.c.bf16 %v254_v25, %v253_v24 }
  0x1a   : > { %267 = vst [vmem:[%s213_s27] sm:$0xff] %v380_v26 }
  0x1b   : > { %268 = vst [vmem:[%s213_s27 + $0x8] sm:$0xff] %v381_v27 }
  0x1c PF: > { %s13_s14 = sadd.s32 1, %s428_s14   ;;  %s497_s12 = smov %s424_s13 }
  0x1d   : > { %p10_p5 = scmp.ge.s32.totalorder %s13_s14, 6   ;;  %s498_s13 = smov %s500_s15 }
  0x1f   :  { %12 = sbr.rel (!%p10_p5) target bundleno = 2 (0x2), region = 62 }

// kernel: generater_forward.11
= control target key start
LH: loop header
LB: loop body
LE: loop exit
PB: predicated region body
PF: predicated region fallthrough
CT: control target
= control target key end

     0   :  { %s3214_s12 = smov 0   ;;  %s3216_s13 = smov 0   ;;  %s3583_s0 = inlined_call_operand.vmem [shape: bf16[4,16,2048], index: 0, kind: input, shape index: {}]   ;;  %s3584_s1 = inlined_call_operand.vmem [shape: bf16[4,2048,256], index: 1, kind: input, shape index: {}]   ;;  %s3585_s2 = inlined_call_operand.vmem [shape: f32[4,16,256], index: 2, kind: output, shape index: {0}]   ;;  %s3586_s3 = inlined_call_operand.vmem [shape: f32[4,8,256], index: 3, kind: output, shape index: {1}]  }
   0x1   :  { %s3218_s14 = smov 0  }
   0x2 LB: > { %s26_s15 = sadd.s32 1, %s3188_s13  ;;  %p2447_p0 = scmp.ge.s32.totalorder %s3192_s14, 1  ;;  %s3192_s14 = sphi %s3218_s14, %s14_s14   ;;  %s3188_s13 = sphi %s3216_s13, %s3588_s13   ;;  %s3184_s12 = sphi %s3214_s12, %s3587_s12  }
   0x3   : > { %p28_p1 = scmp.ge.s32.totalorder %s26_s15, 4  ;;  %p174_p2 = scmp.lt.s32.totalorder %s3192_s14, 5 }
   0x5   : > { %s3590_s15 = smov (%p28_p1, %s26_s15), 0  ;;  %p175_p3 = pnand %p2447_p0, %p174_p2 }
   0x6   : > { %p223_p4 = scmp.lt.s32.totalorder (!%p175_p3), %s3184_s12, 3  ;;  %vm2274_vm0 = vcmask (!%p175_p3), 1040384   ;;  %vm2277_vm1 = vcmask (!%p175_p3), 1041408  }
   0x7   : > { %178 = sbr.rel (%p175_p3) target bundleno = 511 (0x1ff), region = 28 }
   0xe   : > { %s3592_s12 = smov (!%p223_p4, %s3184_s12), 3 }
   0xf   : > { %s2731_s16 = sshll.u32 %s3592_s12, 11  ;;  %s2730_s20 = sshll.u32 %s3592_s12, 7 }
  0x10   : > { %s3238_s19 = scalar_lea.vmem %s3584_s1, %s2731_s16  ;;  %s3288_s23 = scalar_lea.vmem %s3583_s0, %s2730_s20 }
  0x11   : > { %v2786_v0 = vld [vmem:[%s3238_s19 + $0x4] ss:$8 sps:$4 sm:$0xff]   ;;  %v2790_v2 = vld [vmem:[%s3238_s19] ss:$8 sps:$4 sm:$0xff]   ;;  %v2792_v4 = vld [vmem:[%s3238_s19 + $0x14] ss:$8 sps:$4 sm:$0xff]  }
  0x12   : > { %v2788_v1 = vld [vmem:[%s3238_s19 + $0x404] ss:$8 sps:$4 sm:$0xff]   ;;  %1890 = vmatprep.subr.bf16.mxu1 %v2786_v0  ;;  %v2791_v3 = vld [vmem:[%s3238_s19 + $0x400] ss:$8 sps:$4 sm:$0xff]   ;;  %v2794_v5 = vld [vmem:[%s3238_s19 + $0x414] ss:$8 sps:$4 sm:$0xff]  }
  0x13   : > { %2062 = vmatprep.subr.bf16.mxu0 %v2788_v1  ;;  %1891 = vmatpush1.bf16.msra.mxu1 %v2790_v2  ;;  %v2796_v6 = vld [vmem:[%s3238_s19 + $0x10] ss:$8 sps:$4 sm:$0xff]   ;;  %v2798_v8 = vld [vmem:[%s3238_s19 + $0x24] ss:$8 sps:$4 sm:$0xff]   ;;  %v2802_v10 = vld [vmem:[%s3238_s19 + $0x20] ss:$8 sps:$4 sm:$0xff]  }
  0x14   : > { %2063 = vmatpush1.bf16.msra.mxu0 %v2791_v3  ;;  %1892 = vmatprep.subr.bf16.mxu1 %v2792_v4  ;;  %v2797_v7 = vld [vmem:[%s3238_s19 + $0x410] ss:$8 sps:$4 sm:$0xff]   ;;  %v2800_v9 = vld [vmem:[%s3238_s19 + $0x424] ss:$8 sps:$4 sm:$0xff]   ;;  %v2803_v11 = vld [vmem:[%s3238_s19 + $0x420] ss:$8 sps:$4 sm:$0xff]  }
  0x15   : > { %2064 = vmatprep.subr.bf16.mxu0 %v2794_v5  ;;  %v2804_v12 = vld [vmem:[%s3238_s19 + $0x34] ss:$8 sps:$4 sm:$0xff]   ;;  %v2808_v14 = vld [vmem:[%s3238_s19 + $0x30] ss:$8 sps:$4 sm:$0xff]   ;;  %v2810_v16 = vld [vmem:[%s3238_s19 + $0x44] ss:$8 sps:$4 sm:$0xff]  }
  0x16   : > { %v2806_v13 = vld [vmem:[%s3238_s19 + $0x434] ss:$8 sps:$4 sm:$0xff]   ;;  %v2809_v15 = vld [vmem:[%s3238_s19 + $0x430] ss:$8 sps:$4 sm:$0xff]   ;;  %v2812_v17 = vld [vmem:[%s3238_s19 + $0x444] ss:$8 sps:$4 sm:$0xff]  }
  0x17   : > { %1893 = vmatpush1.bf16.msra.mxu1 %v2796_v6  ;;  %v2814_v18 = vld [vmem:[%s3238_s19 + $0x40] ss:$8 sps:$4 sm:$0xff]   ;;  %v2816_v20 = vld [vmem:[%s3238_s19 + $0x54] ss:$8 sps:$4 sm:$0xff]   ;;  %v2820_v22 = vld [vmem:[%s3238_s19 + $0x50] ss:$8 sps:$4 sm:$0xff]  }
  0x18   : > { %2065 = vmatpush1.bf16.msra.mxu0 %v2797_v7  ;;  %1894 = vmatprep.subr.bf16.mxu1 %v2798_v8  ;;  %v2815_v19 = vld [vmem:[%s3238_s19 + $0x440] ss:$8 sps:$4 sm:$0xff]   ;;  %v2818_v21 = vld [vmem:[%s3238_s19 + $0x454] ss:$8 sps:$4 sm:$0xff]   ;;  %v2821_v23 = vld [vmem:[%s3238_s19 + $0x450] ss:$8 sps:$4 sm:$0xff]  }
  0x19   : > { %2066 = vmatprep.subr.bf16.mxu0 %v2800_v9  ;;  %v2822_v24 = vld [vmem:[%s3238_s19 + $0x64] ss:$8 sps:$4 sm:$0xff]   ;;  %v2826_v26 = vld [vmem:[%s3238_s19 + $0x60] ss:$8 sps:$4 sm:$0xff]   ;;  %v2828_v28 = vld [vmem:[%s3238_s19 + $0x74] ss:$8 sps:$4 sm:$0xff]  }
  0x1a   : > { %v2824_v25 = vld [vmem:[%s3238_s19 + $0x464] ss:$8 sps:$4 sm:$0xff]   ;;  %v2827_v27 = vld [vmem:[%s3238_s19 + $0x460] ss:$8 sps:$4 sm:$0xff]   ;;  %v2830_v29 = vld [vmem:[%s3238_s19 + $0x474] ss:$8 sps:$4 sm:$0xff]  }
  0x1b   : > { %1895 = vmatpush1.bf16.msra.mxu1 %v2802_v10  ;;  %v2832_v30 = vld [vmem:[%s3238_s19 + $0x70] ss:$8 sps:$4 sm:$0xff]   ;;  %v2834_v32 = vld [vmem:[%s3238_s19 + $0x84] ss:$8 sps:$4 sm:$0xff]   ;;  %v2838_v34 = vld [vmem:[%s3238_s19 + $0x80] ss:$8 sps:$4 sm:$0xff]  }
  0x1c   : > { %2067 = vmatpush1.bf16.msra.mxu0 %v2803_v11  ;;  %1896 = vmatprep.subr.bf16.mxu1 %v2804_v12  ;;  %v2833_v31 = vld [vmem:[%s3238_s19 + $0x470] ss:$8 sps:$4 sm:$0xff]   ;;  %v2836_v33 = vld [vmem:[%s3238_s19 + $0x484] ss:$8 sps:$4 sm:$0xff]   ;;  %v2839_v35 = vld [vmem:[%s3238_s19 + $0x480] ss:$8 sps:$4 sm:$0xff]  }
  0x1d   : > { %2068 = vmatprep.subr.bf16.mxu0 %v2806_v13  ;;  %v2840_v36 = vld [vmem:[%s3238_s19 + $0x94] ss:$8 sps:$4 sm:$0xff]   ;;  %v2844_v38 = vld [vmem:[%s3238_s19 + $0x90] ss:$8 sps:$4 sm:$0xff]   ;;  %v2846_v40 = vld [vmem:[%s3238_s19 + $0xa4] ss:$8 sps:$4 sm:$0xff]  }
  0x1e   : > { %v2842_v37 = vld [vmem:[%s3238_s19 + $0x494] ss:$8 sps:$4 sm:$0xff]   ;;  %v2845_v39 = vld [vmem:[%s3238_s19 + $0x490] ss:$8 sps:$4 sm:$0xff]   ;;  %v2848_v41 = vld [vmem:[%s3238_s19 + $0x4a4] ss:$8 sps:$4 sm:$0xff]  }
  0x1f   : > { %1897 = vmatpush1.bf16.msra.mxu1 %v2808_v14  ;;  %v2850_v42 = vld [vmem:[%s3238_s19 + $0xa0] ss:$8 sps:$4 sm:$0xff]   ;;  %v2852_v44 = vld [vmem:[%s3238_s19 + $0xb4] ss:$8 sps:$4 sm:$0xff]   ;;  %v2856_v46 = vld [vmem:[%s3238_s19 + $0xb0] ss:$8 sps:$4 sm:$0xff]  }
  0x20   : > { %2069 = vmatpush1.bf16.msra.mxu0 %v2809_v15  ;;  %1898 = vmatprep.subr.bf16.mxu1 %v2810_v16  ;;  %v2851_v43 = vld [vmem:[%s3238_s19 + $0x4a0] ss:$8 sps:$4 sm:$0xff]   ;;  %v2854_v45 = vld [vmem:[%s3238_s19 + $0x4b4] ss:$8 sps:$4 sm:$0xff]   ;;  %v2857_v47 = vld [vmem:[%s3238_s19 + $0x4b0] ss:$8 sps:$4 sm:$0xff]  }
  0x21   : > { %2070 = vmatprep.subr.bf16.mxu0 %v2812_v17  ;;  %v258_v48 = vld [vmem:[%s3288_s23] sm:$0xff]  ;;  %v2864_v58 = vld [vmem:[%s3238_s19 + $0xd4] ss:$8 sps:$4 sm:$0xff]   ;;  %v2868_v60 = vld [vmem:[%s3238_s19 + $0xd0] ss:$8 sps:$4 sm:$0xff]   ;;  %s2732_s24 = sshll.u32 %s3592_s12, 5 }
  0x22   : > { %v266_v49 = vld [vmem:[%s3288_s23 + $0x40] sm:$0xff]  ;;  %v2866_v59 = vld [vmem:[%s3238_s19 + $0x4d4] ss:$8 sps:$4 sm:$0xff]   ;;  %v2869_v61 = vld [vmem:[%s3238_s19 + $0x4d0] ss:$8 sps:$4 sm:$0xff]   ;;  %s247_s27 = scalar_lea.vmem %s3585_s2, %s2732_s24  ;;  %s2733_s28 = sshll.u32 %s3592_s12, 4 }
  0x23   : > { %1899 = vmatpush1.bf16.msra.mxu1 %v2814_v18  ;;  %v2858_v50 = vld [vmem:[%s3238_s19 + $0xc4] ss:$8 sps:$4 sm:$0xff]   ;;  %v2457_v52 = vcombine.high %v258_v48, %v266_v49  ;;  %v2862_v56 = vld [vmem:[%s3238_s19 + $0xc0] ss:$8 sps:$4 sm:$0xff]   ;;  %v2876_v2 = vld [vmem:[%s3238_s19 + $0xf4] ss:$8 sps:$4 sm:$0xff]   ;;  %v2456_v8 = vcombine.low %v258_v48, %v266_v49  ;;  %s257_s4 = scalar_lea.vmem %s3586_s3, %s2733_s28 }
  0x24   : > { %2071 = vmatpush1.bf16.msra.mxu0 %v2815_v19  ;;  %1900 = vmatprep.subr.bf16.mxu1 %v2816_v20  ;;  %v2860_v51 = vld [vmem:[%s3238_s19 + $0x4c4] ss:$8 sps:$4 sm:$0xff]   ;;  %v2863_v57 = vld [vmem:[%s3238_s19 + $0x4c0] ss:$8 sps:$4 sm:$0xff]   ;;  %v2878_v3 = vld [vmem:[%s3238_s19 + $0x4f4] ss:$8 sps:$4 sm:$0xff]  }
  0x25   : > { %2072 = vmatprep.subr.bf16.mxu0 %v2818_v21  ;;  %v262_v53 = vld [vmem:[%s3288_s23 + $0x20] sm:$0xff]  ;;  %1922 = vmatprep.mubr.bf16.mxu1 %v2457_v52  ;;  %v2880_v4 = vld [vmem:[%s3238_s19 + $0xf0] ss:$8 sps:$4 sm:$0xff]   ;;  %v2890_v12 = vld [vmem:[%s3238_s19 + $0x114] ss:$8 sps:$4 sm:$0xff]  }
  0x26   : > { %v270_v54 = vld [vmem:[%s3288_s23 + $0x60] sm:$0xff]  ;;  %v2881_v5 = vld [vmem:[%s3238_s19 + $0x4f0] ss:$8 sps:$4 sm:$0xff]   ;;  %v2893_v13 = vld [vmem:[%s3238_s19 + $0x514] ss:$8 sps:$4 sm:$0xff]  }
  0x27   : > { %1901 = vmatpush1.bf16.msra.mxu1 %v2820_v22  ;;  %v2465_v55 = vcombine.high %v262_v53, %v270_v54  ;;  %v2870_v62 = vld [vmem:[%s3238_s19 + $0xe4] ss:$8 sps:$4 sm:$0xff]   ;;  %v2874_v0 = vld [vmem:[%s3238_s19 + $0xe0] ss:$8 sps:$4 sm:$0xff]   ;;  %v2464_v10 = vcombine.low %v262_v53, %v270_v54  ;;  %v2888_v14 = vld [vmem:[%s3238_s19 + $0x110] ss:$8 sps:$4 sm:$0xff]  }
  0x28   : > { %2073 = vmatpush1.bf16.msra.mxu0 %v2821_v23  ;;  %1902 = vmatprep.subr.bf16.mxu1 %v2822_v24  ;;  %v2872_v63 = vld [vmem:[%s3238_s19 + $0x4e4] ss:$8 sps:$4 sm:$0xff]   ;;  %v2875_v1 = vld [vmem:[%s3238_s19 + $0x4e0] ss:$8 sps:$4 sm:$0xff]   ;;  %v2891_v15 = vld [vmem:[%s3238_s19 + $0x510] ss:$8 sps:$4 sm:$0xff]  }
  0x29   : > { %2074 = vmatprep.subr.bf16.mxu0 %v2824_v25  ;;  %2094 = vmatprep.mubr.bf16.mxu0 %v2465_v55  ;;  %v2884_v6 = vld [vmem:[%s3238_s19 + $0x104] ss:$8 sps:$4 sm:$0xff]   ;;  %v2882_v9 = vld [vmem:[%s3238_s19 + $0x100] ss:$8 sps:$4 sm:$0xff]   ;;  %v2902_v20 = vld [vmem:[%s3238_s19 + $0x134] ss:$8 sps:$4 sm:$0xff]  }
  0x2a   : > { %v2887_v7 = vld [vmem:[%s3238_s19 + $0x504] ss:$8 sps:$4 sm:$0xff]   ;;  %v2885_v11 = vld [vmem:[%s3238_s19 + $0x500] ss:$8 sps:$4 sm:$0xff]   ;;  %v2905_v21 = vld [vmem:[%s3238_s19 + $0x534] ss:$8 sps:$4 sm:$0xff]  }
  0x2b   : > { %1903 = vmatpush1.bf16.msra.mxu1 %v2826_v26  ;;  %v2896_v16 = vld [vmem:[%s3238_s19 + $0x124] ss:$8 sps:$4 sm:$0xff]   ;;  %v2894_v18 = vld [vmem:[%s3238_s19 + $0x120] ss:$8 sps:$4 sm:$0xff]   ;;  %v2900_v22 = vld [vmem:[%s3238_s19 + $0x130] ss:$8 sps:$4 sm:$0xff]  }
  0x2c   : > { %2075 = vmatpush1.bf16.msra.mxu0 %v2827_v27  ;;  %1904 = vmatprep.subr.bf16.mxu1 %v2828_v28  ;;  %v2899_v17 = vld [vmem:[%s3238_s19 + $0x524] ss:$8 sps:$4 sm:$0xff]   ;;  %v2897_v19 = vld [vmem:[%s3238_s19 + $0x520] ss:$8 sps:$4 sm:$0xff]   ;;  %v2903_v23 = vld [vmem:[%s3238_s19 + $0x530] ss:$8 sps:$4 sm:$0xff]  }
  0x2d   : > { %2076 = vmatprep.subr.bf16.mxu0 %v2830_v29  ;;  %v2908_v24 = vld [vmem:[%s3238_s19 + $0x144] ss:$8 sps:$4 sm:$0xff]   ;;  %v2906_v26 = vld [vmem:[%s3238_s19 + $0x140] ss:$8 sps:$4 sm:$0xff]   ;;  %v2914_v28 = vld [vmem:[%s3238_s19 + $0x154] ss:$8 sps:$4 sm:$0xff]  }
  0x2e   : > { %v2911_v25 = vld [vmem:[%s3238_s19 + $0x544] ss:$8 sps:$4 sm:$0xff]   ;;  %v2909_v27 = vld [vmem:[%s3238_s19 + $0x540] ss:$8 sps:$4 sm:$0xff]   ;;  %v2917_v29 = vld [vmem:[%s3238_s19 + $0x554] ss:$8 sps:$4 sm:$0xff]  }
  0x2f   : > { %1905 = vmatpush1.bf16.msra.mxu1 %v2832_v30  ;;  %v2912_v30 = vld [vmem:[%s3238_s19 + $0x150] ss:$8 sps:$4 sm:$0xff]   ;;  %v2930_v48 = vld [vmem:[%s3238_s19 + $0x180] ss:$8 sps:$4 sm:$0xff]   ;;  %v2944_v54 = vld [vmem:[%s3238_s19 + $0x1a4] ss:$8 sps:$4 sm:$0xff]  }
  0x30   : > { %2077 = vmatpush1.bf16.msra.mxu0 %v2833_v31  ;;  %1906 = vmatprep.subr.bf16.mxu1 %v2834_v32  ;;  %v2915_v31 = vld [vmem:[%s3238_s19 + $0x550] ss:$8 sps:$4 sm:$0xff]   ;;  %v2920_v32 = vld [vmem:[%s3238_s19 + $0x164] ss:$8 sps:$4 sm:$0xff]   ;;  %v2933_v49 = vld [vmem:[%s3238_s19 + $0x580] ss:$8 sps:$4 sm:$0xff]  }
  0x31   : > { %2078 = vmatprep.subr.bf16.mxu0 %v2836_v33  ;;  %v2923_v33 = vld [vmem:[%s3238_s19 + $0x564] ss:$8 sps:$4 sm:$0xff]   ;;  %v2936_v52 = vld [vmem:[%s3238_s19 + $0x190] ss:$8 sps:$4 sm:$0xff]  }
  0x32   : > { %v2939_v53 = vld [vmem:[%s3238_s19 + $0x590] ss:$8 sps:$4 sm:$0xff]   ;;  %v2947_v55 = vld [vmem:[%s3238_s19 + $0x5a4] ss:$8 sps:$4 sm:$0xff]  }
  0x33   : > { %1907 = vmatpush1.bf16.msra.mxu1 %v2838_v34  ;;  %v2918_v34 = vld [vmem:[%s3238_s19 + $0x160] ss:$8 sps:$4 sm:$0xff]  }
  0x34   : > { %2079 = vmatpush1.bf16.msra.mxu0 %v2839_v35  ;;  %1908 = vmatprep.subr.bf16.mxu1 %v2840_v36  ;;  %v2921_v35 = vld [vmem:[%s3238_s19 + $0x560] ss:$8 sps:$4 sm:$0xff]  }
  0x35   : > { %2080 = vmatprep.subr.bf16.mxu0 %v2842_v37  ;;  %v3343_v36 = vld [vmem:[%s3288_s23 + $0x8] sm:$0xff] }
  0x36   : > { %v3346_v37 = vld [vmem:[%s3288_s23 + $0x48] sm:$0xff] }
  0x37   : > { %1909 = vmatpush1.bf16.msra.mxu1 %v2844_v38  ;;  %v2926_v38 = vld [vmem:[%s3238_s19 + $0x174] ss:$8 sps:$4 sm:$0xff]  }
  0x38   : > { %2081 = vmatpush1.bf16.msra.mxu0 %v2845_v39  ;;  %1910 = vmatprep.subr.bf16.mxu1 %v2846_v40  ;;  %v2929_v39 = vld [vmem:[%s3238_s19 + $0x574] ss:$8 sps:$4 sm:$0xff]   ;;  %v2459_v40 = vcombine.high %v3343_v36, %v3346_v37 }
  0x39   : > { %2082 = vmatprep.subr.bf16.mxu0 %v2848_v41  ;;  %v3353_v41 = vld [vmem:[%s3288_s23 + $0x28] sm:$0xff] }
  0x3b   : > { %1911 = vmatpush1.bf16.msra.mxu1 %v2850_v42  ;;  %v3356_v42 = vld [vmem:[%s3288_s23 + $0x68] sm:$0xff] }
  0x3c   : > { %2083 = vmatpush1.bf16.msra.mxu0 %v2851_v43  ;;  %1912 = vmatprep.subr.bf16.mxu1 %v2852_v44  ;;  %v2467_v43 = vcombine.high %v3353_v41, %v3356_v42  ;;  %v2924_v44 = vld [vmem:[%s3238_s19 + $0x170] ss:$8 sps:$4 sm:$0xff]  }
  0x3d   : > { %2084 = vmatprep.subr.bf16.mxu0 %v2854_v45  ;;  %v2927_v45 = vld [vmem:[%s3238_s19 + $0x570] ss:$8 sps:$4 sm:$0xff]  }
  0x3f   : > { %1913 = vmatpush1.bf16.msra.mxu1 %v2856_v46  ;;  %v2932_v46 = vld [vmem:[%s3238_s19 + $0x184] ss:$8 sps:$4 sm:$0xff]  }
  0x40   : > { %2085 = vmatpush1.bf16.msra.mxu0 %v2857_v47  ;;  %1914 = vmatprep.subr.bf16.mxu1 %v2858_v50  ;;  %v2935_v47 = vld [vmem:[%s3238_s19 + $0x584] ss:$8 sps:$4 sm:$0xff]   ;;  %v2938_v50 = vld [vmem:[%s3238_s19 + $0x194] ss:$8 sps:$4 sm:$0xff]  }
  0x41   : > { %2086 = vmatprep.subr.bf16.mxu0 %v2860_v51  ;;  %v2941_v51 = vld [vmem:[%s3238_s19 + $0x594] ss:$8 sps:$4 sm:$0xff]  }
  0x43   : > { %1915 = vmatpush1.bf16.msra.mxu1 %v2862_v56  ;;  %v2942_v56 = vld [vmem:[%s3238_s19 + $0x1a0] ss:$8 sps:$4 sm:$0xff]  }
  0x44   : > { %2087 = vmatpush1.bf16.msra.mxu0 %v2863_v57  ;;  %1916 = vmatprep.subr.bf16.mxu1 %v2864_v58  ;;  %v2945_v57 = vld [vmem:[%s3238_s19 + $0x5a0] ss:$8 sps:$4 sm:$0xff]   ;;  %v2950_v58 = vld [vmem:[%s3238_s19 + $0x1b4] ss:$8 sps:$4 sm:$0xff]  }
  0x45   : > { %2088 = vmatprep.subr.bf16.mxu0 %v2866_v59  ;;  %v2953_v59 = vld [vmem:[%s3238_s19 + $0x5b4] ss:$8 sps:$4 sm:$0xff]  }
  0x47   : > { %1917 = vmatpush1.bf16.msra.mxu1 %v2868_v60  ;;  %v2948_v60 = vld [vmem:[%s3238_s19 + $0x1b0] ss:$8 sps:$4 sm:$0xff]  }
  0x48   : > { %2089 = vmatpush1.bf16.msra.mxu0 %v2869_v61  ;;  %1918 = vmatprep.subr.bf16.mxu1 %v2870_v62  ;;  %v2951_v61 = vld [vmem:[%s3238_s19 + $0x5b0] ss:$8 sps:$4 sm:$0xff]   ;;  %v2956_v62 = vld [vmem:[%s3238_s19 + $0x1c4] ss:$8 sps:$4 sm:$0xff]  }
  0x49   : > { %2090 = vmatprep.subr.bf16.mxu0 %v2872_v63  ;;  %v2959_v63 = vld [vmem:[%s3238_s19 + $0x5c4] ss:$8 sps:$4 sm:$0xff]  }
  0x4b   : > { %1919 = vmatpush1.bf16.msra.mxu1 %v2874_v0  ;;  %v2954_v0 = vld [vmem:[%s3238_s19 + $0x1c0] ss:$8 sps:$4 sm:$0xff]  }
  0x4c   : > { %2091 = vmatpush1.bf16.msra.mxu0 %v2875_v1  ;;  %1920 = vmatprep.subr.bf16.mxu1 %v2876_v2  ;;  %v2957_v1 = vld [vmem:[%s3238_s19 + $0x5c0] ss:$8 sps:$4 sm:$0xff]   ;;  %v2962_v2 = vld [vmem:[%s3238_s19 + $0x1d4] ss:$8 sps:$4 sm:$0xff]  }
  0x4d   : > { %2092 = vmatprep.subr.bf16.mxu0 %v2878_v3  ;;  %v2965_v3 = vld [vmem:[%s3238_s19 + $0x5d4] ss:$8 sps:$4 sm:$0xff]  }
  0x4f   : > { %1921 = vmatpush1.bf16.msra.mxu1 %v2880_v4  ;;  %v2960_v4 = vld [vmem:[%s3238_s19 + $0x1d0] ss:$8 sps:$4 sm:$0xff]  }
  0x50   : > { %2093 = vmatpush1.bf16.msra.mxu0 %v2881_v5  ;;  %1933 = vmatprep.subr.bf16.mxu1 %v2884_v6  ;;  %v2963_v5 = vld [vmem:[%s3238_s19 + $0x5d0] ss:$8 sps:$4 sm:$0xff]   ;;  %v2968_v6 = vld [vmem:[%s3238_s19 + $0x1e4] ss:$8 sps:$4 sm:$0xff]  }
  0x51   : > { %2105 = vmatprep.subr.bf16.mxu0 %v2887_v7  ;;  %v2971_v7 = vld [vmem:[%s3238_s19 + $0x5e4] ss:$8 sps:$4 sm:$0xff]  }
  0x52   : > { %1923 = vmatmul.mubr.bf16.vlgmr.msra.gmra.mrb[0].mxu1 %v2456_v8  ;;  %v2966_v8 = vld [vmem:[%s3238_s19 + $0x1e0] ss:$8 sps:$4 sm:$0xff]  }
  0x53   : > { %2095 = vmatmul.mubr.bf16.vlgmr.msra.gmra.mrb[0].mxu0 %v2464_v10  ;;  %1934 = vmatpush1.bf16.msra.mxu1 %v2882_v9  ;;  %v2969_v9 = vld [vmem:[%s3238_s19 + $0x5e0] ss:$8 sps:$4 sm:$0xff]   ;;  %v2974_v10 = vld [vmem:[%s3238_s19 + $0x1f4] ss:$8 sps:$4 sm:$0xff]  }
  0x54   : > { %2106 = vmatpush1.bf16.msra.mxu0 %v2885_v11  ;;  %1935 = vmatprep.subr.bf16.mxu1 %v2890_v12  ;;  %v2977_v11 = vld [vmem:[%s3238_s19 + $0x5f4] ss:$8 sps:$4 sm:$0xff]   ;;  %v2972_v12 = vld [vmem:[%s3238_s19 + $0x1f0] ss:$8 sps:$4 sm:$0xff]  }
  0x55   : > { %2107 = vmatprep.subr.bf16.mxu0 %v2893_v13  ;;  %1965 = vmatprep.mubr.bf16.mxu1 %v2459_v40  ;;  %v2975_v13 = vld [vmem:[%s3238_s19 + $0x5f0] ss:$8 sps:$4 sm:$0xff]   ;;  %v3002_v40 = vld [vmem:[%s3238_s19 + $0x240] ss:$8 sps:$4 sm:$0xff]  }
  0x56   : > { %2137 = vmatprep.mubr.bf16.mxu0 %v2467_v43  ;;  %v3013_v43 = vld [vmem:[%s3238_s19 + $0x654] ss:$8 sps:$4 sm:$0xff]  }
  0x57   : > { %1936 = vmatpush1.bf16.msra.mxu1 %v2888_v14  ;;  %v2980_v14 = vld [vmem:[%s3238_s19 + $0x204] ss:$8 sps:$4 sm:$0xff]  }
  0x58   : > { %2108 = vmatpush1.bf16.msra.mxu0 %v2891_v15  ;;  %1937 = vmatprep.subr.bf16.mxu1 %v2896_v16  ;;  %v2983_v15 = vld [vmem:[%s3238_s19 + $0x604] ss:$8 sps:$4 sm:$0xff]   ;;  %v2458_v16 = vcombine.low %v3343_v36, %v3346_v37  ;;  %v2996_v36 = vld [vmem:[%s3238_s19 + $0x230] ss:$8 sps:$4 sm:$0xff]  }
  0x59   : > { %2109 = vmatprep.subr.bf16.mxu0 %v2899_v17  ;;  %v2978_v17 = vld [vmem:[%s3238_s19 + $0x200] ss:$8 sps:$4 sm:$0xff]   ;;  %v2999_v37 = vld [vmem:[%s3238_s19 + $0x630] ss:$8 sps:$4 sm:$0xff]  }
  0x5b   : > { %1938 = vmatpush1.bf16.msra.mxu1 %v2894_v18  ;;  %v2466_v18 = vcombine.low %v3353_v41, %v3356_v42  ;;  %v3005_v41 = vld [vmem:[%s3238_s19 + $0x640] ss:$8 sps:$4 sm:$0xff]   ;;  %v3010_v42 = vld [vmem:[%s3238_s19 + $0x254] ss:$8 sps:$4 sm:$0xff]  }
  0x5c   : > { %2110 = vmatpush1.bf16.msra.mxu0 %v2897_v19  ;;  %1939 = vmatprep.subr.bf16.mxu1 %v2902_v20  ;;  %v2981_v19 = vld [vmem:[%s3238_s19 + $0x600] ss:$8 sps:$4 sm:$0xff]   ;;  %v2986_v20 = vld [vmem:[%s3238_s19 + $0x214] ss:$8 sps:$4 sm:$0xff]  }
  0x5d   : > { %2111 = vmatprep.subr.bf16.mxu0 %v2905_v21  ;;  %v2989_v21 = vld [vmem:[%s3238_s19 + $0x614] ss:$8 sps:$4 sm:$0xff]  }
  0x5f   : > { %1940 = vmatpush1.bf16.msra.mxu1 %v2900_v22  ;;  %v2984_v22 = vld [vmem:[%s3238_s19 + $0x210] ss:$8 sps:$4 sm:$0xff]  }
  0x60   : > { %2112 = vmatpush1.bf16.msra.mxu0 %v2903_v23  ;;  %1941 = vmatprep.subr.bf16.mxu1 %v2908_v24  ;;  %v2987_v23 = vld [vmem:[%s3238_s19 + $0x610] ss:$8 sps:$4 sm:$0xff]  }
  0x61   : > { %2113 = vmatprep.subr.bf16.mxu0 %v2911_v25  ;;  %v3407_v24 = vld [vmem:[%s3288_s23 + $0x10] sm:$0xff] }
  0x62   : > { %v3410_v25 = vld [vmem:[%s3288_s23 + $0x50] sm:$0xff] }
  0x63   : > { %1942 = vmatpush1.bf16.msra.mxu1 %v2906_v26  ;;  %v2992_v26 = vld [vmem:[%s3238_s19 + $0x224] ss:$8 sps:$4 sm:$0xff]  }
  0x64   : > { %2114 = vmatpush1.bf16.msra.mxu0 %v2909_v27  ;;  %1943 = vmatprep.subr.bf16.mxu1 %v2914_v28  ;;  %v2995_v27 = vld [vmem:[%s3238_s19 + $0x624] ss:$8 sps:$4 sm:$0xff]   ;;  %v2461_v28 = vcombine.high %v3407_v24, %v3410_v25 }
  0x65   : > { %2115 = vmatprep.subr.bf16.mxu0 %v2917_v29  ;;  %v3417_v29 = vld [vmem:[%s3288_s23 + $0x30] sm:$0xff] }
  0x67   : > { %1944 = vmatpush1.bf16.msra.mxu1 %v2912_v30  ;;  %v3420_v30 = vld [vmem:[%s3288_s23 + $0x70] sm:$0xff] }
  0x68   : > { %2116 = vmatpush1.bf16.msra.mxu0 %v2915_v31  ;;  %1945 = vmatprep.subr.bf16.mxu1 %v2920_v32  ;;  %v2469_v31 = vcombine.high %v3417_v29, %v3420_v30  ;;  %v2990_v32 = vld [vmem:[%s3238_s19 + $0x220] ss:$8 sps:$4 sm:$0xff]  }
  0x69   : > { %2117 = vmatprep.subr.bf16.mxu0 %v2923_v33  ;;  %v2993_v33 = vld [vmem:[%s3238_s19 + $0x620] ss:$8 sps:$4 sm:$0xff]  }
  0x6b   : > { %1946 = vmatpush1.bf16.msra.mxu1 %v2918_v34  ;;  %v2998_v34 = vld [vmem:[%s3238_s19 + $0x234] ss:$8 sps:$4 sm:$0xff]  }
  0x6c   : > { %2118 = vmatpush1.bf16.msra.mxu0 %v2921_v35  ;;  %1947 = vmatprep.subr.bf16.mxu1 %v2926_v38  ;;  %v3001_v35 = vld [vmem:[%s3238_s19 + $0x634] ss:$8 sps:$4 sm:$0xff]   ;;  %v3004_v38 = vld [vmem:[%s3238_s19 + $0x244] ss:$8 sps:$4 sm:$0xff]  }
  0x6d   : > { %2119 = vmatprep.subr.bf16.mxu0 %v2929_v39  ;;  %v3007_v39 = vld [vmem:[%s3238_s19 + $0x644] ss:$8 sps:$4 sm:$0xff]  }
  0x6f   : > { %1948 = vmatpush1.bf16.msra.mxu1 %v2924_v44  ;;  %v3008_v44 = vld [vmem:[%s3238_s19 + $0x250] ss:$8 sps:$4 sm:$0xff]  }
  0x70   : > { %2120 = vmatpush1.bf16.msra.mxu0 %v2927_v45  ;;  %1949 = vmatprep.subr.bf16.mxu1 %v2932_v46  ;;  %v3011_v45 = vld [vmem:[%s3238_s19 + $0x650] ss:$8 sps:$4 sm:$0xff]   ;;  %v3016_v46 = vld [vmem:[%s3238_s19 + $0x264] ss:$8 sps:$4 sm:$0xff]  }
  0x71   : > { %2121 = vmatprep.subr.bf16.mxu0 %v2935_v47  ;;  %v3019_v47 = vld [vmem:[%s3238_s19 + $0x664] ss:$8 sps:$4 sm:$0xff]  }
  0x73   : > { %1950 = vmatpush1.bf16.msra.mxu1 %v2930_v48  ;;  %v3014_v48 = vld [vmem:[%s3238_s19 + $0x260] ss:$8 sps:$4 sm:$0xff]  }
  0x74   : > { %2122 = vmatpush1.bf16.msra.mxu0 %v2933_v49  ;;  %1951 = vmatprep.subr.bf16.mxu1 %v2938_v50  ;;  %v3017_v49 = vld [vmem:[%s3238_s19 + $0x660] ss:$8 sps:$4 sm:$0xff]   ;;  %v3022_v50 = vld [vmem:[%s3238_s19 + $0x274] ss:$8 sps:$4 sm:$0xff]  }
  0x75   : > { %2123 = vmatprep.subr.bf16.mxu0 %v2941_v51  ;;  %v3025_v51 = vld [vmem:[%s3238_s19 + $0x674] ss:$8 sps:$4 sm:$0xff]  }
  0x77   : > { %1952 = vmatpush1.bf16.msra.mxu1 %v2936_v52  ;;  %v3020_v52 = vld [vmem:[%s3238_s19 + $0x270] ss:$8 sps:$4 sm:$0xff]  }
  0x78   : > { %2124 = vmatpush1.bf16.msra.mxu0 %v2939_v53  ;;  %1953 = vmatprep.subr.bf16.mxu1 %v2944_v54  ;;  %v3023_v53 = vld [vmem:[%s3238_s19 + $0x670] ss:$8 sps:$4 sm:$0xff]   ;;  %v3028_v54 = vld [vmem:[%s3238_s19 + $0x284] ss:$8 sps:$4 sm:$0xff]  }
  0x79   : > { %2125 = vmatprep.subr.bf16.mxu0 %v2947_v55  ;;  %v3031_v55 = vld [vmem:[%s3238_s19 + $0x684] ss:$8 sps:$4 sm:$0xff]  }
  0x7b   : > { %1954 = vmatpush1.bf16.msra.mxu1 %v2942_v56  ;;  %v3026_v56 = vld [vmem:[%s3238_s19 + $0x280] ss:$8 sps:$4 sm:$0xff]  }
  0x7c   : > { %2126 = vmatpush1.bf16.msra.mxu0 %v2945_v57  ;;  %1955 = vmatprep.subr.bf16.mxu1 %v2950_v58  ;;  %v3029_v57 = vld [vmem:[%s3238_s19 + $0x680] ss:$8 sps:$4 sm:$0xff]   ;;  %v3034_v58 = vld [vmem:[%s3238_s19 + $0x294] ss:$8 sps:$4 sm:$0xff]  }
  0x7d   : > { %2127 = vmatprep.subr.bf16.mxu0 %v2953_v59  ;;  %v3037_v59 = vld [vmem:[%s3238_s19 + $0x694] ss:$8 sps:$4 sm:$0xff]  }
  0x7f   : > { %1956 = vmatpush1.bf16.msra.mxu1 %v2948_v60  ;;  %v3032_v60 = vld [vmem:[%s3238_s19 + $0x290] ss:$8 sps:$4 sm:$0xff]  }
  0x80   : > { %2128 = vmatpush1.bf16.msra.mxu0 %v2951_v61  ;;  %1957 = vmatprep.subr.bf16.mxu1 %v2956_v62  ;;  %v3035_v61 = vld [vmem:[%s3238_s19 + $0x690] ss:$8 sps:$4 sm:$0xff]   ;;  %v3040_v62 = vld [vmem:[%s3238_s19 + $0x2a4] ss:$8 sps:$4 sm:$0xff]  }
  0x81   : > { %2129 = vmatprep.subr.bf16.mxu0 %v2959_v63  ;;  %v3043_v63 = vld [vmem:[%s3238_s19 + $0x6a4] ss:$8 sps:$4 sm:$0xff]  }
  0x83   : > { %1958 = vmatpush1.bf16.msra.mxu1 %v2954_v0  ;;  %v3038_v0 = vld [vmem:[%s3238_s19 + $0x2a0] ss:$8 sps:$4 sm:$0xff]  }
  0x84   : > { %2130 = vmatpush1.bf16.msra.mxu0 %v2957_v1  ;;  %1959 = vmatprep.subr.bf16.mxu1 %v2962_v2  ;;  %v3041_v1 = vld [vmem:[%s3238_s19 + $0x6a0] ss:$8 sps:$4 sm:$0xff]   ;;  %v3046_v2 = vld [vmem:[%s3238_s19 + $0x2b4] ss:$8 sps:$4 sm:$0xff]  }
  0x85   : > { %2131 = vmatprep.subr.bf16.mxu0 %v2965_v3  ;;  %v3049_v3 = vld [vmem:[%s3238_s19 + $0x6b4] ss:$8 sps:$4 sm:$0xff]  }
  0x87   : > { %1960 = vmatpush1.bf16.msra.mxu1 %v2960_v4  ;;  %v3044_v4 = vld [vmem:[%s3238_s19 + $0x2b0] ss:$8 sps:$4 sm:$0xff]  }
  0x88   : > { %2132 = vmatpush1.bf16.msra.mxu0 %v2963_v5  ;;  %1961 = vmatprep.subr.bf16.mxu1 %v2968_v6  ;;  %v3047_v5 = vld [vmem:[%s3238_s19 + $0x6b0] ss:$8 sps:$4 sm:$0xff]   ;;  %v3052_v6 = vld [vmem:[%s3238_s19 + $0x2c4] ss:$8 sps:$4 sm:$0xff]  }
  0x89   : > { %2133 = vmatprep.subr.bf16.mxu0 %v2971_v7  ;;  %v3055_v7 = vld [vmem:[%s3238_s19 + $0x6c4] ss:$8 sps:$4 sm:$0xff]  }
  0x8b   : > { %1962 = vmatpush1.bf16.msra.mxu1 %v2966_v8  ;;  %v3050_v8 = vld [vmem:[%s3238_s19 + $0x2c0] ss:$8 sps:$4 sm:$0xff]  }
  0x8c   : > { %2134 = vmatpush1.bf16.msra.mxu0 %v2969_v9  ;;  %1963 = vmatprep.subr.bf16.mxu1 %v2974_v10  ;;  %v3053_v9 = vld [vmem:[%s3238_s19 + $0x6c0] ss:$8 sps:$4 sm:$0xff]   ;;  %v3058_v10 = vld [vmem:[%s3238_s19 + $0x2d4] ss:$8 sps:$4 sm:$0xff]  }
  0x8d   : > { %2135 = vmatprep.subr.bf16.mxu0 %v2977_v11  ;;  %v3061_v11 = vld [vmem:[%s3238_s19 + $0x6d4] ss:$8 sps:$4 sm:$0xff]  }
  0x8f   : > { %1964 = vmatpush1.bf16.msra.mxu1 %v2972_v12  ;;  %v3056_v12 = vld [vmem:[%s3238_s19 + $0x2d0] ss:$8 sps:$4 sm:$0xff]  }
  0x90   : > { %2136 = vmatpush1.bf16.msra.mxu0 %v2975_v13  ;;  %1976 = vmatprep.subr.bf16.mxu1 %v2980_v14  ;;  %v3059_v13 = vld [vmem:[%s3238_s19 + $0x6d0] ss:$8 sps:$4 sm:$0xff]   ;;  %v3064_v14 = vld [vmem:[%s3238_s19 + $0x2e4] ss:$8 sps:$4 sm:$0xff]  }
  0x91   : > { %2148 = vmatprep.subr.bf16.mxu0 %v2983_v15  ;;  %v3067_v15 = vld [vmem:[%s3238_s19 + $0x6e4] ss:$8 sps:$4 sm:$0xff]  }
  0x92   : > { %1966 = vmatmul.mubr.bf16.vlgmr.msra.gmra.mrb[0].mxu1 %v2458_v16  ;;  %v3062_v16 = vld [vmem:[%s3238_s19 + $0x2e0] ss:$8 sps:$4 sm:$0xff]  }
  0x93   : > { %2138 = vmatmul.mubr.bf16.vlgmr.msra.gmra.mrb[0].mxu0 %v2466_v18  ;;  %1977 = vmatpush1.bf16.msra.mxu1 %v2978_v17  ;;  %v3065_v17 = vld [vmem:[%s3238_s19 + $0x6e0] ss:$8 sps:$4 sm:$0xff]   ;;  %v3070_v18 = vld [vmem:[%s3238_s19 + $0x2f4] ss:$8 sps:$4 sm:$0xff]  }
  0x94   : > { %2149 = vmatpush1.bf16.msra.mxu0 %v2981_v19  ;;  %1978 = vmatprep.subr.bf16.mxu1 %v2986_v20  ;;  %v3073_v19 = vld [vmem:[%s3238_s19 + $0x6f4] ss:$8 sps:$4 sm:$0xff]   ;;  %v3068_v20 = vld [vmem:[%s3238_s19 + $0x2f0] ss:$8 sps:$4 sm:$0xff]  }
  0x95   : > { %2150 = vmatprep.subr.bf16.mxu0 %v2989_v21  ;;  %2008 = vmatprep.mubr.bf16.mxu1 %v2461_v28  ;;  %v3071_v21 = vld [vmem:[%s3238_s19 + $0x6f0] ss:$8 sps:$4 sm:$0xff]   ;;  %v2468_v28 = vcombine.low %v3417_v29, %v3420_v30 }
  0x96   : > { %2180 = vmatprep.mubr.bf16.mxu0 %v2469_v31  ;;  %v3488_v31 = vld [vmem:[%s3288_s23 + $0x58] sm:$0xff] }
  0x97   : > { %1979 = vmatpush1.bf16.msra.mxu1 %v2984_v22  ;;  %v3076_v22 = vld [vmem:[%s3238_s19 + $0x304] ss:$8 sps:$4 sm:$0xff]  }
  0x98   : > { %2151 = vmatpush1.bf16.msra.mxu0 %v2987_v23  ;;  %1980 = vmatprep.subr.bf16.mxu1 %v2992_v26  ;;  %v3079_v23 = vld [vmem:[%s3238_s19 + $0x704] ss:$8 sps:$4 sm:$0xff]   ;;  %v3481_v26 = vld [vmem:[%s3288_s23 + $0x18] sm:$0xff] }
  0x99   : > { %2152 = vmatprep.subr.bf16.mxu0 %v2995_v27  ;;  %v2460_v27 = vcombine.low %v3407_v24, %v3410_v25  ;;  %v3082_v24 = vld [vmem:[%s3238_s19 + $0x314] ss:$8 sps:$4 sm:$0xff]   ;;  %v2463_v29 = vcombine.high %v3481_v26, %v3488_v31 }
  0x9a   : > { %v3085_v25 = vld [vmem:[%s3238_s19 + $0x714] ss:$8 sps:$4 sm:$0xff]  }
  0x9b   : > { %1981 = vmatpush1.bf16.msra.mxu1 %v2990_v32  ;;  %v3491_v32 = vld [vmem:[%s3288_s23 + $0x38] sm:$0xff] }
  0x9c   : > { %2153 = vmatpush1.bf16.msra.mxu0 %v2993_v33  ;;  %1982 = vmatprep.subr.bf16.mxu1 %v2998_v34  ;;  %v3494_v33 = vld [vmem:[%s3288_s23 + $0x78] sm:$0xff]  ;;  %v3074_v34 = vld [vmem:[%s3238_s19 + $0x300] ss:$8 sps:$4 sm:$0xff]  }
  0x9d   : > { %2154 = vmatprep.subr.bf16.mxu0 %v3001_v35  ;;  %v3077_v35 = vld [vmem:[%s3238_s19 + $0x700] ss:$8 sps:$4 sm:$0xff]   ;;  %v2471_v30 = vcombine.high %v3491_v32, %v3494_v33 }
  0x9f   : > { %1983 = vmatpush1.bf16.msra.mxu1 %v2996_v36  ;;  %v3080_v36 = vld [vmem:[%s3238_s19 + $0x310] ss:$8 sps:$4 sm:$0xff]  }
  0xa0   : > { %2155 = vmatpush1.bf16.msra.mxu0 %v2999_v37  ;;  %1984 = vmatprep.subr.bf16.mxu1 %v3004_v38  ;;  %v3083_v37 = vld [vmem:[%s3238_s19 + $0x710] ss:$8 sps:$4 sm:$0xff]   ;;  %v3088_v38 = vld [vmem:[%s3238_s19 + $0x324] ss:$8 sps:$4 sm:$0xff]  }
  0xa1   : > { %2156 = vmatprep.subr.bf16.mxu0 %v3007_v39  ;;  %v3091_v39 = vld [vmem:[%s3238_s19 + $0x724] ss:$8 sps:$4 sm:$0xff]  }
  0xa3   : > { %1985 = vmatpush1.bf16.msra.mxu1 %v3002_v40  ;;  %v3086_v40 = vld [vmem:[%s3238_s19 + $0x320] ss:$8 sps:$4 sm:$0xff]  }
  0xa4   : > { %2157 = vmatpush1.bf16.msra.mxu0 %v3005_v41  ;;  %1986 = vmatprep.subr.bf16.mxu1 %v3010_v42  ;;  %v3089_v41 = vld [vmem:[%s3238_s19 + $0x720] ss:$8 sps:$4 sm:$0xff]   ;;  %v3094_v42 = vld [vmem:[%s3238_s19 + $0x334] ss:$8 sps:$4 sm:$0xff]  }
  0xa5   : > { %2158 = vmatprep.subr.bf16.mxu0 %v3013_v43  ;;  %v3097_v43 = vld [vmem:[%s3238_s19 + $0x734] ss:$8 sps:$4 sm:$0xff]  }
  0xa7   : > { %1987 = vmatpush1.bf16.msra.mxu1 %v3008_v44  ;;  %v3092_v44 = vld [vmem:[%s3238_s19 + $0x330] ss:$8 sps:$4 sm:$0xff]  }
  0xa8   : > { %2159 = vmatpush1.bf16.msra.mxu0 %v3011_v45  ;;  %1988 = vmatprep.subr.bf16.mxu1 %v3016_v46  ;;  %v3095_v45 = vld [vmem:[%s3238_s19 + $0x730] ss:$8 sps:$4 sm:$0xff]   ;;  %v3100_v46 = vld [vmem:[%s3238_s19 + $0x344] ss:$8 sps:$4 sm:$0xff]  }
  0xa9   : > { %2160 = vmatprep.subr.bf16.mxu0 %v3019_v47  ;;  %v3103_v47 = vld [vmem:[%s3238_s19 + $0x744] ss:$8 sps:$4 sm:$0xff]  }
  0xab   : > { %1989 = vmatpush1.bf16.msra.mxu1 %v3014_v48  ;;  %v3098_v48 = vld [vmem:[%s3238_s19 + $0x340] ss:$8 sps:$4 sm:$0xff]  }
  0xac   : > { %2161 = vmatpush1.bf16.msra.mxu0 %v3017_v49  ;;  %1990 = vmatprep.subr.bf16.mxu1 %v3022_v50  ;;  %v3101_v49 = vld [vmem:[%s3238_s19 + $0x740] ss:$8 sps:$4 sm:$0xff]   ;;  %v3106_v50 = vld [vmem:[%s3238_s19 + $0x354] ss:$8 sps:$4 sm:$0xff]  }
  0xad   : > { %2162 = vmatprep.subr.bf16.mxu0 %v3025_v51  ;;  %v3109_v51 = vld [vmem:[%s3238_s19 + $0x754] ss:$8 sps:$4 sm:$0xff]  }
  0xaf   : > { %1991 = vmatpush1.bf16.msra.mxu1 %v3020_v52  ;;  %v3104_v52 = vld [vmem:[%s3238_s19 + $0x350] ss:$8 sps:$4 sm:$0xff]  }
  0xb0   : > { %2163 = vmatpush1.bf16.msra.mxu0 %v3023_v53  ;;  %1992 = vmatprep.subr.bf16.mxu1 %v3028_v54  ;;  %v3107_v53 = vld [vmem:[%s3238_s19 + $0x750] ss:$8 sps:$4 sm:$0xff]   ;;  %v3112_v54 = vld [vmem:[%s3238_s19 + $0x364] ss:$8 sps:$4 sm:$0xff]  }
  0xb1   : > { %2164 = vmatprep.subr.bf16.mxu0 %v3031_v55  ;;  %v3115_v55 = vld [vmem:[%s3238_s19 + $0x764] ss:$8 sps:$4 sm:$0xff]  }
  0xb3   : > { %1993 = vmatpush1.bf16.msra.mxu1 %v3026_v56  ;;  %v3110_v56 = vld [vmem:[%s3238_s19 + $0x360] ss:$8 sps:$4 sm:$0xff]  }
  0xb4   : > { %2165 = vmatpush1.bf16.msra.mxu0 %v3029_v57  ;;  %1994 = vmatprep.subr.bf16.mxu1 %v3034_v58  ;;  %v3113_v57 = vld [vmem:[%s3238_s19 + $0x760] ss:$8 sps:$4 sm:$0xff]   ;;  %v3118_v58 = vld [vmem:[%s3238_s19 + $0x374] ss:$8 sps:$4 sm:$0xff]  }
  0xb5   : > { %2166 = vmatprep.subr.bf16.mxu0 %v3037_v59  ;;  %v3121_v59 = vld [vmem:[%s3238_s19 + $0x774] ss:$8 sps:$4 sm:$0xff]  }
  0xb7   : > { %1995 = vmatpush1.bf16.msra.mxu1 %v3032_v60  ;;  %v3116_v60 = vld [vmem:[%s3238_s19 + $0x370] ss:$8 sps:$4 sm:$0xff]  }
  0xb8   : > { %2167 = vmatpush1.bf16.msra.mxu0 %v3035_v61  ;;  %1996 = vmatprep.subr.bf16.mxu1 %v3040_v62  ;;  %v3119_v61 = vld [vmem:[%s3238_s19 + $0x770] ss:$8 sps:$4 sm:$0xff]   ;;  %v3124_v62 = vld [vmem:[%s3238_s19 + $0x384] ss:$8 sps:$4 sm:$0xff]  }
  0xb9   : > { %2168 = vmatprep.subr.bf16.mxu0 %v3043_v63  ;;  %v3127_v63 = vld [vmem:[%s3238_s19 + $0x784] ss:$8 sps:$4 sm:$0xff]  }
  0xbb   : > { %1997 = vmatpush1.bf16.msra.mxu1 %v3038_v0  ;;  %v3122_v0 = vld [vmem:[%s3238_s19 + $0x380] ss:$8 sps:$4 sm:$0xff]  }
  0xbc   : > { %2169 = vmatpush1.bf16.msra.mxu0 %v3041_v1  ;;  %1998 = vmatprep.subr.bf16.mxu1 %v3046_v2  ;;  %v3125_v1 = vld [vmem:[%s3238_s19 + $0x780] ss:$8 sps:$4 sm:$0xff]   ;;  %v3130_v2 = vld [vmem:[%s3238_s19 + $0x394] ss:$8 sps:$4 sm:$0xff]  }
  0xbd   : > { %2170 = vmatprep.subr.bf16.mxu0 %v3049_v3  ;;  %v3133_v3 = vld [vmem:[%s3238_s19 + $0x794] ss:$8 sps:$4 sm:$0xff]  }
  0xbf   : > { %1999 = vmatpush1.bf16.msra.mxu1 %v3044_v4  ;;  %v3128_v4 = vld [vmem:[%s3238_s19 + $0x390] ss:$8 sps:$4 sm:$0xff]  }
  0xc0   : > { %2171 = vmatpush1.bf16.msra.mxu0 %v3047_v5  ;;  %2000 = vmatprep.subr.bf16.mxu1 %v3052_v6  ;;  %v3131_v5 = vld [vmem:[%s3238_s19 + $0x790] ss:$8 sps:$4 sm:$0xff]   ;;  %v3136_v6 = vld [vmem:[%s3238_s19 + $0x3a4] ss:$8 sps:$4 sm:$0xff]  }
  0xc1   : > { %2172 = vmatprep.subr.bf16.mxu0 %v3055_v7  ;;  %v3139_v7 = vld [vmem:[%s3238_s19 + $0x7a4] ss:$8 sps:$4 sm:$0xff]  }
  0xc3   : > { %2001 = vmatpush1.bf16.msra.mxu1 %v3050_v8  ;;  %v3134_v8 = vld [vmem:[%s3238_s19 + $0x3a0] ss:$8 sps:$4 sm:$0xff]  }
  0xc4   : > { %2173 = vmatpush1.bf16.msra.mxu0 %v3053_v9  ;;  %2002 = vmatprep.subr.bf16.mxu1 %v3058_v10  ;;  %v3137_v9 = vld [vmem:[%s3238_s19 + $0x7a0] ss:$8 sps:$4 sm:$0xff]   ;;  %v3142_v10 = vld [vmem:[%s3238_s19 + $0x3b4] ss:$8 sps:$4 sm:$0xff]  }
  0xc5   : > { %2174 = vmatprep.subr.bf16.mxu0 %v3061_v11  ;;  %v3145_v11 = vld [vmem:[%s3238_s19 + $0x7b4] ss:$8 sps:$4 sm:$0xff]  }
  0xc7   : > { %2003 = vmatpush1.bf16.msra.mxu1 %v3056_v12  ;;  %v3140_v12 = vld [vmem:[%s3238_s19 + $0x3b0] ss:$8 sps:$4 sm:$0xff]  }
  0xc8   : > { %2175 = vmatpush1.bf16.msra.mxu0 %v3059_v13  ;;  %2004 = vmatprep.subr.bf16.mxu1 %v3064_v14  ;;  %v3143_v13 = vld [vmem:[%s3238_s19 + $0x7b0] ss:$8 sps:$4 sm:$0xff]   ;;  %v3148_v14 = vld [vmem:[%s3238_s19 + $0x3c4] ss:$8 sps:$4 sm:$0xff]  }
  0xc9   : > { %2176 = vmatprep.subr.bf16.mxu0 %v3067_v15  ;;  %v3151_v15 = vld [vmem:[%s3238_s19 + $0x7c4] ss:$8 sps:$4 sm:$0xff]  }
  0xcb   : > { %2005 = vmatpush1.bf16.msra.mxu1 %v3062_v16  ;;  %v3146_v16 = vld [vmem:[%s3238_s19 + $0x3c0] ss:$8 sps:$4 sm:$0xff]  }
  0xcc   : > { %2177 = vmatpush1.bf16.msra.mxu0 %v3065_v17  ;;  %2006 = vmatprep.subr.bf16.mxu1 %v3070_v18  ;;  %v3149_v17 = vld [vmem:[%s3238_s19 + $0x7c0] ss:$8 sps:$4 sm:$0xff]   ;;  %v3154_v18 = vld [vmem:[%s3238_s19 + $0x3d4] ss:$8 sps:$4 sm:$0xff]  }
  0xcd   : > { %2178 = vmatprep.subr.bf16.mxu0 %v3073_v19  ;;  %v3157_v19 = vld [vmem:[%s3238_s19 + $0x7d4] ss:$8 sps:$4 sm:$0xff]  }
  0xcf   : > { %2007 = vmatpush1.bf16.msra.mxu1 %v3068_v20  ;;  %v3152_v20 = vld [vmem:[%s3238_s19 + $0x3d0] ss:$8 sps:$4 sm:$0xff]  }
  0xd0   : > { %2179 = vmatpush1.bf16.msra.mxu0 %v3071_v21  ;;  %2019 = vmatprep.subr.bf16.mxu1 %v3076_v22  ;;  %v3155_v21 = vld [vmem:[%s3238_s19 + $0x7d0] ss:$8 sps:$4 sm:$0xff]   ;;  %v3160_v22 = vld [vmem:[%s3238_s19 + $0x3e4] ss:$8 sps:$4 sm:$0xff]  }
  0xd1   : > { %2191 = vmatprep.subr.bf16.mxu0 %v3079_v23  ;;  %v3163_v23 = vld [vmem:[%s3238_s19 + $0x7e4] ss:$8 sps:$4 sm:$0xff]  }
  0xd2   : > { %2009 = vmatmul.mubr.bf16.vlgmr.msra.gmra.mrb[0].mxu1 %v2460_v27  ;;  %v3158_v27 = vld [vmem:[%s3238_s19 + $0x3e0] ss:$8 sps:$4 sm:$0xff]  }
  0xd3   : > { %2181 = vmatmul.mubr.bf16.vlgmr.msra.gmra.mrb[0].mxu0 %v2468_v28  ;;  %2020 = vmatpush1.bf16.msra.mxu1 %v3074_v34  ;;  %v3161_v28 = vld [vmem:[%s3238_s19 + $0x7e0] ss:$8 sps:$4 sm:$0xff]   ;;  %v3166_v34 = vld [vmem:[%s3238_s19 + $0x3f4] ss:$8 sps:$4 sm:$0xff]  }
  0xd4   : > { %2192 = vmatpush1.bf16.msra.mxu0 %v3077_v35  ;;  %2021 = vmatprep.subr.bf16.mxu1 %v3082_v24  ;;  %v3169_v35 = vld [vmem:[%s3238_s19 + $0x7f4] ss:$8 sps:$4 sm:$0xff]   ;;  %v3164_v24 = vld [vmem:[%s3238_s19 + $0x3f0] ss:$8 sps:$4 sm:$0xff]  }
  0xd5   : > { %2193 = vmatprep.subr.bf16.mxu0 %v3085_v25  ;;  %2051 = vmatprep.mubr.bf16.mxu1 %v2463_v29  ;;  %v3167_v25 = vld [vmem:[%s3238_s19 + $0x7f0] ss:$8 sps:$4 sm:$0xff]   ;;  %v2462_v29 = vcombine.low %v3481_v26, %v3488_v31 }
  0xd6   : > { %2223 = vmatprep.mubr.bf16.mxu0 %v2471_v30  ;;  %v2470_v30 = vcombine.low %v3491_v32, %v3494_v33 }
  0xd7   : > { %2022 = vmatpush1.bf16.msra.mxu1 %v3080_v36 }
  0xd8   : > { %2194 = vmatpush1.bf16.msra.mxu0 %v3083_v37  ;;  %2023 = vmatprep.subr.bf16.mxu1 %v3088_v38 }
  0xd9   : > { %2195 = vmatprep.subr.bf16.mxu0 %v3091_v39 }
  0xdb   : > { %2024 = vmatpush1.bf16.msra.mxu1 %v3086_v40 }
  0xdc   : > { %2196 = vmatpush1.bf16.msra.mxu0 %v3089_v41  ;;  %2025 = vmatprep.subr.bf16.mxu1 %v3094_v42 }
  0xdd   : > { %2197 = vmatprep.subr.bf16.mxu0 %v3097_v43 }
  0xdf   : > { %2026 = vmatpush1.bf16.msra.mxu1 %v3092_v44 }
  0xe0   : > { %2198 = vmatpush1.bf16.msra.mxu0 %v3095_v45  ;;  %2027 = vmatprep.subr.bf16.mxu1 %v3100_v46 }
  0xe1   : > { %2199 = vmatprep.subr.bf16.mxu0 %v3103_v47 }
  0xe3   : > { %2028 = vmatpush1.bf16.msra.mxu1 %v3098_v48 }
  0xe4   : > { %2200 = vmatpush1.bf16.msra.mxu0 %v3101_v49  ;;  %2029 = vmatprep.subr.bf16.mxu1 %v3106_v50 }
  0xe5   : > { %2201 = vmatprep.subr.bf16.mxu0 %v3109_v51 }
  0xe7   : > { %2030 = vmatpush1.bf16.msra.mxu1 %v3104_v52 }
  0xe8   : > { %2202 = vmatpush1.bf16.msra.mxu0 %v3107_v53  ;;  %2031 = vmatprep.subr.bf16.mxu1 %v3112_v54 }
  0xe9   : > { %2203 = vmatprep.subr.bf16.mxu0 %v3115_v55 }
  0xeb   : > { %2032 = vmatpush1.bf16.msra.mxu1 %v3110_v56 }
  0xec   : > { %2204 = vmatpush1.bf16.msra.mxu0 %v3113_v57  ;;  %2033 = vmatprep.subr.bf16.mxu1 %v3118_v58 }
  0xed   : > { %2205 = vmatprep.subr.bf16.mxu0 %v3121_v59 }
  0xef   : > { %2034 = vmatpush1.bf16.msra.mxu1 %v3116_v60 }
  0xf0   : > { %2206 = vmatpush1.bf16.msra.mxu0 %v3119_v61  ;;  %2035 = vmatprep.subr.bf16.mxu1 %v3124_v62 }
  0xf1   : > { %2207 = vmatprep.subr.bf16.mxu0 %v3127_v63 }
  0xf3   : > { %2036 = vmatpush1.bf16.msra.mxu1 %v3122_v0 }
  0xf4   : > { %2208 = vmatpush1.bf16.msra.mxu0 %v3125_v1  ;;  %2037 = vmatprep.subr.bf16.mxu1 %v3130_v2 }
  0xf5   : > { %2209 = vmatprep.subr.bf16.mxu0 %v3133_v3 }
  0xf7   : > { %2038 = vmatpush1.bf16.msra.mxu1 %v3128_v4 }
  0xf8   : > { %2210 = vmatpush1.bf16.msra.mxu0 %v3131_v5  ;;  %2039 = vmatprep.subr.bf16.mxu1 %v3136_v6 }
  0xf9   : > { %2211 = vmatprep.subr.bf16.mxu0 %v3139_v7 }
  0xfb   : > { %2040 = vmatpush1.bf16.msra.mxu1 %v3134_v8 }
  0xfc   : > { %2212 = vmatpush1.bf16.msra.mxu0 %v3137_v9  ;;  %2041 = vmatprep.subr.bf16.mxu1 %v3142_v10 }
  0xfd   : > { %2213 = vmatprep.subr.bf16.mxu0 %v3145_v11 }
  0xff   : > { %2042 = vmatpush1.bf16.msra.mxu1 %v3140_v12 }
 0x100   : > { %2214 = vmatpush1.bf16.msra.mxu0 %v3143_v13  ;;  %2043 = vmatprep.subr.bf16.mxu1 %v3148_v14 }
 0x101   : > { %2215 = vmatprep.subr.bf16.mxu0 %v3151_v15 }
 0x103   : > { %2044 = vmatpush1.bf16.msra.mxu1 %v3146_v16 }
 0x104   : > { %2216 = vmatpush1.bf16.msra.mxu0 %v3149_v17  ;;  %2045 = vmatprep.subr.bf16.mxu1 %v3154_v18 }
 0x105   : > { %2217 = vmatprep.subr.bf16.mxu0 %v3157_v19 }
 0x107   : > { %2046 = vmatpush1.bf16.msra.mxu1 %v3152_v20 }
 0x108   : > { %2218 = vmatpush1.bf16.msra.mxu0 %v3155_v21  ;;  %2047 = vmatprep.subr.bf16.mxu1 %v3160_v22 }
 0x109   : > { %2219 = vmatprep.subr.bf16.mxu0 %v3163_v23 }
 0x10b   : > { %2048 = vmatpush1.bf16.msra.mxu1 %v3158_v27 }
 0x10c   : > { %2220 = vmatpush1.bf16.msra.mxu0 %v3161_v28  ;;  %2049 = vmatprep.subr.bf16.mxu1 %v3166_v34 }
 0x10d   : > { %2221 = vmatprep.subr.bf16.mxu0 %v3169_v35 }
 0x10f   : > { %2050 = vmatpush1.bf16.msra.mxu1 %v3164_v24 }
 0x110   : > { %2222 = vmatpush1.bf16.msra.mxu0 %v3167_v25 }
 0x112   : > { %2052 = vmatmul.mubr.bf16.vlgmr.msra.gmra.mrb[0].mxu1 %v2462_v29 }
 0x113   : > { %2224 = vmatmul.mubr.bf16.vlgmr.msra.gmra.mrb[0].mxu0 %v2470_v30 }
 0x1e5   : > { %v2053_v36 = vpop.f32.mrb[0].mxu1 }
 0x1e6   : > { %v2225_v37 = vpop.f32.mrb[0].mxu0  ;;  %v2055_v39 = vpop.f32.mrb[1].mxu1 }
 0x1e7   : > { %v2734_v38 = vadd.f32 %v2225_v37, %v2053_v36  ;;  %v2227_v40 = vpop.f32.mrb[1].mxu0  ;;  %v2057_v42 = vpop.f32.mrb[2].mxu1 }
 0x1e8   : > { %v2735_v41 = vadd.f32 %v2227_v40, %v2055_v39  ;;  %v2229_v26 = vpop.f32.mrb[2].mxu0  ;;  %v2059_v32 = vpop.f32.mrb[3].mxu1 }
 0x1e9   : > { %2234 = vst [vmem:[%s247_s27] sm:$0xff] %v2734_v38  ;;  %v2736_v31 = vadd.f32 %v2229_v26, %v2057_v42  ;;  %v2231_v33 = vpop.f32.mrb[3].mxu0  ;;  %v2254_v44 = vmul.f32 %v2734_v38, %v2734_v38 }
 0x1ea   : > { %2235 = vst [vmem:[%s247_s27 + $0x8] sm:$0xff] %v2735_v41  ;;  %v2737_v43 = vadd.f32 %v2231_v33, %v2059_v32  ;;  %v2255_v47 = vmul.f32 %v2735_v41, %v2735_v41 }
 0x1eb   : > { %2236 = vst [vmem:[%s247_s27 + $0x10] sm:$0xff] %v2736_v31  ;;  %v2238_v45 = vadd.f32 %v2736_v31, %v2734_v38  ;;  %v2256_v46 = vmul.f32 %v2736_v31, %v2736_v31 }
 0x1ec   : > { %2237 = vst [vmem:[%s247_s27 + $0x18] sm:$0xff] %v2737_v43  ;;  %v2245_v48 = vadd.f32 %v2737_v43, %v2735_v41  ;;  %v2257_v49 = vmul.f32 %v2737_v43, %v2737_v43 }
 0x1ed   : > { %v2239_v50 = vrot.slane %v2238_v45, 4  ;;  %v2258_v51 = vadd.f32 %v2256_v46, %v2254_v44 }
 0x1ee   : > { %v2246_v52 = vrot.slane %v2245_v48, 4  ;;  %v2265_v53 = vadd.f32 %v2257_v49, %v2255_v47 }
 0x1ef   : > { %v2240_v54 = vadd.f32 %v2239_v50, %v2238_v45  ;;  %v2259_v55 = vrot.slane %v2258_v51, 4 }
 0x1f0   : > { %v2247_v56 = vadd.f32 %v2246_v52, %v2245_v48  ;;  %v2266_v57 = vrot.slane %v2265_v53, 4 }
 0x1f1   : > { %v2241_v58 = vrot.slane %v2240_v54, 2  ;;  %v2260_v59 = vadd.f32 %v2259_v55, %v2258_v51 }
 0x1f2   : > { %v2248_v60 = vrot.slane %v2247_v56, 2  ;;  %v2267_v61 = vadd.f32 %v2266_v57, %v2265_v53 }
 0x1f3   : > { %v2242_v62 = vadd.f32 %v2241_v58, %v2240_v54  ;;  %v2261_v63 = vrot.slane %v2260_v59, 2 }
 0x1f4   : > { %v2249_v0 = vadd.f32 %v2248_v60, %v2247_v56  ;;  %v2268_v1 = vrot.slane %v2267_v61, 2 }
 0x1f5   : > { %v2243_v2 = vrot.slane %v2242_v62, 1  ;;  %v2262_v3 = vadd.f32 %v2261_v63, %v2260_v59 }
 0x1f6   : > { %v2250_v4 = vrot.slane %v2249_v0, 1  ;;  %v2269_v5 = vadd.f32 %v2268_v1, %v2267_v61 }
 0x1f7   : > { %v2263_v6 = vrot.slane %v2262_v3, 1  ;;  %v2244_v8 = vadd.f32 %v2243_v2, %v2242_v62 }
 0x1f8   : > { %v2270_v7 = vrot.slane %v2269_v5, 1  ;;  %v2251_v10 = vadd.f32 %v2250_v4, %v2249_v0 }
 0x1f9   : > { %v2264_v9 = vadd.f32 %v2263_v6, %v2262_v3 }
 0x1fa   : > { %v2271_v11 = vadd.f32 %v2270_v7, %v2269_v5 }
 0x1fb   : > { %v2275_v12 = vsel %vm2274_vm0, %v2244_v8, %v2264_v9 }
 0x1fc   : > { %v2278_v13 = vsel %vm2277_vm1, %v2275_v12, 0.0  ;;  %v2276_v14 = vsel %vm2274_vm0, %v2251_v10, %v2271_v11 }
 0x1fd   : > { %2280 = vst [vmem:[%s257_s4] sm:$0xff] %v2278_v13  ;;  %v2279_v15 = vsel %vm2277_vm1, %v2276_v14, 0.0 }
 0x1fe   : > { %2281 = vst [vmem:[%s257_s4 + $0x8] sm:$0xff] %v2279_v15 }
 0x1ff PF: > { %s14_s14 = sadd.s32 1, %s3192_s14   ;;  %s3587_s12 = smov %s3188_s13 }
 0x200   : > { %p11_p5 = scmp.ge.s32.totalorder %s14_s14, 6   ;;  %s3588_s13 = smov %s3590_s15 }
 0x202   :  { %13 = sbr.rel (!%p11_p5) target bundleno = 2 (0x2), region = 73 }

// kernel: generater_forward.9
= control target key start
LH: loop header
LB: loop body
LE: loop exit
PB: predicated region body
PF: predicated region fallthrough
CT: control target
= control target key end

     0   :  { %9 = vsyncpa [#allocation3], 0  ;;  %s6938_s12 = smov [#allocation2]   ;;  %s7446_s0 = inlined_call_operand.vmem [shape: bf16[1,16,768], index: 0, kind: input, shape index: {}]   ;;  %s7447_s1 = inlined_call_operand.hbm [shape: bf16[1,768,2048], index: 1, kind: input, shape index: {}]   ;;  %s7448_s2 = inlined_call_operand.vmem [shape: f32[1,16,2048], index: 2, kind: output, shape index: {0}]   ;;  %s7449_s3 = inlined_call_operand.vmem [shape: f32[1,8,512], index: 3, kind: output, shape index: {1}]  }
   0x1   :  { %s17_s13 = sshll.u32 %s6938_s12, 4  ;;  %s6914_s16 = scalar_lea.hbm %s7447_s1, 98304  ;;  %s18_s13 = int_to_ptr.vmem [resolvable:$true] %s17_s13 }
   0x2   :  { %p6915_p0 = scmp.ne.s32.totalorder %s7447_s1, %s6914_s16  ;;  %p6918_p1 = scmp.lt.u32.totalorder %s6914_s16, %s7447_s1 }
   0x4   :  { %p6920_p2 = pnand %p6918_p1, %p6915_p0 }
   0x6   :  { %6923 = shalt.err (!%p6920_p2)
}
   0x7   :  { %s6924_s21 = scalar_lea.vmem %s18_s13, 98304  ;;  %p6929_p4 = scmp.lt.s32.totalorder %s18_s13, %s18_s13 }
   0x8   :  { %p6925_p3 = scmp.ne.s32.totalorder %s18_s13, %s6924_s21  ;;  %p6930_p5 = scmp.lt.s32.totalorder %s6924_s21, %s6924_s21 }
   0xa   :  { %p6931_p6 = por %p6930_p5, %p6929_p4 }
   0xc   :  { %p6932_p7 = pnand %p6931_p6, %p6925_p3 }
   0xe   :  { %6935 = shalt.err (!%p6932_p7)
}
   0xf   :  { %s6939_s22 = smov 1024   ;;  %s6940_s23 = smov 64  }
  0x10   :  { %23 = dma.hbm_to_vmem [thread:$0]  %s7447_s1, 98304, %s18_s13, [#allocation3], %s6939_s22, %s6939_s22, %s6940_s23  }
  0x11   :  { %6936 = dma.done.wait [#allocation3], 98304  }
  0x12   :  { %6937 = vsyncadd [#allocation3], 4294868992  ;;  %v33_v0 = vld [vmem:[#allocation2] sm:$0xff]  ;;  %v34_v2 = vld [vmem:[#allocation2 + $0x8] sm:$0xff]  ;;  %vm6023_vm0 = vcmask 1040384   ;;  %vm6028_vm1 = vcmask 1041408  }
  0x13   :  { %v41_v1 = vld [vmem:[#allocation2 + $0x40] sm:$0xff]  ;;  %v42_v4 = vld [vmem:[#allocation2 + $0x48] sm:$0xff] }
  0x14   :  { %v6053_v3 = vcombine.high %v33_v0, %v41_v1  ;;  %v6052_v5 = vcombine.low %v33_v0, %v41_v1  ;;  %v49_v6 = vld [vmem:[#allocation2 + $0x80] sm:$0xff]  ;;  %v6055_v8 = vcombine.high %v34_v2, %v42_v4  ;;  %v6054_v9 = vcombine.low %v34_v2, %v42_v4  ;;  %v50_v11 = vld [vmem:[#allocation2 + $0x88] sm:$0xff] }
  0x15   :  { %v57_v7 = vld [vmem:[#allocation2 + $0xc0] sm:$0xff]  ;;  %v58_v12 = vld [vmem:[#allocation2 + $0xc8] sm:$0xff] }
  0x16   :  { %v6069_v10 = vcombine.high %v49_v6, %v57_v7  ;;  %v65_v13 = vld [vmem:[#allocation2 + $0x100] sm:$0xff]  ;;  %4671 = vmatprep.subr.bf16.mxu0 %v6053_v3  ;;  %v6071_v14 = vcombine.high %v50_v11, %v58_v12  ;;  %v66_v16 = vld [vmem:[#allocation2 + $0x108] sm:$0xff]  ;;  %4800 = vmatprep.subr.bf16.mxu1 %v6055_v8  ;;  %v6068_v18 = vcombine.low %v49_v6, %v57_v7 }
  0x17   :  { %v73_v15 = vld [vmem:[#allocation2 + $0x140] sm:$0xff]  ;;  %v74_v17 = vld [vmem:[#allocation2 + $0x148] sm:$0xff]  ;;  %4672 = vmatpush1.bf16.msra.mxu0 %v6052_v5  ;;  %4801 = vmatpush1.bf16.msra.mxu1 %v6054_v9  ;;  %v6070_v19 = vcombine.low %v50_v11, %v58_v12 }
  0x18   :  { %4673 = vmatprep.subr.bf16.mxu0 %v6069_v10  ;;  %v6085_v20 = vcombine.high %v65_v13, %v73_v15  ;;  %4802 = vmatprep.subr.bf16.mxu1 %v6071_v14  ;;  %v6087_v21 = vcombine.high %v66_v16, %v74_v17  ;;  %v81_v22 = vld [vmem:[#allocation2 + $0x180] sm:$0xff]  ;;  %v82_v24 = vld [vmem:[#allocation2 + $0x188] sm:$0xff]  ;;  %v6084_v26 = vcombine.low %v65_v13, %v73_v15 }
  0x19   :  { %v89_v23 = vld [vmem:[#allocation2 + $0x1c0] sm:$0xff]  ;;  %v90_v25 = vld [vmem:[#allocation2 + $0x1c8] sm:$0xff]  ;;  %v6086_v27 = vcombine.low %v66_v16, %v74_v17 }
  0x1a   :  { %v6101_v28 = vcombine.high %v81_v22, %v89_v23  ;;  %v6103_v29 = vcombine.high %v82_v24, %v90_v25  ;;  %v97_v30 = vld [vmem:[#allocation2 + $0x200] sm:$0xff]  ;;  %v98_v32 = vld [vmem:[#allocation2 + $0x208] sm:$0xff]  ;;  %v6100_v34 = vcombine.low %v81_v22, %v89_v23  ;;  %v6102_v35 = vcombine.low %v82_v24, %v90_v25 }
  0x1b   :  { %4674 = vmatpush1.bf16.msra.mxu0 %v6068_v18  ;;  %4803 = vmatpush1.bf16.msra.mxu1 %v6070_v19  ;;  %v105_v31 = vld [vmem:[#allocation2 + $0x240] sm:$0xff]  ;;  %v106_v33 = vld [vmem:[#allocation2 + $0x248] sm:$0xff] }
  0x1c   :  { %4675 = vmatprep.subr.bf16.mxu0 %v6085_v20  ;;  %4804 = vmatprep.subr.bf16.mxu1 %v6087_v21  ;;  %v6117_v36 = vcombine.high %v97_v30, %v105_v31  ;;  %v6119_v37 = vcombine.high %v98_v32, %v106_v33  ;;  %v113_v38 = vld [vmem:[#allocation2 + $0x280] sm:$0xff]  ;;  %v114_v40 = vld [vmem:[#allocation2 + $0x288] sm:$0xff]  ;;  %v6116_v42 = vcombine.low %v97_v30, %v105_v31 }
  0x1d   :  { %v121_v39 = vld [vmem:[#allocation2 + $0x2c0] sm:$0xff]  ;;  %v122_v41 = vld [vmem:[#allocation2 + $0x2c8] sm:$0xff]  ;;  %v6118_v43 = vcombine.low %v98_v32, %v106_v33 }
  0x1e   :  { %v6133_v44 = vcombine.high %v113_v38, %v121_v39  ;;  %v6135_v45 = vcombine.high %v114_v40, %v122_v41  ;;  %v129_v46 = vld [vmem:[#allocation2 + $0x300] sm:$0xff]  ;;  %v130_v48 = vld [vmem:[#allocation2 + $0x308] sm:$0xff]  ;;  %v6132_v50 = vcombine.low %v113_v38, %v121_v39  ;;  %v6134_v51 = vcombine.low %v114_v40, %v122_v41 }
  0x1f   :  { %4676 = vmatpush1.bf16.msra.mxu0 %v6084_v26  ;;  %4805 = vmatpush1.bf16.msra.mxu1 %v6086_v27  ;;  %v137_v47 = vld [vmem:[#allocation2 + $0x340] sm:$0xff]  ;;  %v138_v49 = vld [vmem:[#allocation2 + $0x348] sm:$0xff] }
  0x20   :  { %4677 = vmatprep.subr.bf16.mxu0 %v6101_v28  ;;  %4806 = vmatprep.subr.bf16.mxu1 %v6103_v29  ;;  %v6149_v52 = vcombine.high %v129_v46, %v137_v47  ;;  %v6151_v53 = vcombine.high %v130_v48, %v138_v49  ;;  %v145_v54 = vld [vmem:[#allocation2 + $0x380] sm:$0xff]  ;;  %v146_v57 = vld [vmem:[#allocation2 + $0x388] sm:$0xff]  ;;  %v6148_v59 = vcombine.low %v129_v46, %v137_v47 }
  0x21   :  { %v153_v55 = vld [vmem:[#allocation2 + $0x3c0] sm:$0xff]  ;;  %v154_v58 = vld [vmem:[#allocation2 + $0x3c8] sm:$0xff]  ;;  %v6150_v60 = vcombine.low %v130_v48, %v138_v49 }
  0x22   :  { %v6887_v56 = vld [vmem:[%s7446_s0 + $0x4] ss:$24 sps:$4 sm:$0xff]   ;;  %v6165_v61 = vcombine.high %v145_v54, %v153_v55  ;;  %v6167_v62 = vcombine.high %v146_v57, %v154_v58  ;;  %v162_v1 = vld [vmem:[#allocation2 + $0x408] sm:$0xff]  ;;  %v6164_v3 = vcombine.low %v145_v54, %v153_v55  ;;  %v6166_v4 = vcombine.low %v146_v57, %v154_v58 }
  0x23   :  { %4678 = vmatpush1.bf16.msra.mxu0 %v6100_v34  ;;  %4807 = vmatpush1.bf16.msra.mxu1 %v6102_v35  ;;  %v161_v63 = vld [vmem:[#allocation2 + $0x400] sm:$0xff]  ;;  %v170_v2 = vld [vmem:[#allocation2 + $0x448] sm:$0xff] }
  0x24   :  { %4679 = vmatprep.subr.bf16.mxu0 %v6117_v36  ;;  %4808 = vmatprep.subr.bf16.mxu1 %v6119_v37  ;;  %v169_v0 = vld [vmem:[#allocation2 + $0x440] sm:$0xff]  ;;  %v6183_v6 = vcombine.high %v162_v1, %v170_v2  ;;  %v178_v9 = vld [vmem:[#allocation2 + $0x488] sm:$0xff]  ;;  %v6182_v12 = vcombine.low %v162_v1, %v170_v2 }
  0x25   :  { %4703 = vmatprep.mubr.bf16.mxu0 %v6887_v56  ;;  %4832 = vmatprep.mubr.bf16.mxu1 %v6887_v56  ;;  %v6181_v5 = vcombine.high %v161_v63, %v169_v0  ;;  %v177_v7 = vld [vmem:[#allocation2 + $0x480] sm:$0xff]  ;;  %v186_v10 = vld [vmem:[#allocation2 + $0x4c8] sm:$0xff]  ;;  %v6180_v11 = vcombine.low %v161_v63, %v169_v0 }
  0x26   :  { %v185_v8 = vld [vmem:[#allocation2 + $0x4c0] sm:$0xff]  ;;  %v6199_v14 = vcombine.high %v178_v9, %v186_v10  ;;  %v194_v17 = vld [vmem:[#allocation2 + $0x508] sm:$0xff]  ;;  %v6198_v20 = vcombine.low %v178_v9, %v186_v10 }
  0x27   :  { %4680 = vmatpush1.bf16.msra.mxu0 %v6116_v42  ;;  %4809 = vmatpush1.bf16.msra.mxu1 %v6118_v43  ;;  %v6197_v13 = vcombine.high %v177_v7, %v185_v8  ;;  %v193_v15 = vld [vmem:[#allocation2 + $0x500] sm:$0xff]  ;;  %v202_v18 = vld [vmem:[#allocation2 + $0x548] sm:$0xff]  ;;  %v6196_v19 = vcombine.low %v177_v7, %v185_v8 }
  0x28   :  { %4681 = vmatprep.subr.bf16.mxu0 %v6133_v44  ;;  %4810 = vmatprep.subr.bf16.mxu1 %v6135_v45  ;;  %v201_v16 = vld [vmem:[#allocation2 + $0x540] sm:$0xff]  ;;  %v6215_v22 = vcombine.high %v194_v17, %v202_v18  ;;  %v210_v25 = vld [vmem:[#allocation2 + $0x588] sm:$0xff]  ;;  %v6214_v28 = vcombine.low %v194_v17, %v202_v18 }
  0x29   :  { %v6213_v21 = vcombine.high %v193_v15, %v201_v16  ;;  %v209_v23 = vld [vmem:[#allocation2 + $0x580] sm:$0xff]  ;;  %v218_v26 = vld [vmem:[#allocation2 + $0x5c8] sm:$0xff]  ;;  %v6212_v27 = vcombine.low %v193_v15, %v201_v16 }
  0x2a   :  { %v217_v24 = vld [vmem:[#allocation2 + $0x5c0] sm:$0xff]  ;;  %v6231_v30 = vcombine.high %v210_v25, %v218_v26  ;;  %v226_v33 = vld [vmem:[#allocation2 + $0x608] sm:$0xff]  ;;  %v6230_v36 = vcombine.low %v210_v25, %v218_v26 }
  0x2b   :  { %4682 = vmatpush1.bf16.msra.mxu0 %v6132_v50  ;;  %4811 = vmatpush1.bf16.msra.mxu1 %v6134_v51  ;;  %v6229_v29 = vcombine.high %v209_v23, %v217_v24  ;;  %v225_v31 = vld [vmem:[#allocation2 + $0x600] sm:$0xff]  ;;  %v234_v34 = vld [vmem:[#allocation2 + $0x648] sm:$0xff]  ;;  %v6228_v35 = vcombine.low %v209_v23, %v217_v24 }
  0x2c   :  { %4683 = vmatprep.subr.bf16.mxu0 %v6149_v52  ;;  %4812 = vmatprep.subr.bf16.mxu1 %v6151_v53  ;;  %v233_v32 = vld [vmem:[#allocation2 + $0x640] sm:$0xff]  ;;  %v6247_v38 = vcombine.high %v226_v33, %v234_v34  ;;  %v242_v41 = vld [vmem:[#allocation2 + $0x688] sm:$0xff]  ;;  %v6246_v44 = vcombine.low %v226_v33, %v234_v34 }
  0x2d   :  { %v6245_v37 = vcombine.high %v225_v31, %v233_v32  ;;  %v241_v39 = vld [vmem:[#allocation2 + $0x680] sm:$0xff]  ;;  %v250_v42 = vld [vmem:[#allocation2 + $0x6c8] sm:$0xff]  ;;  %v6244_v43 = vcombine.low %v225_v31, %v233_v32 }
  0x2e   :  { %v249_v40 = vld [vmem:[#allocation2 + $0x6c0] sm:$0xff]  ;;  %v6263_v46 = vcombine.high %v242_v41, %v250_v42  ;;  %v258_v49 = vld [vmem:[#allocation2 + $0x708] sm:$0xff]  ;;  %v6262_v52 = vcombine.low %v242_v41, %v250_v42 }
  0x2f   :  { %4684 = vmatpush1.bf16.msra.mxu0 %v6148_v59  ;;  %4813 = vmatpush1.bf16.msra.mxu1 %v6150_v60  ;;  %v6261_v45 = vcombine.high %v241_v39, %v249_v40  ;;  %v257_v47 = vld [vmem:[#allocation2 + $0x700] sm:$0xff]  ;;  %v266_v50 = vld [vmem:[#allocation2 + $0x748] sm:$0xff]  ;;  %v6260_v51 = vcombine.low %v241_v39, %v249_v40 }
  0x30   :  { %4685 = vmatprep.subr.bf16.mxu0 %v6165_v61  ;;  %4814 = vmatprep.subr.bf16.mxu1 %v6167_v62  ;;  %v265_v48 = vld [vmem:[#allocation2 + $0x740] sm:$0xff]  ;;  %v6279_v54 = vcombine.high %v258_v49, %v266_v50  ;;  %v274_v57 = vld [vmem:[#allocation2 + $0x788] sm:$0xff]  ;;  %v6278_v60 = vcombine.low %v258_v49, %v266_v50 }
  0x31   :  { %v6277_v53 = vcombine.high %v257_v47, %v265_v48  ;;  %v273_v55 = vld [vmem:[#allocation2 + $0x780] sm:$0xff]  ;;  %v282_v58 = vld [vmem:[#allocation2 + $0x7c8] sm:$0xff]  ;;  %v6276_v59 = vcombine.low %v257_v47, %v265_v48 }
  0x32   :  { %v281_v56 = vld [vmem:[#allocation2 + $0x7c0] sm:$0xff]  ;;  %v6295_v62 = vcombine.high %v274_v57, %v282_v58  ;;  %v290_v1 = vld [vmem:[#allocation2 + $0x808] sm:$0xff] }
  0x33   :  { %4686 = vmatpush1.bf16.msra.mxu0 %v6164_v3  ;;  %4815 = vmatpush1.bf16.msra.mxu1 %v6166_v4  ;;  %v6293_v61 = vcombine.high %v273_v55, %v281_v56  ;;  %v289_v63 = vld [vmem:[#allocation2 + $0x800] sm:$0xff]  ;;  %v298_v2 = vld [vmem:[#allocation2 + $0x848] sm:$0xff]  ;;  %v6292_v3 = vcombine.low %v273_v55, %v281_v56  ;;  %v6294_v4 = vcombine.low %v274_v57, %v282_v58 }
  0x34   :  { %4687 = vmatprep.subr.bf16.mxu0 %v6181_v5  ;;  %4816 = vmatprep.subr.bf16.mxu1 %v6183_v6  ;;  %v297_v0 = vld [vmem:[#allocation2 + $0x840] sm:$0xff]  ;;  %v6311_v6 = vcombine.high %v290_v1, %v298_v2  ;;  %v306_v10 = vld [vmem:[#allocation2 + $0x888] sm:$0xff] }
  0x35   :  { %v6309_v5 = vcombine.high %v289_v63, %v297_v0  ;;  %v305_v7 = vld [vmem:[#allocation2 + $0x880] sm:$0xff] }
  0x36   :  { %v313_v8 = vld [vmem:[#allocation2 + $0x8c0] sm:$0xff] }
  0x37   :  { %4688 = vmatpush1.bf16.msra.mxu0 %v6180_v11  ;;  %4817 = vmatpush1.bf16.msra.mxu1 %v6182_v12  ;;  %v6889_v9 = vld [vmem:[%s7446_s0] ss:$24 sps:$4 sm:$0xff]   ;;  %v314_v11 = vld [vmem:[#allocation2 + $0x8c8] sm:$0xff]  ;;  %v6308_v12 = vcombine.low %v289_v63, %v297_v0 }
  0x38   :  { %4689 = vmatprep.subr.bf16.mxu0 %v6197_v13  ;;  %4818 = vmatprep.subr.bf16.mxu1 %v6199_v14  ;;  %v6310_v13 = vcombine.low %v290_v1, %v298_v2  ;;  %v6325_v14 = vcombine.high %v305_v7, %v313_v8  ;;  %v321_v15 = vld [vmem:[#allocation2 + $0x900] sm:$0xff]  ;;  %v6327_v16 = vcombine.high %v306_v10, %v314_v11 }
  0x39   :  { %v329_v17 = vld [vmem:[#allocation2 + $0x940] sm:$0xff] }
  0x3a   :  { %v6890_v18 = vld [vmem:[%s7446_s0 + $0xc] ss:$24 sps:$4 sm:$0xff]   ;;  %v6341_v23 = vcombine.high %v321_v15, %v329_v17 }
  0x3b   :  { %4690 = vmatpush1.bf16.msra.mxu0 %v6196_v19  ;;  %4819 = vmatpush1.bf16.msra.mxu1 %v6198_v20  ;;  %v322_v19 = vld [vmem:[#allocation2 + $0x908] sm:$0xff]  ;;  %v337_v25 = vld [vmem:[#allocation2 + $0x980] sm:$0xff] }
  0x3c   :  { %4691 = vmatprep.subr.bf16.mxu0 %v6213_v21  ;;  %4820 = vmatprep.subr.bf16.mxu1 %v6215_v22  ;;  %v330_v20 = vld [vmem:[#allocation2 + $0x948] sm:$0xff]  ;;  %v6324_v21 = vcombine.low %v305_v7, %v313_v8  ;;  %v6326_v22 = vcombine.low %v306_v10, %v314_v11  ;;  %v345_v26 = vld [vmem:[#allocation2 + $0x9c0] sm:$0xff] }
  0x3d   :  { %v6343_v24 = vcombine.high %v322_v19, %v330_v20  ;;  %v6357_v31 = vcombine.high %v337_v25, %v345_v26  ;;  %v353_v33 = vld [vmem:[#allocation2 + $0xa00] sm:$0xff]  ;;  %v434_v11 = vld [vmem:[#allocation2 + $0xc88] sm:$0xff] }
  0x3e   :  { %v361_v34 = vld [vmem:[#allocation2 + $0xa40] sm:$0xff] }
  0x3f   :  { %4692 = vmatpush1.bf16.msra.mxu0 %v6212_v27  ;;  %4821 = vmatpush1.bf16.msra.mxu1 %v6214_v28  ;;  %v338_v27 = vld [vmem:[#allocation2 + $0x988] sm:$0xff]  ;;  %v6373_v39 = vcombine.high %v353_v33, %v361_v34  ;;  %v369_v41 = vld [vmem:[#allocation2 + $0xa80] sm:$0xff] }
  0x40   :  { %4693 = vmatprep.subr.bf16.mxu0 %v6229_v29  ;;  %4822 = vmatprep.subr.bf16.mxu1 %v6231_v30  ;;  %v346_v28 = vld [vmem:[#allocation2 + $0x9c8] sm:$0xff]  ;;  %v6340_v29 = vcombine.low %v321_v15, %v329_v17  ;;  %v6342_v30 = vcombine.low %v322_v19, %v330_v20  ;;  %v377_v42 = vld [vmem:[#allocation2 + $0xac0] sm:$0xff] }
  0x41   :  { %v6359_v32 = vcombine.high %v338_v27, %v346_v28  ;;  %v6389_v47 = vcombine.high %v369_v41, %v377_v42  ;;  %v385_v49 = vld [vmem:[#allocation2 + $0xb00] sm:$0xff]  ;;  %v450_v19 = vld [vmem:[#allocation2 + $0xd08] sm:$0xff] }
  0x42   :  { %v393_v50 = vld [vmem:[#allocation2 + $0xb40] sm:$0xff]  ;;  %v458_v20 = vld [vmem:[#allocation2 + $0xd48] sm:$0xff] }
  0x43   :  { %4694 = vmatpush1.bf16.msra.mxu0 %v6228_v35  ;;  %4823 = vmatpush1.bf16.msra.mxu1 %v6230_v36  ;;  %v354_v35 = vld [vmem:[#allocation2 + $0xa08] sm:$0xff]  ;;  %v6405_v55 = vcombine.high %v385_v49, %v393_v50  ;;  %v401_v57 = vld [vmem:[#allocation2 + $0xb80] sm:$0xff] }
  0x44   :  { %4695 = vmatprep.subr.bf16.mxu0 %v6245_v37  ;;  %4824 = vmatprep.subr.bf16.mxu1 %v6247_v38  ;;  %v362_v36 = vld [vmem:[#allocation2 + $0xa48] sm:$0xff]  ;;  %v6356_v37 = vcombine.low %v337_v25, %v345_v26  ;;  %v6358_v38 = vcombine.low %v338_v27, %v346_v28  ;;  %v409_v58 = vld [vmem:[#allocation2 + $0xbc0] sm:$0xff] }
  0x45   :  { %v6375_v40 = vcombine.high %v354_v35, %v362_v36  ;;  %v6421_v63 = vcombine.high %v401_v57, %v409_v58  ;;  %v417_v1 = vld [vmem:[#allocation2 + $0xc00] sm:$0xff]  ;;  %v466_v27 = vld [vmem:[#allocation2 + $0xd88] sm:$0xff] }
  0x46   :  { %v425_v2 = vld [vmem:[#allocation2 + $0xc40] sm:$0xff]  ;;  %v474_v28 = vld [vmem:[#allocation2 + $0xdc8] sm:$0xff] }
  0x47   :  { %4696 = vmatpush1.bf16.msra.mxu0 %v6244_v43  ;;  %4825 = vmatpush1.bf16.msra.mxu1 %v6246_v44  ;;  %v370_v43 = vld [vmem:[#allocation2 + $0xa88] sm:$0xff]  ;;  %v6437_v7 = vcombine.high %v417_v1, %v425_v2  ;;  %v441_v10 = vld [vmem:[#allocation2 + $0xcc0] sm:$0xff] }
  0x48   :  { %4697 = vmatprep.subr.bf16.mxu0 %v6261_v45  ;;  %4826 = vmatprep.subr.bf16.mxu1 %v6263_v46  ;;  %v378_v44 = vld [vmem:[#allocation2 + $0xac8] sm:$0xff]  ;;  %v6372_v45 = vcombine.low %v353_v33, %v361_v34  ;;  %v6374_v46 = vcombine.low %v354_v35, %v362_v36  ;;  %v449_v17 = vld [vmem:[#allocation2 + $0xd00] sm:$0xff] }
  0x49   :  { %v6391_v48 = vcombine.high %v370_v43, %v378_v44  ;;  %v465_v25 = vld [vmem:[#allocation2 + $0xd80] sm:$0xff]  ;;  %v482_v35 = vld [vmem:[#allocation2 + $0xe08] sm:$0xff] }
  0x4a   :  { %v473_v26 = vld [vmem:[#allocation2 + $0xdc0] sm:$0xff]  ;;  %v490_v36 = vld [vmem:[#allocation2 + $0xe48] sm:$0xff] }
  0x4b   :  { %4698 = vmatpush1.bf16.msra.mxu0 %v6260_v51  ;;  %4827 = vmatpush1.bf16.msra.mxu1 %v6262_v52  ;;  %v386_v51 = vld [vmem:[#allocation2 + $0xb08] sm:$0xff]  ;;  %v481_v33 = vld [vmem:[#allocation2 + $0xe00] sm:$0xff] }
  0x4c   :  { %4699 = vmatprep.subr.bf16.mxu0 %v6277_v53  ;;  %4828 = vmatprep.subr.bf16.mxu1 %v6279_v54  ;;  %v394_v52 = vld [vmem:[#allocation2 + $0xb48] sm:$0xff]  ;;  %v6388_v53 = vcombine.low %v369_v41, %v377_v42  ;;  %v6390_v54 = vcombine.low %v370_v43, %v378_v44  ;;  %v489_v34 = vld [vmem:[#allocation2 + $0xe40] sm:$0xff] }
  0x4d   :  { %v6407_v56 = vcombine.high %v386_v51, %v394_v52  ;;  %v497_v41 = vld [vmem:[#allocation2 + $0xe80] sm:$0xff]  ;;  %v498_v43 = vld [vmem:[#allocation2 + $0xe88] sm:$0xff] }
  0x4e   :  { %v505_v42 = vld [vmem:[#allocation2 + $0xec0] sm:$0xff]  ;;  %v506_v44 = vld [vmem:[#allocation2 + $0xec8] sm:$0xff] }
  0x4f   :  { %4700 = vmatpush1.bf16.msra.mxu0 %v6276_v59  ;;  %4829 = vmatpush1.bf16.msra.mxu1 %v6278_v60  ;;  %v402_v59 = vld [vmem:[#allocation2 + $0xb88] sm:$0xff] }
  0x50   :  { %4701 = vmatprep.subr.bf16.mxu0 %v6293_v61  ;;  %4830 = vmatprep.subr.bf16.mxu1 %v6295_v62  ;;  %v410_v60 = vld [vmem:[#allocation2 + $0xbc8] sm:$0xff]  ;;  %v6404_v61 = vcombine.low %v385_v49, %v393_v50  ;;  %v6406_v62 = vcombine.low %v386_v51, %v394_v52  ;;  %v513_v49 = vld [vmem:[#allocation2 + $0xf00] sm:$0xff] }
  0x51   :  { %v6423_v0 = vcombine.high %v402_v59, %v410_v60  ;;  %v521_v50 = vld [vmem:[#allocation2 + $0xf40] sm:$0xff]  ;;  %v514_v51 = vld [vmem:[#allocation2 + $0xf08] sm:$0xff] }
  0x52   :  { %v522_v52 = vld [vmem:[#allocation2 + $0xf48] sm:$0xff] }
  0x53   :  { %4702 = vmatpush1.bf16.msra.mxu0 %v6292_v3  ;;  %4831 = vmatpush1.bf16.msra.mxu1 %v6294_v4  ;;  %v418_v3 = vld [vmem:[#allocation2 + $0xc08] sm:$0xff] }
  0x54   :  { %4714 = vmatprep.subr.bf16.mxu0 %v6309_v5  ;;  %4843 = vmatprep.subr.bf16.mxu1 %v6311_v6  ;;  %v426_v4 = vld [vmem:[#allocation2 + $0xc48] sm:$0xff]  ;;  %v6420_v5 = vcombine.low %v401_v57, %v409_v58  ;;  %v6422_v6 = vcombine.low %v402_v59, %v410_v60  ;;  %v529_v57 = vld [vmem:[#allocation2 + $0xf80] sm:$0xff] }
  0x55   :  { %v6439_v8 = vcombine.high %v418_v3, %v426_v4  ;;  %v537_v58 = vld [vmem:[#allocation2 + $0xfc0] sm:$0xff]  ;;  %v530_v59 = vld [vmem:[#allocation2 + $0xf88] sm:$0xff] }
  0x56   :  { %4704 = vmatmul.mubr.bf16.vlgmr.msra.gmra.mrb[0].mxu0 %v6889_v9  ;;  %4833 = vmatmul.mubr.bf16.vlgmr.msra.gmra.mrb[0].mxu1 %v6889_v9  ;;  %v433_v9 = vld [vmem:[#allocation2 + $0xc80] sm:$0xff]  ;;  %v538_v60 = vld [vmem:[#allocation2 + $0xfc8] sm:$0xff] }
  0x57   :  { %4715 = vmatpush1.bf16.msra.mxu0 %v6308_v12  ;;  %4844 = vmatpush1.bf16.msra.mxu1 %v6310_v13  ;;  %v442_v12 = vld [vmem:[#allocation2 + $0xcc8] sm:$0xff]  ;;  %v6436_v13 = vcombine.low %v417_v1, %v425_v2  ;;  %v6453_v15 = vcombine.high %v433_v9, %v441_v10  ;;  %v545_v1 = vld [vmem:[#allocation2 + $0x1000] sm:$0xff] }
  0x58   :  { %4716 = vmatprep.subr.bf16.mxu0 %v6325_v14  ;;  %4845 = vmatprep.subr.bf16.mxu1 %v6327_v16  ;;  %v6438_v14 = vcombine.low %v418_v3, %v426_v4  ;;  %v6455_v16 = vcombine.high %v434_v11, %v442_v12  ;;  %v553_v2 = vld [vmem:[#allocation2 + $0x1040] sm:$0xff]  ;;  %v546_v3 = vld [vmem:[#allocation2 + $0x1008] sm:$0xff] }
  0x59   :  { %4746 = vmatprep.mubr.bf16.mxu0 %v6890_v18  ;;  %4875 = vmatprep.mubr.bf16.mxu1 %v6890_v18  ;;  %v457_v18 = vld [vmem:[#allocation2 + $0xd40] sm:$0xff]  ;;  %v554_v4 = vld [vmem:[#allocation2 + $0x1048] sm:$0xff] }
  0x5b   :  { %4717 = vmatpush1.bf16.msra.mxu0 %v6324_v21  ;;  %4846 = vmatpush1.bf16.msra.mxu1 %v6326_v22  ;;  %v6452_v21 = vcombine.low %v433_v9, %v441_v10  ;;  %v6454_v22 = vcombine.low %v434_v11, %v442_v12  ;;  %v561_v9 = vld [vmem:[#allocation2 + $0x1080] sm:$0xff]  ;;  %v562_v12 = vld [vmem:[#allocation2 + $0x1088] sm:$0xff] }
  0x5c   :  { %4718 = vmatprep.subr.bf16.mxu0 %v6341_v23  ;;  %4847 = vmatprep.subr.bf16.mxu1 %v6343_v24  ;;  %v6469_v23 = vcombine.high %v449_v17, %v457_v18  ;;  %v6471_v24 = vcombine.high %v450_v19, %v458_v20  ;;  %v569_v10 = vld [vmem:[#allocation2 + $0x10c0] sm:$0xff] }
  0x5d   :  { %v6892_v11 = vld [vmem:[%s7446_s0 + $0x8] ss:$24 sps:$4 sm:$0xff]  }
  0x5f   :  { %4719 = vmatpush1.bf16.msra.mxu0 %v6340_v29  ;;  %4848 = vmatpush1.bf16.msra.mxu1 %v6342_v30  ;;  %v6468_v29 = vcombine.low %v449_v17, %v457_v18  ;;  %v6470_v30 = vcombine.low %v450_v19, %v458_v20  ;;  %v577_v18 = vld [vmem:[#allocation2 + $0x1100] sm:$0xff]  ;;  %v6893_v20 = vld [vmem:[%s7446_s0 + $0x14] ss:$24 sps:$4 sm:$0xff]  }
  0x60   :  { %4720 = vmatprep.subr.bf16.mxu0 %v6357_v31  ;;  %4849 = vmatprep.subr.bf16.mxu1 %v6359_v32  ;;  %v6485_v31 = vcombine.high %v465_v25, %v473_v26  ;;  %v6487_v32 = vcombine.high %v466_v27, %v474_v28  ;;  %v585_v19 = vld [vmem:[#allocation2 + $0x1140] sm:$0xff] }
  0x63   :  { %4721 = vmatpush1.bf16.msra.mxu0 %v6356_v37  ;;  %4850 = vmatpush1.bf16.msra.mxu1 %v6358_v38  ;;  %v6484_v37 = vcombine.low %v465_v25, %v473_v26  ;;  %v6486_v38 = vcombine.low %v466_v27, %v474_v28  ;;  %v6597_v25 = vcombine.high %v577_v18, %v585_v19  ;;  %v593_v27 = vld [vmem:[#allocation2 + $0x1180] sm:$0xff] }
  0x64   :  { %4722 = vmatprep.subr.bf16.mxu0 %v6373_v39  ;;  %4851 = vmatprep.subr.bf16.mxu1 %v6375_v40  ;;  %v6501_v39 = vcombine.high %v481_v33, %v489_v34  ;;  %v6503_v40 = vcombine.high %v482_v35, %v490_v36  ;;  %v601_v28 = vld [vmem:[#allocation2 + $0x11c0] sm:$0xff] }
  0x67   :  { %4723 = vmatpush1.bf16.msra.mxu0 %v6372_v45  ;;  %4852 = vmatpush1.bf16.msra.mxu1 %v6374_v46  ;;  %v6500_v45 = vcombine.low %v481_v33, %v489_v34  ;;  %v6502_v46 = vcombine.low %v482_v35, %v490_v36  ;;  %v6613_v33 = vcombine.high %v593_v27, %v601_v28  ;;  %v609_v35 = vld [vmem:[#allocation2 + $0x1200] sm:$0xff] }
  0x68   :  { %4724 = vmatprep.subr.bf16.mxu0 %v6389_v47  ;;  %4853 = vmatprep.subr.bf16.mxu1 %v6391_v48  ;;  %v6517_v47 = vcombine.high %v497_v41, %v505_v42  ;;  %v6519_v48 = vcombine.high %v498_v43, %v506_v44  ;;  %v617_v36 = vld [vmem:[#allocation2 + $0x1240] sm:$0xff] }
  0x6b   :  { %4725 = vmatpush1.bf16.msra.mxu0 %v6388_v53  ;;  %4854 = vmatpush1.bf16.msra.mxu1 %v6390_v54  ;;  %v6516_v53 = vcombine.low %v497_v41, %v505_v42  ;;  %v6518_v54 = vcombine.low %v498_v43, %v506_v44  ;;  %v6629_v41 = vcombine.high %v609_v35, %v617_v36  ;;  %v625_v43 = vld [vmem:[#allocation2 + $0x1280] sm:$0xff] }
  0x6c   :  { %4726 = vmatprep.subr.bf16.mxu0 %v6405_v55  ;;  %4855 = vmatprep.subr.bf16.mxu1 %v6407_v56  ;;  %v6533_v55 = vcombine.high %v513_v49, %v521_v50  ;;  %v6535_v56 = vcombine.high %v514_v51, %v522_v52  ;;  %v633_v44 = vld [vmem:[#allocation2 + $0x12c0] sm:$0xff] }
  0x6f   :  { %4727 = vmatpush1.bf16.msra.mxu0 %v6404_v61  ;;  %4856 = vmatpush1.bf16.msra.mxu1 %v6406_v62  ;;  %v6532_v61 = vcombine.low %v513_v49, %v521_v50  ;;  %v6534_v62 = vcombine.low %v514_v51, %v522_v52  ;;  %v6645_v49 = vcombine.high %v625_v43, %v633_v44  ;;  %v641_v51 = vld [vmem:[#allocation2 + $0x1300] sm:$0xff] }
  0x70   :  { %4728 = vmatprep.subr.bf16.mxu0 %v6421_v63  ;;  %4857 = vmatprep.subr.bf16.mxu1 %v6423_v0  ;;  %v6549_v63 = vcombine.high %v529_v57, %v537_v58  ;;  %v6551_v0 = vcombine.high %v530_v59, %v538_v60  ;;  %v649_v52 = vld [vmem:[#allocation2 + $0x1340] sm:$0xff] }
  0x73   :  { %4729 = vmatpush1.bf16.msra.mxu0 %v6420_v5  ;;  %4858 = vmatpush1.bf16.msra.mxu1 %v6422_v6  ;;  %v6548_v5 = vcombine.low %v529_v57, %v537_v58  ;;  %v6550_v6 = vcombine.low %v530_v59, %v538_v60  ;;  %v6661_v57 = vcombine.high %v641_v51, %v649_v52  ;;  %v657_v59 = vld [vmem:[#allocation2 + $0x1380] sm:$0xff] }
  0x74   :  { %4730 = vmatprep.subr.bf16.mxu0 %v6437_v7  ;;  %4859 = vmatprep.subr.bf16.mxu1 %v6439_v8  ;;  %v6565_v7 = vcombine.high %v545_v1, %v553_v2  ;;  %v6567_v8 = vcombine.high %v546_v3, %v554_v4  ;;  %v665_v60 = vld [vmem:[#allocation2 + $0x13c0] sm:$0xff] }
  0x77   :  { %4731 = vmatpush1.bf16.msra.mxu0 %v6436_v13  ;;  %4860 = vmatpush1.bf16.msra.mxu1 %v6438_v14  ;;  %v570_v13 = vld [vmem:[#allocation2 + $0x10c8] sm:$0xff]  ;;  %v6564_v14 = vcombine.low %v545_v1, %v553_v2  ;;  %v6677_v1 = vcombine.high %v657_v59, %v665_v60 }
  0x78   :  { %4732 = vmatprep.subr.bf16.mxu0 %v6453_v15  ;;  %4861 = vmatprep.subr.bf16.mxu1 %v6455_v16  ;;  %v6566_v15 = vcombine.low %v546_v3, %v554_v4  ;;  %v6581_v16 = vcombine.high %v561_v9, %v569_v10  ;;  %v6583_v17 = vcombine.high %v562_v12, %v570_v13  ;;  %v673_v3 = vld [vmem:[#allocation2 + $0x1400] sm:$0xff] }
  0x79   :  { %v681_v4 = vld [vmem:[#allocation2 + $0x1440] sm:$0xff] }
  0x7b   :  { %4733 = vmatpush1.bf16.msra.mxu0 %v6452_v21  ;;  %4862 = vmatpush1.bf16.msra.mxu1 %v6454_v22  ;;  %v578_v21 = vld [vmem:[#allocation2 + $0x1108] sm:$0xff] }
  0x7c   :  { %4734 = vmatprep.subr.bf16.mxu0 %v6469_v23  ;;  %4863 = vmatprep.subr.bf16.mxu1 %v6471_v24  ;;  %v586_v22 = vld [vmem:[#allocation2 + $0x1148] sm:$0xff]  ;;  %v6580_v23 = vcombine.low %v561_v9, %v569_v10  ;;  %v6582_v24 = vcombine.low %v562_v12, %v570_v13  ;;  %v6693_v9 = vcombine.high %v673_v3, %v681_v4  ;;  %v697_v12 = vld [vmem:[#allocation2 + $0x14c0] sm:$0xff] }
  0x7d   :  { %v6599_v26 = vcombine.high %v578_v21, %v586_v22  ;;  %v690_v13 = vld [vmem:[#allocation2 + $0x1488] sm:$0xff] }
  0x7f   :  { %4735 = vmatpush1.bf16.msra.mxu0 %v6468_v29  ;;  %4864 = vmatpush1.bf16.msra.mxu1 %v6470_v30  ;;  %v594_v29 = vld [vmem:[#allocation2 + $0x1188] sm:$0xff] }
  0x80   :  { %4736 = vmatprep.subr.bf16.mxu0 %v6485_v31  ;;  %4865 = vmatprep.subr.bf16.mxu1 %v6487_v32  ;;  %v602_v30 = vld [vmem:[#allocation2 + $0x11c8] sm:$0xff]  ;;  %v6596_v31 = vcombine.low %v577_v18, %v585_v19  ;;  %v6598_v32 = vcombine.low %v578_v21, %v586_v22  ;;  %v705_v19 = vld [vmem:[#allocation2 + $0x1500] sm:$0xff] }
  0x81   :  { %v6615_v34 = vcombine.high %v594_v29, %v602_v30  ;;  %v706_v21 = vld [vmem:[#allocation2 + $0x1508] sm:$0xff] }
  0x82   :  { %v714_v22 = vld [vmem:[#allocation2 + $0x1548] sm:$0xff] }
  0x83   :  { %4737 = vmatpush1.bf16.msra.mxu0 %v6484_v37  ;;  %4866 = vmatpush1.bf16.msra.mxu1 %v6486_v38  ;;  %v610_v37 = vld [vmem:[#allocation2 + $0x1208] sm:$0xff] }
  0x84   :  { %4738 = vmatprep.subr.bf16.mxu0 %v6501_v39  ;;  %4867 = vmatprep.subr.bf16.mxu1 %v6503_v40  ;;  %v618_v38 = vld [vmem:[#allocation2 + $0x1248] sm:$0xff]  ;;  %v6612_v39 = vcombine.low %v593_v27, %v601_v28  ;;  %v6614_v40 = vcombine.low %v594_v29, %v602_v30  ;;  %v721_v27 = vld [vmem:[#allocation2 + $0x1580] sm:$0xff] }
  0x85   :  { %v6631_v42 = vcombine.high %v610_v37, %v618_v38  ;;  %v729_v28 = vld [vmem:[#allocation2 + $0x15c0] sm:$0xff]  ;;  %v722_v29 = vld [vmem:[#allocation2 + $0x1588] sm:$0xff] }
  0x86   :  { %v730_v30 = vld [vmem:[#allocation2 + $0x15c8] sm:$0xff] }
  0x87   :  { %4739 = vmatpush1.bf16.msra.mxu0 %v6500_v45  ;;  %4868 = vmatpush1.bf16.msra.mxu1 %v6502_v46  ;;  %v626_v45 = vld [vmem:[#allocation2 + $0x1288] sm:$0xff] }
  0x88   :  { %4740 = vmatprep.subr.bf16.mxu0 %v6517_v47  ;;  %4869 = vmatprep.subr.bf16.mxu1 %v6519_v48  ;;  %v634_v46 = vld [vmem:[#allocation2 + $0x12c8] sm:$0xff]  ;;  %v6628_v47 = vcombine.low %v609_v35, %v617_v36  ;;  %v6630_v48 = vcombine.low %v610_v37, %v618_v38  ;;  %v737_v35 = vld [vmem:[#allocation2 + $0x1600] sm:$0xff] }
  0x89   :  { %v6647_v50 = vcombine.high %v626_v45, %v634_v46  ;;  %v745_v36 = vld [vmem:[#allocation2 + $0x1640] sm:$0xff]  ;;  %v738_v37 = vld [vmem:[#allocation2 + $0x1608] sm:$0xff] }
  0x8a   :  { %v746_v38 = vld [vmem:[#allocation2 + $0x1648] sm:$0xff] }
  0x8b   :  { %4741 = vmatpush1.bf16.msra.mxu0 %v6516_v53  ;;  %4870 = vmatpush1.bf16.msra.mxu1 %v6518_v54  ;;  %v642_v53 = vld [vmem:[#allocation2 + $0x1308] sm:$0xff] }
  0x8c   :  { %4742 = vmatprep.subr.bf16.mxu0 %v6533_v55  ;;  %4871 = vmatprep.subr.bf16.mxu1 %v6535_v56  ;;  %v650_v54 = vld [vmem:[#allocation2 + $0x1348] sm:$0xff]  ;;  %v6644_v55 = vcombine.low %v625_v43, %v633_v44  ;;  %v6646_v56 = vcombine.low %v626_v45, %v634_v46  ;;  %v753_v43 = vld [vmem:[#allocation2 + $0x1680] sm:$0xff] }
  0x8d   :  { %v6663_v58 = vcombine.high %v642_v53, %v650_v54  ;;  %v761_v44 = vld [vmem:[#allocation2 + $0x16c0] sm:$0xff]  ;;  %v754_v45 = vld [vmem:[#allocation2 + $0x1688] sm:$0xff] }
  0x8e   :  { %v762_v46 = vld [vmem:[#allocation2 + $0x16c8] sm:$0xff] }
  0x8f   :  { %4743 = vmatpush1.bf16.msra.mxu0 %v6532_v61  ;;  %4872 = vmatpush1.bf16.msra.mxu1 %v6534_v62  ;;  %v658_v61 = vld [vmem:[#allocation2 + $0x1388] sm:$0xff] }
  0x90   :  { %4744 = vmatprep.subr.bf16.mxu0 %v6549_v63  ;;  %4873 = vmatprep.subr.bf16.mxu1 %v6551_v0  ;;  %v666_v62 = vld [vmem:[#allocation2 + $0x13c8] sm:$0xff]  ;;  %v6660_v63 = vcombine.low %v641_v51, %v649_v52  ;;  %v6662_v0 = vcombine.low %v642_v53, %v650_v54  ;;  %v769_v51 = vld [vmem:[#allocation2 + $0x1700] sm:$0xff] }
  0x91   :  { %v6679_v2 = vcombine.high %v658_v61, %v666_v62  ;;  %v777_v52 = vld [vmem:[#allocation2 + $0x1740] sm:$0xff]  ;;  %v770_v53 = vld [vmem:[#allocation2 + $0x1708] sm:$0xff] }
  0x92   :  { %v778_v54 = vld [vmem:[#allocation2 + $0x1748] sm:$0xff] }
  0x93   :  { %4745 = vmatpush1.bf16.msra.mxu0 %v6548_v5  ;;  %4874 = vmatpush1.bf16.msra.mxu1 %v6550_v6  ;;  %v674_v5 = vld [vmem:[#allocation2 + $0x1408] sm:$0xff] }
  0x94   :  { %4757 = vmatprep.subr.bf16.mxu0 %v6565_v7  ;;  %4886 = vmatprep.subr.bf16.mxu1 %v6567_v8  ;;  %v682_v6 = vld [vmem:[#allocation2 + $0x1448] sm:$0xff]  ;;  %v6676_v7 = vcombine.low %v657_v59, %v665_v60  ;;  %v6678_v8 = vcombine.low %v658_v61, %v666_v62  ;;  %v785_v59 = vld [vmem:[#allocation2 + $0x1780] sm:$0xff] }
  0x95   :  { %v6695_v10 = vcombine.high %v674_v5, %v682_v6  ;;  %v793_v60 = vld [vmem:[#allocation2 + $0x17c0] sm:$0xff]  ;;  %v786_v61 = vld [vmem:[#allocation2 + $0x1788] sm:$0xff] }
  0x96   :  { %4747 = vmatmul.mubr.bf16.vlgmr.msra.gmra.mrb[0].mxu0 %v6892_v11  ;;  %4876 = vmatmul.mubr.bf16.vlgmr.msra.gmra.mrb[0].mxu1 %v6892_v11  ;;  %v689_v11 = vld [vmem:[#allocation2 + $0x1480] sm:$0xff]  ;;  %v794_v62 = vld [vmem:[#allocation2 + $0x17c8] sm:$0xff] }
  0x97   :  { %4758 = vmatpush1.bf16.msra.mxu0 %v6564_v14  ;;  %4887 = vmatpush1.bf16.msra.mxu1 %v6566_v15  ;;  %v698_v14 = vld [vmem:[#allocation2 + $0x14c8] sm:$0xff]  ;;  %v6692_v15 = vcombine.low %v673_v3, %v681_v4  ;;  %v35_v3 = vld [vmem:[#allocation2 + $0x10] sm:$0xff] }
  0x98   :  { %4759 = vmatprep.subr.bf16.mxu0 %v6581_v16  ;;  %4888 = vmatprep.subr.bf16.mxu1 %v6583_v17  ;;  %v6694_v16 = vcombine.low %v674_v5, %v682_v6  ;;  %v6709_v17 = vcombine.high %v689_v11, %v697_v12  ;;  %v6711_v18 = vcombine.high %v690_v13, %v698_v14  ;;  %v43_v4 = vld [vmem:[#allocation2 + $0x50] sm:$0xff]  ;;  %v36_v5 = vld [vmem:[#allocation2 + $0x18] sm:$0xff] }
  0x99   :  { %4789 = vmatprep.mubr.bf16.mxu0 %v6893_v20  ;;  %4918 = vmatprep.mubr.bf16.mxu1 %v6893_v20  ;;  %v713_v20 = vld [vmem:[#allocation2 + $0x1540] sm:$0xff]  ;;  %v44_v6 = vld [vmem:[#allocation2 + $0x58] sm:$0xff] }
  0x9b   :  { %4760 = vmatpush1.bf16.msra.mxu0 %v6580_v23  ;;  %4889 = vmatpush1.bf16.msra.mxu1 %v6582_v24  ;;  %v6708_v23 = vcombine.low %v689_v11, %v697_v12  ;;  %v6710_v24 = vcombine.low %v690_v13, %v698_v14  ;;  %v51_v11 = vld [vmem:[#allocation2 + $0x90] sm:$0xff]  ;;  %v52_v14 = vld [vmem:[#allocation2 + $0x98] sm:$0xff] }
  0x9c   :  { %4761 = vmatprep.subr.bf16.mxu0 %v6597_v25  ;;  %4890 = vmatprep.subr.bf16.mxu1 %v6599_v26  ;;  %v6725_v25 = vcombine.high %v705_v19, %v713_v20  ;;  %v6727_v26 = vcombine.high %v706_v21, %v714_v22  ;;  %v59_v12 = vld [vmem:[#allocation2 + $0xd0] sm:$0xff] }
  0x9d   :  { %v6895_v13 = vld [vmem:[%s7446_s0 + $0x10] ss:$24 sps:$4 sm:$0xff]  }
  0x9f   :  { %4762 = vmatpush1.bf16.msra.mxu0 %v6596_v31  ;;  %4891 = vmatpush1.bf16.msra.mxu1 %v6598_v32  ;;  %v6724_v31 = vcombine.low %v705_v19, %v713_v20  ;;  %v6726_v32 = vcombine.low %v706_v21, %v714_v22  ;;  %v67_v20 = vld [vmem:[#allocation2 + $0x110] sm:$0xff]  ;;  %v68_v22 = vld [vmem:[#allocation2 + $0x118] sm:$0xff] }
  0xa0   :  { %4763 = vmatprep.subr.bf16.mxu0 %v6613_v33  ;;  %4892 = vmatprep.subr.bf16.mxu1 %v6615_v34  ;;  %v6741_v33 = vcombine.high %v721_v27, %v729_v28  ;;  %v6743_v34 = vcombine.high %v722_v29, %v730_v30  ;;  %v75_v21 = vld [vmem:[#allocation2 + $0x150] sm:$0xff] }
  0xa3   :  { %4764 = vmatpush1.bf16.msra.mxu0 %v6612_v39  ;;  %4893 = vmatpush1.bf16.msra.mxu1 %v6614_v40  ;;  %v6740_v39 = vcombine.low %v721_v27, %v729_v28  ;;  %v6742_v40 = vcombine.low %v722_v29, %v730_v30  ;;  %v83_v28 = vld [vmem:[#allocation2 + $0x190] sm:$0xff]  ;;  %v6896_v30 = vld [vmem:[%s7446_s0 + $0x4] ss:$24 sps:$4 sm:$0xff]  }
  0xa4   :  { %4765 = vmatprep.subr.bf16.mxu0 %v6629_v41  ;;  %4894 = vmatprep.subr.bf16.mxu1 %v6631_v42  ;;  %v6757_v41 = vcombine.high %v737_v35, %v745_v36  ;;  %v6759_v42 = vcombine.high %v738_v37, %v746_v38  ;;  %v91_v29 = vld [vmem:[#allocation2 + $0x1d0] sm:$0xff] }
  0xa7   :  { %4766 = vmatpush1.bf16.msra.mxu0 %v6628_v47  ;;  %4895 = vmatpush1.bf16.msra.mxu1 %v6630_v48  ;;  %v6756_v47 = vcombine.low %v737_v35, %v745_v36  ;;  %v6758_v48 = vcombine.low %v738_v37, %v746_v38  ;;  %v6105_v35 = vcombine.high %v83_v28, %v91_v29  ;;  %v99_v37 = vld [vmem:[#allocation2 + $0x210] sm:$0xff] }
  0xa8   :  { %4767 = vmatprep.subr.bf16.mxu0 %v6645_v49  ;;  %4896 = vmatprep.subr.bf16.mxu1 %v6647_v50  ;;  %v6773_v49 = vcombine.high %v753_v43, %v761_v44  ;;  %v6775_v50 = vcombine.high %v754_v45, %v762_v46  ;;  %v107_v38 = vld [vmem:[#allocation2 + $0x250] sm:$0xff] }
  0xab   :  { %4768 = vmatpush1.bf16.msra.mxu0 %v6644_v55  ;;  %4897 = vmatpush1.bf16.msra.mxu1 %v6646_v56  ;;  %v6772_v55 = vcombine.low %v753_v43, %v761_v44  ;;  %v6774_v56 = vcombine.low %v754_v45, %v762_v46  ;;  %v6121_v43 = vcombine.high %v99_v37, %v107_v38  ;;  %v115_v45 = vld [vmem:[#allocation2 + $0x290] sm:$0xff] }
  0xac   :  { %4769 = vmatprep.subr.bf16.mxu0 %v6661_v57  ;;  %4898 = vmatprep.subr.bf16.mxu1 %v6663_v58  ;;  %v6789_v57 = vcombine.high %v769_v51, %v777_v52  ;;  %v6791_v58 = vcombine.high %v770_v53, %v778_v54  ;;  %v123_v46 = vld [vmem:[#allocation2 + $0x2d0] sm:$0xff] }
  0xaf   :  { %4770 = vmatpush1.bf16.msra.mxu0 %v6660_v63  ;;  %4899 = vmatpush1.bf16.msra.mxu1 %v6662_v0  ;;  %v6788_v63 = vcombine.low %v769_v51, %v777_v52  ;;  %v6790_v0 = vcombine.low %v770_v53, %v778_v54  ;;  %v6137_v51 = vcombine.high %v115_v45, %v123_v46  ;;  %v131_v53 = vld [vmem:[#allocation2 + $0x310] sm:$0xff] }
  0xb0   :  { %4771 = vmatprep.subr.bf16.mxu0 %v6677_v1  ;;  %4900 = vmatprep.subr.bf16.mxu1 %v6679_v2  ;;  %v6805_v1 = vcombine.high %v785_v59, %v793_v60  ;;  %v6807_v2 = vcombine.high %v786_v61, %v794_v62  ;;  %v139_v54 = vld [vmem:[#allocation2 + $0x350] sm:$0xff] }
  0xb3   :  { %4772 = vmatpush1.bf16.msra.mxu0 %v6676_v7  ;;  %4901 = vmatpush1.bf16.msra.mxu1 %v6678_v8  ;;  %v6804_v7 = vcombine.low %v785_v59, %v793_v60  ;;  %v6806_v8 = vcombine.low %v786_v61, %v794_v62  ;;  %v6153_v59 = vcombine.high %v131_v53, %v139_v54  ;;  %v147_v61 = vld [vmem:[#allocation2 + $0x390] sm:$0xff] }
  0xb4   :  { %4773 = vmatprep.subr.bf16.mxu0 %v6693_v9  ;;  %4902 = vmatprep.subr.bf16.mxu1 %v6695_v10  ;;  %v6057_v9 = vcombine.high %v35_v3, %v43_v4  ;;  %v6059_v10 = vcombine.high %v36_v5, %v44_v6  ;;  %v155_v62 = vld [vmem:[#allocation2 + $0x3d0] sm:$0xff] }
  0xb7   :  { %4774 = vmatpush1.bf16.msra.mxu0 %v6692_v15  ;;  %4903 = vmatpush1.bf16.msra.mxu1 %v6694_v16  ;;  %v60_v15 = vld [vmem:[#allocation2 + $0xd8] sm:$0xff]  ;;  %v6056_v16 = vcombine.low %v35_v3, %v43_v4  ;;  %v6169_v3 = vcombine.high %v147_v61, %v155_v62 }
  0xb8   :  { %4775 = vmatprep.subr.bf16.mxu0 %v6709_v17  ;;  %4904 = vmatprep.subr.bf16.mxu1 %v6711_v18  ;;  %v6058_v17 = vcombine.low %v36_v5, %v44_v6  ;;  %v6073_v18 = vcombine.high %v51_v11, %v59_v12  ;;  %v6075_v19 = vcombine.high %v52_v14, %v60_v15  ;;  %v163_v5 = vld [vmem:[#allocation2 + $0x410] sm:$0xff] }
  0xb9   :  { %v171_v6 = vld [vmem:[#allocation2 + $0x450] sm:$0xff] }
  0xbb   :  { %4776 = vmatpush1.bf16.msra.mxu0 %v6708_v23  ;;  %4905 = vmatpush1.bf16.msra.mxu1 %v6710_v24  ;;  %v76_v23 = vld [vmem:[#allocation2 + $0x158] sm:$0xff]  ;;  %v6072_v24 = vcombine.low %v51_v11, %v59_v12  ;;  %v6185_v11 = vcombine.high %v163_v5, %v171_v6 }
  0xbc   :  { %4777 = vmatprep.subr.bf16.mxu0 %v6725_v25  ;;  %4906 = vmatprep.subr.bf16.mxu1 %v6727_v26  ;;  %v6074_v25 = vcombine.low %v52_v14, %v60_v15  ;;  %v6089_v26 = vcombine.high %v67_v20, %v75_v21  ;;  %v6091_v27 = vcombine.high %v68_v22, %v76_v23  ;;  %v187_v14 = vld [vmem:[#allocation2 + $0x4d0] sm:$0xff]  ;;  %v180_v15 = vld [vmem:[#allocation2 + $0x498] sm:$0xff] }
  0xbf   :  { %4778 = vmatpush1.bf16.msra.mxu0 %v6724_v31  ;;  %4907 = vmatpush1.bf16.msra.mxu1 %v6726_v32  ;;  %v84_v31 = vld [vmem:[#allocation2 + $0x198] sm:$0xff] }
  0xc0   :  { %4779 = vmatprep.subr.bf16.mxu0 %v6741_v33  ;;  %4908 = vmatprep.subr.bf16.mxu1 %v6743_v34  ;;  %v92_v32 = vld [vmem:[#allocation2 + $0x1d8] sm:$0xff]  ;;  %v6088_v33 = vcombine.low %v67_v20, %v75_v21  ;;  %v6090_v34 = vcombine.low %v68_v22, %v76_v23  ;;  %v195_v21 = vld [vmem:[#allocation2 + $0x510] sm:$0xff] }
  0xc1   :  { %v6107_v36 = vcombine.high %v84_v31, %v92_v32  ;;  %v203_v22 = vld [vmem:[#allocation2 + $0x550] sm:$0xff]  ;;  %v196_v23 = vld [vmem:[#allocation2 + $0x518] sm:$0xff] }
  0xc3   :  { %4780 = vmatpush1.bf16.msra.mxu0 %v6740_v39  ;;  %4909 = vmatpush1.bf16.msra.mxu1 %v6742_v40  ;;  %v100_v39 = vld [vmem:[#allocation2 + $0x218] sm:$0xff] }
  0xc4   :  { %4781 = vmatprep.subr.bf16.mxu0 %v6757_v41  ;;  %4910 = vmatprep.subr.bf16.mxu1 %v6759_v42  ;;  %v108_v40 = vld [vmem:[#allocation2 + $0x258] sm:$0xff]  ;;  %v6104_v41 = vcombine.low %v83_v28, %v91_v29  ;;  %v6106_v42 = vcombine.low %v84_v31, %v92_v32  ;;  %v211_v29 = vld [vmem:[#allocation2 + $0x590] sm:$0xff] }
  0xc5   :  { %v6123_v44 = vcombine.high %v100_v39, %v108_v40  ;;  %v212_v31 = vld [vmem:[#allocation2 + $0x598] sm:$0xff] }
  0xc6   :  { %v220_v32 = vld [vmem:[#allocation2 + $0x5d8] sm:$0xff] }
  0xc7   :  { %4782 = vmatpush1.bf16.msra.mxu0 %v6756_v47  ;;  %4911 = vmatpush1.bf16.msra.mxu1 %v6758_v48  ;;  %v116_v47 = vld [vmem:[#allocation2 + $0x298] sm:$0xff] }
  0xc8   :  { %4783 = vmatprep.subr.bf16.mxu0 %v6773_v49  ;;  %4912 = vmatprep.subr.bf16.mxu1 %v6775_v50  ;;  %v124_v48 = vld [vmem:[#allocation2 + $0x2d8] sm:$0xff]  ;;  %v6120_v49 = vcombine.low %v99_v37, %v107_v38  ;;  %v6122_v50 = vcombine.low %v100_v39, %v108_v40  ;;  %v227_v37 = vld [vmem:[#allocation2 + $0x610] sm:$0xff] }
  0xc9   :  { %v6139_v52 = vcombine.high %v116_v47, %v124_v48  ;;  %v235_v38 = vld [vmem:[#allocation2 + $0x650] sm:$0xff]  ;;  %v228_v39 = vld [vmem:[#allocation2 + $0x618] sm:$0xff] }
  0xca   :  { %v236_v40 = vld [vmem:[#allocation2 + $0x658] sm:$0xff] }
  0xcb   :  { %4784 = vmatpush1.bf16.msra.mxu0 %v6772_v55  ;;  %4913 = vmatpush1.bf16.msra.mxu1 %v6774_v56  ;;  %v132_v55 = vld [vmem:[#allocation2 + $0x318] sm:$0xff] }
  0xcc   :  { %4785 = vmatprep.subr.bf16.mxu0 %v6789_v57  ;;  %4914 = vmatprep.subr.bf16.mxu1 %v6791_v58  ;;  %v140_v56 = vld [vmem:[#allocation2 + $0x358] sm:$0xff]  ;;  %v6136_v57 = vcombine.low %v115_v45, %v123_v46  ;;  %v6138_v58 = vcombine.low %v116_v47, %v124_v48  ;;  %v243_v45 = vld [vmem:[#allocation2 + $0x690] sm:$0xff] }
  0xcd   :  { %v6155_v60 = vcombine.high %v132_v55, %v140_v56  ;;  %v251_v46 = vld [vmem:[#allocation2 + $0x6d0] sm:$0xff]  ;;  %v244_v47 = vld [vmem:[#allocation2 + $0x698] sm:$0xff] }
  0xce   :  { %v252_v48 = vld [vmem:[#allocation2 + $0x6d8] sm:$0xff] }
  0xcf   :  { %4786 = vmatpush1.bf16.msra.mxu0 %v6788_v63  ;;  %4915 = vmatpush1.bf16.msra.mxu1 %v6790_v0  ;;  %v148_v63 = vld [vmem:[#allocation2 + $0x398] sm:$0xff] }
  0xd0   :  { %4787 = vmatprep.subr.bf16.mxu0 %v6805_v1  ;;  %4916 = vmatprep.subr.bf16.mxu1 %v6807_v2  ;;  %v156_v0 = vld [vmem:[#allocation2 + $0x3d8] sm:$0xff]  ;;  %v6152_v1 = vcombine.low %v131_v53, %v139_v54  ;;  %v6154_v2 = vcombine.low %v132_v55, %v140_v56  ;;  %v259_v53 = vld [vmem:[#allocation2 + $0x710] sm:$0xff] }
  0xd1   :  { %v6171_v4 = vcombine.high %v148_v63, %v156_v0  ;;  %v267_v54 = vld [vmem:[#allocation2 + $0x750] sm:$0xff]  ;;  %v260_v55 = vld [vmem:[#allocation2 + $0x718] sm:$0xff] }
  0xd2   :  { %v268_v56 = vld [vmem:[#allocation2 + $0x758] sm:$0xff] }
  0xd3   :  { %4788 = vmatpush1.bf16.msra.mxu0 %v6804_v7  ;;  %4917 = vmatpush1.bf16.msra.mxu1 %v6806_v8  ;;  %v164_v7 = vld [vmem:[#allocation2 + $0x418] sm:$0xff] }
  0xd4   :  { %4929 = vmatprep.subr.bf16.mxu0 %v6057_v9  ;;  %5058 = vmatprep.subr.bf16.mxu1 %v6059_v10  ;;  %v172_v8 = vld [vmem:[#allocation2 + $0x458] sm:$0xff]  ;;  %v6168_v9 = vcombine.low %v147_v61, %v155_v62  ;;  %v6170_v10 = vcombine.low %v148_v63, %v156_v0  ;;  %v275_v61 = vld [vmem:[#allocation2 + $0x790] sm:$0xff] }
  0xd5   :  { %v6187_v12 = vcombine.high %v164_v7, %v172_v8  ;;  %v283_v62 = vld [vmem:[#allocation2 + $0x7d0] sm:$0xff]  ;;  %v276_v63 = vld [vmem:[#allocation2 + $0x798] sm:$0xff] }
  0xd6   :  { %4790 = vmatmul.mubr.bf16.vlgmr.msra.gmra.mrb[0].mxu0 %v6895_v13  ;;  %4919 = vmatmul.mubr.bf16.vlgmr.msra.gmra.mrb[0].mxu1 %v6895_v13  ;;  %v179_v13 = vld [vmem:[#allocation2 + $0x490] sm:$0xff]  ;;  %v284_v0 = vld [vmem:[#allocation2 + $0x7d8] sm:$0xff] }
  0xd7   :  { %4930 = vmatpush1.bf16.msra.mxu0 %v6056_v16  ;;  %5059 = vmatpush1.bf16.msra.mxu1 %v6058_v17  ;;  %v188_v16 = vld [vmem:[#allocation2 + $0x4d8] sm:$0xff]  ;;  %v6184_v17 = vcombine.low %v163_v5, %v171_v6  ;;  %v291_v5 = vld [vmem:[#allocation2 + $0x810] sm:$0xff] }
  0xd8   :  { %4931 = vmatprep.subr.bf16.mxu0 %v6073_v18  ;;  %5060 = vmatprep.subr.bf16.mxu1 %v6075_v19  ;;  %v6186_v18 = vcombine.low %v164_v7, %v172_v8  ;;  %v6201_v19 = vcombine.high %v179_v13, %v187_v14  ;;  %v6203_v20 = vcombine.high %v180_v15, %v188_v16  ;;  %v299_v6 = vld [vmem:[#allocation2 + $0x850] sm:$0xff]  ;;  %v292_v7 = vld [vmem:[#allocation2 + $0x818] sm:$0xff] }
  0xd9   :  { %4961 = vmatprep.mubr.bf16.mxu0 %v6896_v30  ;;  %5090 = vmatprep.mubr.bf16.mxu1 %v6896_v30  ;;  %v219_v30 = vld [vmem:[#allocation2 + $0x5d0] sm:$0xff]  ;;  %v300_v8 = vld [vmem:[#allocation2 + $0x858] sm:$0xff] }
  0xdb   :  { %4932 = vmatpush1.bf16.msra.mxu0 %v6072_v24  ;;  %5061 = vmatpush1.bf16.msra.mxu1 %v6074_v25  ;;  %v204_v24 = vld [vmem:[#allocation2 + $0x558] sm:$0xff]  ;;  %v6200_v25 = vcombine.low %v179_v13, %v187_v14  ;;  %v307_v13 = vld [vmem:[#allocation2 + $0x890] sm:$0xff] }
  0xdc   :  { %4933 = vmatprep.subr.bf16.mxu0 %v6089_v26  ;;  %5062 = vmatprep.subr.bf16.mxu1 %v6091_v27  ;;  %v6202_v26 = vcombine.low %v180_v15, %v188_v16  ;;  %v6217_v27 = vcombine.high %v195_v21, %v203_v22  ;;  %v6219_v28 = vcombine.high %v196_v23, %v204_v24  ;;  %v315_v14 = vld [vmem:[#allocation2 + $0x8d0] sm:$0xff]  ;;  %v308_v15 = vld [vmem:[#allocation2 + $0x898] sm:$0xff] }
  0xdd   :  { %v316_v16 = vld [vmem:[#allocation2 + $0x8d8] sm:$0xff] }
  0xdf   :  { %4934 = vmatpush1.bf16.msra.mxu0 %v6088_v33  ;;  %5063 = vmatpush1.bf16.msra.mxu1 %v6090_v34  ;;  %v6216_v33 = vcombine.low %v195_v21, %v203_v22  ;;  %v6218_v34 = vcombine.low %v196_v23, %v204_v24  ;;  %v323_v21 = vld [vmem:[#allocation2 + $0x910] sm:$0xff]  ;;  %v6897_v23 = vld [vmem:[%s7446_s0] ss:$24 sps:$4 sm:$0xff]  }
  0xe0   :  { %4935 = vmatprep.subr.bf16.mxu0 %v6105_v35  ;;  %5064 = vmatprep.subr.bf16.mxu1 %v6107_v36  ;;  %v6233_v35 = vcombine.high %v211_v29, %v219_v30  ;;  %v6235_v36 = vcombine.high %v212_v31, %v220_v32  ;;  %v331_v22 = vld [vmem:[#allocation2 + $0x950] sm:$0xff]  ;;  %v324_v24 = vld [vmem:[#allocation2 + $0x918] sm:$0xff] }
  0xe3   :  { %4936 = vmatpush1.bf16.msra.mxu0 %v6104_v41  ;;  %5065 = vmatpush1.bf16.msra.mxu1 %v6106_v42  ;;  %v6232_v41 = vcombine.low %v211_v29, %v219_v30  ;;  %v6234_v42 = vcombine.low %v212_v31, %v220_v32  ;;  %v339_v30 = vld [vmem:[#allocation2 + $0x990] sm:$0xff]  ;;  %v6898_v32 = vld [vmem:[%s7446_s0 + $0xc] ss:$24 sps:$4 sm:$0xff]  }
  0xe4   :  { %4937 = vmatprep.subr.bf16.mxu0 %v6121_v43  ;;  %5066 = vmatprep.subr.bf16.mxu1 %v6123_v44  ;;  %v6249_v43 = vcombine.high %v227_v37, %v235_v38  ;;  %v6251_v44 = vcombine.high %v228_v39, %v236_v40  ;;  %v347_v31 = vld [vmem:[#allocation2 + $0x9d0] sm:$0xff] }
  0xe7   :  { %4938 = vmatpush1.bf16.msra.mxu0 %v6120_v49  ;;  %5067 = vmatpush1.bf16.msra.mxu1 %v6122_v50  ;;  %v6248_v49 = vcombine.low %v227_v37, %v235_v38  ;;  %v6250_v50 = vcombine.low %v228_v39, %v236_v40  ;;  %v6361_v37 = vcombine.high %v339_v30, %v347_v31  ;;  %v355_v39 = vld [vmem:[#allocation2 + $0xa10] sm:$0xff] }
  0xe8   :  { %4939 = vmatprep.subr.bf16.mxu0 %v6137_v51  ;;  %5068 = vmatprep.subr.bf16.mxu1 %v6139_v52  ;;  %v6265_v51 = vcombine.high %v243_v45, %v251_v46  ;;  %v6267_v52 = vcombine.high %v244_v47, %v252_v48  ;;  %v363_v40 = vld [vmem:[#allocation2 + $0xa50] sm:$0xff] }
  0xeb   :  { %4940 = vmatpush1.bf16.msra.mxu0 %v6136_v57  ;;  %5069 = vmatpush1.bf16.msra.mxu1 %v6138_v58  ;;  %v6264_v57 = vcombine.low %v243_v45, %v251_v46  ;;  %v6266_v58 = vcombine.low %v244_v47, %v252_v48  ;;  %v6377_v45 = vcombine.high %v355_v39, %v363_v40  ;;  %v371_v47 = vld [vmem:[#allocation2 + $0xa90] sm:$0xff] }
  0xec   :  { %4941 = vmatprep.subr.bf16.mxu0 %v6153_v59  ;;  %5070 = vmatprep.subr.bf16.mxu1 %v6155_v60  ;;  %v6281_v59 = vcombine.high %v259_v53, %v267_v54  ;;  %v6283_v60 = vcombine.high %v260_v55, %v268_v56  ;;  %v379_v48 = vld [vmem:[#allocation2 + $0xad0] sm:$0xff] }
  0xef   :  { %4942 = vmatpush1.bf16.msra.mxu0 %v6152_v1  ;;  %5071 = vmatpush1.bf16.msra.mxu1 %v6154_v2  ;;  %v6280_v1 = vcombine.low %v259_v53, %v267_v54  ;;  %v6282_v2 = vcombine.low %v260_v55, %v268_v56  ;;  %v6393_v53 = vcombine.high %v371_v47, %v379_v48  ;;  %v387_v55 = vld [vmem:[#allocation2 + $0xb10] sm:$0xff] }
  0xf0   :  { %4943 = vmatprep.subr.bf16.mxu0 %v6169_v3  ;;  %5072 = vmatprep.subr.bf16.mxu1 %v6171_v4  ;;  %v6297_v3 = vcombine.high %v275_v61, %v283_v62  ;;  %v6299_v4 = vcombine.high %v276_v63, %v284_v0  ;;  %v395_v56 = vld [vmem:[#allocation2 + $0xb50] sm:$0xff] }
  0xf3   :  { %4944 = vmatpush1.bf16.msra.mxu0 %v6168_v9  ;;  %5073 = vmatpush1.bf16.msra.mxu1 %v6170_v10  ;;  %v6296_v9 = vcombine.low %v275_v61, %v283_v62  ;;  %v6298_v10 = vcombine.low %v276_v63, %v284_v0  ;;  %v6409_v61 = vcombine.high %v387_v55, %v395_v56  ;;  %v403_v63 = vld [vmem:[#allocation2 + $0xb90] sm:$0xff] }
  0xf4   :  { %4945 = vmatprep.subr.bf16.mxu0 %v6185_v11  ;;  %5074 = vmatprep.subr.bf16.mxu1 %v6187_v12  ;;  %v6313_v11 = vcombine.high %v291_v5, %v299_v6  ;;  %v6315_v12 = vcombine.high %v292_v7, %v300_v8  ;;  %v411_v0 = vld [vmem:[#allocation2 + $0xbd0] sm:$0xff] }
  0xf7   :  { %4946 = vmatpush1.bf16.msra.mxu0 %v6184_v17  ;;  %5075 = vmatpush1.bf16.msra.mxu1 %v6186_v18  ;;  %v6312_v17 = vcombine.low %v291_v5, %v299_v6  ;;  %v6314_v18 = vcombine.low %v292_v7, %v300_v8  ;;  %v6425_v5 = vcombine.high %v403_v63, %v411_v0  ;;  %v419_v7 = vld [vmem:[#allocation2 + $0xc10] sm:$0xff] }
  0xf8   :  { %4947 = vmatprep.subr.bf16.mxu0 %v6201_v19  ;;  %5076 = vmatprep.subr.bf16.mxu1 %v6203_v20  ;;  %v6329_v19 = vcombine.high %v307_v13, %v315_v14  ;;  %v6331_v20 = vcombine.high %v308_v15, %v316_v16  ;;  %v427_v8 = vld [vmem:[#allocation2 + $0xc50] sm:$0xff] }
  0xfb   :  { %4948 = vmatpush1.bf16.msra.mxu0 %v6200_v25  ;;  %5077 = vmatpush1.bf16.msra.mxu1 %v6202_v26  ;;  %v332_v25 = vld [vmem:[#allocation2 + $0x958] sm:$0xff]  ;;  %v6328_v26 = vcombine.low %v307_v13, %v315_v14  ;;  %v6441_v13 = vcombine.high %v419_v7, %v427_v8 }
  0xfc   :  { %4949 = vmatprep.subr.bf16.mxu0 %v6217_v27  ;;  %5078 = vmatprep.subr.bf16.mxu1 %v6219_v28  ;;  %v6330_v27 = vcombine.low %v308_v15, %v316_v16  ;;  %v6345_v28 = vcombine.high %v323_v21, %v331_v22  ;;  %v6347_v29 = vcombine.high %v324_v24, %v332_v25  ;;  %v435_v15 = vld [vmem:[#allocation2 + $0xc90] sm:$0xff] }
  0xfd   :  { %v443_v16 = vld [vmem:[#allocation2 + $0xcd0] sm:$0xff] }
  0xff   :  { %4950 = vmatpush1.bf16.msra.mxu0 %v6216_v33  ;;  %5079 = vmatpush1.bf16.msra.mxu1 %v6218_v34  ;;  %v340_v33 = vld [vmem:[#allocation2 + $0x998] sm:$0xff] }
 0x100   :  { %4951 = vmatprep.subr.bf16.mxu0 %v6233_v35  ;;  %5080 = vmatprep.subr.bf16.mxu1 %v6235_v36  ;;  %v348_v34 = vld [vmem:[#allocation2 + $0x9d8] sm:$0xff]  ;;  %v6344_v35 = vcombine.low %v323_v21, %v331_v22  ;;  %v6346_v36 = vcombine.low %v324_v24, %v332_v25  ;;  %v6457_v21 = vcombine.high %v435_v15, %v443_v16  ;;  %v459_v24 = vld [vmem:[#allocation2 + $0xd50] sm:$0xff] }
 0x101   :  { %v6363_v38 = vcombine.high %v340_v33, %v348_v34  ;;  %v452_v25 = vld [vmem:[#allocation2 + $0xd18] sm:$0xff] }
 0x103   :  { %4952 = vmatpush1.bf16.msra.mxu0 %v6232_v41  ;;  %5081 = vmatpush1.bf16.msra.mxu1 %v6234_v42  ;;  %v356_v41 = vld [vmem:[#allocation2 + $0xa18] sm:$0xff] }
 0x104   :  { %4953 = vmatprep.subr.bf16.mxu0 %v6249_v43  ;;  %5082 = vmatprep.subr.bf16.mxu1 %v6251_v44  ;;  %v364_v42 = vld [vmem:[#allocation2 + $0xa58] sm:$0xff]  ;;  %v6360_v43 = vcombine.low %v339_v30, %v347_v31  ;;  %v6362_v44 = vcombine.low %v340_v33, %v348_v34  ;;  %v467_v31 = vld [vmem:[#allocation2 + $0xd90] sm:$0xff] }
 0x105   :  { %v6379_v46 = vcombine.high %v356_v41, %v364_v42  ;;  %v468_v33 = vld [vmem:[#allocation2 + $0xd98] sm:$0xff] }
 0x106   :  { %v476_v34 = vld [vmem:[#allocation2 + $0xdd8] sm:$0xff] }
 0x107   :  { %4954 = vmatpush1.bf16.msra.mxu0 %v6248_v49  ;;  %5083 = vmatpush1.bf16.msra.mxu1 %v6250_v50  ;;  %v372_v49 = vld [vmem:[#allocation2 + $0xa98] sm:$0xff] }
 0x108   :  { %4955 = vmatprep.subr.bf16.mxu0 %v6265_v51  ;;  %5084 = vmatprep.subr.bf16.mxu1 %v6267_v52  ;;  %v380_v50 = vld [vmem:[#allocation2 + $0xad8] sm:$0xff]  ;;  %v6376_v51 = vcombine.low %v355_v39, %v363_v40  ;;  %v6378_v52 = vcombine.low %v356_v41, %v364_v42  ;;  %v483_v39 = vld [vmem:[#allocation2 + $0xe10] sm:$0xff] }
 0x109   :  { %v6395_v54 = vcombine.high %v372_v49, %v380_v50  ;;  %v491_v40 = vld [vmem:[#allocation2 + $0xe50] sm:$0xff]  ;;  %v484_v41 = vld [vmem:[#allocation2 + $0xe18] sm:$0xff] }
 0x10a   :  { %v492_v42 = vld [vmem:[#allocation2 + $0xe58] sm:$0xff] }
 0x10b   :  { %4956 = vmatpush1.bf16.msra.mxu0 %v6264_v57  ;;  %5085 = vmatpush1.bf16.msra.mxu1 %v6266_v58  ;;  %v388_v57 = vld [vmem:[#allocation2 + $0xb18] sm:$0xff] }
 0x10c   :  { %4957 = vmatprep.subr.bf16.mxu0 %v6281_v59  ;;  %5086 = vmatprep.subr.bf16.mxu1 %v6283_v60  ;;  %v396_v58 = vld [vmem:[#allocation2 + $0xb58] sm:$0xff]  ;;  %v6392_v59 = vcombine.low %v371_v47, %v379_v48  ;;  %v6394_v60 = vcombine.low %v372_v49, %v380_v50  ;;  %v499_v47 = vld [vmem:[#allocation2 + $0xe90] sm:$0xff] }
 0x10d   :  { %v6411_v62 = vcombine.high %v388_v57, %v396_v58  ;;  %v507_v48 = vld [vmem:[#allocation2 + $0xed0] sm:$0xff]  ;;  %v500_v49 = vld [vmem:[#allocation2 + $0xe98] sm:$0xff] }
 0x10e   :  { %v508_v50 = vld [vmem:[#allocation2 + $0xed8] sm:$0xff] }
 0x10f   :  { %4958 = vmatpush1.bf16.msra.mxu0 %v6280_v1  ;;  %5087 = vmatpush1.bf16.msra.mxu1 %v6282_v2  ;;  %v404_v1 = vld [vmem:[#allocation2 + $0xb98] sm:$0xff] }
 0x110   :  { %4959 = vmatprep.subr.bf16.mxu0 %v6297_v3  ;;  %5088 = vmatprep.subr.bf16.mxu1 %v6299_v4  ;;  %v412_v2 = vld [vmem:[#allocation2 + $0xbd8] sm:$0xff]  ;;  %v6408_v3 = vcombine.low %v387_v55, %v395_v56  ;;  %v6410_v4 = vcombine.low %v388_v57, %v396_v58  ;;  %v515_v55 = vld [vmem:[#allocation2 + $0xf10] sm:$0xff] }
 0x111   :  { %v6427_v6 = vcombine.high %v404_v1, %v412_v2  ;;  %v523_v56 = vld [vmem:[#allocation2 + $0xf50] sm:$0xff]  ;;  %v516_v57 = vld [vmem:[#allocation2 + $0xf18] sm:$0xff] }
 0x112   :  { %v524_v58 = vld [vmem:[#allocation2 + $0xf58] sm:$0xff] }
 0x113   :  { %4960 = vmatpush1.bf16.msra.mxu0 %v6296_v9  ;;  %5089 = vmatpush1.bf16.msra.mxu1 %v6298_v10  ;;  %v420_v9 = vld [vmem:[#allocation2 + $0xc18] sm:$0xff] }
 0x114   :  { %4972 = vmatprep.subr.bf16.mxu0 %v6313_v11  ;;  %5101 = vmatprep.subr.bf16.mxu1 %v6315_v12  ;;  %v428_v10 = vld [vmem:[#allocation2 + $0xc58] sm:$0xff]  ;;  %v6424_v11 = vcombine.low %v403_v63, %v411_v0  ;;  %v6426_v12 = vcombine.low %v404_v1, %v412_v2  ;;  %v531_v63 = vld [vmem:[#allocation2 + $0xf90] sm:$0xff] }
 0x115   :  { %v6443_v14 = vcombine.high %v420_v9, %v428_v10  ;;  %v539_v0 = vld [vmem:[#allocation2 + $0xfd0] sm:$0xff]  ;;  %v532_v1 = vld [vmem:[#allocation2 + $0xf98] sm:$0xff] }
 0x116   :  { %4962 = vmatmul.mubr.bf16.vlgmr.msra.gmra.mrb[4].mxu0 %v6897_v23  ;;  %5091 = vmatmul.mubr.bf16.vlgmr.msra.gmra.mrb[4].mxu1 %v6897_v23  ;;  %v451_v23 = vld [vmem:[#allocation2 + $0xd10] sm:$0xff]  ;;  %v540_v2 = vld [vmem:[#allocation2 + $0xfd8] sm:$0xff] }
 0x117   :  { %4973 = vmatpush1.bf16.msra.mxu0 %v6312_v17  ;;  %5102 = vmatpush1.bf16.msra.mxu1 %v6314_v18  ;;  %v436_v17 = vld [vmem:[#allocation2 + $0xc98] sm:$0xff] }
 0x118   :  { %4974 = vmatprep.subr.bf16.mxu0 %v6329_v19  ;;  %5103 = vmatprep.subr.bf16.mxu1 %v6331_v20  ;;  %v444_v18 = vld [vmem:[#allocation2 + $0xcd8] sm:$0xff]  ;;  %v6440_v19 = vcombine.low %v419_v7, %v427_v8  ;;  %v6442_v20 = vcombine.low %v420_v9, %v428_v10  ;;  %v547_v7 = vld [vmem:[#allocation2 + $0x1010] sm:$0xff] }
 0x119   :  { %5004 = vmatprep.mubr.bf16.mxu0 %v6898_v32  ;;  %5133 = vmatprep.mubr.bf16.mxu1 %v6898_v32  ;;  %v6459_v22 = vcombine.high %v436_v17, %v444_v18  ;;  %v475_v32 = vld [vmem:[#allocation2 + $0xdd0] sm:$0xff]  ;;  %v548_v9 = vld [vmem:[#allocation2 + $0x1018] sm:$0xff] }
 0x11a   :  { %v555_v8 = vld [vmem:[#allocation2 + $0x1050] sm:$0xff]  ;;  %v556_v10 = vld [vmem:[#allocation2 + $0x1058] sm:$0xff] }
 0x11b   :  { %4975 = vmatpush1.bf16.msra.mxu0 %v6328_v26  ;;  %5104 = vmatpush1.bf16.msra.mxu1 %v6330_v27  ;;  %v460_v26 = vld [vmem:[#allocation2 + $0xd58] sm:$0xff]  ;;  %v6456_v27 = vcombine.low %v435_v15, %v443_v16  ;;  %v563_v15 = vld [vmem:[#allocation2 + $0x1090] sm:$0xff] }
 0x11c   :  { %4976 = vmatprep.subr.bf16.mxu0 %v6345_v28  ;;  %5105 = vmatprep.subr.bf16.mxu1 %v6347_v29  ;;  %v6458_v28 = vcombine.low %v436_v17, %v444_v18  ;;  %v6473_v29 = vcombine.high %v451_v23, %v459_v24  ;;  %v6475_v30 = vcombine.high %v452_v25, %v460_v26  ;;  %v571_v16 = vld [vmem:[#allocation2 + $0x10d0] sm:$0xff]  ;;  %v564_v17 = vld [vmem:[#allocation2 + $0x1098] sm:$0xff] }
 0x11d   :  { %v572_v18 = vld [vmem:[#allocation2 + $0x10d8] sm:$0xff] }
 0x11f   :  { %4977 = vmatpush1.bf16.msra.mxu0 %v6344_v35  ;;  %5106 = vmatpush1.bf16.msra.mxu1 %v6346_v36  ;;  %v6472_v35 = vcombine.low %v451_v23, %v459_v24  ;;  %v6474_v36 = vcombine.low %v452_v25, %v460_v26  ;;  %v579_v23 = vld [vmem:[#allocation2 + $0x1110] sm:$0xff]  ;;  %v6899_v25 = vld [vmem:[%s7446_s0 + $0x8] ss:$24 sps:$4 sm:$0xff]   ;;  %v580_v26 = vld [vmem:[#allocation2 + $0x1118] sm:$0xff] }
 0x120   :  { %4978 = vmatprep.subr.bf16.mxu0 %v6361_v37  ;;  %5107 = vmatprep.subr.bf16.mxu1 %v6363_v38  ;;  %v6489_v37 = vcombine.high %v467_v31, %v475_v32  ;;  %v6491_v38 = vcombine.high %v468_v33, %v476_v34  ;;  %v587_v24 = vld [vmem:[#allocation2 + $0x1150] sm:$0xff] }
 0x123   :  { %4979 = vmatpush1.bf16.msra.mxu0 %v6360_v43  ;;  %5108 = vmatpush1.bf16.msra.mxu1 %v6362_v44  ;;  %v6488_v43 = vcombine.low %v467_v31, %v475_v32  ;;  %v6490_v44 = vcombine.low %v468_v33, %v476_v34  ;;  %v595_v32 = vld [vmem:[#allocation2 + $0x1190] sm:$0xff] }
 0x124   :  { %4980 = vmatprep.subr.bf16.mxu0 %v6377_v45  ;;  %5109 = vmatprep.subr.bf16.mxu1 %v6379_v46  ;;  %v6505_v45 = vcombine.high %v483_v39, %v491_v40  ;;  %v6507_v46 = vcombine.high %v484_v41, %v492_v42  ;;  %v603_v33 = vld [vmem:[#allocation2 + $0x11d0] sm:$0xff] }
 0x125   :  { %v6900_v34 = vld [vmem:[%s7446_s0 + $0x14] ss:$24 sps:$4 sm:$0xff]  }
 0x127   :  { %4981 = vmatpush1.bf16.msra.mxu0 %v6376_v51  ;;  %5110 = vmatpush1.bf16.msra.mxu1 %v6378_v52  ;;  %v6504_v51 = vcombine.low %v483_v39, %v491_v40  ;;  %v6506_v52 = vcombine.low %v484_v41, %v492_v42  ;;  %v6617_v39 = vcombine.high %v595_v32, %v603_v33  ;;  %v611_v41 = vld [vmem:[#allocation2 + $0x1210] sm:$0xff] }
 0x128   :  { %4982 = vmatprep.subr.bf16.mxu0 %v6393_v53  ;;  %5111 = vmatprep.subr.bf16.mxu1 %v6395_v54  ;;  %v6521_v53 = vcombine.high %v499_v47, %v507_v48  ;;  %v6523_v54 = vcombine.high %v500_v49, %v508_v50  ;;  %v619_v42 = vld [vmem:[#allocation2 + $0x1250] sm:$0xff] }
 0x12b   :  { %4983 = vmatpush1.bf16.msra.mxu0 %v6392_v59  ;;  %5112 = vmatpush1.bf16.msra.mxu1 %v6394_v60  ;;  %v6520_v59 = vcombine.low %v499_v47, %v507_v48  ;;  %v6522_v60 = vcombine.low %v500_v49, %v508_v50  ;;  %v6633_v47 = vcombine.high %v611_v41, %v619_v42  ;;  %v627_v49 = vld [vmem:[#allocation2 + $0x1290] sm:$0xff] }
 0x12c   :  { %4984 = vmatprep.subr.bf16.mxu0 %v6409_v61  ;;  %5113 = vmatprep.subr.bf16.mxu1 %v6411_v62  ;;  %v6537_v61 = vcombine.high %v515_v55, %v523_v56  ;;  %v6539_v62 = vcombine.high %v516_v57, %v524_v58  ;;  %v635_v50 = vld [vmem:[#allocation2 + $0x12d0] sm:$0xff] }
 0x12f   :  { %4985 = vmatpush1.bf16.msra.mxu0 %v6408_v3  ;;  %5114 = vmatpush1.bf16.msra.mxu1 %v6410_v4  ;;  %v6536_v3 = vcombine.low %v515_v55, %v523_v56  ;;  %v6538_v4 = vcombine.low %v516_v57, %v524_v58  ;;  %v6649_v55 = vcombine.high %v627_v49, %v635_v50  ;;  %v643_v57 = vld [vmem:[#allocation2 + $0x1310] sm:$0xff] }
 0x130   :  { %4986 = vmatprep.subr.bf16.mxu0 %v6425_v5  ;;  %5115 = vmatprep.subr.bf16.mxu1 %v6427_v6  ;;  %v6553_v5 = vcombine.high %v531_v63, %v539_v0  ;;  %v6555_v6 = vcombine.high %v532_v1, %v540_v2  ;;  %v651_v58 = vld [vmem:[#allocation2 + $0x1350] sm:$0xff] }
 0x133   :  { %4987 = vmatpush1.bf16.msra.mxu0 %v6424_v11  ;;  %5116 = vmatpush1.bf16.msra.mxu1 %v6426_v12  ;;  %v6552_v11 = vcombine.low %v531_v63, %v539_v0  ;;  %v6554_v12 = vcombine.low %v532_v1, %v540_v2  ;;  %v6665_v63 = vcombine.high %v643_v57, %v651_v58  ;;  %v659_v1 = vld [vmem:[#allocation2 + $0x1390] sm:$0xff] }
 0x134   :  { %4988 = vmatprep.subr.bf16.mxu0 %v6441_v13  ;;  %5117 = vmatprep.subr.bf16.mxu1 %v6443_v14  ;;  %v6569_v13 = vcombine.high %v547_v7, %v555_v8  ;;  %v6571_v14 = vcombine.high %v548_v9, %v556_v10  ;;  %v667_v2 = vld [vmem:[#allocation2 + $0x13d0] sm:$0xff] }
 0x137   :  { %4989 = vmatpush1.bf16.msra.mxu0 %v6440_v19  ;;  %5118 = vmatpush1.bf16.msra.mxu1 %v6442_v20  ;;  %v6568_v19 = vcombine.low %v547_v7, %v555_v8  ;;  %v6570_v20 = vcombine.low %v548_v9, %v556_v10  ;;  %v6681_v7 = vcombine.high %v659_v1, %v667_v2  ;;  %v675_v9 = vld [vmem:[#allocation2 + $0x1410] sm:$0xff] }
 0x138   :  { %4990 = vmatprep.subr.bf16.mxu0 %v6457_v21  ;;  %5119 = vmatprep.subr.bf16.mxu1 %v6459_v22  ;;  %v6585_v21 = vcombine.high %v563_v15, %v571_v16  ;;  %v6587_v22 = vcombine.high %v564_v17, %v572_v18  ;;  %v683_v10 = vld [vmem:[#allocation2 + $0x1450] sm:$0xff] }
 0x13b   :  { %4991 = vmatpush1.bf16.msra.mxu0 %v6456_v27  ;;  %5120 = vmatpush1.bf16.msra.mxu1 %v6458_v28  ;;  %v588_v27 = vld [vmem:[#allocation2 + $0x1158] sm:$0xff]  ;;  %v6584_v28 = vcombine.low %v563_v15, %v571_v16  ;;  %v6697_v15 = vcombine.high %v675_v9, %v683_v10 }
 0x13c   :  { %4992 = vmatprep.subr.bf16.mxu0 %v6473_v29  ;;  %5121 = vmatprep.subr.bf16.mxu1 %v6475_v30  ;;  %v6586_v29 = vcombine.low %v564_v17, %v572_v18  ;;  %v6601_v30 = vcombine.high %v579_v23, %v587_v24  ;;  %v6603_v31 = vcombine.high %v580_v26, %v588_v27  ;;  %v691_v17 = vld [vmem:[#allocation2 + $0x1490] sm:$0xff] }
 0x13d   :  { %v699_v18 = vld [vmem:[#allocation2 + $0x14d0] sm:$0xff] }
 0x13f   :  { %4993 = vmatpush1.bf16.msra.mxu0 %v6472_v35  ;;  %5122 = vmatpush1.bf16.msra.mxu1 %v6474_v36  ;;  %v596_v35 = vld [vmem:[#allocation2 + $0x1198] sm:$0xff] }
 0x140   :  { %4994 = vmatprep.subr.bf16.mxu0 %v6489_v37  ;;  %5123 = vmatprep.subr.bf16.mxu1 %v6491_v38  ;;  %v604_v36 = vld [vmem:[#allocation2 + $0x11d8] sm:$0xff]  ;;  %v6600_v37 = vcombine.low %v579_v23, %v587_v24  ;;  %v6602_v38 = vcombine.low %v580_v26, %v588_v27  ;;  %v6713_v23 = vcombine.high %v691_v17, %v699_v18  ;;  %v715_v26 = vld [vmem:[#allocation2 + $0x1550] sm:$0xff] }
 0x141   :  { %v6619_v40 = vcombine.high %v596_v35, %v604_v36  ;;  %v708_v27 = vld [vmem:[#allocation2 + $0x1518] sm:$0xff] }
 0x143   :  { %4995 = vmatpush1.bf16.msra.mxu0 %v6488_v43  ;;  %5124 = vmatpush1.bf16.msra.mxu1 %v6490_v44  ;;  %v612_v43 = vld [vmem:[#allocation2 + $0x1218] sm:$0xff] }
 0x144   :  { %4996 = vmatprep.subr.bf16.mxu0 %v6505_v45  ;;  %5125 = vmatprep.subr.bf16.mxu1 %v6507_v46  ;;  %v620_v44 = vld [vmem:[#allocation2 + $0x1258] sm:$0xff]  ;;  %v6616_v45 = vcombine.low %v595_v32, %v603_v33  ;;  %v6618_v46 = vcombine.low %v596_v35, %v604_v36  ;;  %v723_v33 = vld [vmem:[#allocation2 + $0x1590] sm:$0xff] }
 0x145   :  { %v6635_v48 = vcombine.high %v612_v43, %v620_v44  ;;  %v724_v35 = vld [vmem:[#allocation2 + $0x1598] sm:$0xff] }
 0x146   :  { %v732_v36 = vld [vmem:[#allocation2 + $0x15d8] sm:$0xff] }
 0x147   :  { %4997 = vmatpush1.bf16.msra.mxu0 %v6504_v51  ;;  %5126 = vmatpush1.bf16.msra.mxu1 %v6506_v52  ;;  %v628_v51 = vld [vmem:[#allocation2 + $0x1298] sm:$0xff] }
 0x148   :  { %4998 = vmatprep.subr.bf16.mxu0 %v6521_v53  ;;  %5127 = vmatprep.subr.bf16.mxu1 %v6523_v54  ;;  %v636_v52 = vld [vmem:[#allocation2 + $0x12d8] sm:$0xff]  ;;  %v6632_v53 = vcombine.low %v611_v41, %v619_v42  ;;  %v6634_v54 = vcombine.low %v612_v43, %v620_v44  ;;  %v739_v41 = vld [vmem:[#allocation2 + $0x1610] sm:$0xff] }
 0x149   :  { %v6651_v56 = vcombine.high %v628_v51, %v636_v52  ;;  %v747_v42 = vld [vmem:[#allocation2 + $0x1650] sm:$0xff]  ;;  %v740_v43 = vld [vmem:[#allocation2 + $0x1618] sm:$0xff] }
 0x14a   :  { %v748_v44 = vld [vmem:[#allocation2 + $0x1658] sm:$0xff] }
 0x14b   :  { %4999 = vmatpush1.bf16.msra.mxu0 %v6520_v59  ;;  %5128 = vmatpush1.bf16.msra.mxu1 %v6522_v60  ;;  %v644_v59 = vld [vmem:[#allocation2 + $0x1318] sm:$0xff] }
 0x14c   :  { %5000 = vmatprep.subr.bf16.mxu0 %v6537_v61  ;;  %5129 = vmatprep.subr.bf16.mxu1 %v6539_v62  ;;  %v652_v60 = vld [vmem:[#allocation2 + $0x1358] sm:$0xff]  ;;  %v6648_v61 = vcombine.low %v627_v49, %v635_v50  ;;  %v6650_v62 = vcombine.low %v628_v51, %v636_v52  ;;  %v755_v49 = vld [vmem:[#allocation2 + $0x1690] sm:$0xff] }
 0x14d   :  { %v6667_v0 = vcombine.high %v644_v59, %v652_v60  ;;  %v763_v50 = vld [vmem:[#allocation2 + $0x16d0] sm:$0xff]  ;;  %v756_v51 = vld [vmem:[#allocation2 + $0x1698] sm:$0xff] }
 0x14e   :  { %v764_v52 = vld [vmem:[#allocation2 + $0x16d8] sm:$0xff] }
 0x14f   :  { %5001 = vmatpush1.bf16.msra.mxu0 %v6536_v3  ;;  %5130 = vmatpush1.bf16.msra.mxu1 %v6538_v4  ;;  %v660_v3 = vld [vmem:[#allocation2 + $0x1398] sm:$0xff] }
 0x150   :  { %5002 = vmatprep.subr.bf16.mxu0 %v6553_v5  ;;  %5131 = vmatprep.subr.bf16.mxu1 %v6555_v6  ;;  %v668_v4 = vld [vmem:[#allocation2 + $0x13d8] sm:$0xff]  ;;  %v6664_v5 = vcombine.low %v643_v57, %v651_v58  ;;  %v6666_v6 = vcombine.low %v644_v59, %v652_v60  ;;  %v771_v57 = vld [vmem:[#allocation2 + $0x1710] sm:$0xff] }
 0x151   :  { %v6683_v8 = vcombine.high %v660_v3, %v668_v4  ;;  %v779_v58 = vld [vmem:[#allocation2 + $0x1750] sm:$0xff]  ;;  %v772_v59 = vld [vmem:[#allocation2 + $0x1718] sm:$0xff] }
 0x152   :  { %v780_v60 = vld [vmem:[#allocation2 + $0x1758] sm:$0xff] }
 0x153   :  { %5003 = vmatpush1.bf16.msra.mxu0 %v6552_v11  ;;  %5132 = vmatpush1.bf16.msra.mxu1 %v6554_v12  ;;  %v676_v11 = vld [vmem:[#allocation2 + $0x1418] sm:$0xff] }
 0x154   :  { %5015 = vmatprep.subr.bf16.mxu0 %v6569_v13  ;;  %5144 = vmatprep.subr.bf16.mxu1 %v6571_v14  ;;  %v684_v12 = vld [vmem:[#allocation2 + $0x1458] sm:$0xff]  ;;  %v6680_v13 = vcombine.low %v659_v1, %v667_v2  ;;  %v6682_v14 = vcombine.low %v660_v3, %v668_v4  ;;  %v787_v1 = vld [vmem:[#allocation2 + $0x1790] sm:$0xff] }
 0x155   :  { %v6699_v16 = vcombine.high %v676_v11, %v684_v12  ;;  %v795_v2 = vld [vmem:[#allocation2 + $0x17d0] sm:$0xff]  ;;  %v788_v3 = vld [vmem:[#allocation2 + $0x1798] sm:$0xff] }
 0x156   :  { %5005 = vmatmul.mubr.bf16.vlgmr.msra.gmra.mrb[4].mxu0 %v6899_v25  ;;  %5134 = vmatmul.mubr.bf16.vlgmr.msra.gmra.mrb[4].mxu1 %v6899_v25  ;;  %v707_v25 = vld [vmem:[#allocation2 + $0x1510] sm:$0xff]  ;;  %v796_v4 = vld [vmem:[#allocation2 + $0x17d8] sm:$0xff] }
 0x157   :  { %5016 = vmatpush1.bf16.msra.mxu0 %v6568_v19  ;;  %5145 = vmatpush1.bf16.msra.mxu1 %v6570_v20  ;;  %v692_v19 = vld [vmem:[#allocation2 + $0x1498] sm:$0xff] }
 0x158   :  { %5017 = vmatprep.subr.bf16.mxu0 %v6585_v21  ;;  %5146 = vmatprep.subr.bf16.mxu1 %v6587_v22  ;;  %v700_v20 = vld [vmem:[#allocation2 + $0x14d8] sm:$0xff]  ;;  %v6696_v21 = vcombine.low %v675_v9, %v683_v10  ;;  %v6698_v22 = vcombine.low %v676_v11, %v684_v12  ;;  %v37_v9 = vld [vmem:[#allocation2 + $0x20] sm:$0xff]  ;;  %v38_v11 = vld [vmem:[#allocation2 + $0x28] sm:$0xff] }
 0x159   :  { %5047 = vmatprep.mubr.bf16.mxu0 %v6900_v34  ;;  %5176 = vmatprep.mubr.bf16.mxu1 %v6900_v34  ;;  %v6715_v24 = vcombine.high %v692_v19, %v700_v20  ;;  %v731_v34 = vld [vmem:[#allocation2 + $0x15d0] sm:$0xff]  ;;  %v45_v10 = vld [vmem:[#allocation2 + $0x60] sm:$0xff]  ;;  %v46_v12 = vld [vmem:[#allocation2 + $0x68] sm:$0xff] }
 0x15b   :  { %5018 = vmatpush1.bf16.msra.mxu0 %v6584_v28  ;;  %5147 = vmatpush1.bf16.msra.mxu1 %v6586_v29  ;;  %v716_v28 = vld [vmem:[#allocation2 + $0x1558] sm:$0xff]  ;;  %v6712_v29 = vcombine.low %v691_v17, %v699_v18  ;;  %v53_v17 = vld [vmem:[#allocation2 + $0xa0] sm:$0xff] }
 0x15c   :  { %5019 = vmatprep.subr.bf16.mxu0 %v6601_v30  ;;  %5148 = vmatprep.subr.bf16.mxu1 %v6603_v31  ;;  %v6714_v30 = vcombine.low %v692_v19, %v700_v20  ;;  %v6729_v31 = vcombine.high %v707_v25, %v715_v26  ;;  %v6731_v32 = vcombine.high %v708_v27, %v716_v28  ;;  %v61_v18 = vld [vmem:[#allocation2 + $0xe0] sm:$0xff]  ;;  %v54_v19 = vld [vmem:[#allocation2 + $0xa8] sm:$0xff] }
 0x15d   :  { %v62_v20 = vld [vmem:[#allocation2 + $0xe8] sm:$0xff] }
 0x15f   :  { %5020 = vmatpush1.bf16.msra.mxu0 %v6600_v37  ;;  %5149 = vmatpush1.bf16.msra.mxu1 %v6602_v38  ;;  %v6728_v37 = vcombine.low %v707_v25, %v715_v26  ;;  %v6730_v38 = vcombine.low %v708_v27, %v716_v28  ;;  %v69_v25 = vld [vmem:[#allocation2 + $0x120] sm:$0xff]  ;;  %v6901_v27 = vld [vmem:[%s7446_s0 + $0x10] ss:$24 sps:$4 sm:$0xff]  }
 0x160   :  { %5021 = vmatprep.subr.bf16.mxu0 %v6617_v39  ;;  %5150 = vmatprep.subr.bf16.mxu1 %v6619_v40  ;;  %v6745_v39 = vcombine.high %v723_v33, %v731_v34  ;;  %v6747_v40 = vcombine.high %v724_v35, %v732_v36  ;;  %v77_v26 = vld [vmem:[#allocation2 + $0x160] sm:$0xff]  ;;  %v70_v28 = vld [vmem:[#allocation2 + $0x128] sm:$0xff] }
 0x163   :  { %5022 = vmatpush1.bf16.msra.mxu0 %v6616_v45  ;;  %5151 = vmatpush1.bf16.msra.mxu1 %v6618_v46  ;;  %v6744_v45 = vcombine.low %v723_v33, %v731_v34  ;;  %v6746_v46 = vcombine.low %v724_v35, %v732_v36  ;;  %v85_v34 = vld [vmem:[#allocation2 + $0x1a0] sm:$0xff] }
 0x164   :  { %5023 = vmatprep.subr.bf16.mxu0 %v6633_v47  ;;  %5152 = vmatprep.subr.bf16.mxu1 %v6635_v48  ;;  %v6761_v47 = vcombine.high %v739_v41, %v747_v42  ;;  %v6763_v48 = vcombine.high %v740_v43, %v748_v44  ;;  %v93_v35 = vld [vmem:[#allocation2 + $0x1e0] sm:$0xff] }
 0x165   :  { %v6902_v36 = vld [vmem:[%s7446_s0 + $0x4] ss:$24 sps:$4 sm:$0xff]  }
 0x167   :  { %5024 = vmatpush1.bf16.msra.mxu0 %v6632_v53  ;;  %5153 = vmatpush1.bf16.msra.mxu1 %v6634_v54  ;;  %v6760_v53 = vcombine.low %v739_v41, %v747_v42  ;;  %v6762_v54 = vcombine.low %v740_v43, %v748_v44  ;;  %v6109_v41 = vcombine.high %v85_v34, %v93_v35  ;;  %v101_v43 = vld [vmem:[#allocation2 + $0x220] sm:$0xff] }
 0x168   :  { %5025 = vmatprep.subr.bf16.mxu0 %v6649_v55  ;;  %5154 = vmatprep.subr.bf16.mxu1 %v6651_v56  ;;  %v6777_v55 = vcombine.high %v755_v49, %v763_v50  ;;  %v6779_v56 = vcombine.high %v756_v51, %v764_v52  ;;  %v109_v44 = vld [vmem:[#allocation2 + $0x260] sm:$0xff] }
 0x16b   :  { %5026 = vmatpush1.bf16.msra.mxu0 %v6648_v61  ;;  %5155 = vmatpush1.bf16.msra.mxu1 %v6650_v62  ;;  %v6776_v61 = vcombine.low %v755_v49, %v763_v50  ;;  %v6778_v62 = vcombine.low %v756_v51, %v764_v52  ;;  %v6125_v49 = vcombine.high %v101_v43, %v109_v44  ;;  %v117_v51 = vld [vmem:[#allocation2 + $0x2a0] sm:$0xff] }
 0x16c   :  { %5027 = vmatprep.subr.bf16.mxu0 %v6665_v63  ;;  %5156 = vmatprep.subr.bf16.mxu1 %v6667_v0  ;;  %v6793_v63 = vcombine.high %v771_v57, %v779_v58  ;;  %v6795_v0 = vcombine.high %v772_v59, %v780_v60  ;;  %v125_v52 = vld [vmem:[#allocation2 + $0x2e0] sm:$0xff] }
 0x16f   :  { %5028 = vmatpush1.bf16.msra.mxu0 %v6664_v5  ;;  %5157 = vmatpush1.bf16.msra.mxu1 %v6666_v6  ;;  %v6792_v5 = vcombine.low %v771_v57, %v779_v58  ;;  %v6794_v6 = vcombine.low %v772_v59, %v780_v60  ;;  %v6141_v57 = vcombine.high %v117_v51, %v125_v52  ;;  %v133_v59 = vld [vmem:[#allocation2 + $0x320] sm:$0xff] }
 0x170   :  { %5029 = vmatprep.subr.bf16.mxu0 %v6681_v7  ;;  %5158 = vmatprep.subr.bf16.mxu1 %v6683_v8  ;;  %v6809_v7 = vcombine.high %v787_v1, %v795_v2  ;;  %v6811_v8 = vcombine.high %v788_v3, %v796_v4  ;;  %v141_v60 = vld [vmem:[#allocation2 + $0x360] sm:$0xff] }
 0x173   :  { %5030 = vmatpush1.bf16.msra.mxu0 %v6680_v13  ;;  %5159 = vmatpush1.bf16.msra.mxu1 %v6682_v14  ;;  %v6808_v13 = vcombine.low %v787_v1, %v795_v2  ;;  %v6810_v14 = vcombine.low %v788_v3, %v796_v4  ;;  %v6157_v2 = vcombine.high %v133_v59, %v141_v60  ;;  %v157_v3 = vld [vmem:[#allocation2 + $0x3e0] sm:$0xff]  ;;  %v150_v4 = vld [vmem:[#allocation2 + $0x3a8] sm:$0xff] }
 0x174   :  { %5031 = vmatprep.subr.bf16.mxu0 %v6697_v15  ;;  %5160 = vmatprep.subr.bf16.mxu1 %v6699_v16  ;;  %v6061_v15 = vcombine.high %v37_v9, %v45_v10  ;;  %v6063_v16 = vcombine.high %v38_v11, %v46_v12 }
 0x177   :  { %5032 = vmatpush1.bf16.msra.mxu0 %v6696_v21  ;;  %5161 = vmatpush1.bf16.msra.mxu1 %v6698_v22  ;;  %v6060_v21 = vcombine.low %v37_v9, %v45_v10  ;;  %v6062_v22 = vcombine.low %v38_v11, %v46_v12  ;;  %v6156_v10 = vcombine.low %v133_v59, %v141_v60  ;;  %v213_v59 = vld [vmem:[#allocation2 + $0x5a0] sm:$0xff] }
 0x178   :  { %5033 = vmatprep.subr.bf16.mxu0 %v6713_v23  ;;  %5162 = vmatprep.subr.bf16.mxu1 %v6715_v24  ;;  %v6077_v23 = vcombine.high %v53_v17, %v61_v18  ;;  %v6079_v24 = vcombine.high %v54_v19, %v62_v20  ;;  %v221_v60 = vld [vmem:[#allocation2 + $0x5e0] sm:$0xff] }
 0x17b   :  { %5034 = vmatpush1.bf16.msra.mxu0 %v6712_v29  ;;  %5163 = vmatpush1.bf16.msra.mxu1 %v6714_v30  ;;  %v78_v29 = vld [vmem:[#allocation2 + $0x168] sm:$0xff]  ;;  %v6076_v30 = vcombine.low %v53_v17, %v61_v18 }
 0x17c   :  { %5035 = vmatprep.subr.bf16.mxu0 %v6729_v31  ;;  %5164 = vmatprep.subr.bf16.mxu1 %v6731_v32  ;;  %v6078_v31 = vcombine.low %v54_v19, %v62_v20  ;;  %v6093_v32 = vcombine.high %v69_v25, %v77_v26  ;;  %v6095_v33 = vcombine.high %v70_v28, %v78_v29 }
 0x17f   :  { %5036 = vmatpush1.bf16.msra.mxu0 %v6728_v37  ;;  %5165 = vmatpush1.bf16.msra.mxu1 %v6730_v38  ;;  %v86_v37 = vld [vmem:[#allocation2 + $0x1a8] sm:$0xff] }
 0x180   :  { %5037 = vmatprep.subr.bf16.mxu0 %v6745_v39  ;;  %5166 = vmatprep.subr.bf16.mxu1 %v6747_v40  ;;  %v94_v38 = vld [vmem:[#allocation2 + $0x1e8] sm:$0xff]  ;;  %v6092_v39 = vcombine.low %v69_v25, %v77_v26  ;;  %v6094_v40 = vcombine.low %v70_v28, %v78_v29  ;;  %v165_v28 = vld [vmem:[#allocation2 + $0x420] sm:$0xff] }
 0x181   :  { %v6111_v42 = vcombine.high %v86_v37, %v94_v38  ;;  %v173_v29 = vld [vmem:[#allocation2 + $0x460] sm:$0xff] }
 0x183   :  { %5038 = vmatpush1.bf16.msra.mxu0 %v6744_v45  ;;  %5167 = vmatpush1.bf16.msra.mxu1 %v6746_v46  ;;  %v102_v45 = vld [vmem:[#allocation2 + $0x228] sm:$0xff] }
 0x184   :  { %5039 = vmatprep.subr.bf16.mxu0 %v6761_v47  ;;  %5168 = vmatprep.subr.bf16.mxu1 %v6763_v48  ;;  %v110_v46 = vld [vmem:[#allocation2 + $0x268] sm:$0xff]  ;;  %v6108_v47 = vcombine.low %v85_v34, %v93_v35  ;;  %v6110_v48 = vcombine.low %v86_v37, %v94_v38 }
 0x185   :  { %v6127_v50 = vcombine.high %v102_v45, %v110_v46  ;;  %v166_v34 = vld [vmem:[#allocation2 + $0x428] sm:$0xff] }
 0x186   :  { %v174_v35 = vld [vmem:[#allocation2 + $0x468] sm:$0xff] }
 0x187   :  { %5040 = vmatpush1.bf16.msra.mxu0 %v6760_v53  ;;  %5169 = vmatpush1.bf16.msra.mxu1 %v6762_v54  ;;  %v118_v53 = vld [vmem:[#allocation2 + $0x2a8] sm:$0xff] }
 0x188   :  { %5041 = vmatprep.subr.bf16.mxu0 %v6777_v55  ;;  %5170 = vmatprep.subr.bf16.mxu1 %v6779_v56  ;;  %v126_v54 = vld [vmem:[#allocation2 + $0x2e8] sm:$0xff]  ;;  %v6124_v55 = vcombine.low %v101_v43, %v109_v44  ;;  %v6126_v56 = vcombine.low %v102_v45, %v110_v46  ;;  %v181_v43 = vld [vmem:[#allocation2 + $0x4a0] sm:$0xff] }
 0x189   :  { %v6143_v58 = vcombine.high %v118_v53, %v126_v54  ;;  %v6142_v1 = vcombine.low %v118_v53, %v126_v54  ;;  %v189_v44 = vld [vmem:[#allocation2 + $0x4e0] sm:$0xff]  ;;  %v182_v45 = vld [vmem:[#allocation2 + $0x4a8] sm:$0xff] }
 0x18a   :  { %v190_v46 = vld [vmem:[#allocation2 + $0x4e8] sm:$0xff] }
 0x18b   :  { %5042 = vmatpush1.bf16.msra.mxu0 %v6776_v61  ;;  %5171 = vmatpush1.bf16.msra.mxu1 %v6778_v62  ;;  %v134_v61 = vld [vmem:[#allocation2 + $0x328] sm:$0xff] }
 0x18c   :  { %5043 = vmatprep.subr.bf16.mxu0 %v6793_v63  ;;  %5172 = vmatprep.subr.bf16.mxu1 %v6795_v0  ;;  %v142_v62 = vld [vmem:[#allocation2 + $0x368] sm:$0xff]  ;;  %v6140_v63 = vcombine.low %v117_v51, %v125_v52  ;;  %v7012_v0 = vld [vmem:[#allocation2 + $0x3a0] sm:$0xff] }
 0x18d   :  { %v6158_v11 = vcombine.low %v134_v61, %v142_v62  ;;  %v6172_v38 = vcombine.low %v7012_v0, %v157_v3  ;;  %v197_v51 = vld [vmem:[#allocation2 + $0x520] sm:$0xff]  ;;  %v198_v53 = vld [vmem:[#allocation2 + $0x528] sm:$0xff] }
 0x18e   :  { %v205_v52 = vld [vmem:[#allocation2 + $0x560] sm:$0xff]  ;;  %v206_v54 = vld [vmem:[#allocation2 + $0x568] sm:$0xff] }
 0x18f   :  { %5044 = vmatpush1.bf16.msra.mxu0 %v6792_v5  ;;  %5173 = vmatpush1.bf16.msra.mxu1 %v6794_v6  ;;  %v158_v5 = vld [vmem:[#allocation2 + $0x3e8] sm:$0xff] }
 0x190   :  { %5045 = vmatprep.subr.bf16.mxu0 %v6809_v7  ;;  %5174 = vmatprep.subr.bf16.mxu1 %v6811_v8  ;;  %v6159_v7 = vcombine.high %v134_v61, %v142_v62  ;;  %v6175_v17 = vcombine.high %v150_v4, %v158_v5  ;;  %v214_v61 = vld [vmem:[#allocation2 + $0x5a8] sm:$0xff] }
 0x191   :  { %v222_v62 = vld [vmem:[#allocation2 + $0x5e8] sm:$0xff] }
 0x193   :  { %5046 = vmatpush1.bf16.msra.mxu0 %v6808_v13  ;;  %5175 = vmatpush1.bf16.msra.mxu1 %v6810_v14 }
 0x194   :  { %5187 = vmatprep.subr.bf16.mxu0 %v6061_v15  ;;  %5316 = vmatprep.subr.bf16.mxu1 %v6063_v16  ;;  %v6173_v16 = vcombine.high %v7012_v0, %v157_v3  ;;  %v6222_v0 = vcombine.low %v198_v53, %v206_v54  ;;  %v229_v3 = vld [vmem:[#allocation2 + $0x620] sm:$0xff] }
 0x196   :  { %5048 = vmatmul.mubr.bf16.vlgmr.msra.gmra.mrb[4].mxu0 %v6901_v27  ;;  %5177 = vmatmul.mubr.bf16.vlgmr.msra.gmra.mrb[4].mxu1 %v6901_v27 }
 0x197   :  { %5188 = vmatpush1.bf16.msra.mxu0 %v6060_v21  ;;  %5317 = vmatpush1.bf16.msra.mxu1 %v6062_v22 }
 0x198   :  { %5189 = vmatprep.subr.bf16.mxu0 %v6077_v23  ;;  %5318 = vmatprep.subr.bf16.mxu1 %v6079_v24 }
 0x199   :  { %5219 = vmatprep.mubr.bf16.mxu0 %v6902_v36  ;;  %5348 = vmatprep.mubr.bf16.mxu1 %v6902_v36 }
 0x19b   :  { %5190 = vmatpush1.bf16.msra.mxu0 %v6076_v30  ;;  %5319 = vmatpush1.bf16.msra.mxu1 %v6078_v31 }
 0x19c   :  { %5191 = vmatprep.subr.bf16.mxu0 %v6093_v32  ;;  %5320 = vmatprep.subr.bf16.mxu1 %v6095_v33 }
 0x19f   :  { %5192 = vmatpush1.bf16.msra.mxu0 %v6092_v39  ;;  %5321 = vmatpush1.bf16.msra.mxu1 %v6094_v40  ;;  %v6174_v40 = vcombine.low %v150_v4, %v158_v5  ;;  %v237_v4 = vld [vmem:[#allocation2 + $0x660] sm:$0xff]  ;;  %v230_v5 = vld [vmem:[#allocation2 + $0x628] sm:$0xff] }
 0x1a0   :  { %5193 = vmatprep.subr.bf16.mxu0 %v6109_v41  ;;  %5322 = vmatprep.subr.bf16.mxu1 %v6111_v42  ;;  %v6189_v41 = vcombine.high %v165_v28, %v173_v29  ;;  %v6191_v42 = vcombine.high %v166_v34, %v174_v35 }
 0x1a3   :  { %5194 = vmatpush1.bf16.msra.mxu0 %v6108_v47  ;;  %5323 = vmatpush1.bf16.msra.mxu1 %v6110_v48  ;;  %v6188_v47 = vcombine.low %v165_v28, %v173_v29  ;;  %v6190_v48 = vcombine.low %v166_v34, %v174_v35  ;;  %v278_v34 = vld [vmem:[#allocation2 + $0x7a8] sm:$0xff] }
 0x1a4   :  { %5195 = vmatprep.subr.bf16.mxu0 %v6125_v49  ;;  %5324 = vmatprep.subr.bf16.mxu1 %v6127_v50  ;;  %v6205_v49 = vcombine.high %v181_v43, %v189_v44  ;;  %v6207_v50 = vcombine.high %v182_v45, %v190_v46  ;;  %v286_v35 = vld [vmem:[#allocation2 + $0x7e8] sm:$0xff] }
 0x1a7   :  { %5196 = vmatpush1.bf16.msra.mxu0 %v6124_v55  ;;  %5325 = vmatpush1.bf16.msra.mxu1 %v6126_v56  ;;  %v6204_v55 = vcombine.low %v181_v43, %v189_v44  ;;  %v6206_v56 = vcombine.low %v182_v45, %v190_v46  ;;  %v293_v43 = vld [vmem:[#allocation2 + $0x820] sm:$0xff]  ;;  %v294_v45 = vld [vmem:[#allocation2 + $0x828] sm:$0xff] }
 0x1a8   :  { %5197 = vmatprep.subr.bf16.mxu0 %v6141_v57  ;;  %5326 = vmatprep.subr.bf16.mxu1 %v6143_v58  ;;  %v6221_v57 = vcombine.high %v197_v51, %v205_v52  ;;  %v6223_v58 = vcombine.high %v198_v53, %v206_v54  ;;  %v301_v44 = vld [vmem:[#allocation2 + $0x860] sm:$0xff]  ;;  %v302_v46 = vld [vmem:[#allocation2 + $0x868] sm:$0xff] }
 0x1a9   :  { %v4791_v6 = vpop.f32.mrb[0].mxu0  ;;  %v4920_v8 = vpop.f32.mrb[0].mxu1  ;;  %v310_v53 = vld [vmem:[#allocation2 + $0x8a8] sm:$0xff] }
 0x1aa   :  { %5703 = vst [vmem:[%s7448_s2] sm:$0xff] %v4791_v6  ;;  %v4793_v9 = vpop.f32.mrb[1].mxu0  ;;  %v5767_v12 = vmul.f32 %v4791_v6, %v4791_v6  ;;  %5705 = vst [vmem:[%s7448_s2 + $0x10] sm:$0xff] %v4920_v8  ;;  %v5769_v13 = vmul.f32 %v4920_v8, %v4920_v8  ;;  %v4922_v14 = vpop.f32.mrb[1].mxu1  ;;  %v318_v54 = vld [vmem:[#allocation2 + $0x8e8] sm:$0xff] }
 0x1ab   :  { %5704 = vst [vmem:[%s7448_s2 + $0x8] sm:$0xff] %v4793_v9  ;;  %v4795_v15 = vpop.f32.mrb[2].mxu0  ;;  %5198 = vmatpush1.bf16.msra.mxu0 %v6140_v63  ;;  %v5768_v18 = vmul.f32 %v4793_v9, %v4793_v9  ;;  %5706 = vst [vmem:[%s7448_s2 + $0x18] sm:$0xff] %v4922_v14  ;;  %v4924_v21 = vpop.f32.mrb[2].mxu1  ;;  %5327 = vmatpush1.bf16.msra.mxu1 %v6142_v1  ;;  %v5770_v30 = vmul.f32 %v4922_v14, %v4922_v14 }
 0x1ac   :  { %5719 = vst [vmem:[%s7448_s2 + $0x80] sm:$0xff] %v4795_v15  ;;  %v7030_v19 = vadd.f32 %v4795_v15, %v4791_v6  ;;  %v5771_v20 = vmul.f32 %v4795_v15, %v4795_v15  ;;  %v4797_v22 = vpop.f32.mrb[3].mxu0  ;;  %5199 = vmatprep.subr.bf16.mxu0 %v6157_v2  ;;  %5721 = vst [vmem:[%s7448_s2 + $0x90] sm:$0xff] %v4924_v21  ;;  %v7035_v23 = vadd.f32 %v4924_v21, %v4920_v8  ;;  %v4926_v27 = vpop.f32.mrb[3].mxu1  ;;  %v238_v6 = vld [vmem:[#allocation2 + $0x668] sm:$0xff] }
 0x1ad   :  { %v5773_v24 = vmul.f32 %v4924_v21, %v4924_v21  ;;  %5720 = vst [vmem:[%s7448_s2 + $0x88] sm:$0xff] %v4797_v22  ;;  %v7040_v25 = vadd.f32 %v4797_v22, %v4793_v9  ;;  %v5772_v26 = vmul.f32 %v4797_v22, %v4797_v22  ;;  %5328 = vmatprep.subr.bf16.mxu1 %v6159_v7  ;;  %5722 = vst [vmem:[%s7448_s2 + $0x98] sm:$0xff] %v4926_v27  ;;  %v269_v21 = vld [vmem:[#allocation2 + $0x760] sm:$0xff]  ;;  %v262_v22 = vld [vmem:[#allocation2 + $0x728] sm:$0xff] }
 0x1ae   :  { %v7042_v31 = vadd.f32 %v5771_v20, %v5767_v12  ;;  %v7047_v32 = vadd.f32 %v4926_v27, %v4922_v14  ;;  %v5774_v33 = vmul.f32 %v4926_v27, %v4926_v27  ;;  %v6220_v63 = vcombine.low %v197_v51, %v205_v52  ;;  %v253_v12 = vld [vmem:[#allocation2 + $0x6e0] sm:$0xff]  ;;  %v254_v14 = vld [vmem:[#allocation2 + $0x6e8] sm:$0xff] }
 0x1af   :  { %v7049_v36 = vadd.f32 %v5773_v24, %v5769_v13  ;;  %v7051_v37 = vadd.f32 %v5772_v26, %v5768_v18  ;;  %5200 = vmatpush1.bf16.msra.mxu0 %v6156_v10  ;;  %5329 = vmatpush1.bf16.msra.mxu1 %v6158_v11  ;;  %v6237_v1 = vcombine.high %v213_v59, %v221_v60  ;;  %v245_v11 = vld [vmem:[#allocation2 + $0x6a0] sm:$0xff]  ;;  %v246_v13 = vld [vmem:[#allocation2 + $0x6a8] sm:$0xff] }
 0x1b0   :  { %v7054_v39 = vadd.f32 %v5774_v33, %v5770_v30  ;;  %5201 = vmatprep.subr.bf16.mxu0 %v6173_v16  ;;  %5330 = vmatprep.subr.bf16.mxu1 %v6175_v17  ;;  %v6239_v2 = vcombine.high %v214_v61, %v222_v62  ;;  %v6236_v7 = vcombine.low %v213_v59, %v221_v60  ;;  %v261_v20 = vld [vmem:[#allocation2 + $0x720] sm:$0xff]  ;;  %v270_v24 = vld [vmem:[#allocation2 + $0x768] sm:$0xff] }
 0x1b1   :  { %v6238_v8 = vcombine.low %v214_v61, %v222_v62  ;;  %v6253_v9 = vcombine.high %v229_v3, %v237_v4  ;;  %v6255_v10 = vcombine.high %v230_v5, %v238_v6  ;;  %v6252_v15 = vcombine.low %v229_v3, %v237_v4  ;;  %v277_v30 = vld [vmem:[#allocation2 + $0x7a0] sm:$0xff]  ;;  %v326_v62 = vld [vmem:[#allocation2 + $0x928] sm:$0xff] }
 0x1b2   :  { %v6254_v16 = vcombine.low %v230_v5, %v238_v6  ;;  %v6269_v17 = vcombine.high %v245_v11, %v253_v12  ;;  %v6271_v18 = vcombine.high %v246_v13, %v254_v14  ;;  %v6268_v26 = vcombine.low %v245_v11, %v253_v12  ;;  %v285_v33 = vld [vmem:[#allocation2 + $0x7e0] sm:$0xff] }
 0x1b3   :  { %5202 = vmatpush1.bf16.msra.mxu0 %v6172_v38  ;;  %5331 = vmatpush1.bf16.msra.mxu1 %v6174_v40  ;;  %v6270_v27 = vcombine.low %v246_v13, %v254_v14  ;;  %v6285_v28 = vcombine.high %v261_v20, %v269_v21  ;;  %v6287_v29 = vcombine.high %v262_v22, %v270_v24  ;;  %v309_v51 = vld [vmem:[#allocation2 + $0x8a0] sm:$0xff] }
 0x1b4   :  { %5203 = vmatprep.subr.bf16.mxu0 %v6189_v41  ;;  %5332 = vmatprep.subr.bf16.mxu1 %v6191_v42  ;;  %v6284_v38 = vcombine.low %v261_v20, %v269_v21  ;;  %v6286_v40 = vcombine.low %v262_v22, %v270_v24  ;;  %v6301_v41 = vcombine.high %v277_v30, %v285_v33  ;;  %v317_v52 = vld [vmem:[#allocation2 + $0x8e0] sm:$0xff] }
 0x1b5   :  { %v6303_v42 = vcombine.high %v278_v34, %v286_v35  ;;  %v325_v59 = vld [vmem:[#allocation2 + $0x920] sm:$0xff] }
 0x1b6   :  { %v333_v60 = vld [vmem:[#allocation2 + $0x960] sm:$0xff] }
 0x1b7   :  { %5204 = vmatpush1.bf16.msra.mxu0 %v6188_v47  ;;  %5333 = vmatpush1.bf16.msra.mxu1 %v6190_v48  ;;  %v6300_v47 = vcombine.low %v277_v30, %v285_v33  ;;  %v6302_v48 = vcombine.low %v278_v34, %v286_v35  ;;  %v6903_v61 = vld [vmem:[%s7446_s0] ss:$24 sps:$4 sm:$0xff]   ;;  %v6904_v6 = vld [vmem:[%s7446_s0 + $0xc] ss:$24 sps:$4 sm:$0xff]  }
 0x1b8   :  { %5205 = vmatprep.subr.bf16.mxu0 %v6205_v49  ;;  %5334 = vmatprep.subr.bf16.mxu1 %v6207_v50  ;;  %v6317_v49 = vcombine.high %v293_v43, %v301_v44  ;;  %v6319_v50 = vcombine.high %v294_v45, %v302_v46  ;;  %v341_v4 = vld [vmem:[#allocation2 + $0x9a0] sm:$0xff] }
 0x1b9   :  { %v349_v5 = vld [vmem:[#allocation2 + $0x9e0] sm:$0xff] }
 0x1ba   :  { %v6365_v11 = vcombine.high %v341_v4, %v349_v5  ;;  %v357_v13 = vld [vmem:[#allocation2 + $0xa20] sm:$0xff] }
 0x1bb   :  { %5206 = vmatpush1.bf16.msra.mxu0 %v6204_v55  ;;  %5335 = vmatpush1.bf16.msra.mxu1 %v6206_v56  ;;  %v6316_v55 = vcombine.low %v293_v43, %v301_v44  ;;  %v6318_v56 = vcombine.low %v294_v45, %v302_v46  ;;  %v365_v14 = vld [vmem:[#allocation2 + $0xa60] sm:$0xff] }
 0x1bc   :  { %5207 = vmatprep.subr.bf16.mxu0 %v6221_v57  ;;  %5336 = vmatprep.subr.bf16.mxu1 %v6223_v58  ;;  %v6333_v57 = vcombine.high %v309_v51, %v317_v52  ;;  %v6335_v58 = vcombine.high %v310_v53, %v318_v54  ;;  %v6381_v20 = vcombine.high %v357_v13, %v365_v14  ;;  %v373_v22 = vld [vmem:[#allocation2 + $0xaa0] sm:$0xff] }
 0x1bd   :  { %v381_v24 = vld [vmem:[#allocation2 + $0xae0] sm:$0xff] }
 0x1be   :  { %v6397_v30 = vcombine.high %v373_v22, %v381_v24  ;;  %v389_v34 = vld [vmem:[#allocation2 + $0xb20] sm:$0xff] }
 0x1bf   :  { %5208 = vmatpush1.bf16.msra.mxu0 %v6220_v63  ;;  %5337 = vmatpush1.bf16.msra.mxu1 %v6222_v0  ;;  %v334_v63 = vld [vmem:[#allocation2 + $0x968] sm:$0xff]  ;;  %v6332_v0 = vcombine.low %v309_v51, %v317_v52  ;;  %v397_v35 = vld [vmem:[#allocation2 + $0xb60] sm:$0xff] }
 0x1c0   :  { %5209 = vmatprep.subr.bf16.mxu0 %v6237_v1  ;;  %5338 = vmatprep.subr.bf16.mxu1 %v6239_v2  ;;  %v6334_v1 = vcombine.low %v310_v53, %v318_v54  ;;  %v6349_v2 = vcombine.high %v325_v59, %v333_v60  ;;  %v6351_v3 = vcombine.high %v326_v62, %v334_v63  ;;  %v405_v45 = vld [vmem:[#allocation2 + $0xba0] sm:$0xff] }
 0x1c1   :  { %v6413_v43 = vcombine.high %v389_v34, %v397_v35  ;;  %v413_v46 = vld [vmem:[#allocation2 + $0xbe0] sm:$0xff] }
 0x1c2   :  { %v6429_v51 = vcombine.high %v405_v45, %v413_v46  ;;  %v421_v53 = vld [vmem:[#allocation2 + $0xc20] sm:$0xff] }
 0x1c3   :  { %5210 = vmatpush1.bf16.msra.mxu0 %v6236_v7  ;;  %5339 = vmatpush1.bf16.msra.mxu1 %v6238_v8  ;;  %v342_v7 = vld [vmem:[#allocation2 + $0x9a8] sm:$0xff]  ;;  %v429_v54 = vld [vmem:[#allocation2 + $0xc60] sm:$0xff] }
 0x1c4   :  { %5211 = vmatprep.subr.bf16.mxu0 %v6253_v9  ;;  %5340 = vmatprep.subr.bf16.mxu1 %v6255_v10  ;;  %v350_v8 = vld [vmem:[#allocation2 + $0x9e8] sm:$0xff]  ;;  %v6348_v9 = vcombine.low %v325_v59, %v333_v60  ;;  %v6350_v10 = vcombine.low %v326_v62, %v334_v63  ;;  %v6445_v59 = vcombine.high %v421_v53, %v429_v54  ;;  %v445_v62 = vld [vmem:[#allocation2 + $0xce0] sm:$0xff] }
 0x1c5   :  { %v6367_v12 = vcombine.high %v342_v7, %v350_v8  ;;  %v438_v63 = vld [vmem:[#allocation2 + $0xca8] sm:$0xff] }
 0x1c7   :  { %5212 = vmatpush1.bf16.msra.mxu0 %v6252_v15  ;;  %5341 = vmatpush1.bf16.msra.mxu1 %v6254_v16  ;;  %v358_v15 = vld [vmem:[#allocation2 + $0xa28] sm:$0xff] }
 0x1c8   :  { %5213 = vmatprep.subr.bf16.mxu0 %v6269_v17  ;;  %5342 = vmatprep.subr.bf16.mxu1 %v6271_v18  ;;  %v366_v16 = vld [vmem:[#allocation2 + $0xa68] sm:$0xff]  ;;  %v6364_v17 = vcombine.low %v341_v4, %v349_v5  ;;  %v6366_v18 = vcombine.low %v342_v7, %v350_v8  ;;  %v453_v5 = vld [vmem:[#allocation2 + $0xd20] sm:$0xff] }
 0x1c9   :  { %v6383_v21 = vcombine.high %v358_v15, %v366_v16  ;;  %v454_v7 = vld [vmem:[#allocation2 + $0xd28] sm:$0xff] }
 0x1ca   :  { %v462_v8 = vld [vmem:[#allocation2 + $0xd68] sm:$0xff] }
 0x1cb   :  { %5214 = vmatpush1.bf16.msra.mxu0 %v6268_v26  ;;  %5343 = vmatpush1.bf16.msra.mxu1 %v6270_v27  ;;  %v374_v26 = vld [vmem:[#allocation2 + $0xaa8] sm:$0xff] }
 0x1cc   :  { %5215 = vmatprep.subr.bf16.mxu0 %v6285_v28  ;;  %5344 = vmatprep.subr.bf16.mxu1 %v6287_v29  ;;  %v382_v27 = vld [vmem:[#allocation2 + $0xae8] sm:$0xff]  ;;  %v6380_v28 = vcombine.low %v357_v13, %v365_v14  ;;  %v6382_v29 = vcombine.low %v358_v15, %v366_v16  ;;  %v469_v13 = vld [vmem:[#allocation2 + $0xda0] sm:$0xff] }
 0x1cd   :  { %v6399_v33 = vcombine.high %v374_v26, %v382_v27  ;;  %v477_v14 = vld [vmem:[#allocation2 + $0xde0] sm:$0xff]  ;;  %v470_v15 = vld [vmem:[#allocation2 + $0xda8] sm:$0xff] }
 0x1ce   :  { %v478_v16 = vld [vmem:[#allocation2 + $0xde8] sm:$0xff] }
 0x1cf   :  { %5216 = vmatpush1.bf16.msra.mxu0 %v6284_v38  ;;  %5345 = vmatpush1.bf16.msra.mxu1 %v6286_v40  ;;  %v390_v38 = vld [vmem:[#allocation2 + $0xb28] sm:$0xff] }
 0x1d0   :  { %5217 = vmatprep.subr.bf16.mxu0 %v6301_v41  ;;  %5346 = vmatprep.subr.bf16.mxu1 %v6303_v42  ;;  %v398_v40 = vld [vmem:[#allocation2 + $0xb68] sm:$0xff]  ;;  %v6396_v41 = vcombine.low %v373_v22, %v381_v24  ;;  %v6398_v42 = vcombine.low %v374_v26, %v382_v27  ;;  %v485_v22 = vld [vmem:[#allocation2 + $0xe20] sm:$0xff] }
 0x1d1   :  { %v6415_v44 = vcombine.high %v390_v38, %v398_v40  ;;  %v493_v24 = vld [vmem:[#allocation2 + $0xe60] sm:$0xff]  ;;  %v486_v26 = vld [vmem:[#allocation2 + $0xe28] sm:$0xff] }
 0x1d2   :  { %v494_v27 = vld [vmem:[#allocation2 + $0xe68] sm:$0xff] }
 0x1d3   :  { %5218 = vmatpush1.bf16.msra.mxu0 %v6300_v47  ;;  %5347 = vmatpush1.bf16.msra.mxu1 %v6302_v48  ;;  %v406_v47 = vld [vmem:[#allocation2 + $0xba8] sm:$0xff] }
 0x1d4   :  { %5230 = vmatprep.subr.bf16.mxu0 %v6317_v49  ;;  %5359 = vmatprep.subr.bf16.mxu1 %v6319_v50  ;;  %v414_v48 = vld [vmem:[#allocation2 + $0xbe8] sm:$0xff]  ;;  %v6412_v49 = vcombine.low %v389_v34, %v397_v35  ;;  %v6414_v50 = vcombine.low %v390_v38, %v398_v40  ;;  %v501_v34 = vld [vmem:[#allocation2 + $0xea0] sm:$0xff] }
 0x1d5   :  { %v6431_v52 = vcombine.high %v406_v47, %v414_v48  ;;  %v509_v35 = vld [vmem:[#allocation2 + $0xee0] sm:$0xff]  ;;  %v502_v38 = vld [vmem:[#allocation2 + $0xea8] sm:$0xff] }
 0x1d6   :  { %5220 = vmatmul.mubr.bf16.vlgmr.msra.gmra.mrb[8].mxu0 %v6903_v61  ;;  %5349 = vmatmul.mubr.bf16.vlgmr.msra.gmra.mrb[8].mxu1 %v6903_v61  ;;  %v437_v61 = vld [vmem:[#allocation2 + $0xca0] sm:$0xff]  ;;  %v510_v40 = vld [vmem:[#allocation2 + $0xee8] sm:$0xff] }
 0x1d7   :  { %5231 = vmatpush1.bf16.msra.mxu0 %v6316_v55  ;;  %5360 = vmatpush1.bf16.msra.mxu1 %v6318_v56  ;;  %v422_v55 = vld [vmem:[#allocation2 + $0xc28] sm:$0xff] }
 0x1d8   :  { %5232 = vmatprep.subr.bf16.mxu0 %v6333_v57  ;;  %5361 = vmatprep.subr.bf16.mxu1 %v6335_v58  ;;  %v430_v56 = vld [vmem:[#allocation2 + $0xc68] sm:$0xff]  ;;  %v6428_v57 = vcombine.low %v405_v45, %v413_v46  ;;  %v6430_v58 = vcombine.low %v406_v47, %v414_v48  ;;  %v517_v45 = vld [vmem:[#allocation2 + $0xf20] sm:$0xff] }
 0x1d9   :  { %5262 = vmatprep.mubr.bf16.mxu0 %v6904_v6  ;;  %5391 = vmatprep.mubr.bf16.mxu1 %v6904_v6  ;;  %v6447_v60 = vcombine.high %v422_v55, %v430_v56  ;;  %v461_v6 = vld [vmem:[#allocation2 + $0xd60] sm:$0xff]  ;;  %v518_v47 = vld [vmem:[#allocation2 + $0xf28] sm:$0xff] }
 0x1da   :  { %v525_v46 = vld [vmem:[#allocation2 + $0xf60] sm:$0xff]  ;;  %v526_v48 = vld [vmem:[#allocation2 + $0xf68] sm:$0xff] }
 0x1db   :  { %5233 = vmatpush1.bf16.msra.mxu0 %v6332_v0  ;;  %5362 = vmatpush1.bf16.msra.mxu1 %v6334_v1  ;;  %v446_v0 = vld [vmem:[#allocation2 + $0xce8] sm:$0xff]  ;;  %v6444_v1 = vcombine.low %v421_v53, %v429_v54  ;;  %v533_v53 = vld [vmem:[#allocation2 + $0xfa0] sm:$0xff] }
 0x1dc   :  { %5234 = vmatprep.subr.bf16.mxu0 %v6349_v2  ;;  %5363 = vmatprep.subr.bf16.mxu1 %v6351_v3  ;;  %v6446_v2 = vcombine.low %v422_v55, %v430_v56  ;;  %v6461_v3 = vcombine.high %v437_v61, %v445_v62  ;;  %v6463_v4 = vcombine.high %v438_v63, %v446_v0  ;;  %v541_v54 = vld [vmem:[#allocation2 + $0xfe0] sm:$0xff]  ;;  %v534_v55 = vld [vmem:[#allocation2 + $0xfa8] sm:$0xff] }
 0x1dd   :  { %v542_v56 = vld [vmem:[#allocation2 + $0xfe8] sm:$0xff] }
 0x1df   :  { %5235 = vmatpush1.bf16.msra.mxu0 %v6348_v9  ;;  %5364 = vmatpush1.bf16.msra.mxu1 %v6350_v10  ;;  %v6460_v9 = vcombine.low %v437_v61, %v445_v62  ;;  %v6462_v10 = vcombine.low %v438_v63, %v446_v0  ;;  %v549_v61 = vld [vmem:[#allocation2 + $0x1020] sm:$0xff]  ;;  %v550_v63 = vld [vmem:[#allocation2 + $0x1028] sm:$0xff] }
 0x1e0   :  { %5236 = vmatprep.subr.bf16.mxu0 %v6365_v11  ;;  %5365 = vmatprep.subr.bf16.mxu1 %v6367_v12  ;;  %v6477_v11 = vcombine.high %v453_v5, %v461_v6  ;;  %v6479_v12 = vcombine.high %v454_v7, %v462_v8  ;;  %v557_v62 = vld [vmem:[#allocation2 + $0x1060] sm:$0xff]  ;;  %v558_v0 = vld [vmem:[#allocation2 + $0x1068] sm:$0xff] }
 0x1e3   :  { %5237 = vmatpush1.bf16.msra.mxu0 %v6364_v17  ;;  %5366 = vmatpush1.bf16.msra.mxu1 %v6366_v18  ;;  %v6476_v17 = vcombine.low %v453_v5, %v461_v6  ;;  %v6478_v18 = vcombine.low %v454_v7, %v462_v8  ;;  %v565_v5 = vld [vmem:[#allocation2 + $0x10a0] sm:$0xff]  ;;  %v566_v7 = vld [vmem:[#allocation2 + $0x10a8] sm:$0xff] }
 0x1e4   :  { %5238 = vmatprep.subr.bf16.mxu0 %v6381_v20  ;;  %5367 = vmatprep.subr.bf16.mxu1 %v6383_v21  ;;  %v6493_v20 = vcombine.high %v469_v13, %v477_v14  ;;  %v6495_v21 = vcombine.high %v470_v15, %v478_v16  ;;  %v573_v6 = vld [vmem:[#allocation2 + $0x10e0] sm:$0xff]  ;;  %v574_v8 = vld [vmem:[#allocation2 + $0x10e8] sm:$0xff] }
 0x1e7   :  { %5239 = vmatpush1.bf16.msra.mxu0 %v6380_v28  ;;  %5368 = vmatpush1.bf16.msra.mxu1 %v6382_v29  ;;  %v6492_v28 = vcombine.low %v469_v13, %v477_v14  ;;  %v6494_v29 = vcombine.low %v470_v15, %v478_v16  ;;  %v581_v13 = vld [vmem:[#allocation2 + $0x1120] sm:$0xff]  ;;  %v582_v16 = vld [vmem:[#allocation2 + $0x1128] sm:$0xff] }
 0x1e8   :  { %5240 = vmatprep.subr.bf16.mxu0 %v6397_v30  ;;  %5369 = vmatprep.subr.bf16.mxu1 %v6399_v33  ;;  %v6509_v30 = vcombine.high %v485_v22, %v493_v24  ;;  %v6511_v33 = vcombine.high %v486_v26, %v494_v27  ;;  %v589_v14 = vld [vmem:[#allocation2 + $0x1160] sm:$0xff] }
 0x1e9   :  { %v6905_v15 = vld [vmem:[%s7446_s0 + $0x8] ss:$24 sps:$4 sm:$0xff]  }
 0x1eb   :  { %5241 = vmatpush1.bf16.msra.mxu0 %v6396_v41  ;;  %5370 = vmatpush1.bf16.msra.mxu1 %v6398_v42  ;;  %v6508_v41 = vcombine.low %v485_v22, %v493_v24  ;;  %v6510_v42 = vcombine.low %v486_v26, %v494_v27  ;;  %v597_v24 = vld [vmem:[#allocation2 + $0x11a0] sm:$0xff]  ;;  %v6906_v27 = vld [vmem:[%s7446_s0 + $0x14] ss:$24 sps:$4 sm:$0xff]  }
 0x1ec   :  { %5242 = vmatprep.subr.bf16.mxu0 %v6413_v43  ;;  %5371 = vmatprep.subr.bf16.mxu1 %v6415_v44  ;;  %v6525_v43 = vcombine.high %v501_v34, %v509_v35  ;;  %v6527_v44 = vcombine.high %v502_v38, %v510_v40  ;;  %v605_v26 = vld [vmem:[#allocation2 + $0x11e0] sm:$0xff] }
 0x1ef   :  { %5243 = vmatpush1.bf16.msra.mxu0 %v6412_v49  ;;  %5372 = vmatpush1.bf16.msra.mxu1 %v6414_v50  ;;  %v6524_v49 = vcombine.low %v501_v34, %v509_v35  ;;  %v6526_v50 = vcombine.low %v502_v38, %v510_v40  ;;  %v6621_v34 = vcombine.high %v597_v24, %v605_v26  ;;  %v613_v38 = vld [vmem:[#allocation2 + $0x1220] sm:$0xff] }
 0x1f0   :  { %5244 = vmatprep.subr.bf16.mxu0 %v6429_v51  ;;  %5373 = vmatprep.subr.bf16.mxu1 %v6431_v52  ;;  %v6541_v51 = vcombine.high %v517_v45, %v525_v46  ;;  %v6543_v52 = vcombine.high %v518_v47, %v526_v48  ;;  %v621_v40 = vld [vmem:[#allocation2 + $0x1260] sm:$0xff] }
 0x1f3   :  { %5245 = vmatpush1.bf16.msra.mxu0 %v6428_v57  ;;  %5374 = vmatpush1.bf16.msra.mxu1 %v6430_v58  ;;  %v6540_v57 = vcombine.low %v517_v45, %v525_v46  ;;  %v6542_v58 = vcombine.low %v518_v47, %v526_v48  ;;  %v6637_v45 = vcombine.high %v613_v38, %v621_v40  ;;  %v629_v47 = vld [vmem:[#allocation2 + $0x12a0] sm:$0xff] }
 0x1f4   :  { %5246 = vmatprep.subr.bf16.mxu0 %v6445_v59  ;;  %5375 = vmatprep.subr.bf16.mxu1 %v6447_v60  ;;  %v6557_v59 = vcombine.high %v533_v53, %v541_v54  ;;  %v6559_v60 = vcombine.high %v534_v55, %v542_v56  ;;  %v637_v48 = vld [vmem:[#allocation2 + $0x12e0] sm:$0xff] }
 0x1f7   :  { %5247 = vmatpush1.bf16.msra.mxu0 %v6444_v1  ;;  %5376 = vmatpush1.bf16.msra.mxu1 %v6446_v2  ;;  %v6556_v1 = vcombine.low %v533_v53, %v541_v54  ;;  %v6558_v2 = vcombine.low %v534_v55, %v542_v56  ;;  %v6653_v53 = vcombine.high %v629_v47, %v637_v48  ;;  %v645_v55 = vld [vmem:[#allocation2 + $0x1320] sm:$0xff] }
 0x1f8   :  { %5248 = vmatprep.subr.bf16.mxu0 %v6461_v3  ;;  %5377 = vmatprep.subr.bf16.mxu1 %v6463_v4  ;;  %v6573_v3 = vcombine.high %v549_v61, %v557_v62  ;;  %v6575_v4 = vcombine.high %v550_v63, %v558_v0  ;;  %v653_v56 = vld [vmem:[#allocation2 + $0x1360] sm:$0xff] }
 0x1fb   :  { %5249 = vmatpush1.bf16.msra.mxu0 %v6460_v9  ;;  %5378 = vmatpush1.bf16.msra.mxu1 %v6462_v10  ;;  %v6572_v9 = vcombine.low %v549_v61, %v557_v62  ;;  %v6574_v10 = vcombine.low %v550_v63, %v558_v0  ;;  %v6669_v61 = vcombine.high %v645_v55, %v653_v56  ;;  %v661_v63 = vld [vmem:[#allocation2 + $0x13a0] sm:$0xff] }
 0x1fc   :  { %5250 = vmatprep.subr.bf16.mxu0 %v6477_v11  ;;  %5379 = vmatprep.subr.bf16.mxu1 %v6479_v12  ;;  %v6589_v11 = vcombine.high %v565_v5, %v573_v6  ;;  %v6591_v12 = vcombine.high %v566_v7, %v574_v8  ;;  %v669_v0 = vld [vmem:[#allocation2 + $0x13e0] sm:$0xff] }
 0x1ff   :  { %5251 = vmatpush1.bf16.msra.mxu0 %v6476_v17  ;;  %5380 = vmatpush1.bf16.msra.mxu1 %v6478_v18  ;;  %v590_v17 = vld [vmem:[#allocation2 + $0x1168] sm:$0xff]  ;;  %v6588_v18 = vcombine.low %v565_v5, %v573_v6  ;;  %v6685_v5 = vcombine.high %v661_v63, %v669_v0 }
 0x200   :  { %5252 = vmatprep.subr.bf16.mxu0 %v6493_v20  ;;  %5381 = vmatprep.subr.bf16.mxu1 %v6495_v21  ;;  %v6590_v20 = vcombine.low %v566_v7, %v574_v8  ;;  %v6605_v21 = vcombine.high %v581_v13, %v589_v14  ;;  %v6607_v22 = vcombine.high %v582_v16, %v590_v17  ;;  %v677_v7 = vld [vmem:[#allocation2 + $0x1420] sm:$0xff] }
 0x201   :  { %v685_v8 = vld [vmem:[#allocation2 + $0x1460] sm:$0xff] }
 0x203   :  { %5253 = vmatpush1.bf16.msra.mxu0 %v6492_v28  ;;  %5382 = vmatpush1.bf16.msra.mxu1 %v6494_v29  ;;  %v598_v28 = vld [vmem:[#allocation2 + $0x11a8] sm:$0xff] }
 0x204   :  { %5254 = vmatprep.subr.bf16.mxu0 %v6509_v30  ;;  %5383 = vmatprep.subr.bf16.mxu1 %v6511_v33  ;;  %v606_v29 = vld [vmem:[#allocation2 + $0x11e8] sm:$0xff]  ;;  %v6604_v30 = vcombine.low %v581_v13, %v589_v14  ;;  %v6606_v33 = vcombine.low %v582_v16, %v590_v17  ;;  %v6701_v13 = vcombine.high %v677_v7, %v685_v8  ;;  %v701_v16 = vld [vmem:[#allocation2 + $0x14e0] sm:$0xff] }
 0x205   :  { %v6623_v35 = vcombine.high %v598_v28, %v606_v29  ;;  %v694_v17 = vld [vmem:[#allocation2 + $0x14a8] sm:$0xff] }
 0x207   :  { %5255 = vmatpush1.bf16.msra.mxu0 %v6508_v41  ;;  %5384 = vmatpush1.bf16.msra.mxu1 %v6510_v42  ;;  %v614_v41 = vld [vmem:[#allocation2 + $0x1228] sm:$0xff] }
 0x208   :  { %5256 = vmatprep.subr.bf16.mxu0 %v6525_v43  ;;  %5385 = vmatprep.subr.bf16.mxu1 %v6527_v44  ;;  %v622_v42 = vld [vmem:[#allocation2 + $0x1268] sm:$0xff]  ;;  %v6620_v43 = vcombine.low %v597_v24, %v605_v26  ;;  %v6622_v44 = vcombine.low %v598_v28, %v606_v29  ;;  %v709_v26 = vld [vmem:[#allocation2 + $0x1520] sm:$0xff] }
 0x209   :  { %v6639_v46 = vcombine.high %v614_v41, %v622_v42  ;;  %v710_v28 = vld [vmem:[#allocation2 + $0x1528] sm:$0xff] }
 0x20a   :  { %v718_v29 = vld [vmem:[#allocation2 + $0x1568] sm:$0xff] }
 0x20b   :  { %5257 = vmatpush1.bf16.msra.mxu0 %v6524_v49  ;;  %5386 = vmatpush1.bf16.msra.mxu1 %v6526_v50  ;;  %v630_v49 = vld [vmem:[#allocation2 + $0x12a8] sm:$0xff] }
 0x20c   :  { %5258 = vmatprep.subr.bf16.mxu0 %v6541_v51  ;;  %5387 = vmatprep.subr.bf16.mxu1 %v6543_v52  ;;  %v638_v50 = vld [vmem:[#allocation2 + $0x12e8] sm:$0xff]  ;;  %v6636_v51 = vcombine.low %v613_v38, %v621_v40  ;;  %v6638_v52 = vcombine.low %v614_v41, %v622_v42  ;;  %v725_v38 = vld [vmem:[#allocation2 + $0x15a0] sm:$0xff] }
 0x20d   :  { %v6655_v54 = vcombine.high %v630_v49, %v638_v50  ;;  %v733_v40 = vld [vmem:[#allocation2 + $0x15e0] sm:$0xff]  ;;  %v726_v41 = vld [vmem:[#allocation2 + $0x15a8] sm:$0xff] }
 0x20e   :  { %v734_v42 = vld [vmem:[#allocation2 + $0x15e8] sm:$0xff] }
 0x20f   :  { %5259 = vmatpush1.bf16.msra.mxu0 %v6540_v57  ;;  %5388 = vmatpush1.bf16.msra.mxu1 %v6542_v58  ;;  %v646_v57 = vld [vmem:[#allocation2 + $0x1328] sm:$0xff] }
 0x210   :  { %5260 = vmatprep.subr.bf16.mxu0 %v6557_v59  ;;  %5389 = vmatprep.subr.bf16.mxu1 %v6559_v60  ;;  %v654_v58 = vld [vmem:[#allocation2 + $0x1368] sm:$0xff]  ;;  %v6652_v59 = vcombine.low %v629_v47, %v637_v48  ;;  %v6654_v60 = vcombine.low %v630_v49, %v638_v50  ;;  %v741_v47 = vld [vmem:[#allocation2 + $0x1620] sm:$0xff] }
 0x211   :  { %v6671_v62 = vcombine.high %v646_v57, %v654_v58  ;;  %v749_v48 = vld [vmem:[#allocation2 + $0x1660] sm:$0xff]  ;;  %v742_v49 = vld [vmem:[#allocation2 + $0x1628] sm:$0xff] }
 0x212   :  { %v750_v50 = vld [vmem:[#allocation2 + $0x1668] sm:$0xff] }
 0x213   :  { %5261 = vmatpush1.bf16.msra.mxu0 %v6556_v1  ;;  %5390 = vmatpush1.bf16.msra.mxu1 %v6558_v2  ;;  %v662_v1 = vld [vmem:[#allocation2 + $0x13a8] sm:$0xff] }
 0x214   :  { %5273 = vmatprep.subr.bf16.mxu0 %v6573_v3  ;;  %5402 = vmatprep.subr.bf16.mxu1 %v6575_v4  ;;  %v670_v2 = vld [vmem:[#allocation2 + $0x13e8] sm:$0xff]  ;;  %v6668_v3 = vcombine.low %v645_v55, %v653_v56  ;;  %v6670_v4 = vcombine.low %v646_v57, %v654_v58  ;;  %v757_v55 = vld [vmem:[#allocation2 + $0x16a0] sm:$0xff] }
 0x215   :  { %v6687_v6 = vcombine.high %v662_v1, %v670_v2  ;;  %v765_v56 = vld [vmem:[#allocation2 + $0x16e0] sm:$0xff]  ;;  %v758_v57 = vld [vmem:[#allocation2 + $0x16a8] sm:$0xff] }
 0x216   :  { %5263 = vmatmul.mubr.bf16.vlgmr.msra.gmra.mrb[8].mxu0 %v6905_v15  ;;  %5392 = vmatmul.mubr.bf16.vlgmr.msra.gmra.mrb[8].mxu1 %v6905_v15  ;;  %v693_v15 = vld [vmem:[#allocation2 + $0x14a0] sm:$0xff]  ;;  %v766_v58 = vld [vmem:[#allocation2 + $0x16e8] sm:$0xff] }
 0x217   :  { %5274 = vmatpush1.bf16.msra.mxu0 %v6572_v9  ;;  %5403 = vmatpush1.bf16.msra.mxu1 %v6574_v10  ;;  %v678_v9 = vld [vmem:[#allocation2 + $0x1428] sm:$0xff] }
 0x218   :  { %5275 = vmatprep.subr.bf16.mxu0 %v6589_v11  ;;  %5404 = vmatprep.subr.bf16.mxu1 %v6591_v12  ;;  %v686_v10 = vld [vmem:[#allocation2 + $0x1468] sm:$0xff]  ;;  %v6684_v11 = vcombine.low %v661_v63, %v669_v0  ;;  %v6686_v12 = vcombine.low %v662_v1, %v670_v2  ;;  %v773_v63 = vld [vmem:[#allocation2 + $0x1720] sm:$0xff] }
 0x219   :  { %5305 = vmatprep.mubr.bf16.mxu0 %v6906_v27  ;;  %5434 = vmatprep.mubr.bf16.mxu1 %v6906_v27  ;;  %v6703_v14 = vcombine.high %v678_v9, %v686_v10  ;;  %v717_v27 = vld [vmem:[#allocation2 + $0x1560] sm:$0xff]  ;;  %v774_v1 = vld [vmem:[#allocation2 + $0x1728] sm:$0xff] }
 0x21a   :  { %v781_v0 = vld [vmem:[#allocation2 + $0x1760] sm:$0xff]  ;;  %v782_v2 = vld [vmem:[#allocation2 + $0x1768] sm:$0xff] }
 0x21b   :  { %5276 = vmatpush1.bf16.msra.mxu0 %v6588_v18  ;;  %5405 = vmatpush1.bf16.msra.mxu1 %v6590_v20  ;;  %v702_v18 = vld [vmem:[#allocation2 + $0x14e8] sm:$0xff]  ;;  %v6700_v20 = vcombine.low %v677_v7, %v685_v8  ;;  %v789_v7 = vld [vmem:[#allocation2 + $0x17a0] sm:$0xff] }
 0x21c   :  { %5277 = vmatprep.subr.bf16.mxu0 %v6605_v21  ;;  %5406 = vmatprep.subr.bf16.mxu1 %v6607_v22  ;;  %v6702_v21 = vcombine.low %v678_v9, %v686_v10  ;;  %v6717_v22 = vcombine.high %v693_v15, %v701_v16  ;;  %v6719_v24 = vcombine.high %v694_v17, %v702_v18  ;;  %v797_v8 = vld [vmem:[#allocation2 + $0x17e0] sm:$0xff]  ;;  %v790_v9 = vld [vmem:[#allocation2 + $0x17a8] sm:$0xff] }
 0x21d   :  { %v798_v10 = vld [vmem:[#allocation2 + $0x17e8] sm:$0xff] }
 0x21f   :  { %5278 = vmatpush1.bf16.msra.mxu0 %v6604_v30  ;;  %5407 = vmatpush1.bf16.msra.mxu1 %v6606_v33  ;;  %v6716_v30 = vcombine.low %v693_v15, %v701_v16  ;;  %v6718_v33 = vcombine.low %v694_v17, %v702_v18  ;;  %v39_v15 = vld [vmem:[#allocation2 + $0x30] sm:$0xff]  ;;  %v5736_v17 = vrot.slane %v7030_v19, 4  ;;  %v5776_v18 = vrot.slane %v7042_v31, 4 }
 0x220   :  { %5279 = vmatprep.subr.bf16.mxu0 %v6621_v34  ;;  %5408 = vmatprep.subr.bf16.mxu1 %v6623_v35  ;;  %v6733_v34 = vcombine.high %v709_v26, %v717_v27  ;;  %v6735_v35 = vcombine.high %v710_v28, %v718_v29  ;;  %v47_v16 = vld [vmem:[#allocation2 + $0x70] sm:$0xff] }
 0x223   :  { %5280 = vmatpush1.bf16.msra.mxu0 %v6620_v43  ;;  %5409 = vmatpush1.bf16.msra.mxu1 %v6622_v44  ;;  %v6732_v43 = vcombine.low %v709_v26, %v717_v27  ;;  %v6734_v44 = vcombine.low %v710_v28, %v718_v29  ;;  %v5790_v26 = vrot.slane %v7049_v36, 4  ;;  %v5783_v27 = vrot.slane %v7051_v37, 4 }
 0x224   :  { %5281 = vmatprep.subr.bf16.mxu0 %v6637_v45  ;;  %5410 = vmatprep.subr.bf16.mxu1 %v6639_v46  ;;  %v6749_v45 = vcombine.high %v725_v38, %v733_v40  ;;  %v6751_v46 = vcombine.high %v726_v41, %v734_v42  ;;  %v5757_v28 = vrot.slane %v7047_v32, 4  ;;  %v6812_v29 = vcombine.low %v789_v7, %v797_v8 }
 0x227   :  { %5282 = vmatpush1.bf16.msra.mxu0 %v6636_v51  ;;  %5411 = vmatpush1.bf16.msra.mxu1 %v6638_v52  ;;  %v6748_v51 = vcombine.low %v725_v38, %v733_v40  ;;  %v6750_v52 = vcombine.low %v726_v41, %v734_v42  ;;  %v55_v38 = vld [vmem:[#allocation2 + $0xb0] sm:$0xff]  ;;  %v5737_v41 = vadd.f32 %v5736_v17, %v7030_v19 }
 0x228   :  { %5283 = vmatprep.subr.bf16.mxu0 %v6653_v53  ;;  %5412 = vmatprep.subr.bf16.mxu1 %v6655_v54  ;;  %v6765_v53 = vcombine.high %v741_v47, %v749_v48  ;;  %v6767_v54 = vcombine.high %v742_v49, %v750_v50  ;;  %v63_v40 = vld [vmem:[#allocation2 + $0xf0] sm:$0xff]  ;;  %v5777_v42 = vadd.f32 %v5776_v18, %v7042_v31 }
 0x229   :  { %v6081_v31 = vcombine.high %v55_v38, %v63_v40  ;;  %v7090_v17 = vld [vmem:[#allocation2 + $0x230] sm:$0xff] }
 0x22a   :  { %v7092_v18 = vld [vmem:[#allocation2 + $0x270] sm:$0xff] }
 0x22b   :  { %5284 = vmatpush1.bf16.msra.mxu0 %v6652_v59  ;;  %5413 = vmatpush1.bf16.msra.mxu1 %v6654_v60  ;;  %v6764_v59 = vcombine.low %v741_v47, %v749_v48  ;;  %v6766_v60 = vcombine.low %v742_v49, %v750_v50  ;;  %v5791_v47 = vadd.f32 %v5790_v26, %v7049_v36  ;;  %v7094_v26 = vld [vmem:[#allocation2 + $0x238] sm:$0xff] }
 0x22c   :  { %5285 = vmatprep.subr.bf16.mxu0 %v6669_v61  ;;  %5414 = vmatprep.subr.bf16.mxu1 %v6671_v62  ;;  %v6781_v61 = vcombine.high %v757_v55, %v765_v56  ;;  %v6783_v62 = vcombine.high %v758_v57, %v766_v58  ;;  %v5784_v48 = vadd.f32 %v5783_v27, %v7051_v37  ;;  %v72_v37 = vld [vmem:[#allocation2 + $0x138] sm:$0xff] }
 0x22d   :  { %v5758_v49 = vadd.f32 %v5757_v28, %v7047_v32  ;;  %v6064_v50 = vcombine.low %v39_v15, %v47_v16  ;;  %v6907_v32 = vld [vmem:[%s7446_s0 + $0x10] ss:$24 sps:$4 sm:$0xff]   ;;  %v7096_v27 = vld [vmem:[#allocation2 + $0x278] sm:$0xff] }
 0x22f   :  { %5286 = vmatpush1.bf16.msra.mxu0 %v6668_v3  ;;  %5415 = vmatpush1.bf16.msra.mxu1 %v6670_v4  ;;  %v6780_v3 = vcombine.low %v757_v55, %v765_v56  ;;  %v6782_v4 = vcombine.low %v758_v57, %v766_v58  ;;  %v80_v56 = vld [vmem:[#allocation2 + $0x178] sm:$0xff]  ;;  %v5785_v57 = vrot.slane %v5784_v48, 2  ;;  %v5759_v58 = vrot.slane %v5758_v49, 2 }
 0x230   :  { %5287 = vmatprep.subr.bf16.mxu0 %v6685_v5  ;;  %5416 = vmatprep.subr.bf16.mxu1 %v6687_v6  ;;  %v6797_v5 = vcombine.high %v773_v63, %v781_v0  ;;  %v6799_v6 = vcombine.high %v774_v1, %v782_v2 }
 0x233   :  { %5288 = vmatpush1.bf16.msra.mxu0 %v6684_v11  ;;  %5417 = vmatpush1.bf16.msra.mxu1 %v6686_v12  ;;  %v6796_v11 = vcombine.low %v773_v63, %v781_v0  ;;  %v6798_v12 = vcombine.low %v774_v1, %v782_v2  ;;  %v6099_v63 = vcombine.high %v72_v37, %v80_v56  ;;  %v87_v0 = vld [vmem:[#allocation2 + $0x1b0] sm:$0xff]  ;;  %v6908_v2 = vld [vmem:[%s7446_s0 + $0x4] ss:$24 sps:$4 sm:$0xff]  }
 0x234   :  { %5289 = vmatprep.subr.bf16.mxu0 %v6701_v13  ;;  %5418 = vmatprep.subr.bf16.mxu1 %v6703_v14  ;;  %v6813_v13 = vcombine.high %v789_v7, %v797_v8  ;;  %v6815_v14 = vcombine.high %v790_v9, %v798_v10  ;;  %v95_v1 = vld [vmem:[#allocation2 + $0x1f0] sm:$0xff]  ;;  %v88_v7 = vld [vmem:[#allocation2 + $0x1b8] sm:$0xff] }
 0x235   :  { %v96_v8 = vld [vmem:[#allocation2 + $0x1f8] sm:$0xff] }
 0x237   :  { %5290 = vmatpush1.bf16.msra.mxu0 %v6700_v20  ;;  %5419 = vmatpush1.bf16.msra.mxu1 %v6702_v21  ;;  %v5750_v20 = vrot.slane %v7035_v23, 4  ;;  %v5743_v21 = vrot.slane %v7040_v25, 4 }
 0x238   :  { %5291 = vmatprep.subr.bf16.mxu0 %v6717_v22  ;;  %5420 = vmatprep.subr.bf16.mxu1 %v6719_v24  ;;  %v40_v22 = vld [vmem:[#allocation2 + $0x38] sm:$0xff] }
 0x239   :  { %v48_v24 = vld [vmem:[#allocation2 + $0x78] sm:$0xff] }
 0x23a   :  { %v6066_v19 = vcombine.low %v40_v22, %v48_v24 }
 0x23b   :  { %5292 = vmatpush1.bf16.msra.mxu0 %v6716_v30  ;;  %5421 = vmatpush1.bf16.msra.mxu1 %v6718_v33  ;;  %v5797_v30 = vrot.slane %v7054_v39, 4  ;;  %v6814_v33 = vcombine.low %v790_v9, %v798_v10  ;;  %v5786_v10 = vadd.f32 %v5785_v57, %v5784_v48  ;;  %v7150_v57 = vld [vmem:[#allocation2 + $0x470] sm:$0xff] }
 0x23c   :  { %5293 = vmatprep.subr.bf16.mxu0 %v6733_v34  ;;  %5422 = vmatprep.subr.bf16.mxu1 %v6735_v35  ;;  %v6065_v34 = vcombine.high %v39_v15, %v47_v16  ;;  %v6067_v35 = vcombine.high %v40_v22, %v48_v24  ;;  %v6113_v15 = vcombine.high %v87_v0, %v95_v1 }
 0x23d   :  { %v6115_v16 = vcombine.high %v88_v7, %v96_v8 }
 0x23f   :  { %5294 = vmatpush1.bf16.msra.mxu0 %v6732_v43  ;;  %5423 = vmatpush1.bf16.msra.mxu1 %v6734_v44  ;;  %v5751_v43 = vadd.f32 %v5750_v20, %v7035_v23  ;;  %v5744_v44 = vadd.f32 %v5743_v21, %v7040_v25  ;;  %v79_v25 = vld [vmem:[#allocation2 + $0x170] sm:$0xff] }
 0x240   :  { %5295 = vmatprep.subr.bf16.mxu0 %v6749_v45  ;;  %5424 = vmatprep.subr.bf16.mxu1 %v6751_v46  ;;  %v56_v45 = vld [vmem:[#allocation2 + $0xb8] sm:$0xff] }
 0x241   :  { %v64_v46 = vld [vmem:[#allocation2 + $0xf8] sm:$0xff]  ;;  %v5752_v55 = vrot.slane %v5751_v43, 2  ;;  %v5745_v36 = vrot.slane %v5744_v44, 2 }
 0x242   :  { %v6083_v23 = vcombine.high %v56_v45, %v64_v46 }
 0x243   :  { %5296 = vmatpush1.bf16.msra.mxu0 %v6748_v51  ;;  %5425 = vmatpush1.bf16.msra.mxu1 %v6750_v52  ;;  %v5798_v51 = vadd.f32 %v5797_v30, %v7054_v39  ;;  %v71_v52 = vld [vmem:[#allocation2 + $0x130] sm:$0xff]  ;;  %v5792_v39 = vrot.slane %v5791_v47, 2 }
 0x244   :  { %5297 = vmatprep.subr.bf16.mxu0 %v6765_v53  ;;  %5426 = vmatprep.subr.bf16.mxu1 %v6767_v54  ;;  %v5738_v53 = vrot.slane %v5737_v41, 2  ;;  %v5778_v54 = vrot.slane %v5777_v42, 2 }
 0x245   :  { %v5793_v9 = vadd.f32 %v5792_v39, %v5791_v47  ;;  %v7148_v39 = vld [vmem:[#allocation2 + $0x430] sm:$0xff] }
 0x247   :  { %5298 = vmatpush1.bf16.msra.mxu0 %v6764_v59  ;;  %5427 = vmatpush1.bf16.msra.mxu1 %v6766_v60  ;;  %v6080_v59 = vcombine.low %v55_v38, %v63_v40  ;;  %v5799_v60 = vrot.slane %v5798_v51, 2  ;;  %v5794_v28 = vrot.slane %v5793_v9, 1  ;;  %v6129_v38 = vcombine.high %v7090_v17, %v7092_v18  ;;  %v7100_v40 = vld [vmem:[#allocation2 + $0x2b0] sm:$0xff] }
 0x248   :  { %5299 = vmatprep.subr.bf16.mxu0 %v6781_v61  ;;  %5428 = vmatprep.subr.bf16.mxu1 %v6783_v62  ;;  %v6082_v61 = vcombine.low %v56_v45, %v64_v46  ;;  %v6097_v62 = vcombine.high %v71_v52, %v79_v25  ;;  %v7110_v45 = vld [vmem:[#allocation2 + $0x330] sm:$0xff] }
 0x249   :  { %v7112_v46 = vld [vmem:[#allocation2 + $0x370] sm:$0xff] }
 0x24b   :  { %5300 = vmatpush1.bf16.msra.mxu0 %v6780_v3  ;;  %5429 = vmatpush1.bf16.msra.mxu1 %v6782_v4  ;;  %v5739_v3 = vadd.f32 %v5738_v53, %v5737_v41  ;;  %v5779_v4 = vadd.f32 %v5778_v54, %v5777_v42  ;;  %v7102_v41 = vld [vmem:[#allocation2 + $0x2f0] sm:$0xff]  ;;  %v7104_v42 = vld [vmem:[#allocation2 + $0x2b8] sm:$0xff]  ;;  %v6128_v53 = vcombine.low %v7090_v17, %v7092_v18 }
 0x24c   :  { %5301 = vmatprep.subr.bf16.mxu0 %v6797_v5  ;;  %5430 = vmatprep.subr.bf16.mxu1 %v6799_v6  ;;  %v5753_v5 = vadd.f32 %v5752_v55, %v5751_v43  ;;  %v5746_v6 = vadd.f32 %v5745_v36, %v5744_v44  ;;  %v6131_v43 = vcombine.high %v7094_v26, %v7096_v27  ;;  %v7108_v44 = vld [vmem:[#allocation2 + $0x2f8] sm:$0xff]  ;;  %v7136_v54 = vld [vmem:[#allocation2 + $0x3f0] sm:$0xff] }
 0x24d   :  { %v5740_v20 = vrot.slane %v5739_v3, 1  ;;  %v5780_v21 = vrot.slane %v5779_v4, 1  ;;  %v7138_v55 = vld [vmem:[#allocation2 + $0x3b8] sm:$0xff] }
 0x24e   :  { %v5754_v22 = vrot.slane %v5753_v5, 1  ;;  %v5747_v24 = vrot.slane %v5746_v6, 1  ;;  %v7140_v36 = vld [vmem:[#allocation2 + $0x3f8] sm:$0xff] }
 0x24f   :  { %5302 = vmatpush1.bf16.msra.mxu0 %v6796_v11  ;;  %5431 = vmatpush1.bf16.msra.mxu1 %v6798_v12  ;;  %v5760_v11 = vadd.f32 %v5759_v58, %v5758_v49  ;;  %v6096_v12 = vcombine.low %v71_v52, %v79_v25  ;;  %v7114_v47 = vadd.f32 %v5740_v20, %v5739_v3  ;;  %v7152_v58 = vld [vmem:[#allocation2 + $0x438] sm:$0xff]  ;;  %v7202_v20 = vld [vmem:[#allocation2 + $0x5b0] sm:$0xff] }
 0x250   :  { %5303 = vmatprep.subr.bf16.mxu0 %v6813_v13  ;;  %5432 = vmatprep.subr.bf16.mxu1 %v6815_v14  ;;  %v5800_v13 = vadd.f32 %v5799_v60, %v5798_v51  ;;  %v6098_v14 = vcombine.low %v72_v37, %v80_v56  ;;  %v7116_v48 = vadd.f32 %v5780_v21, %v5779_v4  ;;  %v7122_v51 = vld [vmem:[#allocation2 + $0x338] sm:$0xff]  ;;  %v7204_v21 = vld [vmem:[#allocation2 + $0x5f0] sm:$0xff] }
 0x251   :  { %v5761_v30 = vrot.slane %v5760_v11, 1  ;;  %v7118_v49 = vadd.f32 %v5754_v22, %v5753_v5  ;;  %v6130_v37 = vcombine.low %v7094_v26, %v7096_v27  ;;  %v6145_v56 = vcombine.high %v7100_v40, %v7102_v41 }
 0x252   :  { %v6146_v60 = vcombine.low %v7104_v42, %v7108_v44 }
 0x253   :  { %5304 = vmatpush1.bf16.msra.mxu0 %v6812_v29  ;;  %5433 = vmatpush1.bf16.msra.mxu1 %v6814_v33  ;;  %v5787_v29 = vrot.slane %v5786_v10, 1  ;;  %v6112_v33 = vcombine.low %v87_v0, %v95_v1  ;;  %v7132_v25 = vadd.f32 %v5761_v30, %v5760_v11  ;;  %v7164_v0 = vld [vmem:[#allocation2 + $0x4b0] sm:$0xff]  ;;  %v6179_v11 = vcombine.high %v7138_v55, %v7140_v36 }
 0x254   :  { %5445 = vmatprep.subr.bf16.mxu0 %v6065_v34  ;;  %5574 = vmatprep.subr.bf16.mxu1 %v6067_v35  ;;  %v5801_v34 = vrot.slane %v5800_v13, 1  ;;  %v6114_v35 = vcombine.low %v88_v7, %v96_v8  ;;  %v7166_v1 = vld [vmem:[#allocation2 + $0x4f0] sm:$0xff]  ;;  %v7178_v7 = vld [vmem:[#allocation2 + $0x4f8] sm:$0xff] }
 0x255   :  { %v7130_v52 = vadd.f32 %v5787_v29, %v5786_v10  ;;  %v7180_v8 = vld [vmem:[#allocation2 + $0x530] sm:$0xff]  ;;  %v6178_v10 = vcombine.low %v7138_v55, %v7140_v36 }
 0x256   :  { %5306 = vmatmul.mubr.bf16.vlgmr.msra.gmra.mrb[8].mxu0 %v6907_v32  ;;  %5435 = vmatmul.mubr.bf16.vlgmr.msra.gmra.mrb[8].mxu1 %v6907_v32  ;;  %v7142_v32 = vadd.f32 %v5801_v34, %v5800_v13  ;;  %v7190_v13 = vld [vmem:[#allocation2 + $0x570] sm:$0xff] }
 0x257   :  { %5446 = vmatpush1.bf16.msra.mxu0 %v6064_v50  ;;  %5575 = vmatpush1.bf16.msra.mxu1 %v6066_v19  ;;  %v7120_v50 = vadd.f32 %v5747_v24, %v5746_v6  ;;  %v7124_v19 = vld [vmem:[#allocation2 + $0x378] sm:$0xff] }
 0x258   :  { %5447 = vmatprep.subr.bf16.mxu0 %v6081_v31  ;;  %5576 = vmatprep.subr.bf16.mxu1 %v6083_v23  ;;  %v7126_v31 = vld [vmem:[#allocation2 + $0x3b0] sm:$0xff]  ;;  %v7128_v23 = vadd.f32 %v5794_v28, %v5793_v9  ;;  %v6162_v3 = vcombine.low %v7122_v51, %v7124_v19  ;;  %v6163_v4 = vcombine.high %v7122_v51, %v7124_v19  ;;  %v7176_v6 = vld [vmem:[#allocation2 + $0x4b8] sm:$0xff] }
 0x259   :  { %5477 = vmatprep.mubr.bf16.mxu0 %v6908_v2  ;;  %5606 = vmatprep.mubr.bf16.mxu1 %v6908_v2  ;;  %v6160_v2 = vcombine.low %v7110_v45, %v7112_v46  ;;  %v6177_v5 = vcombine.high %v7126_v31, %v7136_v54  ;;  %v6176_v9 = vcombine.low %v7126_v31, %v7136_v54 }
 0x25b   :  { %5448 = vmatpush1.bf16.msra.mxu0 %v6080_v59  ;;  %5577 = vmatpush1.bf16.msra.mxu1 %v6082_v61  ;;  %v6144_v59 = vcombine.low %v7100_v40, %v7102_v41  ;;  %v6147_v61 = vcombine.high %v7104_v42, %v7108_v44 }
 0x25c   :  { %5449 = vmatprep.subr.bf16.mxu0 %v6097_v62  ;;  %5578 = vmatprep.subr.bf16.mxu1 %v6099_v63  ;;  %v6161_v62 = vcombine.high %v7110_v45, %v7112_v46  ;;  %v7162_v63 = vld [vmem:[#allocation2 + $0x478] sm:$0xff] }
 0x25d   :  { %v6194_v17 = vcombine.low %v7152_v58, %v7162_v63  ;;  %v6195_v18 = vcombine.high %v7152_v58, %v7162_v63  ;;  %v216_v58 = vld [vmem:[#allocation2 + $0x5b8] sm:$0xff] }
 0x25e   :  { %v224_v63 = vld [vmem:[#allocation2 + $0x5f8] sm:$0xff] }
 0x25f   :  { %5450 = vmatpush1.bf16.msra.mxu0 %v6096_v12  ;;  %5579 = vmatpush1.bf16.msra.mxu1 %v6098_v14  ;;  %v6193_v12 = vcombine.high %v7148_v39, %v7150_v57  ;;  %v7192_v14 = vld [vmem:[#allocation2 + $0x538] sm:$0xff] }
 0x260   :  { %5451 = vmatprep.subr.bf16.mxu0 %v6113_v15  ;;  %5580 = vmatprep.subr.bf16.mxu1 %v6115_v16  ;;  %v7194_v15 = vld [vmem:[#allocation2 + $0x578] sm:$0xff]  ;;  %v6192_v16 = vcombine.low %v7148_v39, %v7150_v57  ;;  %v7451_v39 = vcombine.high %v7176_v6, %v7178_v7 }
 0x263   :  { %5452 = vmatpush1.bf16.msra.mxu0 %v6112_v33  ;;  %5581 = vmatpush1.bf16.msra.mxu1 %v6114_v35 }
 0x264   :  { %5453 = vmatprep.subr.bf16.mxu0 %v6129_v38  ;;  %5582 = vmatprep.subr.bf16.mxu1 %v6131_v43 }
 0x267   :  { %5454 = vmatpush1.bf16.msra.mxu0 %v6128_v53  ;;  %5583 = vmatpush1.bf16.msra.mxu1 %v6130_v37 }
 0x268   :  { %5455 = vmatprep.subr.bf16.mxu0 %v6145_v56  ;;  %5584 = vmatprep.subr.bf16.mxu1 %v6147_v61 }
 0x269   :  { %v5049_v22 = vpop.f32.mrb[4].mxu0  ;;  %v5178_v29 = vpop.f32.mrb[4].mxu1 }
 0x26a   :  { %5707 = vst [vmem:[%s7448_s2 + $0x20] sm:$0xff] %v5049_v22  ;;  %v5051_v30 = vpop.f32.mrb[5].mxu0  ;;  %v5839_v40 = vmul.f32 %v5049_v22, %v5049_v22  ;;  %5709 = vst [vmem:[%s7448_s2 + $0x30] sm:$0xff] %v5178_v29  ;;  %v5841_v41 = vmul.f32 %v5178_v29, %v5178_v29  ;;  %v5180_v43 = vpop.f32.mrb[5].mxu1 }
 0x26b   :  { %5708 = vst [vmem:[%s7448_s2 + $0x28] sm:$0xff] %v5051_v30  ;;  %v5840_v42 = vmul.f32 %v5051_v30, %v5051_v30  ;;  %v5053_v44 = vpop.f32.mrb[6].mxu0  ;;  %5456 = vmatpush1.bf16.msra.mxu0 %v6144_v59  ;;  %5710 = vst [vmem:[%s7448_s2 + $0x38] sm:$0xff] %v5180_v43  ;;  %v5842_v37 = vmul.f32 %v5180_v43, %v5180_v43  ;;  %v5182_v35 = vpop.f32.mrb[6].mxu1  ;;  %5585 = vmatpush1.bf16.msra.mxu1 %v6146_v60 }
 0x26c   :  { %5723 = vst [vmem:[%s7448_s2 + $0xa0] sm:$0xff] %v5053_v44  ;;  %v5807_v56 = vadd.f32 %v5053_v44, %v5049_v22  ;;  %v5843_v61 = vmul.f32 %v5053_v44, %v5053_v44  ;;  %v5055_v33 = vpop.f32.mrb[7].mxu0  ;;  %5457 = vmatprep.subr.bf16.mxu0 %v6161_v62  ;;  %5725 = vst [vmem:[%s7448_s2 + $0xb0] sm:$0xff] %v5182_v35  ;;  %v5821_v59 = vadd.f32 %v5182_v35, %v5178_v29  ;;  %v5184_v27 = vpop.f32.mrb[7].mxu1 }
 0x26d   :  { %v5845_v53 = vmul.f32 %v5182_v35, %v5182_v35  ;;  %5724 = vst [vmem:[%s7448_s2 + $0xa8] sm:$0xff] %v5055_v33  ;;  %v5814_v38 = vadd.f32 %v5055_v33, %v5051_v30  ;;  %v5844_v34 = vmul.f32 %v5055_v33, %v5055_v33  ;;  %5586 = vmatprep.subr.bf16.mxu1 %v6163_v4  ;;  %5726 = vst [vmem:[%s7448_s2 + $0xb8] sm:$0xff] %v5184_v27 }
 0x26e   :  { %v5808_v22 = vrot.slane %v5807_v56, 4  ;;  %v5847_v44 = vadd.f32 %v5843_v61, %v5839_v40  ;;  %v5828_v60 = vadd.f32 %v5184_v27, %v5180_v43  ;;  %v5846_v62 = vmul.f32 %v5184_v27, %v5184_v27 }
 0x26f   :  { %v5822_v24 = vrot.slane %v5821_v59, 4  ;;  %v5861_v28 = vadd.f32 %v5845_v53, %v5841_v41  ;;  %v5815_v29 = vrot.slane %v5814_v38, 4  ;;  %v5854_v35 = vadd.f32 %v5844_v34, %v5840_v42  ;;  %5458 = vmatpush1.bf16.msra.mxu0 %v6160_v2  ;;  %5587 = vmatpush1.bf16.msra.mxu1 %v6162_v3 }
 0x270   :  { %v5809_v30 = vadd.f32 %v5808_v22, %v5807_v56  ;;  %v5848_v33 = vrot.slane %v5847_v44, 4  ;;  %v5829_v26 = vrot.slane %v5828_v60, 4  ;;  %v5868_v4 = vadd.f32 %v5846_v62, %v5842_v37  ;;  %5459 = vmatprep.subr.bf16.mxu0 %v6177_v5  ;;  %5588 = vmatprep.subr.bf16.mxu1 %v6179_v11 }
 0x271   :  { %v5823_v27 = vadd.f32 %v5822_v24, %v5821_v59  ;;  %v5862_v40 = vrot.slane %v5861_v28, 4  ;;  %v5816_v41 = vadd.f32 %v5815_v29, %v5814_v38  ;;  %v5855_v34 = vrot.slane %v5854_v35, 4 }
 0x272   :  { %v5810_v45 = vrot.slane %v5809_v30, 2  ;;  %v5849_v46 = vadd.f32 %v5848_v33, %v5847_v44  ;;  %v5830_v2 = vadd.f32 %v5829_v26, %v5828_v60  ;;  %v5869_v42 = vrot.slane %v5868_v4, 4 }
 0x273   :  { %v5824_v43 = vrot.slane %v5823_v27, 2  ;;  %v5863_v53 = vadd.f32 %v5862_v40, %v5861_v28  ;;  %v5817_v51 = vrot.slane %v5816_v41, 2  ;;  %v5856_v19 = vadd.f32 %v5855_v34, %v5854_v35  ;;  %5460 = vmatpush1.bf16.msra.mxu0 %v6176_v9  ;;  %5589 = vmatpush1.bf16.msra.mxu1 %v6178_v10 }
 0x274   :  { %v5811_v3 = vadd.f32 %v5810_v45, %v5809_v30  ;;  %v5850_v5 = vrot.slane %v5849_v46, 2  ;;  %v5831_v24 = vrot.slane %v5830_v2, 2  ;;  %v5870_v38 = vadd.f32 %v5869_v42, %v5868_v4  ;;  %5461 = vmatprep.subr.bf16.mxu0 %v6193_v12  ;;  %5590 = vmatprep.subr.bf16.mxu1 %v6195_v18  ;;  %v240_v42 = vld [vmem:[#allocation2 + $0x678] sm:$0xff] }
 0x275   :  { %v5825_v11 = vadd.f32 %v5824_v43, %v5823_v27  ;;  %v5864_v26 = vrot.slane %v5863_v53, 2  ;;  %v5818_v28 = vadd.f32 %v5817_v51, %v5816_v41  ;;  %v5857_v37 = vrot.slane %v5856_v19, 2 }
 0x276   :  { %v5812_v31 = vrot.slane %v5811_v3, 1  ;;  %v5851_v54 = vadd.f32 %v5850_v5, %v5849_v46  ;;  %v5832_v9 = vadd.f32 %v5831_v24, %v5830_v2  ;;  %v5871_v56 = vrot.slane %v5870_v38, 2  ;;  %v239_v2 = vld [vmem:[#allocation2 + $0x670] sm:$0xff]  ;;  %v248_v24 = vld [vmem:[#allocation2 + $0x6b8] sm:$0xff] }
 0x277   :  { %v5826_v61 = vrot.slane %v5825_v11, 1  ;;  %v5865_v59 = vadd.f32 %v5864_v26, %v5863_v53  ;;  %v5819_v55 = vrot.slane %v5818_v28, 1  ;;  %v5858_v36 = vadd.f32 %v5857_v37, %v5856_v19  ;;  %5462 = vmatpush1.bf16.msra.mxu0 %v6192_v16  ;;  %5591 = vmatpush1.bf16.msra.mxu1 %v6194_v17  ;;  %v255_v5 = vld [vmem:[#allocation2 + $0x6f0] sm:$0xff] }
 0x278   :  { %v5813_v10 = vadd.f32 %v5812_v31, %v5811_v3  ;;  %v5852_v12 = vrot.slane %v5851_v54, 1  ;;  %v5833_v22 = vrot.slane %v5832_v9, 1  ;;  %v5872_v44 = vadd.f32 %v5871_v56, %v5870_v38  ;;  %5592 = vmatprep.subr.bf16.mxu1 %v7451_v39  ;;  %v247_v3 = vld [vmem:[#allocation2 + $0x6b0] sm:$0xff] }
 0x279   :  { %v7450_v18 = vcombine.high %v7164_v0, %v7166_v1  ;;  %v5827_v60 = vadd.f32 %v5826_v61, %v5825_v11  ;;  %v5866_v62 = vrot.slane %v5865_v59, 1  ;;  %v5820_v29 = vadd.f32 %v5819_v55, %v5818_v28  ;;  %v271_v26 = vld [vmem:[#allocation2 + $0x770] sm:$0xff]  ;;  %v280_v61 = vld [vmem:[#allocation2 + $0x7b8] sm:$0xff] }
 0x27a   :  { %v5859_v35 = vrot.slane %v5858_v36, 1  ;;  %v7285_v57 = vadd.f32 %v5813_v10, %v7114_v47  ;;  %v5853_v16 = vadd.f32 %v5852_v12, %v5851_v54  ;;  %v5834_v30 = vadd.f32 %v5833_v22, %v5832_v9  ;;  %v279_v9 = vld [vmem:[#allocation2 + $0x7b0] sm:$0xff] }
 0x27b   :  { %5463 = vmatprep.subr.bf16.mxu0 %v7450_v18  ;;  %v5873_v33 = vrot.slane %v5872_v44, 1  ;;  %v7288_v17 = vadd.f32 %v5827_v60, %v7118_v49  ;;  %v5867_v4 = vadd.f32 %v5866_v62, %v5865_v59  ;;  %v7291_v27 = vadd.f32 %v5820_v29, %v7120_v50  ;;  %v287_v56 = vld [vmem:[#allocation2 + $0x7f0] sm:$0xff]  ;;  %v288_v59 = vld [vmem:[#allocation2 + $0x7f8] sm:$0xff] }
 0x27c   :  { %v5860_v40 = vadd.f32 %v5859_v35, %v5858_v36  ;;  %v7452_v41 = vcombine.low %v7164_v0, %v7166_v1  ;;  %v7297_v47 = vadd.f32 %v5853_v16, %v7116_v48  ;;  %v7300_v34 = vadd.f32 %v5834_v30, %v7132_v25  ;;  %v231_v1 = vld [vmem:[#allocation2 + $0x630] sm:$0xff]  ;;  %v296_v18 = vld [vmem:[#allocation2 + $0x838] sm:$0xff] }
 0x27d   :  { %v5874_v45 = vadd.f32 %v5873_v33, %v5872_v44  ;;  %v7453_v49 = vcombine.low %v7176_v6, %v7178_v7  ;;  %v7454_v50 = vcombine.high %v7180_v8, %v7190_v13  ;;  %v7309_v46 = vadd.f32 %v5867_v4, %v7128_v23  ;;  %v232_v7 = vld [vmem:[#allocation2 + $0x638] sm:$0xff]  ;;  %v295_v22 = vld [vmem:[#allocation2 + $0x830] sm:$0xff] }
 0x27e   :  { %5464 = vmatpush1.bf16.msra.mxu0 %v7452_v41  ;;  %v7312_v0 = vadd.f32 %v5860_v40, %v7130_v52  ;;  %v7455_v48 = vcombine.high %v7192_v14, %v7194_v15  ;;  %v6243_v25 = vcombine.high %v216_v58, %v224_v63  ;;  %v7456_v43 = vcombine.low %v7180_v8, %v7190_v13  ;;  %v256_v8 = vld [vmem:[#allocation2 + $0x6f8] sm:$0xff]  ;;  %v303_v44 = vld [vmem:[#allocation2 + $0x870] sm:$0xff] }
 0x27f   :  { %5593 = vmatpush1.bf16.msra.mxu1 %v7453_v49  ;;  %5465 = vmatprep.subr.bf16.mxu0 %v7454_v50  ;;  %v7318_v6 = vadd.f32 %v5874_v45, %v7142_v32  ;;  %v6240_v23 = vcombine.low %v7202_v20, %v7204_v21  ;;  %v7457_v52 = vcombine.low %v7192_v14, %v7194_v15  ;;  %v263_v15 = vld [vmem:[#allocation2 + $0x730] sm:$0xff]  ;;  %v304_v60 = vld [vmem:[#allocation2 + $0x878] sm:$0xff] }
 0x280   :  { %5594 = vmatprep.subr.bf16.mxu1 %v7455_v48  ;;  %v7458_v53 = vcombine.high %v7202_v20, %v7204_v21  ;;  %v6242_v51 = vcombine.low %v216_v58, %v224_v63  ;;  %v6257_v32 = vcombine.high %v231_v1, %v239_v2  ;;  %v6259_v19 = vcombine.high %v232_v7, %v240_v42  ;;  %v264_v20 = vld [vmem:[#allocation2 + $0x738] sm:$0xff]  ;;  %v311_v16 = vld [vmem:[#allocation2 + $0x8b0] sm:$0xff] }
 0x281   :  { %v6256_v13 = vcombine.low %v231_v1, %v239_v2  ;;  %v6258_v38 = vcombine.low %v232_v7, %v240_v42  ;;  %v6273_v11 = vcombine.high %v247_v3, %v255_v5  ;;  %v6275_v14 = vcombine.high %v248_v24, %v256_v8  ;;  %v272_v21 = vld [vmem:[#allocation2 + $0x778] sm:$0xff]  ;;  %v319_v30 = vld [vmem:[#allocation2 + $0x8f0] sm:$0xff] }
 0x282   :  { %5466 = vmatpush1.bf16.msra.mxu0 %v7456_v43  ;;  %v6272_v28 = vcombine.low %v247_v3, %v255_v5  ;;  %v6274_v37 = vcombine.low %v248_v24, %v256_v8  ;;  %v6289_v31 = vcombine.high %v263_v15, %v271_v26  ;;  %v6291_v54 = vcombine.high %v264_v20, %v272_v21  ;;  %v312_v33 = vld [vmem:[#allocation2 + $0x8b8] sm:$0xff]  ;;  %v327_v45 = vld [vmem:[#allocation2 + $0x930] sm:$0xff] }
 0x283   :  { %5595 = vmatpush1.bf16.msra.mxu1 %v7457_v52  ;;  %5467 = vmatprep.subr.bf16.mxu0 %v7458_v53  ;;  %v6288_v55 = vcombine.low %v263_v15, %v271_v26  ;;  %v6290_v36 = vcombine.low %v264_v20, %v272_v21  ;;  %v6305_v10 = vcombine.high %v279_v9, %v287_v56  ;;  %v320_v58 = vld [vmem:[#allocation2 + $0x8f8] sm:$0xff]  ;;  %v335_v49 = vld [vmem:[#allocation2 + $0x970] sm:$0xff]  ;;  %v6910_v52 = vld [vmem:[%s7446_s0 + $0xc] ss:$24 sps:$4 sm:$0xff]  }
 0x284   :  { %5596 = vmatprep.subr.bf16.mxu1 %v6243_v25  ;;  %v6307_v12 = vcombine.high %v280_v61, %v288_v59  ;;  %v6304_v62 = vcombine.low %v279_v9, %v287_v56  ;;  %v6306_v29 = vcombine.low %v280_v61, %v288_v59  ;;  %v6321_v35 = vcombine.high %v295_v22, %v303_v44  ;;  %v6909_v50 = vld [vmem:[%s7446_s0] ss:$24 sps:$4 sm:$0xff]   ;;  %v343_v43 = vld [vmem:[#allocation2 + $0x9b0] sm:$0xff] }
 0x285   :  { %v6323_v39 = vcombine.high %v296_v18, %v304_v60  ;;  %v6320_v63 = vcombine.low %v295_v22, %v303_v44  ;;  %v6322_v4 = vcombine.low %v296_v18, %v304_v60  ;;  %v6337_v40 = vcombine.high %v311_v16, %v319_v30  ;;  %v328_v48 = vld [vmem:[#allocation2 + $0x938] sm:$0xff]  ;;  %v359_v24 = vld [vmem:[#allocation2 + $0xa30] sm:$0xff] }
 0x286   :  { %5468 = vmatpush1.bf16.msra.mxu0 %v6240_v23  ;;  %v6339_v41 = vcombine.high %v312_v33, %v320_v58  ;;  %v336_v25 = vld [vmem:[#allocation2 + $0x978] sm:$0xff]  ;;  %v6336_v1 = vcombine.low %v311_v16, %v319_v30  ;;  %v6338_v2 = vcombine.low %v312_v33, %v320_v58  ;;  %v6353_v7 = vcombine.high %v327_v45, %v335_v49  ;;  %v351_v23 = vld [vmem:[#allocation2 + $0x9f0] sm:$0xff] }
 0x287   :  { %5597 = vmatpush1.bf16.msra.mxu1 %v6242_v51  ;;  %5469 = vmatprep.subr.bf16.mxu0 %v6257_v32  ;;  %v6355_v42 = vcombine.high %v328_v48, %v336_v25  ;;  %v344_v53 = vld [vmem:[#allocation2 + $0x9b8] sm:$0xff]  ;;  %v6352_v32 = vcombine.low %v327_v45, %v335_v49  ;;  %v6369_v3 = vcombine.high %v343_v43, %v351_v23  ;;  %v367_v8 = vld [vmem:[#allocation2 + $0xa70] sm:$0xff] }
 0x288   :  { %5598 = vmatprep.subr.bf16.mxu1 %v6259_v19  ;;  %v352_v51 = vld [vmem:[#allocation2 + $0x9f8] sm:$0xff]  ;;  %v6354_v19 = vcombine.low %v328_v48, %v336_v25  ;;  %v6385_v15 = vcombine.high %v359_v24, %v367_v8  ;;  %v375_v20 = vld [vmem:[#allocation2 + $0xab0] sm:$0xff] }
 0x289   :  { %v6371_v5 = vcombine.high %v344_v53, %v352_v51  ;;  %v383_v21 = vld [vmem:[#allocation2 + $0xaf0] sm:$0xff]  ;;  %v440_v25 = vld [vmem:[#allocation2 + $0xcb8] sm:$0xff] }
 0x28a   :  { %5470 = vmatpush1.bf16.msra.mxu0 %v6256_v13  ;;  %v360_v13 = vld [vmem:[#allocation2 + $0xa38] sm:$0xff]  ;;  %v6401_v9 = vcombine.high %v375_v20, %v383_v21  ;;  %v391_v61 = vld [vmem:[#allocation2 + $0xb30] sm:$0xff] }
 0x28b   :  { %5599 = vmatpush1.bf16.msra.mxu1 %v6258_v38  ;;  %5471 = vmatprep.subr.bf16.mxu0 %v6273_v11  ;;  %v368_v38 = vld [vmem:[#allocation2 + $0xa78] sm:$0xff]  ;;  %v6368_v11 = vcombine.low %v343_v43, %v351_v23  ;;  %v399_v59 = vld [vmem:[#allocation2 + $0xb70] sm:$0xff] }
 0x28c   :  { %5600 = vmatprep.subr.bf16.mxu1 %v6275_v14  ;;  %v6370_v14 = vcombine.low %v344_v53, %v352_v51  ;;  %v6387_v26 = vcombine.high %v360_v13, %v368_v38  ;;  %v6417_v22 = vcombine.high %v391_v61, %v399_v59  ;;  %v407_v18 = vld [vmem:[#allocation2 + $0xbb0] sm:$0xff]  ;;  %v456_v53 = vld [vmem:[#allocation2 + $0xd38] sm:$0xff] }
 0x28d   :  { %v415_v60 = vld [vmem:[#allocation2 + $0xbf0] sm:$0xff]  ;;  %v464_v51 = vld [vmem:[#allocation2 + $0xd78] sm:$0xff] }
 0x28e   :  { %5472 = vmatpush1.bf16.msra.mxu0 %v6272_v28  ;;  %v376_v28 = vld [vmem:[#allocation2 + $0xab8] sm:$0xff]  ;;  %v6433_v16 = vcombine.high %v407_v18, %v415_v60  ;;  %v423_v33 = vld [vmem:[#allocation2 + $0xc30] sm:$0xff] }
 0x28f   :  { %5601 = vmatpush1.bf16.msra.mxu1 %v6274_v37  ;;  %5473 = vmatprep.subr.bf16.mxu0 %v6289_v31  ;;  %v384_v37 = vld [vmem:[#allocation2 + $0xaf8] sm:$0xff]  ;;  %v6384_v31 = vcombine.low %v359_v24, %v367_v8  ;;  %v431_v58 = vld [vmem:[#allocation2 + $0xc70] sm:$0xff] }
 0x290   :  { %5602 = vmatprep.subr.bf16.mxu1 %v6291_v54  ;;  %v6386_v54 = vcombine.low %v360_v13, %v368_v38  ;;  %v6403_v56 = vcombine.high %v376_v28, %v384_v37  ;;  %v6449_v45 = vcombine.high %v423_v33, %v431_v58  ;;  %v447_v48 = vld [vmem:[#allocation2 + $0xcf0] sm:$0xff]  ;;  %v472_v13 = vld [vmem:[#allocation2 + $0xdb8] sm:$0xff] }
 0x291   :  { %v455_v23 = vld [vmem:[#allocation2 + $0xd30] sm:$0xff]  ;;  %v480_v38 = vld [vmem:[#allocation2 + $0xdf8] sm:$0xff] }
 0x292   :  { %5474 = vmatpush1.bf16.msra.mxu0 %v6288_v55  ;;  %v392_v55 = vld [vmem:[#allocation2 + $0xb38] sm:$0xff]  ;;  %v471_v24 = vld [vmem:[#allocation2 + $0xdb0] sm:$0xff] }
 0x293   :  { %5603 = vmatpush1.bf16.msra.mxu1 %v6290_v36  ;;  %5475 = vmatprep.subr.bf16.mxu0 %v6305_v10  ;;  %v400_v36 = vld [vmem:[#allocation2 + $0xb78] sm:$0xff]  ;;  %v6400_v10 = vcombine.low %v375_v20, %v383_v21  ;;  %v479_v8 = vld [vmem:[#allocation2 + $0xdf0] sm:$0xff] }
 0x294   :  { %5604 = vmatprep.subr.bf16.mxu1 %v6307_v12  ;;  %v6402_v12 = vcombine.low %v376_v28, %v384_v37  ;;  %v6419_v44 = vcombine.high %v392_v55, %v400_v36  ;;  %v487_v20 = vld [vmem:[#allocation2 + $0xe30] sm:$0xff]  ;;  %v488_v28 = vld [vmem:[#allocation2 + $0xe38] sm:$0xff] }
 0x295   :  { %v495_v21 = vld [vmem:[#allocation2 + $0xe70] sm:$0xff]  ;;  %v496_v37 = vld [vmem:[#allocation2 + $0xe78] sm:$0xff] }
 0x296   :  { %5476 = vmatpush1.bf16.msra.mxu0 %v6304_v62  ;;  %v408_v62 = vld [vmem:[#allocation2 + $0xbb8] sm:$0xff] }
 0x297   :  { %5605 = vmatpush1.bf16.msra.mxu1 %v6306_v29  ;;  %5488 = vmatprep.subr.bf16.mxu0 %v6321_v35  ;;  %v416_v29 = vld [vmem:[#allocation2 + $0xbf8] sm:$0xff]  ;;  %v6416_v35 = vcombine.low %v391_v61, %v399_v59  ;;  %v503_v61 = vld [vmem:[#allocation2 + $0xeb0] sm:$0xff] }
 0x298   :  { %5617 = vmatprep.subr.bf16.mxu1 %v6323_v39  ;;  %v6418_v39 = vcombine.low %v392_v55, %v400_v36  ;;  %v6435_v30 = vcombine.high %v408_v62, %v416_v29  ;;  %v511_v59 = vld [vmem:[#allocation2 + $0xef0] sm:$0xff]  ;;  %v504_v55 = vld [vmem:[#allocation2 + $0xeb8] sm:$0xff] }
 0x299   :  { %5478 = vmatmul.mubr.bf16.vlgmr.msra.gmra.mrb[12].mxu0 %v6909_v50  ;;  %v512_v36 = vld [vmem:[#allocation2 + $0xef8] sm:$0xff] }
 0x29a   :  { %5489 = vmatpush1.bf16.msra.mxu0 %v6320_v63  ;;  %5607 = vmatmul.mubr.bf16.vlgmr.msra.gmra.mrb[12].mxu1 %v6909_v50  ;;  %v424_v63 = vld [vmem:[#allocation2 + $0xc38] sm:$0xff]  ;;  %v439_v50 = vld [vmem:[#allocation2 + $0xcb0] sm:$0xff] }
 0x29b   :  { %5618 = vmatpush1.bf16.msra.mxu1 %v6322_v4  ;;  %5490 = vmatprep.subr.bf16.mxu0 %v6337_v40  ;;  %v432_v4 = vld [vmem:[#allocation2 + $0xc78] sm:$0xff]  ;;  %v6432_v40 = vcombine.low %v407_v18, %v415_v60  ;;  %v519_v18 = vld [vmem:[#allocation2 + $0xf30] sm:$0xff] }
 0x29c   :  { %5619 = vmatprep.subr.bf16.mxu1 %v6339_v41  ;;  %5520 = vmatprep.mubr.bf16.mxu0 %v6910_v52  ;;  %v6434_v41 = vcombine.low %v408_v62, %v416_v29  ;;  %v6451_v49 = vcombine.high %v424_v63, %v432_v4  ;;  %v527_v60 = vld [vmem:[#allocation2 + $0xf70] sm:$0xff]  ;;  %v520_v62 = vld [vmem:[#allocation2 + $0xf38] sm:$0xff] }
 0x29d   :  { %5649 = vmatprep.mubr.bf16.mxu1 %v6910_v52  ;;  %v463_v52 = vld [vmem:[#allocation2 + $0xd70] sm:$0xff]  ;;  %v528_v29 = vld [vmem:[#allocation2 + $0xf78] sm:$0xff] }
 0x29e   :  { %5491 = vmatpush1.bf16.msra.mxu0 %v6336_v1  ;;  %v448_v1 = vld [vmem:[#allocation2 + $0xcf8] sm:$0xff] }
 0x29f   :  { %5620 = vmatpush1.bf16.msra.mxu1 %v6338_v2  ;;  %5492 = vmatprep.subr.bf16.mxu0 %v6353_v7  ;;  %v6448_v2 = vcombine.low %v423_v33, %v431_v58  ;;  %v6450_v7 = vcombine.low %v424_v63, %v432_v4  ;;  %v6467_v43 = vcombine.high %v440_v25, %v448_v1  ;;  %v535_v33 = vld [vmem:[#allocation2 + $0xfb0] sm:$0xff]  ;;  %v536_v63 = vld [vmem:[#allocation2 + $0xfb8] sm:$0xff] }
 0x2a0   :  { %5621 = vmatprep.subr.bf16.mxu1 %v6355_v42  ;;  %v6465_v42 = vcombine.high %v439_v50, %v447_v48  ;;  %v543_v58 = vld [vmem:[#allocation2 + $0xff0] sm:$0xff]  ;;  %v544_v4 = vld [vmem:[#allocation2 + $0xff8] sm:$0xff] }
 0x2a2   :  { %5493 = vmatpush1.bf16.msra.mxu0 %v6352_v32  ;;  %v6464_v32 = vcombine.low %v439_v50, %v447_v48  ;;  %v551_v50 = vld [vmem:[#allocation2 + $0x1030] sm:$0xff] }
 0x2a3   :  { %5622 = vmatpush1.bf16.msra.mxu1 %v6354_v19  ;;  %5494 = vmatprep.subr.bf16.mxu0 %v6369_v3  ;;  %v6466_v19 = vcombine.low %v440_v25, %v448_v1  ;;  %v6481_v3 = vcombine.high %v455_v23, %v463_v52  ;;  %v559_v48 = vld [vmem:[#allocation2 + $0x1070] sm:$0xff]  ;;  %v552_v25 = vld [vmem:[#allocation2 + $0x1038] sm:$0xff] }
 0x2a4   :  { %5623 = vmatprep.subr.bf16.mxu1 %v6371_v5  ;;  %v6483_v5 = vcombine.high %v456_v53, %v464_v51  ;;  %v560_v1 = vld [vmem:[#allocation2 + $0x1078] sm:$0xff] }
 0x2a6   :  { %5495 = vmatpush1.bf16.msra.mxu0 %v6368_v11  ;;  %v6480_v11 = vcombine.low %v455_v23, %v463_v52  ;;  %v567_v23 = vld [vmem:[#allocation2 + $0x10b0] sm:$0xff] }
 0x2a7   :  { %5624 = vmatpush1.bf16.msra.mxu1 %v6370_v14  ;;  %5496 = vmatprep.subr.bf16.mxu0 %v6385_v15  ;;  %v6482_v14 = vcombine.low %v456_v53, %v464_v51  ;;  %v6497_v15 = vcombine.high %v471_v24, %v479_v8  ;;  %v575_v52 = vld [vmem:[#allocation2 + $0x10f0] sm:$0xff]  ;;  %v568_v53 = vld [vmem:[#allocation2 + $0x10b8] sm:$0xff] }
 0x2a8   :  { %5625 = vmatprep.subr.bf16.mxu1 %v6387_v26  ;;  %v6499_v26 = vcombine.high %v472_v13, %v480_v38  ;;  %v576_v51 = vld [vmem:[#allocation2 + $0x10f8] sm:$0xff] }
 0x2aa   :  { %5497 = vmatpush1.bf16.msra.mxu0 %v6384_v31  ;;  %v6496_v31 = vcombine.low %v471_v24, %v479_v8  ;;  %v583_v24 = vld [vmem:[#allocation2 + $0x1130] sm:$0xff] }
 0x2ab   :  { %5626 = vmatpush1.bf16.msra.mxu1 %v6386_v54  ;;  %5498 = vmatprep.subr.bf16.mxu0 %v6401_v9  ;;  %v6498_v54 = vcombine.low %v472_v13, %v480_v38  ;;  %v6513_v9 = vcombine.high %v487_v20, %v495_v21  ;;  %v591_v8 = vld [vmem:[#allocation2 + $0x1170] sm:$0xff]  ;;  %v6911_v13 = vld [vmem:[%s7446_s0 + $0x8] ss:$24 sps:$4 sm:$0xff]   ;;  %v584_v38 = vld [vmem:[#allocation2 + $0x1138] sm:$0xff] }
 0x2ac   :  { %5627 = vmatprep.subr.bf16.mxu1 %v6403_v56  ;;  %v6515_v56 = vcombine.high %v488_v28, %v496_v37 }
 0x2ae   :  { %5499 = vmatpush1.bf16.msra.mxu0 %v6400_v10  ;;  %v6512_v10 = vcombine.low %v487_v20, %v495_v21  ;;  %v599_v21 = vld [vmem:[#allocation2 + $0x11b0] sm:$0xff] }
 0x2af   :  { %5628 = vmatpush1.bf16.msra.mxu1 %v6402_v12  ;;  %5500 = vmatprep.subr.bf16.mxu0 %v6417_v22  ;;  %v6514_v12 = vcombine.low %v488_v28, %v496_v37  ;;  %v6529_v22 = vcombine.high %v503_v61, %v511_v59  ;;  %v607_v28 = vld [vmem:[#allocation2 + $0x11f0] sm:$0xff] }
 0x2b0   :  { %5629 = vmatprep.subr.bf16.mxu1 %v6419_v44  ;;  %v6531_v44 = vcombine.high %v504_v55, %v512_v36  ;;  %v6912_v37 = vld [vmem:[%s7446_s0 + $0x14] ss:$24 sps:$4 sm:$0xff]  }
 0x2b2   :  { %5501 = vmatpush1.bf16.msra.mxu0 %v6416_v35  ;;  %v6528_v35 = vcombine.low %v503_v61, %v511_v59  ;;  %v6625_v61 = vcombine.high %v599_v21, %v607_v28 }
 0x2b3   :  { %5630 = vmatpush1.bf16.msra.mxu1 %v6418_v39  ;;  %5502 = vmatprep.subr.bf16.mxu0 %v6433_v16  ;;  %v6530_v39 = vcombine.low %v504_v55, %v512_v36  ;;  %v6545_v16 = vcombine.high %v519_v18, %v527_v60  ;;  %v615_v55 = vld [vmem:[#allocation2 + $0x1230] sm:$0xff] }
 0x2b4   :  { %5631 = vmatprep.subr.bf16.mxu1 %v6435_v30  ;;  %v6547_v30 = vcombine.high %v520_v62, %v528_v29  ;;  %v623_v36 = vld [vmem:[#allocation2 + $0x1270] sm:$0xff] }
 0x2b6   :  { %5503 = vmatpush1.bf16.msra.mxu0 %v6432_v40  ;;  %v6544_v40 = vcombine.low %v519_v18, %v527_v60  ;;  %v6641_v18 = vcombine.high %v615_v55, %v623_v36 }
 0x2b7   :  { %5632 = vmatpush1.bf16.msra.mxu1 %v6434_v41  ;;  %5504 = vmatprep.subr.bf16.mxu0 %v6449_v45  ;;  %v6546_v41 = vcombine.low %v520_v62, %v528_v29  ;;  %v6561_v45 = vcombine.high %v535_v33, %v543_v58  ;;  %v631_v62 = vld [vmem:[#allocation2 + $0x12b0] sm:$0xff] }
 0x2b8   :  { %5633 = vmatprep.subr.bf16.mxu1 %v6451_v49  ;;  %v6563_v49 = vcombine.high %v536_v63, %v544_v4  ;;  %v639_v29 = vld [vmem:[#allocation2 + $0x12f0] sm:$0xff] }
 0x2ba   :  { %5505 = vmatpush1.bf16.msra.mxu0 %v6448_v2  ;;  %v6560_v2 = vcombine.low %v535_v33, %v543_v58  ;;  %v6657_v33 = vcombine.high %v631_v62, %v639_v29 }
 0x2bb   :  { %5634 = vmatpush1.bf16.msra.mxu1 %v6450_v7  ;;  %5506 = vmatprep.subr.bf16.mxu0 %v6465_v42  ;;  %v6562_v7 = vcombine.low %v536_v63, %v544_v4  ;;  %v6577_v42 = vcombine.high %v551_v50, %v559_v48  ;;  %v647_v63 = vld [vmem:[#allocation2 + $0x1330] sm:$0xff] }
 0x2bc   :  { %5635 = vmatprep.subr.bf16.mxu1 %v6467_v43  ;;  %v6579_v43 = vcombine.high %v552_v25, %v560_v1  ;;  %v655_v4 = vld [vmem:[#allocation2 + $0x1370] sm:$0xff] }
 0x2be   :  { %5507 = vmatpush1.bf16.msra.mxu0 %v6464_v32  ;;  %v6576_v32 = vcombine.low %v551_v50, %v559_v48  ;;  %v6673_v50 = vcombine.high %v647_v63, %v655_v4 }
 0x2bf   :  { %5636 = vmatpush1.bf16.msra.mxu1 %v6466_v19  ;;  %5508 = vmatprep.subr.bf16.mxu0 %v6481_v3  ;;  %v6578_v19 = vcombine.low %v552_v25, %v560_v1  ;;  %v6593_v3 = vcombine.high %v567_v23, %v575_v52  ;;  %v663_v25 = vld [vmem:[#allocation2 + $0x13b0] sm:$0xff] }
 0x2c0   :  { %5637 = vmatprep.subr.bf16.mxu1 %v6483_v5  ;;  %v6595_v5 = vcombine.high %v568_v53, %v576_v51  ;;  %v671_v1 = vld [vmem:[#allocation2 + $0x13f0] sm:$0xff] }
 0x2c2   :  { %5509 = vmatpush1.bf16.msra.mxu0 %v6480_v11  ;;  %v592_v11 = vld [vmem:[#allocation2 + $0x1178] sm:$0xff] }
 0x2c3   :  { %5638 = vmatpush1.bf16.msra.mxu1 %v6482_v14  ;;  %5510 = vmatprep.subr.bf16.mxu0 %v6497_v15  ;;  %v6592_v14 = vcombine.low %v567_v23, %v575_v52  ;;  %v6594_v15 = vcombine.low %v568_v53, %v576_v51  ;;  %v6611_v20 = vcombine.high %v584_v38, %v592_v11  ;;  %v679_v53 = vld [vmem:[#allocation2 + $0x1430] sm:$0xff] }
 0x2c4   :  { %5639 = vmatprep.subr.bf16.mxu1 %v6499_v26  ;;  %v6609_v26 = vcombine.high %v583_v24, %v591_v8  ;;  %v6689_v23 = vcombine.high %v663_v25, %v671_v1  ;;  %v687_v51 = vld [vmem:[#allocation2 + $0x1470] sm:$0xff] }
 0x2c6   :  { %5511 = vmatpush1.bf16.msra.mxu0 %v6496_v31  ;;  %v600_v31 = vld [vmem:[#allocation2 + $0x11b8] sm:$0xff] }
 0x2c7   :  { %5640 = vmatpush1.bf16.msra.mxu1 %v6498_v54  ;;  %5512 = vmatprep.subr.bf16.mxu0 %v6513_v9  ;;  %v608_v54 = vld [vmem:[#allocation2 + $0x11f8] sm:$0xff]  ;;  %v6608_v9 = vcombine.low %v583_v24, %v591_v8  ;;  %v6705_v24 = vcombine.high %v679_v53, %v687_v51 }
 0x2c8   :  { %5641 = vmatprep.subr.bf16.mxu1 %v6515_v56  ;;  %v6610_v56 = vcombine.low %v584_v38, %v592_v11  ;;  %v6627_v59 = vcombine.high %v600_v31, %v608_v54  ;;  %v703_v38 = vld [vmem:[#allocation2 + $0x14f0] sm:$0xff]  ;;  %v696_v11 = vld [vmem:[#allocation2 + $0x14b8] sm:$0xff] }
 0x2ca   :  { %5513 = vmatpush1.bf16.msra.mxu0 %v6512_v10  ;;  %v616_v10 = vld [vmem:[#allocation2 + $0x1238] sm:$0xff] }
 0x2cb   :  { %5642 = vmatpush1.bf16.msra.mxu1 %v6514_v12  ;;  %5514 = vmatprep.subr.bf16.mxu0 %v6529_v22  ;;  %v624_v12 = vld [vmem:[#allocation2 + $0x1278] sm:$0xff]  ;;  %v6624_v22 = vcombine.low %v599_v21, %v607_v28  ;;  %v711_v28 = vld [vmem:[#allocation2 + $0x1530] sm:$0xff] }
 0x2cc   :  { %5643 = vmatprep.subr.bf16.mxu1 %v6531_v44  ;;  %v6626_v44 = vcombine.low %v600_v31, %v608_v54  ;;  %v6643_v60 = vcombine.high %v616_v10, %v624_v12  ;;  %v712_v31 = vld [vmem:[#allocation2 + $0x1538] sm:$0xff] }
 0x2cd   :  { %v720_v54 = vld [vmem:[#allocation2 + $0x1578] sm:$0xff] }
 0x2ce   :  { %5515 = vmatpush1.bf16.msra.mxu0 %v6528_v35  ;;  %v632_v35 = vld [vmem:[#allocation2 + $0x12b8] sm:$0xff] }
 0x2cf   :  { %5644 = vmatpush1.bf16.msra.mxu1 %v6530_v39  ;;  %5516 = vmatprep.subr.bf16.mxu0 %v6545_v16  ;;  %v640_v39 = vld [vmem:[#allocation2 + $0x12f8] sm:$0xff]  ;;  %v6640_v16 = vcombine.low %v615_v55, %v623_v36  ;;  %v727_v55 = vld [vmem:[#allocation2 + $0x15b0] sm:$0xff] }
 0x2d0   :  { %5645 = vmatprep.subr.bf16.mxu1 %v6547_v30  ;;  %v6642_v30 = vcombine.low %v616_v10, %v624_v12  ;;  %v6659_v58 = vcombine.high %v632_v35, %v640_v39  ;;  %v735_v36 = vld [vmem:[#allocation2 + $0x15f0] sm:$0xff]  ;;  %v728_v10 = vld [vmem:[#allocation2 + $0x15b8] sm:$0xff] }
 0x2d1   :  { %v736_v12 = vld [vmem:[#allocation2 + $0x15f8] sm:$0xff] }
 0x2d2   :  { %5517 = vmatpush1.bf16.msra.mxu0 %v6544_v40  ;;  %v648_v40 = vld [vmem:[#allocation2 + $0x1338] sm:$0xff] }
 0x2d3   :  { %5646 = vmatpush1.bf16.msra.mxu1 %v6546_v41  ;;  %5518 = vmatprep.subr.bf16.mxu0 %v6561_v45  ;;  %v656_v41 = vld [vmem:[#allocation2 + $0x1378] sm:$0xff]  ;;  %v6656_v45 = vcombine.low %v631_v62, %v639_v29  ;;  %v743_v62 = vld [vmem:[#allocation2 + $0x1630] sm:$0xff] }
 0x2d4   :  { %5647 = vmatprep.subr.bf16.mxu1 %v6563_v49  ;;  %v6658_v49 = vcombine.low %v632_v35, %v640_v39  ;;  %v6675_v48 = vcombine.high %v648_v40, %v656_v41  ;;  %v751_v29 = vld [vmem:[#allocation2 + $0x1670] sm:$0xff]  ;;  %v744_v35 = vld [vmem:[#allocation2 + $0x1638] sm:$0xff] }
 0x2d5   :  { %v752_v39 = vld [vmem:[#allocation2 + $0x1678] sm:$0xff] }
 0x2d6   :  { %5519 = vmatpush1.bf16.msra.mxu0 %v6560_v2  ;;  %v664_v2 = vld [vmem:[#allocation2 + $0x13b8] sm:$0xff] }
 0x2d7   :  { %5648 = vmatpush1.bf16.msra.mxu1 %v6562_v7  ;;  %5531 = vmatprep.subr.bf16.mxu0 %v6577_v42  ;;  %v672_v7 = vld [vmem:[#allocation2 + $0x13f8] sm:$0xff]  ;;  %v6672_v42 = vcombine.low %v647_v63, %v655_v4  ;;  %v759_v63 = vld [vmem:[#allocation2 + $0x16b0] sm:$0xff] }
 0x2d8   :  { %5660 = vmatprep.subr.bf16.mxu1 %v6579_v43  ;;  %v6674_v43 = vcombine.low %v648_v40, %v656_v41  ;;  %v6691_v52 = vcombine.high %v664_v2, %v672_v7  ;;  %v767_v4 = vld [vmem:[#allocation2 + $0x16f0] sm:$0xff]  ;;  %v760_v40 = vld [vmem:[#allocation2 + $0x16b8] sm:$0xff] }
 0x2d9   :  { %5521 = vmatmul.mubr.bf16.vlgmr.msra.gmra.mrb[12].mxu0 %v6911_v13  ;;  %v768_v41 = vld [vmem:[#allocation2 + $0x16f8] sm:$0xff] }
 0x2da   :  { %5532 = vmatpush1.bf16.msra.mxu0 %v6576_v32  ;;  %5650 = vmatmul.mubr.bf16.vlgmr.msra.gmra.mrb[12].mxu1 %v6911_v13  ;;  %v680_v32 = vld [vmem:[#allocation2 + $0x1438] sm:$0xff]  ;;  %v695_v13 = vld [vmem:[#allocation2 + $0x14b0] sm:$0xff] }
 0x2db   :  { %5661 = vmatpush1.bf16.msra.mxu1 %v6578_v19  ;;  %5533 = vmatprep.subr.bf16.mxu0 %v6593_v3  ;;  %v688_v19 = vld [vmem:[#allocation2 + $0x1478] sm:$0xff]  ;;  %v6688_v3 = vcombine.low %v663_v25, %v671_v1  ;;  %v775_v25 = vld [vmem:[#allocation2 + $0x1730] sm:$0xff] }
 0x2dc   :  { %5662 = vmatprep.subr.bf16.mxu1 %v6595_v5  ;;  %5563 = vmatprep.mubr.bf16.mxu0 %v6912_v37  ;;  %v6690_v5 = vcombine.low %v664_v2, %v672_v7  ;;  %v6707_v8 = vcombine.high %v680_v32, %v688_v19  ;;  %v783_v1 = vld [vmem:[#allocation2 + $0x1770] sm:$0xff]  ;;  %v776_v2 = vld [vmem:[#allocation2 + $0x1738] sm:$0xff] }
 0x2dd   :  { %5692 = vmatprep.mubr.bf16.mxu1 %v6912_v37  ;;  %v719_v37 = vld [vmem:[#allocation2 + $0x1570] sm:$0xff]  ;;  %v784_v7 = vld [vmem:[#allocation2 + $0x1778] sm:$0xff] }
 0x2de   :  { %5534 = vmatpush1.bf16.msra.mxu0 %v6592_v14  ;;  %v704_v14 = vld [vmem:[#allocation2 + $0x14f8] sm:$0xff] }
 0x2df   :  { %5663 = vmatpush1.bf16.msra.mxu1 %v6594_v15  ;;  %5535 = vmatprep.subr.bf16.mxu0 %v6609_v26  ;;  %v6704_v15 = vcombine.low %v679_v53, %v687_v51  ;;  %v6706_v26 = vcombine.low %v680_v32, %v688_v19  ;;  %v6723_v21 = vcombine.high %v696_v11, %v704_v14  ;;  %v791_v53 = vld [vmem:[#allocation2 + $0x17b0] sm:$0xff]  ;;  %v792_v32 = vld [vmem:[#allocation2 + $0x17b8] sm:$0xff] }
 0x2e0   :  { %5664 = vmatprep.subr.bf16.mxu1 %v6611_v20  ;;  %v6721_v20 = vcombine.high %v695_v13, %v703_v38  ;;  %v799_v51 = vld [vmem:[#allocation2 + $0x17f0] sm:$0xff]  ;;  %v800_v19 = vld [vmem:[#allocation2 + $0x17f8] sm:$0xff] }
 0x2e2   :  { %5536 = vmatpush1.bf16.msra.mxu0 %v6608_v9  ;;  %v6720_v9 = vcombine.low %v695_v13, %v703_v38  ;;  %v6816_v13 = vcombine.low %v791_v53, %v799_v51  ;;  %v6818_v38 = vcombine.low %v792_v32, %v800_v19 }
 0x2e3   :  { %5665 = vmatpush1.bf16.msra.mxu1 %v6610_v56  ;;  %5537 = vmatprep.subr.bf16.mxu0 %v6625_v61  ;;  %v6722_v56 = vcombine.low %v696_v11, %v704_v14  ;;  %v6737_v61 = vcombine.high %v711_v28, %v719_v37  ;;  %v6913_v11 = vld [vmem:[%s7446_s0 + $0x10] ss:$24 sps:$4 sm:$0xff]  }
 0x2e4   :  { %5666 = vmatprep.subr.bf16.mxu1 %v6627_v59  ;;  %v6739_v59 = vcombine.high %v712_v31, %v720_v54 }
 0x2e6   :  { %5538 = vmatpush1.bf16.msra.mxu0 %v6624_v22  ;;  %v6736_v22 = vcombine.low %v711_v28, %v719_v37 }
 0x2e7   :  { %5667 = vmatpush1.bf16.msra.mxu1 %v6626_v44  ;;  %5539 = vmatprep.subr.bf16.mxu0 %v6641_v18  ;;  %v6738_v44 = vcombine.low %v712_v31, %v720_v54  ;;  %v6753_v18 = vcombine.high %v727_v55, %v735_v36 }
 0x2e8   :  { %5668 = vmatprep.subr.bf16.mxu1 %v6643_v60  ;;  %v6755_v60 = vcombine.high %v728_v10, %v736_v12 }
 0x2ea   :  { %5540 = vmatpush1.bf16.msra.mxu0 %v6640_v16  ;;  %v6752_v16 = vcombine.low %v727_v55, %v735_v36 }
 0x2eb   :  { %5669 = vmatpush1.bf16.msra.mxu1 %v6642_v30  ;;  %5541 = vmatprep.subr.bf16.mxu0 %v6657_v33  ;;  %v6754_v30 = vcombine.low %v728_v10, %v736_v12  ;;  %v6769_v33 = vcombine.high %v743_v62, %v751_v29 }
 0x2ec   :  { %5670 = vmatprep.subr.bf16.mxu1 %v6659_v58  ;;  %v6771_v58 = vcombine.high %v744_v35, %v752_v39 }
 0x2ee   :  { %5542 = vmatpush1.bf16.msra.mxu0 %v6656_v45  ;;  %v6768_v45 = vcombine.low %v743_v62, %v751_v29 }
 0x2ef   :  { %5671 = vmatpush1.bf16.msra.mxu1 %v6658_v49  ;;  %5543 = vmatprep.subr.bf16.mxu0 %v6673_v50  ;;  %v6770_v49 = vcombine.low %v744_v35, %v752_v39  ;;  %v6785_v50 = vcombine.high %v759_v63, %v767_v4 }
 0x2f0   :  { %5672 = vmatprep.subr.bf16.mxu1 %v6675_v48  ;;  %v6787_v48 = vcombine.high %v760_v40, %v768_v41 }
 0x2f2   :  { %5544 = vmatpush1.bf16.msra.mxu0 %v6672_v42  ;;  %v6784_v42 = vcombine.low %v759_v63, %v767_v4 }
 0x2f3   :  { %5673 = vmatpush1.bf16.msra.mxu1 %v6674_v43  ;;  %5545 = vmatprep.subr.bf16.mxu0 %v6689_v23  ;;  %v6786_v43 = vcombine.low %v760_v40, %v768_v41  ;;  %v6801_v23 = vcombine.high %v775_v25, %v783_v1 }
 0x2f4   :  { %5674 = vmatprep.subr.bf16.mxu1 %v6691_v52  ;;  %v6803_v52 = vcombine.high %v776_v2, %v784_v7 }
 0x2f6   :  { %5546 = vmatpush1.bf16.msra.mxu0 %v6688_v3  ;;  %v6800_v3 = vcombine.low %v775_v25, %v783_v1 }
 0x2f7   :  { %5675 = vmatpush1.bf16.msra.mxu1 %v6690_v5  ;;  %5547 = vmatprep.subr.bf16.mxu0 %v6705_v24  ;;  %v6802_v5 = vcombine.low %v776_v2, %v784_v7  ;;  %v6817_v24 = vcombine.high %v791_v53, %v799_v51 }
 0x2f8   :  { %5676 = vmatprep.subr.bf16.mxu1 %v6707_v8  ;;  %v6819_v8 = vcombine.high %v792_v32, %v800_v19 }
 0x2fa   :  { %5548 = vmatpush1.bf16.msra.mxu0 %v6704_v15 }
 0x2fb   :  { %5677 = vmatpush1.bf16.msra.mxu1 %v6706_v26  ;;  %5549 = vmatprep.subr.bf16.mxu0 %v6721_v20 }
 0x2fc   :  { %5678 = vmatprep.subr.bf16.mxu1 %v6723_v21 }
 0x2fe   :  { %5550 = vmatpush1.bf16.msra.mxu0 %v6720_v9 }
 0x2ff   :  { %5679 = vmatpush1.bf16.msra.mxu1 %v6722_v56  ;;  %5551 = vmatprep.subr.bf16.mxu0 %v6737_v61 }
 0x300   :  { %5680 = vmatprep.subr.bf16.mxu1 %v6739_v59 }
 0x302   :  { %5552 = vmatpush1.bf16.msra.mxu0 %v6736_v22 }
 0x303   :  { %5681 = vmatpush1.bf16.msra.mxu1 %v6738_v44  ;;  %5553 = vmatprep.subr.bf16.mxu0 %v6753_v18 }
 0x304   :  { %5682 = vmatprep.subr.bf16.mxu1 %v6755_v60 }
 0x306   :  { %5554 = vmatpush1.bf16.msra.mxu0 %v6752_v16 }
 0x307   :  { %5683 = vmatpush1.bf16.msra.mxu1 %v6754_v30  ;;  %5555 = vmatprep.subr.bf16.mxu0 %v6769_v33 }
 0x308   :  { %5684 = vmatprep.subr.bf16.mxu1 %v6771_v58 }
 0x30a   :  { %5556 = vmatpush1.bf16.msra.mxu0 %v6768_v45 }
 0x30b   :  { %5685 = vmatpush1.bf16.msra.mxu1 %v6770_v49  ;;  %5557 = vmatprep.subr.bf16.mxu0 %v6785_v50 }
 0x30c   :  { %5686 = vmatprep.subr.bf16.mxu1 %v6787_v48 }
 0x30e   :  { %5558 = vmatpush1.bf16.msra.mxu0 %v6784_v42 }
 0x30f   :  { %5687 = vmatpush1.bf16.msra.mxu1 %v6786_v43  ;;  %5559 = vmatprep.subr.bf16.mxu0 %v6801_v23 }
 0x310   :  { %5688 = vmatprep.subr.bf16.mxu1 %v6803_v52 }
 0x312   :  { %5560 = vmatpush1.bf16.msra.mxu0 %v6800_v3 }
 0x313   :  { %5689 = vmatpush1.bf16.msra.mxu1 %v6802_v5  ;;  %5561 = vmatprep.subr.bf16.mxu0 %v6817_v24 }
 0x314   :  { %5690 = vmatprep.subr.bf16.mxu1 %v6819_v8 }
 0x316   :  { %5562 = vmatpush1.bf16.msra.mxu0 %v6816_v13 }
 0x317   :  { %5691 = vmatpush1.bf16.msra.mxu1 %v6818_v38 }
 0x319   :  { %5564 = vmatmul.mubr.bf16.vlgmr.msra.gmra.mrb[12].mxu0 %v6913_v11 }
 0x31a   :  { %5693 = vmatmul.mubr.bf16.vlgmr.msra.gmra.mrb[12].mxu1 %v6913_v11 }
 0x329   :  { %v5307_v14 = vpop.f32.mrb[8].mxu0  ;;  %v5436_v15 = vpop.f32.mrb[8].mxu1 }
 0x32a   :  { %5711 = vst [vmem:[%s7448_s2 + $0x40] sm:$0xff] %v5307_v14  ;;  %v5309_v26 = vpop.f32.mrb[9].mxu0  ;;  %v5911_v20 = vmul.f32 %v5307_v14, %v5307_v14  ;;  %5713 = vst [vmem:[%s7448_s2 + $0x50] sm:$0xff] %v5436_v15  ;;  %v5913_v21 = vmul.f32 %v5436_v15, %v5436_v15  ;;  %v5438_v28 = vpop.f32.mrb[9].mxu1 }
 0x32b   :  { %5712 = vst [vmem:[%s7448_s2 + $0x48] sm:$0xff] %v5309_v26  ;;  %v5311_v37 = vpop.f32.mrb[10].mxu0  ;;  %v5912_v31 = vmul.f32 %v5309_v26, %v5309_v26  ;;  %5714 = vst [vmem:[%s7448_s2 + $0x58] sm:$0xff] %v5438_v28  ;;  %v5914_v54 = vmul.f32 %v5438_v28, %v5438_v28  ;;  %v5440_v61 = vpop.f32.mrb[10].mxu1 }
 0x32c   :  { %5727 = vst [vmem:[%s7448_s2 + $0xc0] sm:$0xff] %v5311_v37  ;;  %v5879_v9 = vadd.f32 %v5311_v37, %v5307_v14  ;;  %v5915_v56 = vmul.f32 %v5311_v37, %v5311_v37  ;;  %v5313_v59 = vpop.f32.mrb[11].mxu0  ;;  %5729 = vst [vmem:[%s7448_s2 + $0xd0] sm:$0xff] %v5440_v61  ;;  %v5893_v55 = vadd.f32 %v5440_v61, %v5436_v15  ;;  %v5442_v22 = vpop.f32.mrb[11].mxu1 }
 0x32d   :  { %v5917_v36 = vmul.f32 %v5440_v61, %v5440_v61  ;;  %5728 = vst [vmem:[%s7448_s2 + $0xc8] sm:$0xff] %v5313_v59  ;;  %v5886_v10 = vadd.f32 %v5313_v59, %v5309_v26  ;;  %v5916_v12 = vmul.f32 %v5313_v59, %v5313_v59  ;;  %5730 = vst [vmem:[%s7448_s2 + $0xd8] sm:$0xff] %v5442_v22 }
 0x32e   :  { %v5880_v44 = vrot.slane %v5879_v9, 4  ;;  %v5919_v18 = vadd.f32 %v5915_v56, %v5911_v20  ;;  %v5900_v60 = vadd.f32 %v5442_v22, %v5438_v28  ;;  %v5918_v62 = vmul.f32 %v5442_v22, %v5442_v22 }
 0x32f   :  { %v5894_v29 = vrot.slane %v5893_v55, 4  ;;  %v5933_v35 = vadd.f32 %v5917_v36, %v5913_v21  ;;  %v5887_v39 = vrot.slane %v5886_v10, 4  ;;  %v5926_v16 = vadd.f32 %v5916_v12, %v5912_v31 }
 0x330   :  { %v5881_v30 = vadd.f32 %v5880_v44, %v5879_v9  ;;  %v5920_v33 = vrot.slane %v5919_v18, 4  ;;  %v5901_v58 = vrot.slane %v5900_v60, 4  ;;  %v5940_v63 = vadd.f32 %v5918_v62, %v5914_v54 }
 0x331   :  { %v5895_v4 = vadd.f32 %v5894_v29, %v5893_v55  ;;  %v5934_v40 = vrot.slane %v5933_v35, 4  ;;  %v5888_v41 = vadd.f32 %v5887_v39, %v5886_v10  ;;  %v5927_v45 = vrot.slane %v5926_v16, 4 }
 0x332   :  { %v5882_v49 = vrot.slane %v5881_v30, 2  ;;  %v5921_v50 = vadd.f32 %v5920_v33, %v5919_v18  ;;  %v5902_v48 = vadd.f32 %v5901_v58, %v5900_v60  ;;  %v5941_v25 = vrot.slane %v5940_v63, 4 }
 0x333   :  { %v5896_v1 = vrot.slane %v5895_v4, 2  ;;  %v5935_v2 = vadd.f32 %v5934_v40, %v5933_v35  ;;  %v5889_v7 = vrot.slane %v5888_v41, 2  ;;  %v5928_v42 = vadd.f32 %v5927_v45, %v5926_v16 }
 0x334   :  { %v5883_v43 = vadd.f32 %v5882_v49, %v5881_v30  ;;  %v5922_v23 = vrot.slane %v5921_v50, 2  ;;  %v5903_v52 = vrot.slane %v5902_v48, 2  ;;  %v5942_v53 = vadd.f32 %v5941_v25, %v5940_v63 }
 0x335   :  { %v5897_v51 = vadd.f32 %v5896_v1, %v5895_v4  ;;  %v5936_v32 = vrot.slane %v5935_v2, 2  ;;  %v5890_v19 = vadd.f32 %v5889_v7, %v5888_v41  ;;  %v5929_v3 = vrot.slane %v5928_v42, 2 }
 0x336   :  { %v5884_v5 = vrot.slane %v5883_v43, 1  ;;  %v5923_v24 = vadd.f32 %v5922_v23, %v5921_v50  ;;  %v5904_v8 = vadd.f32 %v5903_v52, %v5902_v48  ;;  %v5943_v13 = vrot.slane %v5942_v53, 2 }
 0x337   :  { %v5898_v38 = vrot.slane %v5897_v51, 1  ;;  %v5937_v11 = vadd.f32 %v5936_v32, %v5935_v2  ;;  %v5891_v14 = vrot.slane %v5890_v19, 1  ;;  %v5930_v15 = vadd.f32 %v5929_v3, %v5928_v42 }
 0x338   :  { %v5885_v26 = vadd.f32 %v5884_v5, %v5883_v43  ;;  %v5924_v20 = vrot.slane %v5923_v24, 1  ;;  %v5905_v21 = vrot.slane %v5904_v8, 1  ;;  %v5944_v28 = vadd.f32 %v5943_v13, %v5942_v53 }
 0x339   :  { %v5899_v37 = vadd.f32 %v5898_v38, %v5897_v51  ;;  %v5938_v31 = vrot.slane %v5937_v11, 1  ;;  %v5892_v54 = vadd.f32 %v5891_v14, %v5890_v19  ;;  %v5931_v9 = vrot.slane %v5930_v15, 1 }
 0x33a   :  { %v7371_v56 = vadd.f32 %v5885_v26, %v7285_v57  ;;  %v5925_v61 = vadd.f32 %v5924_v20, %v5923_v24  ;;  %v5906_v59 = vadd.f32 %v5905_v21, %v5904_v8  ;;  %v5945_v55 = vrot.slane %v5944_v28, 1 }
 0x33b   :  { %v7374_v36 = vadd.f32 %v5899_v37, %v7288_v17  ;;  %v5939_v10 = vadd.f32 %v5938_v31, %v5937_v11  ;;  %v7377_v12 = vadd.f32 %v5892_v54, %v7291_v27  ;;  %v5932_v22 = vadd.f32 %v5931_v9, %v5930_v15 }
 0x33c   :  { %v7380_v44 = vadd.f32 %v5925_v61, %v7297_v47  ;;  %v7383_v18 = vadd.f32 %v5906_v59, %v7300_v34  ;;  %v5946_v60 = vadd.f32 %v5945_v55, %v5944_v28 }
 0x33d   :  { %v7386_v57 = vadd.f32 %v5939_v10, %v7309_v46  ;;  %v7389_v62 = vadd.f32 %v5932_v22, %v7312_v0 }
 0x33e   :  { %v7392_v17 = vadd.f32 %v5946_v60, %v7318_v6 }
 0x3ec   :  { %v5565_v29 = vpop.f32.mrb[12].mxu0 }
 0x3ed   :  { %5715 = vst [vmem:[%s7448_s2 + $0x60] sm:$0xff] %v5565_v29  ;;  %v5694_v27 = vpop.f32.mrb[12].mxu1  ;;  %v5567_v47 = vpop.f32.mrb[13].mxu0  ;;  %v5983_v35 = vmul.f32 %v5565_v29, %v5565_v29 }
 0x3ee   :  { %5717 = vst [vmem:[%s7448_s2 + $0x70] sm:$0xff] %v5694_v27  ;;  %v5985_v34 = vmul.f32 %v5694_v27, %v5694_v27  ;;  %5716 = vst [vmem:[%s7448_s2 + $0x68] sm:$0xff] %v5567_v47  ;;  %v5696_v46 = vpop.f32.mrb[13].mxu1  ;;  %v5569_v0 = vpop.f32.mrb[14].mxu0  ;;  %v5984_v6 = vmul.f32 %v5567_v47, %v5567_v47 }
 0x3ef   :  { %5718 = vst [vmem:[%s7448_s2 + $0x78] sm:$0xff] %v5696_v46  ;;  %v5986_v39 = vmul.f32 %v5696_v46, %v5696_v46  ;;  %5731 = vst [vmem:[%s7448_s2 + $0xe0] sm:$0xff] %v5569_v0  ;;  %v5951_v16 = vadd.f32 %v5569_v0, %v5565_v29  ;;  %v5987_v30 = vmul.f32 %v5569_v0, %v5569_v0  ;;  %v5698_v33 = vpop.f32.mrb[14].mxu1  ;;  %v5571_v58 = vpop.f32.mrb[15].mxu0 }
 0x3f0   :  { %5733 = vst [vmem:[%s7448_s2 + $0xf0] sm:$0xff] %v5698_v33  ;;  %v5965_v63 = vadd.f32 %v5698_v33, %v5694_v27  ;;  %v5989_v4 = vmul.f32 %v5698_v33, %v5698_v33  ;;  %5732 = vst [vmem:[%s7448_s2 + $0xe8] sm:$0xff] %v5571_v58  ;;  %v5958_v40 = vadd.f32 %v5571_v58, %v5567_v47  ;;  %v5700_v45 = vpop.f32.mrb[15].mxu1 }
 0x3f1   :  { %v5988_v41 = vmul.f32 %v5571_v58, %v5571_v58  ;;  %v5952_v49 = vrot.slane %v5951_v16, 4  ;;  %v5991_v50 = vadd.f32 %v5987_v30, %v5983_v35  ;;  %5734 = vst [vmem:[%s7448_s2 + $0xf8] sm:$0xff] %v5700_v45  ;;  %v5972_v48 = vadd.f32 %v5700_v45, %v5696_v46 }
 0x3f2   :  { %v5990_v25 = vmul.f32 %v5700_v45, %v5700_v45  ;;  %v5966_v1 = vrot.slane %v5965_v63, 4  ;;  %v6005_v2 = vadd.f32 %v5989_v4, %v5985_v34  ;;  %v5959_v7 = vrot.slane %v5958_v40, 4 }
 0x3f3   :  { %v5998_v42 = vadd.f32 %v5988_v41, %v5984_v6  ;;  %v5953_v43 = vadd.f32 %v5952_v49, %v5951_v16  ;;  %v5992_v23 = vrot.slane %v5991_v50, 4  ;;  %v5973_v52 = vrot.slane %v5972_v48, 4 }
 0x3f4   :  { %v6012_v53 = vadd.f32 %v5990_v25, %v5986_v39  ;;  %v5967_v51 = vadd.f32 %v5966_v1, %v5965_v63  ;;  %v6006_v32 = vrot.slane %v6005_v2, 4  ;;  %v5960_v19 = vadd.f32 %v5959_v7, %v5958_v40 }
 0x3f5   :  { %v5999_v3 = vrot.slane %v5998_v42, 4  ;;  %v5954_v5 = vrot.slane %v5953_v43, 2  ;;  %v5993_v24 = vadd.f32 %v5992_v23, %v5991_v50  ;;  %v5974_v8 = vadd.f32 %v5973_v52, %v5972_v48 }
 0x3f6   :  { %v6013_v13 = vrot.slane %v6012_v53, 4  ;;  %v5968_v38 = vrot.slane %v5967_v51, 2  ;;  %v6007_v11 = vadd.f32 %v6006_v32, %v6005_v2  ;;  %v5961_v14 = vrot.slane %v5960_v19, 2 }
 0x3f7   :  { %v6000_v15 = vadd.f32 %v5999_v3, %v5998_v42  ;;  %v5955_v26 = vadd.f32 %v5954_v5, %v5953_v43  ;;  %v5994_v20 = vrot.slane %v5993_v24, 2  ;;  %v5975_v21 = vrot.slane %v5974_v8, 2 }
 0x3f8   :  { %v6014_v28 = vadd.f32 %v6013_v13, %v6012_v53  ;;  %v5969_v37 = vadd.f32 %v5968_v38, %v5967_v51  ;;  %v6008_v31 = vrot.slane %v6007_v11, 2  ;;  %v5962_v54 = vadd.f32 %v5961_v14, %v5960_v19 }
 0x3f9   :  { %v6001_v9 = vrot.slane %v6000_v15, 2  ;;  %v5956_v61 = vrot.slane %v5955_v26, 1  ;;  %v5995_v59 = vadd.f32 %v5994_v20, %v5993_v24  ;;  %v5976_v55 = vadd.f32 %v5975_v21, %v5974_v8 }
 0x3fa   :  { %v6015_v10 = vrot.slane %v6014_v28, 2  ;;  %v5970_v22 = vrot.slane %v5969_v37, 1  ;;  %v6009_v60 = vadd.f32 %v6008_v31, %v6007_v11  ;;  %v5963_v29 = vrot.slane %v5962_v54, 1 }
 0x3fb   :  { %v6002_v27 = vadd.f32 %v6001_v9, %v6000_v15  ;;  %v5957_v47 = vadd.f32 %v5956_v61, %v5955_v26  ;;  %v5996_v35 = vrot.slane %v5995_v59, 1  ;;  %v5977_v34 = vrot.slane %v5976_v55, 1 }
 0x3fc   :  { %v6016_v46 = vadd.f32 %v6015_v10, %v6014_v28  ;;  %v5971_v0 = vadd.f32 %v5970_v22, %v5969_v37  ;;  %v6010_v6 = vrot.slane %v6009_v60, 1  ;;  %v5964_v39 = vadd.f32 %v5963_v29, %v5962_v54 }
 0x3fd   :  { %v6003_v16 = vrot.slane %v6002_v27, 1  ;;  %v5979_v30 = vadd.f32 %v5957_v47, %v7371_v56  ;;  %v5997_v33 = vadd.f32 %v5996_v35, %v5995_v59  ;;  %v5978_v58 = vadd.f32 %v5977_v34, %v5976_v55 }
 0x3fe   :  { %v6017_v63 = vrot.slane %v6016_v46, 1  ;;  %v5981_v4 = vadd.f32 %v5971_v0, %v7374_v36  ;;  %v6011_v40 = vadd.f32 %v6010_v6, %v6009_v60  ;;  %v5980_v41 = vadd.f32 %v5964_v39, %v7377_v12 }
 0x3ff   :  { %v6004_v45 = vadd.f32 %v6003_v16, %v6002_v27  ;;  %v6019_v49 = vadd.f32 %v5997_v33, %v7380_v44  ;;  %v5982_v50 = vadd.f32 %v5978_v58, %v7383_v18 }
 0x400   :  { %v6018_v48 = vadd.f32 %v6017_v63, %v6016_v46  ;;  %v6021_v25 = vadd.f32 %v6011_v40, %v7386_v57 }
 0x401   :  { %v6020_v1 = vadd.f32 %v6004_v45, %v7389_v62  ;;  %v6024_v56 = vsel %vm6023_vm0, %v5979_v30, %v6019_v49 }
 0x402   :  { %v6022_v2 = vadd.f32 %v6018_v48, %v7392_v17  ;;  %v6029_v36 = vsel %vm6028_vm1, %v6024_v56, 0.0  ;;  %v6026_v7 = vsel %vm6023_vm0, %v5981_v4, %v6021_v25 }
 0x403   :  { %v6025_v12 = vsel %vm6023_vm0, %v5980_v41, %v6020_v1  ;;  %6033 = vst [vmem:[%s7449_s3] sm:$0xff] %v6029_v36  ;;  %v6031_v44 = vsel %vm6028_vm1, %v6026_v7, 0.0 }
 0x404   :  { %v6030_v18 = vsel %vm6028_vm1, %v6025_v12, 0.0  ;;  %v6027_v57 = vsel %vm6023_vm0, %v5982_v50, %v6022_v2  ;;  %6035 = vst [vmem:[%s7449_s3 + $0x10] sm:$0xff] %v6031_v44 }
 0x405   :  { %6034 = vst [vmem:[%s7449_s3 + $0x8] sm:$0xff] %v6030_v18  ;;  %v6032_v62 = vsel %vm6028_vm1, %v6027_v57, 0.0 }
 0x406   :  { %6036 = vst [vmem:[%s7449_s3 + $0x18] sm:$0xff] %v6032_v62 }
 0x407   :  { %6045 = vsyncpa [#allocation3], 1 }

// kernel: generater_forward.14
= control target key start
LH: loop header
LB: loop body
LE: loop exit
PB: predicated region body
PF: predicated region fallthrough
CT: control target
= control target key end

     0   :  { %s449_s12 = smov 0   ;;  %s451_s13 = smov 0   ;;  %s488_s0 = inlined_call_operand.vmem [shape: f32[4,32,128], index: 0, kind: input, shape index: {}]   ;;  %s489_s1 = inlined_call_operand.vmem [shape: f32[1,128], index: 1, kind: input, shape index: {}]   ;;  %s490_s2 = inlined_call_operand.vmem [shape: f32[1,128], index: 2, kind: input, shape index: {}]   ;;  %s491_s3 = inlined_call_operand.vmem [shape: bf16[4,32,128], index: 3, kind: output, shape index: {}]  }
   0x1   :  { %s453_s14 = smov 0  }
   0x2 LB: > { %s25_s15 = sadd.s32 1, %s423_s13  ;;  %p351_p0 = scmp.ge.s32.totalorder %s427_s14, 1  ;;  %s427_s14 = sphi %s453_s14, %s13_s14   ;;  %s423_s13 = sphi %s451_s13, %s493_s13   ;;  %s419_s12 = sphi %s449_s12, %s492_s12  }
   0x3   : > { %p27_p1 = scmp.ge.s32.totalorder %s25_s15, 4  ;;  %p158_p2 = scmp.lt.s32.totalorder %s427_s14, 5 }
   0x5   : > { %s495_s15 = smov (%p27_p1, %s25_s15), 0  ;;  %p159_p3 = pnand %p351_p0, %p158_p2 }
   0x6   : > { %p191_p4 = scmp.lt.s32.totalorder (!%p159_p3), %s419_s12, 3  ;;  %v356_v0 = vld [vmem:[%s489_s1] ss:$0 sm:$0xff] (!%p159_p3) }
   0x7   : > { %162 = sbr.rel (%p159_p3) target bundleno = 28 (0x1c), region = 32  ;;  %v357_v1 = vld [vmem:[%s490_s2] ss:$0 sm:$0xff] (!%p159_p3) }
   0xe   : > { %s497_s12 = smov (!%p191_p4, %s419_s12), 3 }
   0xf   : > { %s364_s16 = sshll.u32 %s497_s12, 5  ;;  %s365_s24 = sshll.u32 %s497_s12, 4 }
  0x10   : > { %s198_s21 = scalar_lea.vmem %s488_s0, %s364_s16  ;;  %s208_s27 = scalar_lea.vmem %s491_s3, %s365_s24 }
  0x11   : > { %v210_v2 = vld [vmem:[%s198_s21] sm:$0xff]  ;;  %v211_v3 = vld [vmem:[%s198_s21 + $0x8] sm:$0xff]  ;;  %v212_v4 = vld [vmem:[%s198_s21 + $0x10] sm:$0xff] }
  0x12   : > { %v221_v5 = vmul.f32 %v356_v0, %v210_v2  ;;  %v222_v6 = vmul.f32 %v356_v0, %v211_v3  ;;  %v213_v7 = vld [vmem:[%s198_s21 + $0x18] sm:$0xff]  ;;  %v223_v8 = vmul.f32 %v356_v0, %v212_v4 }
  0x13   : > { %v224_v9 = vmul.f32 %v356_v0, %v213_v7 }
  0x14   : > { %v232_v10 = vadd.f32 %v357_v1, %v221_v5  ;;  %v233_v11 = vadd.f32 %v357_v1, %v222_v6  ;;  %v234_v12 = vadd.f32 %v357_v1, %v223_v8 }
  0x15   : > { %v235_v13 = vadd.f32 %v357_v1, %v224_v9 }
  0x16   : > { %v236_v14 = vmax.f32 %v232_v10, 0.0  ;;  %v237_v15 = vmax.f32 %v233_v11, 0.0  ;;  %v238_v16 = vmax.f32 %v234_v12, 0.0 }
  0x17   : > { %v239_v17 = vmax.f32 %v235_v13, 0.0 }
  0x18   : > { %v373_v18 = vpack.c.bf16 %v237_v15, %v236_v14 }
  0x19   : > { %v378_v19 = vpack.c.bf16 %v239_v17, %v238_v16 }
  0x1a   : > { %374 = vst [vmem:[%s208_s27] sm:$0xff] %v373_v18  }
  0x1b   : > { %380 = vst [vmem:[%s208_s27 + $0x8] sm:$0xff] %v378_v19  }
  0x1c PF: > { %s13_s14 = sadd.s32 1, %s427_s14   ;;  %s492_s12 = smov %s423_s13 }
  0x1d   : > { %p10_p5 = scmp.ge.s32.totalorder %s13_s14, 6   ;;  %s493_s13 = smov %s495_s15 }
  0x1f   :  { %12 = sbr.rel (!%p10_p5) target bundleno = 2 (0x2), region = 62 }

// kernel: generater_forward.13
= control target key start
LH: loop header
LB: loop body
LE: loop exit
PB: predicated region body
PF: predicated region fallthrough
CT: control target
= control target key end

     0   :  { %s1574_s12 = smov 0   ;;  %s1576_s13 = smov 0   ;;  %s1703_s0 = inlined_call_operand.vmem [shape: bf16[4,32,1024], index: 0, kind: input, shape index: {}]   ;;  %s1704_s1 = inlined_call_operand.vmem [shape: bf16[4,1024,128], index: 1, kind: input, shape index: {}]   ;;  %s1705_s2 = inlined_call_operand.vmem [shape: f32[4,32,128], index: 2, kind: output, shape index: {0}]   ;;  %s1706_s3 = inlined_call_operand.vmem [shape: f32[4,8,128], index: 3, kind: output, shape index: {1}]  }
   0x1   :  { %s1578_s14 = smov 0  }
   0x2 LB: > { %s26_s15 = sadd.s32 1, %s1548_s13  ;;  %p1237_p0 = scmp.ge.s32.totalorder %s1552_s14, 1  ;;  %s1552_s14 = sphi %s1578_s14, %s14_s14   ;;  %s1548_s13 = sphi %s1576_s13, %s1708_s13   ;;  %s1544_s12 = sphi %s1574_s12, %s1707_s12  }
   0x3   : > { %p28_p1 = scmp.ge.s32.totalorder %s26_s15, 4  ;;  %p174_p2 = scmp.lt.s32.totalorder %s1552_s14, 5 }
   0x5   : > { %s1710_s15 = smov (%p28_p1, %s26_s15), 0  ;;  %p175_p3 = pnand %p1237_p0, %p174_p2 }
   0x6   : > { %p220_p4 = scmp.lt.s32.totalorder (!%p175_p3), %s1544_s12, 3  ;;  %vm1085_vm0 = vcmask (!%p175_p3), 1040384   ;;  %vm1087_vm1 = vcmask (!%p175_p3), 1041408  }
   0x7   : > { %178 = sbr.rel (%p175_p3) target bundleno = 331 (0x14b), region = 28 }
   0xe   : > { %s1712_s12 = smov (!%p220_p4, %s1544_s12), 3 }
   0xf   : > { %s1328_s16 = sshll.u32 %s1712_s12, 9  ;;  %s1327_s20 = sshll.u32 %s1712_s12, 7 }
  0x10   : > { %s1598_s19 = scalar_lea.vmem %s1704_s1, %s1328_s16  ;;  %s1634_s23 = scalar_lea.vmem %s1703_s0, %s1327_s20 }
  0x11   : > { %v1466_v0 = vld [vmem:[%s1598_s19 + $0x40] sm:$0xff]   ;;  %v1470_v4 = vld [vmem:[%s1598_s19 + $0x48] sm:$0xff]   ;;  %v1474_v8 = vld [vmem:[%s1598_s19 + $0x50] sm:$0xff]   ;;  %s1329_s24 = sshll.u32 %s1712_s12, 5  ;;  %s1244_s28 = sshll.u32 %s1712_s12, 3 }
  0x12   : > { %v1467_v1 = vld [vmem:[%s1598_s19 + $0xc0] sm:$0xff]   ;;  %1330 = vmatprep.subr.bf16.mxu0 %v1466_v0  ;;  %v1471_v5 = vld [vmem:[%s1598_s19 + $0xc8] sm:$0xff]   ;;  %v1475_v9 = vld [vmem:[%s1598_s19 + $0xd0] sm:$0xff]   ;;  %s243_s27 = scalar_lea.vmem %s1705_s2, %s1329_s24  ;;  %s251_s4 = scalar_lea.vmem %s1706_s3, %s1244_s28 }
  0x13   : > { %v1468_v2 = vld [vmem:[%s1598_s19] sm:$0xff]   ;;  %1358 = vmatprep.subr.bf16.mxu1 %v1467_v1  ;;  %v1472_v6 = vld [vmem:[%s1598_s19 + $0x8] sm:$0xff]   ;;  %v1476_v10 = vld [vmem:[%s1598_s19 + $0x10] sm:$0xff]  }
  0x14   : > { %v1469_v3 = vld [vmem:[%s1598_s19 + $0x80] sm:$0xff]   ;;  %1331 = vmatpush3.bf16.msra.mxu0 %v1468_v2  ;;  %v1473_v7 = vld [vmem:[%s1598_s19 + $0x88] sm:$0xff]   ;;  %v1477_v11 = vld [vmem:[%s1598_s19 + $0x90] sm:$0xff]  }
  0x15   : > { %1359 = vmatpush3.bf16.msra.mxu1 %v1469_v3  ;;  %1332 = vmatprep.subr.bf16.mxu0 %v1470_v4  ;;  %v1478_v12 = vld [vmem:[%s1598_s19 + $0x58] sm:$0xff]   ;;  %v1482_v16 = vld [vmem:[%s1598_s19 + $0x60] sm:$0xff]   ;;  %v1486_v20 = vld [vmem:[%s1598_s19 + $0x68] sm:$0xff]  }
  0x16   : > { %1360 = vmatprep.subr.bf16.mxu1 %v1471_v5  ;;  %v1479_v13 = vld [vmem:[%s1598_s19 + $0xd8] sm:$0xff]   ;;  %v1483_v17 = vld [vmem:[%s1598_s19 + $0xe0] sm:$0xff]   ;;  %v1487_v21 = vld [vmem:[%s1598_s19 + $0xe8] sm:$0xff]  }
  0x17   : > { %v1480_v14 = vld [vmem:[%s1598_s19 + $0x18] sm:$0xff]   ;;  %v1484_v18 = vld [vmem:[%s1598_s19 + $0x20] sm:$0xff]   ;;  %v1488_v22 = vld [vmem:[%s1598_s19 + $0x28] sm:$0xff]  }
  0x18   : > { %1333 = vmatpush3.bf16.msra.mxu0 %v1472_v6  ;;  %v1481_v15 = vld [vmem:[%s1598_s19 + $0x98] sm:$0xff]   ;;  %v1485_v19 = vld [vmem:[%s1598_s19 + $0xa0] sm:$0xff]   ;;  %v1489_v23 = vld [vmem:[%s1598_s19 + $0xa8] sm:$0xff]  }
  0x19   : > { %1361 = vmatpush3.bf16.msra.mxu1 %v1473_v7  ;;  %1334 = vmatprep.subr.bf16.mxu0 %v1474_v8  ;;  %v1490_v24 = vld [vmem:[%s1598_s19 + $0x70] sm:$0xff]   ;;  %v1494_v28 = vld [vmem:[%s1598_s19 + $0x78] sm:$0xff]   ;;  %v253_v32 = vld [vmem:[%s1634_s23] sm:$0xff] }
  0x1a   : > { %1362 = vmatprep.subr.bf16.mxu1 %v1475_v9  ;;  %v1491_v25 = vld [vmem:[%s1598_s19 + $0xf0] sm:$0xff]   ;;  %v1495_v29 = vld [vmem:[%s1598_s19 + $0xf8] sm:$0xff]   ;;  %v257_v33 = vld [vmem:[%s1634_s23 + $0x20] sm:$0xff] }
  0x1b   : > { %v1492_v26 = vld [vmem:[%s1598_s19 + $0x30] sm:$0xff]   ;;  %v1496_v30 = vld [vmem:[%s1598_s19 + $0x38] sm:$0xff]   ;;  %v254_v34 = vld [vmem:[%s1634_s23 + $0x8] sm:$0xff]  ;;  %v1245_v35 = vcombine.low %v253_v32, %v257_v33  ;;  %v1246_v36 = vcombine.high %v253_v32, %v257_v33 }
  0x1c   : > { %1335 = vmatpush3.bf16.msra.mxu0 %v1476_v10  ;;  %v1493_v27 = vld [vmem:[%s1598_s19 + $0xb0] sm:$0xff]   ;;  %v1497_v31 = vld [vmem:[%s1598_s19 + $0xb8] sm:$0xff]   ;;  %v258_v37 = vld [vmem:[%s1634_s23 + $0x28] sm:$0xff] }
  0x1d   : > { %1363 = vmatpush3.bf16.msra.mxu1 %v1477_v11  ;;  %1336 = vmatprep.subr.bf16.mxu0 %v1478_v12  ;;  %v1247_v38 = vcombine.low %v254_v34, %v258_v37  ;;  %v1248_v39 = vcombine.high %v254_v34, %v258_v37  ;;  %v1498_v40 = vld [vmem:[%s1598_s19 + $0x140] sm:$0xff]   ;;  %v1502_v44 = vld [vmem:[%s1598_s19 + $0x148] sm:$0xff]   ;;  %v1506_v48 = vld [vmem:[%s1598_s19 + $0x150] sm:$0xff]  }
  0x1e   : > { %1364 = vmatprep.subr.bf16.mxu1 %v1479_v13  ;;  %893 = vmatprep.mubr.bf16.mxu0 %v1246_v36  ;;  %v1499_v41 = vld [vmem:[%s1598_s19 + $0x1c0] sm:$0xff]   ;;  %v1503_v45 = vld [vmem:[%s1598_s19 + $0x1c8] sm:$0xff]   ;;  %v1507_v49 = vld [vmem:[%s1598_s19 + $0x1d0] sm:$0xff]  }
  0x1f   : > { %942 = vmatprep.mubr.bf16.mxu1 %v1248_v39  ;;  %v1500_v42 = vld [vmem:[%s1598_s19 + $0x100] sm:$0xff]   ;;  %v1504_v46 = vld [vmem:[%s1598_s19 + $0x108] sm:$0xff]   ;;  %v1508_v50 = vld [vmem:[%s1598_s19 + $0x110] sm:$0xff]  }
  0x20   : > { %1337 = vmatpush3.bf16.msra.mxu0 %v1480_v14  ;;  %v1501_v43 = vld [vmem:[%s1598_s19 + $0x180] sm:$0xff]   ;;  %v1505_v47 = vld [vmem:[%s1598_s19 + $0x188] sm:$0xff]   ;;  %v1509_v51 = vld [vmem:[%s1598_s19 + $0x190] sm:$0xff]  }
  0x21   : > { %1365 = vmatpush3.bf16.msra.mxu1 %v1481_v15  ;;  %1338 = vmatprep.subr.bf16.mxu0 %v1482_v16  ;;  %v1510_v52 = vld [vmem:[%s1598_s19 + $0x158] sm:$0xff]   ;;  %v1514_v56 = vld [vmem:[%s1598_s19 + $0x160] sm:$0xff]   ;;  %v262_v63 = vld [vmem:[%s1634_s23 + $0x48] sm:$0xff] }
  0x22   : > { %1366 = vmatprep.subr.bf16.mxu1 %v1483_v17  ;;  %v1511_v53 = vld [vmem:[%s1598_s19 + $0x1d8] sm:$0xff]   ;;  %v1515_v57 = vld [vmem:[%s1598_s19 + $0x1e0] sm:$0xff]   ;;  %v266_v0 = vld [vmem:[%s1634_s23 + $0x68] sm:$0xff] }
  0x23   : > { %v1512_v54 = vld [vmem:[%s1598_s19 + $0x118] sm:$0xff]   ;;  %v1516_v58 = vld [vmem:[%s1598_s19 + $0x120] sm:$0xff]   ;;  %v1256_v2 = vcombine.high %v262_v63, %v266_v0  ;;  %v1518_v3 = vld [vmem:[%s1598_s19 + $0x168] sm:$0xff]   ;;  %v1255_v4 = vcombine.low %v262_v63, %v266_v0 }
  0x24   : > { %1339 = vmatpush3.bf16.msra.mxu0 %v1484_v18  ;;  %v1513_v55 = vld [vmem:[%s1598_s19 + $0x198] sm:$0xff]   ;;  %v1517_v59 = vld [vmem:[%s1598_s19 + $0x1a0] sm:$0xff]   ;;  %v1519_v5 = vld [vmem:[%s1598_s19 + $0x1e8] sm:$0xff]  }
  0x25   : > { %1367 = vmatpush3.bf16.msra.mxu1 %v1485_v19  ;;  %1340 = vmatprep.subr.bf16.mxu0 %v1486_v20  ;;  %v261_v60 = vld [vmem:[%s1634_s23 + $0x40] sm:$0xff]  ;;  %v1520_v6 = vld [vmem:[%s1598_s19 + $0x128] sm:$0xff]   ;;  %v1522_v8 = vld [vmem:[%s1598_s19 + $0x170] sm:$0xff]  }
  0x26   : > { %1368 = vmatprep.subr.bf16.mxu1 %v1487_v21  ;;  %v265_v61 = vld [vmem:[%s1634_s23 + $0x60] sm:$0xff]  ;;  %v1521_v7 = vld [vmem:[%s1598_s19 + $0x1a8] sm:$0xff]   ;;  %v1523_v9 = vld [vmem:[%s1598_s19 + $0x1f0] sm:$0xff]  }
  0x27   : > { %v1254_v62 = vcombine.high %v261_v60, %v265_v61  ;;  %v1253_v1 = vcombine.low %v261_v60, %v265_v61  ;;  %v1524_v10 = vld [vmem:[%s1598_s19 + $0x130] sm:$0xff]   ;;  %v1526_v12 = vld [vmem:[%s1598_s19 + $0x178] sm:$0xff]  }
  0x28   : > { %1341 = vmatpush3.bf16.msra.mxu0 %v1488_v22  ;;  %v1525_v11 = vld [vmem:[%s1598_s19 + $0x1b0] sm:$0xff]   ;;  %v1527_v13 = vld [vmem:[%s1598_s19 + $0x1f8] sm:$0xff]  }
  0x29   : > { %1369 = vmatpush3.bf16.msra.mxu1 %v1489_v23  ;;  %1342 = vmatprep.subr.bf16.mxu0 %v1490_v24  ;;  %v1528_v14 = vld [vmem:[%s1598_s19 + $0x138] sm:$0xff]   ;;  %v255_v16 = vld [vmem:[%s1634_s23 + $0x10] sm:$0xff] }
  0x2a   : > { %1370 = vmatprep.subr.bf16.mxu1 %v1491_v25  ;;  %v1529_v15 = vld [vmem:[%s1598_s19 + $0x1b8] sm:$0xff]   ;;  %v259_v17 = vld [vmem:[%s1634_s23 + $0x30] sm:$0xff] }
  0x2b   : > { %v256_v18 = vld [vmem:[%s1634_s23 + $0x18] sm:$0xff]  ;;  %v1249_v20 = vcombine.low %v255_v16, %v259_v17  ;;  %v1250_v21 = vcombine.high %v255_v16, %v259_v17  ;;  %v263_v24 = vld [vmem:[%s1634_s23 + $0x50] sm:$0xff] }
  0x2c   : > { %1343 = vmatpush3.bf16.msra.mxu0 %v1492_v26  ;;  %v260_v19 = vld [vmem:[%s1634_s23 + $0x38] sm:$0xff]  ;;  %v267_v25 = vld [vmem:[%s1634_s23 + $0x70] sm:$0xff] }
  0x2d   : > { %1371 = vmatpush3.bf16.msra.mxu1 %v1493_v27  ;;  %1344 = vmatprep.subr.bf16.mxu0 %v1494_v28  ;;  %v1251_v22 = vcombine.low %v256_v18, %v260_v19  ;;  %v1252_v23 = vcombine.high %v256_v18, %v260_v19  ;;  %v264_v26 = vld [vmem:[%s1634_s23 + $0x58] sm:$0xff]  ;;  %v1258_v27 = vcombine.high %v263_v24, %v267_v25 }
  0x2e   : > { %1372 = vmatprep.subr.bf16.mxu1 %v1495_v29  ;;  %v268_v28 = vld [vmem:[%s1634_s23 + $0x78] sm:$0xff] }
  0x2f   : > { %v1260_v29 = vcombine.high %v264_v26, %v268_v28 }
  0x30   : > { %1345 = vmatpush3.bf16.msra.mxu0 %v1496_v30  ;;  %v1257_v30 = vcombine.low %v263_v24, %v267_v25 }
  0x31   : > { %1373 = vmatpush3.bf16.msra.mxu1 %v1497_v31  ;;  %1386 = vmatprep.subr.bf16.mxu0 %v1498_v40  ;;  %v1259_v31 = vcombine.low %v264_v26, %v268_v28 }
  0x32   : > { %1414 = vmatprep.subr.bf16.mxu1 %v1499_v41 }
  0x33   : > { %894 = vmatmul.mubr.bf16.vlgmr.msra.gmra.mrb[0].mxu0 %v1245_v35 }
  0x34   : > { %943 = vmatmul.mubr.bf16.vlgmr.msra.gmra.mrb[0].mxu1 %v1247_v38  ;;  %1387 = vmatpush3.bf16.msra.mxu0 %v1500_v42 }
  0x35   : > { %1415 = vmatpush3.bf16.msra.mxu1 %v1501_v43  ;;  %1388 = vmatprep.subr.bf16.mxu0 %v1502_v44 }
  0x36   : > { %1416 = vmatprep.subr.bf16.mxu1 %v1503_v45  ;;  %901 = vmatprep.mubr.bf16.mxu0 %v1254_v62 }
  0x37   : > { %950 = vmatprep.mubr.bf16.mxu1 %v1256_v2 }
  0x38   : > { %1389 = vmatpush3.bf16.msra.mxu0 %v1504_v46 }
  0x39   : > { %1417 = vmatpush3.bf16.msra.mxu1 %v1505_v47  ;;  %1390 = vmatprep.subr.bf16.mxu0 %v1506_v48 }
  0x3a   : > { %1418 = vmatprep.subr.bf16.mxu1 %v1507_v49 }
  0x3b   : > { %902 = vmatmul.mubr.bf16.gmra.mrb[4].mxu0 %v1253_v1 }
  0x3c   : > { %1391 = vmatpush3.bf16.msra.mxu0 %v1508_v50  ;;  %951 = vmatmul.mubr.bf16.gmra.mrb[4].mxu1 %v1255_v4 }
  0x3d   : > { %1419 = vmatpush3.bf16.msra.mxu1 %v1509_v51  ;;  %1392 = vmatprep.subr.bf16.mxu0 %v1510_v52 }
  0x3e   : > { %1420 = vmatprep.subr.bf16.mxu1 %v1511_v53  ;;  %991 = vmatprep.mubr.bf16.mxu0 %v1250_v21 }
  0x3f   : > { %1040 = vmatprep.mubr.bf16.mxu1 %v1252_v23 }
  0x40   : > { %1393 = vmatpush3.bf16.msra.mxu0 %v1512_v54 }
  0x41   : > { %1421 = vmatpush3.bf16.msra.mxu1 %v1513_v55  ;;  %1394 = vmatprep.subr.bf16.mxu0 %v1514_v56 }
  0x42   : > { %1422 = vmatprep.subr.bf16.mxu1 %v1515_v57 }
  0x44   : > { %1395 = vmatpush3.bf16.msra.mxu0 %v1516_v58 }
  0x45   : > { %1423 = vmatpush3.bf16.msra.mxu1 %v1517_v59  ;;  %1396 = vmatprep.subr.bf16.mxu0 %v1518_v3 }
  0x46   : > { %1424 = vmatprep.subr.bf16.mxu1 %v1519_v5 }
  0x48   : > { %1397 = vmatpush3.bf16.msra.mxu0 %v1520_v6 }
  0x49   : > { %1425 = vmatpush3.bf16.msra.mxu1 %v1521_v7  ;;  %1398 = vmatprep.subr.bf16.mxu0 %v1522_v8 }
  0x4a   : > { %1426 = vmatprep.subr.bf16.mxu1 %v1523_v9 }
  0x4c   : > { %1399 = vmatpush3.bf16.msra.mxu0 %v1524_v10 }
  0x4d   : > { %1427 = vmatpush3.bf16.msra.mxu1 %v1525_v11  ;;  %1400 = vmatprep.subr.bf16.mxu0 %v1526_v12 }
  0x4e   : > { %1428 = vmatprep.subr.bf16.mxu1 %v1527_v13 }
  0x50   : > { %1401 = vmatpush3.bf16.msra.mxu0 %v1528_v14 }
  0x51   : > { %1429 = vmatpush3.bf16.msra.mxu1 %v1529_v15 }
  0x53   : > { %992 = vmatmul.mubr.bf16.vlgmr.msra.gmra.mrb[8].mxu0 %v1249_v20 }
  0x54   : > { %1041 = vmatmul.mubr.bf16.vlgmr.msra.gmra.mrb[8].mxu1 %v1251_v22  ;;  %999 = vmatprep.mubr.bf16.mxu0 %v1258_v27 }
  0x55   : > { %1048 = vmatprep.mubr.bf16.mxu1 %v1260_v29 }
  0x5b   : > { %1000 = vmatmul.mubr.bf16.gmra.mrb[12].mxu0 %v1257_v30 }
  0x5c   : > { %1049 = vmatmul.mubr.bf16.gmra.mrb[12].mxu1 %v1259_v31 }
 0x106   : > { %v1346_v32 = vpop.f32.mrb[0].mxu0 }
 0x107   : > { %v1374_v33 = vpop.f32.mrb[0].mxu1  ;;  %v1347_v34 = vpop.f32.mrb[1].mxu0 }
 0x108   : > { %v1348_v35 = vadd.f32 %v1347_v34, %v1346_v32  ;;  %v1375_v36 = vpop.f32.mrb[1].mxu1  ;;  %v1349_v37 = vpop.f32.mrb[2].mxu0 }
 0x109   : > { %v1376_v38 = vadd.f32 %v1375_v36, %v1374_v33  ;;  %v1377_v39 = vpop.f32.mrb[2].mxu1  ;;  %v1350_v40 = vpop.f32.mrb[3].mxu0 }
 0x10a   : > { %v1351_v41 = vadd.f32 %v1350_v40, %v1349_v37  ;;  %v1378_v42 = vpop.f32.mrb[3].mxu1 }
 0x10b   : > { %v945_v43 = vadd.f32 %v1376_v38, %v1348_v35  ;;  %v1379_v44 = vadd.f32 %v1378_v42, %v1377_v39 }
 0x10d   : > { %v948_v45 = vadd.f32 %v1379_v44, %v1351_v41 }
 0x10e   : > { %v1352_v46 = vpop.f32.mrb[4].mxu0 }
 0x10f   : > { %v1380_v47 = vpop.f32.mrb[4].mxu1  ;;  %v1353_v48 = vpop.f32.mrb[5].mxu0 }
 0x110   : > { %v1354_v49 = vadd.f32 %v1353_v48, %v1352_v46  ;;  %v1381_v50 = vpop.f32.mrb[5].mxu1  ;;  %v1355_v51 = vpop.f32.mrb[6].mxu0 }
 0x111   : > { %v1382_v52 = vadd.f32 %v1381_v50, %v1380_v47  ;;  %v1383_v53 = vpop.f32.mrb[6].mxu1  ;;  %v1356_v54 = vpop.f32.mrb[7].mxu0 }
 0x112   : > { %v1357_v55 = vadd.f32 %v1356_v54, %v1355_v51  ;;  %v1384_v56 = vpop.f32.mrb[7].mxu1 }
 0x113   : > { %v953_v57 = vadd.f32 %v1382_v52, %v1354_v49  ;;  %v1385_v58 = vadd.f32 %v1384_v56, %v1383_v53 }
 0x115   : > { %v956_v59 = vadd.f32 %v1385_v58, %v1357_v55 }
 0x126   : > { %v1402_v60 = vpop.f32.mrb[8].mxu0 }
 0x127   : > { %v1430_v61 = vpop.f32.mrb[8].mxu1  ;;  %v1403_v62 = vpop.f32.mrb[9].mxu0 }
 0x128   : > { %v1431_v63 = vpop.f32.mrb[9].mxu1  ;;  %v1404_v0 = vadd.f32 %v1403_v62, %v1402_v60  ;;  %v1405_v2 = vpop.f32.mrb[10].mxu0 }
 0x129   : > { %v1432_v1 = vadd.f32 %v1431_v63, %v1430_v61  ;;  %v1433_v3 = vpop.f32.mrb[10].mxu1  ;;  %v1406_v4 = vpop.f32.mrb[11].mxu0 }
 0x12a   : > { %v1434_v5 = vpop.f32.mrb[11].mxu1  ;;  %v994_v6 = vadd.f32 %v1404_v0, %v945_v43  ;;  %v1407_v7 = vadd.f32 %v1406_v4, %v1405_v2 }
 0x12b   : > { %v1435_v8 = vadd.f32 %v1434_v5, %v1433_v3 }
 0x12c   : > { %v1043_v9 = vadd.f32 %v1432_v1, %v994_v6  ;;  %v997_v10 = vadd.f32 %v1407_v7, %v948_v45 }
 0x12e   : > { %1057 = vst [vmem:[%s243_s27] sm:$0xff] %v1043_v9  ;;  %v1046_v11 = vadd.f32 %v1435_v8, %v997_v10  ;;  %v1408_v12 = vpop.f32.mrb[12].mxu0  ;;  %v1071_v14 = vmul.f32 %v1043_v9, %v1043_v9 }
 0x12f   : > { %v1436_v13 = vpop.f32.mrb[12].mxu1  ;;  %v1409_v15 = vpop.f32.mrb[13].mxu0 }
 0x130   : > { %v1437_v16 = vpop.f32.mrb[13].mxu1  ;;  %1058 = vst [vmem:[%s243_s27 + $0x8] sm:$0xff] %v1046_v11  ;;  %v1061_v17 = vadd.f32 %v1046_v11, %v1043_v9  ;;  %v1072_v18 = vmul.f32 %v1046_v11, %v1046_v11  ;;  %v1410_v19 = vadd.f32 %v1409_v15, %v1408_v12  ;;  %v1411_v21 = vpop.f32.mrb[14].mxu0 }
 0x131   : > { %v1438_v20 = vadd.f32 %v1437_v16, %v1436_v13  ;;  %v1439_v22 = vpop.f32.mrb[14].mxu1  ;;  %v1412_v23 = vpop.f32.mrb[15].mxu0 }
 0x132   : > { %v1440_v24 = vpop.f32.mrb[15].mxu1  ;;  %v1075_v25 = vadd.f32 %v1072_v18, %v1071_v14  ;;  %v1002_v26 = vadd.f32 %v1410_v19, %v953_v57  ;;  %v1413_v27 = vadd.f32 %v1412_v23, %v1411_v21 }
 0x133   : > { %v1441_v28 = vadd.f32 %v1440_v24, %v1439_v22 }
 0x134   : > { %v1051_v29 = vadd.f32 %v1438_v20, %v1002_v26  ;;  %v1005_v30 = vadd.f32 %v1413_v27, %v956_v59 }
 0x136   : > { %1059 = vst [vmem:[%s243_s27 + $0x10] sm:$0xff] %v1051_v29  ;;  %v1062_v31 = vadd.f32 %v1061_v17, %v1051_v29  ;;  %v1073_v32 = vmul.f32 %v1051_v29, %v1051_v29  ;;  %v1054_v33 = vadd.f32 %v1441_v28, %v1005_v30 }
 0x138   : > { %v1076_v34 = vadd.f32 %v1075_v25, %v1073_v32  ;;  %1060 = vst [vmem:[%s243_s27 + $0x18] sm:$0xff] %v1054_v33  ;;  %v1063_v35 = vadd.f32 %v1062_v31, %v1054_v33  ;;  %v1074_v36 = vmul.f32 %v1054_v33, %v1054_v33 }
 0x13a   : > { %v1064_v37 = vrot.slane %v1063_v35, 4  ;;  %v1077_v38 = vadd.f32 %v1076_v34, %v1074_v36 }
 0x13c   : > { %v1065_v39 = vadd.f32 %v1064_v37, %v1063_v35  ;;  %v1078_v40 = vrot.slane %v1077_v38, 4 }
 0x13e   : > { %v1066_v41 = vrot.slane %v1065_v39, 2  ;;  %v1079_v42 = vadd.f32 %v1078_v40, %v1077_v38 }
 0x140   : > { %v1067_v43 = vadd.f32 %v1066_v41, %v1065_v39  ;;  %v1080_v44 = vrot.slane %v1079_v42, 2 }
 0x142   : > { %v1068_v45 = vrot.slane %v1067_v43, 1  ;;  %v1081_v46 = vadd.f32 %v1080_v44, %v1079_v42 }
 0x144   : > { %v1082_v47 = vrot.slane %v1081_v46, 1  ;;  %v1069_v48 = vadd.f32 %v1068_v45, %v1067_v43 }
 0x146   : > { %v1083_v49 = vadd.f32 %v1082_v47, %v1081_v46 }
 0x148   : > { %v1086_v50 = vsel %vm1085_vm0, %v1069_v48, %v1083_v49 }
 0x149   : > { %v1088_v51 = vsel %vm1087_vm1, %v1086_v50, 0.0 }
 0x14a   : > { %1089 = vst [vmem:[%s251_s4] sm:$0xff] %v1088_v51 }
 0x14b PF: > { %s14_s14 = sadd.s32 1, %s1552_s14   ;;  %s1707_s12 = smov %s1548_s13 }
 0x14c   : > { %p11_p5 = scmp.ge.s32.totalorder %s14_s14, 6   ;;  %s1708_s13 = smov %s1710_s15 }
 0x14e   :  { %13 = sbr.rel (!%p11_p5) target bundleno = 2 (0x2), region = 73 }

// kernel: generater_forward.16
= control target key start
LH: loop header
LB: loop body
LE: loop exit
PB: predicated region body
PF: predicated region fallthrough
CT: control target
= control target key end

     0   :  { %s617_s12 = smov 0   ;;  %s619_s13 = smov 0   ;;  %s724_s0 = inlined_call_operand.vmem [shape: f32[4,128,128], index: 0, kind: input, shape index: {}]   ;;  %s725_s1 = inlined_call_operand.vmem [shape: f32[1,128], index: 1, kind: input, shape index: {}]   ;;  %s726_s2 = inlined_call_operand.vmem [shape: f32[1,128], index: 2, kind: input, shape index: {}]   ;;  %s727_s3 = inlined_call_operand.vmem [shape: bf16[4,128,128], index: 3, kind: output, shape index: {}]  }
   0x1   :  { %s621_s14 = smov 0  }
   0x2 LB: > { %s25_s15 = sadd.s32 1, %s591_s13  ;;  %p459_p0 = scmp.ge.s32.totalorder %s595_s14, 1  ;;  %s595_s14 = sphi %s621_s14, %s13_s14   ;;  %s591_s13 = sphi %s619_s13, %s729_s13   ;;  %s587_s12 = sphi %s617_s12, %s728_s12  }
   0x3   : > { %p27_p1 = scmp.ge.s32.totalorder %s25_s15, 4  ;;  %p158_p2 = scmp.lt.s32.totalorder %s595_s14, 5 }
   0x5   : > { %s731_s15 = smov (%p27_p1, %s25_s15), 0  ;;  %p159_p3 = pnand %p459_p0, %p158_p2 }
   0x6   : > { %p191_p4 = scmp.lt.s32.totalorder (!%p159_p3), %s587_s12, 3  ;;  %v641_v0 = vld [vmem:[%s725_s1] ss:$0 sm:$0xff] (!%p159_p3) }
   0x7   : > { %162 = sbr.rel (%p159_p3) target bundleno = 38 (0x26), region = 32  ;;  %v651_v1 = vld [vmem:[%s726_s2] ss:$0 sm:$0xff] (!%p159_p3) }
   0xe   : > { %s733_s12 = smov (!%p191_p4, %s587_s12), 3 }
   0xf   : > { %s484_s16 = sshll.u32 %s733_s12, 7  ;;  %s485_s24 = sshll.u32 %s733_s12, 6 }
  0x10   : > { %s646_s21 = scalar_lea.vmem %s724_s0, %s484_s16  ;;  %s683_s27 = scalar_lea.vmem %s727_s3, %s485_s24 }
  0x11   : > { %v210_v2 = vld [vmem:[%s646_s21] sm:$0xff]  ;;  %v211_v3 = vld [vmem:[%s646_s21 + $0x8] sm:$0xff]  ;;  %v212_v4 = vld [vmem:[%s646_s21 + $0x10] sm:$0xff] }
  0x12   : > { %v233_v5 = vmul.f32 %v641_v0, %v210_v2  ;;  %v234_v6 = vmul.f32 %v641_v0, %v211_v3  ;;  %v213_v7 = vld [vmem:[%s646_s21 + $0x18] sm:$0xff]  ;;  %v235_v8 = vmul.f32 %v641_v0, %v212_v4  ;;  %v214_v9 = vld [vmem:[%s646_s21 + $0x20] sm:$0xff]  ;;  %v215_v10 = vld [vmem:[%s646_s21 + $0x28] sm:$0xff] }
  0x13   : > { %v236_v11 = vmul.f32 %v641_v0, %v213_v7  ;;  %v237_v12 = vmul.f32 %v641_v0, %v214_v9  ;;  %v238_v13 = vmul.f32 %v641_v0, %v215_v10  ;;  %v216_v14 = vld [vmem:[%s646_s21 + $0x30] sm:$0xff]  ;;  %v217_v15 = vld [vmem:[%s646_s21 + $0x38] sm:$0xff]  ;;  %v218_v24 = vld [vmem:[%s646_s21 + $0x40] sm:$0xff] }
  0x14   : > { %v256_v16 = vadd.f32 %v651_v1, %v233_v5  ;;  %v257_v17 = vadd.f32 %v651_v1, %v234_v6  ;;  %v258_v18 = vadd.f32 %v651_v1, %v235_v8  ;;  %v239_v19 = vmul.f32 %v641_v0, %v216_v14  ;;  %v219_v25 = vld [vmem:[%s646_s21 + $0x48] sm:$0xff]  ;;  %v220_v30 = vld [vmem:[%s646_s21 + $0x50] sm:$0xff]  ;;  %v221_v35 = vld [vmem:[%s646_s21 + $0x58] sm:$0xff] }
  0x15   : > { %v259_v20 = vadd.f32 %v651_v1, %v236_v11  ;;  %v260_v21 = vadd.f32 %v651_v1, %v237_v12  ;;  %v261_v22 = vadd.f32 %v651_v1, %v238_v13  ;;  %v240_v23 = vmul.f32 %v641_v0, %v217_v15  ;;  %v222_v36 = vld [vmem:[%s646_s21 + $0x60] sm:$0xff]  ;;  %v223_v41 = vld [vmem:[%s646_s21 + $0x68] sm:$0xff]  ;;  %v224_v42 = vld [vmem:[%s646_s21 + $0x70] sm:$0xff] }
  0x16   : > { %v272_v26 = vmax.f32 %v256_v16, 0.0  ;;  %v273_v27 = vmax.f32 %v257_v17, 0.0  ;;  %v274_v28 = vmax.f32 %v258_v18, 0.0  ;;  %v262_v29 = vadd.f32 %v651_v1, %v239_v19  ;;  %v225_v51 = vld [vmem:[%s646_s21 + $0x78] sm:$0xff] }
  0x17   : > { %v275_v31 = vmax.f32 %v259_v20, 0.0  ;;  %v276_v32 = vmax.f32 %v260_v21, 0.0  ;;  %v277_v33 = vmax.f32 %v261_v22, 0.0  ;;  %v263_v34 = vadd.f32 %v651_v1, %v240_v23 }
  0x18   : > { %v505_v37 = vpack.c.bf16 %v273_v27, %v272_v26  ;;  %v278_v38 = vmax.f32 %v262_v29, 0.0  ;;  %v241_v39 = vmul.f32 %v641_v0, %v218_v24  ;;  %v242_v40 = vmul.f32 %v641_v0, %v219_v25 }
  0x19   : > { %v510_v43 = vpack.c.bf16 %v275_v31, %v274_v28  ;;  %v515_v44 = vpack.c.bf16 %v277_v33, %v276_v32  ;;  %v279_v45 = vmax.f32 %v263_v34, 0.0  ;;  %v243_v46 = vmul.f32 %v641_v0, %v220_v30 }
  0x1a   : > { %506 = vst [vmem:[%s683_s27] sm:$0xff] %v505_v37   ;;  %v264_v47 = vadd.f32 %v651_v1, %v241_v39  ;;  %v265_v48 = vadd.f32 %v651_v1, %v242_v40  ;;  %v244_v49 = vmul.f32 %v641_v0, %v221_v35  ;;  %v245_v50 = vmul.f32 %v641_v0, %v222_v36 }
  0x1b   : > { %542 = vst [vmem:[%s683_s27 + $0x8] sm:$0xff] %v510_v43   ;;  %543 = vst [vmem:[%s683_s27 + $0x10] sm:$0xff] %v515_v44   ;;  %v520_v52 = vpack.c.bf16 %v279_v45, %v278_v38  ;;  %v266_v53 = vadd.f32 %v651_v1, %v243_v46  ;;  %v246_v54 = vmul.f32 %v641_v0, %v223_v41 }
  0x1c   : > { %v247_v55 = vmul.f32 %v641_v0, %v224_v42  ;;  %v280_v56 = vmax.f32 %v264_v47, 0.0  ;;  %v281_v57 = vmax.f32 %v265_v48, 0.0  ;;  %v267_v58 = vadd.f32 %v651_v1, %v244_v49 }
  0x1d   : > { %v268_v59 = vadd.f32 %v651_v1, %v245_v50  ;;  %544 = vst [vmem:[%s683_s27 + $0x18] sm:$0xff] %v520_v52   ;;  %v282_v60 = vmax.f32 %v266_v53, 0.0  ;;  %v269_v61 = vadd.f32 %v651_v1, %v246_v54  ;;  %v248_v62 = vmul.f32 %v641_v0, %v225_v51 }
  0x1e   : > { %v270_v63 = vadd.f32 %v651_v1, %v247_v55  ;;  %v525_v2 = vpack.c.bf16 %v281_v57, %v280_v56  ;;  %v283_v3 = vmax.f32 %v267_v58, 0.0 }
  0x1f   : > { %v284_v4 = vmax.f32 %v268_v59, 0.0  ;;  %v285_v5 = vmax.f32 %v269_v61, 0.0  ;;  %v271_v6 = vadd.f32 %v651_v1, %v248_v62 }
  0x20   : > { %v286_v7 = vmax.f32 %v270_v63, 0.0  ;;  %545 = vst [vmem:[%s683_s27 + $0x20] sm:$0xff] %v525_v2   ;;  %v530_v8 = vpack.c.bf16 %v283_v3, %v282_v60 }
  0x21   : > { %v535_v9 = vpack.c.bf16 %v285_v5, %v284_v4  ;;  %v287_v10 = vmax.f32 %v271_v6, 0.0 }
  0x22   : > { %546 = vst [vmem:[%s683_s27 + $0x28] sm:$0xff] %v530_v8  }
  0x23   : > { %547 = vst [vmem:[%s683_s27 + $0x30] sm:$0xff] %v535_v9   ;;  %v540_v11 = vpack.c.bf16 %v287_v10, %v286_v7 }
  0x25   : > { %548 = vst [vmem:[%s683_s27 + $0x38] sm:$0xff] %v540_v11  }
  0x26 PF: > { %s13_s14 = sadd.s32 1, %s595_s14   ;;  %s728_s12 = smov %s591_s13 }
  0x27   : > { %p10_p5 = scmp.ge.s32.totalorder %s13_s14, 6   ;;  %s729_s13 = smov %s731_s15 }
  0x29   :  { %12 = sbr.rel (!%p10_p5) target bundleno = 2 (0x2), region = 62 }

// kernel: generater_forward.15
= control target key start
LH: loop header
LB: loop body
LE: loop exit
PB: predicated region body
PF: predicated region fallthrough
CT: control target
= control target key end

     0   :  { %s1476_s12 = smov 0   ;;  %s1478_s13 = smov 0   ;;  %s1610_s0 = inlined_call_operand.vmem [shape: bf16[4,128,512], index: 0, kind: input, shape index: {}]   ;;  %s1611_s1 = inlined_call_operand.vmem [shape: bf16[4,512,128], index: 1, kind: input, shape index: {}]   ;;  %s1612_s2 = inlined_call_operand.vmem [shape: f32[4,128,128], index: 2, kind: output, shape index: {0}]   ;;  %s1613_s3 = inlined_call_operand.vmem [shape: f32[4,8,128], index: 3, kind: output, shape index: {1}]  }
   0x1   :  { %s1480_s14 = smov 0  }
   0x2 LB: > { %s26_s15 = sadd.s32 1, %s1450_s13  ;;  %p1123_p0 = scmp.ge.s32.totalorder %s1454_s14, 1  ;;  %s1454_s14 = sphi %s1480_s14, %s14_s14   ;;  %s1450_s13 = sphi %s1478_s13, %s1615_s13   ;;  %s1446_s12 = sphi %s1476_s12, %s1614_s12  }
   0x3   : > { %p28_p1 = scmp.ge.s32.totalorder %s26_s15, 4  ;;  %p174_p2 = scmp.lt.s32.totalorder %s1454_s14, 5 }
   0x5   : > { %s1617_s15 = smov (%p28_p1, %s26_s15), 0  ;;  %p175_p3 = pnand %p1123_p0, %p174_p2 }
   0x6   : > { %p220_p4 = scmp.lt.s32.totalorder (!%p175_p3), %s1446_s12, 3  ;;  %vm971_vm0 = vcmask (!%p175_p3), 1040384   ;;  %vm973_vm1 = vcmask (!%p175_p3), 1041408  }
   0x7   : > { %178 = sbr.rel (%p175_p3) target bundleno = 346 (0x15a), region = 28 }
   0xe   : > { %s1619_s12 = smov (!%p220_p4, %s1446_s12), 3 }
   0xf   : > { %s1197_s16 = sshll.u32 %s1619_s12, 8  ;;  %s1199_s23 = sshll.u32 %s1619_s12, 7 }
  0x10   : > { %s1502_s19 = scalar_lea.vmem %s1611_s1, %s1197_s16  ;;  %s1539_s22 = scalar_lea.vmem %s1610_s0, %s1197_s16 }
  0x11   : > { %v1352_v0 = vld [vmem:[%s1502_s19 + $0x40] sm:$0xff]   ;;  %v1356_v4 = vld [vmem:[%s1502_s19 + $0x48] sm:$0xff]   ;;  %v1360_v8 = vld [vmem:[%s1502_s19 + $0x50] sm:$0xff]   ;;  %s1579_s26 = scalar_lea.vmem %s1612_s2, %s1199_s23  ;;  %s1130_s27 = sshll.u32 %s1619_s12, 3 }
  0x12   : > { %v1353_v1 = vld [vmem:[%s1502_s19 + $0xc0] sm:$0xff]   ;;  %1200 = vmatprep.subr.bf16.mxu0 %v1352_v0  ;;  %v1357_v5 = vld [vmem:[%s1502_s19 + $0xc8] sm:$0xff]   ;;  %v1361_v9 = vld [vmem:[%s1502_s19 + $0xd0] sm:$0xff]   ;;  %s251_s30 = scalar_lea.vmem %s1613_s3, %s1130_s27 }
  0x13   : > { %v1354_v2 = vld [vmem:[%s1502_s19] sm:$0xff]   ;;  %1264 = vmatprep.subr.bf16.mxu1 %v1353_v1  ;;  %v1358_v6 = vld [vmem:[%s1502_s19 + $0x8] sm:$0xff]   ;;  %v1362_v10 = vld [vmem:[%s1502_s19 + $0x10] sm:$0xff]  }
  0x14   : > { %v1355_v3 = vld [vmem:[%s1502_s19 + $0x80] sm:$0xff]   ;;  %1201 = vmatpush3.bf16.msra.mxu0 %v1354_v2  ;;  %v1359_v7 = vld [vmem:[%s1502_s19 + $0x88] sm:$0xff]   ;;  %v1363_v11 = vld [vmem:[%s1502_s19 + $0x90] sm:$0xff]  }
  0x15   : > { %1265 = vmatpush3.bf16.msra.mxu1 %v1355_v3  ;;  %1202 = vmatprep.subr.bf16.mxu0 %v1356_v4  ;;  %v1364_v12 = vld [vmem:[%s1502_s19 + $0x58] sm:$0xff]   ;;  %v1368_v16 = vld [vmem:[%s1502_s19 + $0x60] sm:$0xff]   ;;  %v1372_v20 = vld [vmem:[%s1502_s19 + $0x68] sm:$0xff]  }
  0x16   : > { %1266 = vmatprep.subr.bf16.mxu1 %v1357_v5  ;;  %v1365_v13 = vld [vmem:[%s1502_s19 + $0xd8] sm:$0xff]   ;;  %v1369_v17 = vld [vmem:[%s1502_s19 + $0xe0] sm:$0xff]   ;;  %v1373_v21 = vld [vmem:[%s1502_s19 + $0xe8] sm:$0xff]  }
  0x17   : > { %v1366_v14 = vld [vmem:[%s1502_s19 + $0x18] sm:$0xff]   ;;  %v1370_v18 = vld [vmem:[%s1502_s19 + $0x20] sm:$0xff]   ;;  %v1374_v22 = vld [vmem:[%s1502_s19 + $0x28] sm:$0xff]  }
  0x18   : > { %1203 = vmatpush3.bf16.msra.mxu0 %v1358_v6  ;;  %v1367_v15 = vld [vmem:[%s1502_s19 + $0x98] sm:$0xff]   ;;  %v1371_v19 = vld [vmem:[%s1502_s19 + $0xa0] sm:$0xff]   ;;  %v1375_v23 = vld [vmem:[%s1502_s19 + $0xa8] sm:$0xff]  }
  0x19   : > { %1267 = vmatpush3.bf16.msra.mxu1 %v1359_v7  ;;  %1204 = vmatprep.subr.bf16.mxu0 %v1360_v8  ;;  %v1376_v24 = vld [vmem:[%s1502_s19 + $0x70] sm:$0xff]   ;;  %v1380_v28 = vld [vmem:[%s1502_s19 + $0x78] sm:$0xff]  }
  0x1a   : > { %1268 = vmatprep.subr.bf16.mxu1 %v1361_v9  ;;  %v1377_v25 = vld [vmem:[%s1502_s19 + $0xf0] sm:$0xff]   ;;  %v1381_v29 = vld [vmem:[%s1502_s19 + $0xf8] sm:$0xff]  }
  0x1b   : > { %v1378_v26 = vld [vmem:[%s1502_s19 + $0x30] sm:$0xff]   ;;  %v1382_v30 = vld [vmem:[%s1502_s19 + $0x38] sm:$0xff]  }
  0x1c   : > { %1205 = vmatpush3.bf16.msra.mxu0 %v1362_v10  ;;  %v1379_v27 = vld [vmem:[%s1502_s19 + $0xb0] sm:$0xff]   ;;  %v1383_v31 = vld [vmem:[%s1502_s19 + $0xb8] sm:$0xff]  }
  0x1d   : > { %1269 = vmatpush3.bf16.msra.mxu1 %v1363_v11  ;;  %1206 = vmatprep.subr.bf16.mxu0 %v1364_v12  ;;  %v1384_v32 = vld [vmem:[%s1539_s22] ss:$16 sps:$4 sm:$0xff]   ;;  %v1386_v33 = vld [vmem:[%s1539_s22 + $0x4] ss:$16 sps:$4 sm:$0xff]   ;;  %v1387_v34 = vld [vmem:[%s1539_s22 + $0x8] ss:$16 sps:$4 sm:$0xff]  }
  0x1e   : > { %1270 = vmatprep.subr.bf16.mxu1 %v1365_v13  ;;  %v1389_v35 = vld [vmem:[%s1539_s22 + $0xc] ss:$16 sps:$4 sm:$0xff]   ;;  %733 = vmatprep.mubr.bf16.mxu0 %v1386_v33  ;;  %v1390_v36 = vld [vmem:[%s1539_s22 + $0x24] ss:$16 sps:$4 sm:$0xff]   ;;  %v1394_v38 = vld [vmem:[%s1539_s22 + $0x20] ss:$16 sps:$4 sm:$0xff]  }
  0x1f   : > { %830 = vmatprep.mubr.bf16.mxu1 %v1389_v35  ;;  %v1392_v37 = vld [vmem:[%s1539_s22 + $0x2c] ss:$16 sps:$4 sm:$0xff]   ;;  %v1395_v39 = vld [vmem:[%s1539_s22 + $0x28] ss:$16 sps:$4 sm:$0xff]   ;;  %v1396_v40 = vld [vmem:[%s1539_s22 + $0x44] ss:$16 sps:$4 sm:$0xff]  }
  0x20   : > { %1207 = vmatpush3.bf16.msra.mxu0 %v1366_v14  ;;  %v1398_v41 = vld [vmem:[%s1539_s22 + $0x4c] ss:$16 sps:$4 sm:$0xff]   ;;  %v1400_v42 = vld [vmem:[%s1539_s22 + $0x40] ss:$16 sps:$4 sm:$0xff]   ;;  %v1401_v43 = vld [vmem:[%s1539_s22 + $0x48] ss:$16 sps:$4 sm:$0xff]  }
  0x21   : > { %1271 = vmatpush3.bf16.msra.mxu1 %v1367_v15  ;;  %1208 = vmatprep.subr.bf16.mxu0 %v1368_v16  ;;  %v1402_v44 = vld [vmem:[%s1539_s22 + $0x64] ss:$16 sps:$4 sm:$0xff]   ;;  %v1404_v45 = vld [vmem:[%s1539_s22 + $0x6c] ss:$16 sps:$4 sm:$0xff]   ;;  %v1406_v46 = vld [vmem:[%s1539_s22 + $0x60] ss:$16 sps:$4 sm:$0xff]  }
  0x22   : > { %1272 = vmatprep.subr.bf16.mxu1 %v1369_v17  ;;  %v1407_v47 = vld [vmem:[%s1539_s22 + $0x68] ss:$16 sps:$4 sm:$0xff]   ;;  %v1408_v48 = vld [vmem:[%s1539_s22 + $0x84] ss:$16 sps:$4 sm:$0xff]   ;;  %v1410_v49 = vld [vmem:[%s1539_s22 + $0x8c] ss:$16 sps:$4 sm:$0xff]  }
  0x23   : > { %v1412_v50 = vld [vmem:[%s1539_s22 + $0x80] ss:$16 sps:$4 sm:$0xff]   ;;  %v1413_v51 = vld [vmem:[%s1539_s22 + $0x88] ss:$16 sps:$4 sm:$0xff]   ;;  %v1414_v52 = vld [vmem:[%s1539_s22 + $0xa4] ss:$16 sps:$4 sm:$0xff]  }
  0x24   : > { %1209 = vmatpush3.bf16.msra.mxu0 %v1370_v18  ;;  %v1416_v53 = vld [vmem:[%s1539_s22 + $0xac] ss:$16 sps:$4 sm:$0xff]   ;;  %v1418_v54 = vld [vmem:[%s1539_s22 + $0xa0] ss:$16 sps:$4 sm:$0xff]   ;;  %v1419_v55 = vld [vmem:[%s1539_s22 + $0xa8] ss:$16 sps:$4 sm:$0xff]  }
  0x25   : > { %1273 = vmatpush3.bf16.msra.mxu1 %v1371_v19  ;;  %1210 = vmatprep.subr.bf16.mxu0 %v1372_v20  ;;  %v1420_v56 = vld [vmem:[%s1539_s22 + $0xc4] ss:$16 sps:$4 sm:$0xff]   ;;  %v1422_v57 = vld [vmem:[%s1539_s22 + $0xcc] ss:$16 sps:$4 sm:$0xff]   ;;  %v1424_v58 = vld [vmem:[%s1539_s22 + $0xc0] ss:$16 sps:$4 sm:$0xff]  }
  0x26   : > { %1274 = vmatprep.subr.bf16.mxu1 %v1373_v21  ;;  %v1425_v59 = vld [vmem:[%s1539_s22 + $0xc8] ss:$16 sps:$4 sm:$0xff]   ;;  %v1426_v60 = vld [vmem:[%s1539_s22 + $0xe4] ss:$16 sps:$4 sm:$0xff]   ;;  %v1428_v61 = vld [vmem:[%s1539_s22 + $0xec] ss:$16 sps:$4 sm:$0xff]  }
  0x27   : > { %v1430_v62 = vld [vmem:[%s1539_s22 + $0xe0] ss:$16 sps:$4 sm:$0xff]   ;;  %v1431_v63 = vld [vmem:[%s1539_s22 + $0xe8] ss:$16 sps:$4 sm:$0xff]  }
  0x28   : > { %1211 = vmatpush3.bf16.msra.mxu0 %v1374_v22 }
  0x29   : > { %1275 = vmatpush3.bf16.msra.mxu1 %v1375_v23  ;;  %1212 = vmatprep.subr.bf16.mxu0 %v1376_v24 }
  0x2a   : > { %1276 = vmatprep.subr.bf16.mxu1 %v1377_v25 }
  0x2c   : > { %1213 = vmatpush3.bf16.msra.mxu0 %v1378_v26 }
  0x2d   : > { %1277 = vmatpush3.bf16.msra.mxu1 %v1379_v27  ;;  %1214 = vmatprep.subr.bf16.mxu0 %v1380_v28 }
  0x2e   : > { %1278 = vmatprep.subr.bf16.mxu1 %v1381_v29 }
  0x30   : > { %1215 = vmatpush3.bf16.msra.mxu0 %v1382_v30 }
  0x31   : > { %1279 = vmatpush3.bf16.msra.mxu1 %v1383_v31 }
  0x33   : > { %734 = vmatmul.mubr.bf16.vlgmr.msra.gmra.mrb[0].mxu0 %v1384_v32 }
  0x34   : > { %831 = vmatmul.mubr.bf16.vlgmr.msra.gmra.mrb[0].mxu1 %v1387_v34  ;;  %741 = vmatprep.mubr.bf16.mxu0 %v1390_v36 }
  0x35   : > { %838 = vmatprep.mubr.bf16.mxu1 %v1392_v37 }
  0x3b   : > { %742 = vmatmul.mubr.bf16.gmra.mrb[4].mxu0 %v1394_v38 }
  0x3c   : > { %839 = vmatmul.mubr.bf16.gmra.mrb[4].mxu1 %v1395_v39  ;;  %749 = vmatprep.mubr.bf16.mxu0 %v1396_v40 }
  0x3d   : > { %846 = vmatprep.mubr.bf16.mxu1 %v1398_v41 }
  0x43   : > { %750 = vmatmul.mubr.bf16.gmra.mrb[8].mxu0 %v1400_v42 }
  0x44   : > { %847 = vmatmul.mubr.bf16.gmra.mrb[8].mxu1 %v1401_v43  ;;  %757 = vmatprep.mubr.bf16.mxu0 %v1402_v44 }
  0x45   : > { %854 = vmatprep.mubr.bf16.mxu1 %v1404_v45 }
  0x4b   : > { %758 = vmatmul.mubr.bf16.gmra.mrb[12].mxu0 %v1406_v46 }
  0x4c   : > { %855 = vmatmul.mubr.bf16.gmra.mrb[12].mxu1 %v1407_v47  ;;  %765 = vmatprep.mubr.bf16.mxu0 %v1408_v48 }
  0x4d   : > { %862 = vmatprep.mubr.bf16.mxu1 %v1410_v49 }
  0x53   : > { %766 = vmatmul.mubr.bf16.gmra.mrb[16].mxu0 %v1412_v50 }
  0x54   : > { %863 = vmatmul.mubr.bf16.gmra.mrb[16].mxu1 %v1413_v51  ;;  %773 = vmatprep.mubr.bf16.mxu0 %v1414_v52 }
  0x55   : > { %870 = vmatprep.mubr.bf16.mxu1 %v1416_v53 }
  0x5b   : > { %774 = vmatmul.mubr.bf16.gmra.mrb[20].mxu0 %v1418_v54 }
  0x5c   : > { %871 = vmatmul.mubr.bf16.gmra.mrb[20].mxu1 %v1419_v55  ;;  %781 = vmatprep.mubr.bf16.mxu0 %v1420_v56 }
  0x5d   : > { %878 = vmatprep.mubr.bf16.mxu1 %v1422_v57 }
  0x63   : > { %782 = vmatmul.mubr.bf16.gmra.mrb[24].mxu0 %v1424_v58 }
  0x64   : > { %879 = vmatmul.mubr.bf16.gmra.mrb[24].mxu1 %v1425_v59  ;;  %789 = vmatprep.mubr.bf16.mxu0 %v1426_v60 }
  0x65   : > { %886 = vmatprep.mubr.bf16.mxu1 %v1428_v61 }
  0x6b   : > { %790 = vmatmul.mubr.bf16.gmra.mrb[28].mxu0 %v1430_v62 }
  0x6c   : > { %887 = vmatmul.mubr.bf16.gmra.mrb[28].mxu1 %v1431_v63 }
 0x106   : > { %v1216_v0 = vpop.f32.mrb[0].mxu0 }
 0x107   : > { %v1280_v1 = vpop.f32.mrb[0].mxu1  ;;  %v1217_v2 = vpop.f32.mrb[1].mxu0 }
 0x108   : > { %v1218_v3 = vadd.f32 %v1217_v2, %v1216_v0  ;;  %v1281_v4 = vpop.f32.mrb[1].mxu1  ;;  %v1219_v5 = vpop.f32.mrb[2].mxu0 }
 0x109   : > { %v1282_v6 = vadd.f32 %v1281_v4, %v1280_v1  ;;  %v1283_v7 = vpop.f32.mrb[2].mxu1  ;;  %v1220_v8 = vpop.f32.mrb[3].mxu0 }
 0x10a   : > { %v1221_v9 = vadd.f32 %v1220_v8, %v1219_v5  ;;  %v1284_v10 = vpop.f32.mrb[3].mxu1 }
 0x10b   : > { %v833_v11 = vadd.f32 %v1282_v6, %v1218_v3  ;;  %v1285_v12 = vadd.f32 %v1284_v10, %v1283_v7 }
 0x10d   : > { %895 = vst [vmem:[%s1579_s26] sm:$0xff] %v833_v11  ;;  %v836_v13 = vadd.f32 %v1285_v12, %v1221_v9  ;;  %v933_v15 = vmul.f32 %v833_v11, %v833_v11 }
 0x10e   : > { %v1222_v14 = vpop.f32.mrb[4].mxu0 }
 0x10f   : > { %896 = vst [vmem:[%s1579_s26 + $0x8] sm:$0xff] %v836_v13  ;;  %v911_v16 = vadd.f32 %v836_v13, %v833_v11  ;;  %v934_v17 = vmul.f32 %v836_v13, %v836_v13  ;;  %v1286_v18 = vpop.f32.mrb[4].mxu1  ;;  %v1223_v19 = vpop.f32.mrb[5].mxu0 }
 0x110   : > { %v1224_v20 = vadd.f32 %v1223_v19, %v1222_v14  ;;  %v1287_v21 = vpop.f32.mrb[5].mxu1  ;;  %v1225_v22 = vpop.f32.mrb[6].mxu0 }
 0x111   : > { %v949_v23 = vadd.f32 %v934_v17, %v933_v15  ;;  %v1288_v24 = vadd.f32 %v1287_v21, %v1286_v18  ;;  %v1289_v25 = vpop.f32.mrb[6].mxu1  ;;  %v1226_v26 = vpop.f32.mrb[7].mxu0 }
 0x112   : > { %v1227_v27 = vadd.f32 %v1226_v26, %v1225_v22  ;;  %v1290_v28 = vpop.f32.mrb[7].mxu1 }
 0x113   : > { %v841_v29 = vadd.f32 %v1288_v24, %v1224_v20  ;;  %v1291_v30 = vadd.f32 %v1290_v28, %v1289_v25 }
 0x115   : > { %897 = vst [vmem:[%s1579_s26 + $0x10] sm:$0xff] %v841_v29  ;;  %v912_v31 = vadd.f32 %v911_v16, %v841_v29  ;;  %v935_v32 = vmul.f32 %v841_v29, %v841_v29  ;;  %v844_v33 = vadd.f32 %v1291_v30, %v1227_v27 }
 0x116   : > { %v1228_v34 = vpop.f32.mrb[8].mxu0 }
 0x117   : > { %v950_v35 = vadd.f32 %v949_v23, %v935_v32  ;;  %898 = vst [vmem:[%s1579_s26 + $0x18] sm:$0xff] %v844_v33  ;;  %v913_v36 = vadd.f32 %v912_v31, %v844_v33  ;;  %v936_v37 = vmul.f32 %v844_v33, %v844_v33  ;;  %v1292_v38 = vpop.f32.mrb[8].mxu1  ;;  %v1229_v39 = vpop.f32.mrb[9].mxu0 }
 0x118   : > { %v1230_v40 = vadd.f32 %v1229_v39, %v1228_v34  ;;  %v1293_v41 = vpop.f32.mrb[9].mxu1  ;;  %v1231_v42 = vpop.f32.mrb[10].mxu0 }
 0x119   : > { %v951_v43 = vadd.f32 %v950_v35, %v936_v37  ;;  %v1294_v44 = vadd.f32 %v1293_v41, %v1292_v38  ;;  %v1295_v45 = vpop.f32.mrb[10].mxu1  ;;  %v1232_v46 = vpop.f32.mrb[11].mxu0 }
 0x11a   : > { %v1233_v47 = vadd.f32 %v1232_v46, %v1231_v42  ;;  %v1296_v48 = vpop.f32.mrb[11].mxu1 }
 0x11b   : > { %v849_v49 = vadd.f32 %v1294_v44, %v1230_v40  ;;  %v1297_v50 = vadd.f32 %v1296_v48, %v1295_v45 }
 0x11d   : > { %899 = vst [vmem:[%s1579_s26 + $0x20] sm:$0xff] %v849_v49  ;;  %v914_v51 = vadd.f32 %v913_v36, %v849_v49  ;;  %v937_v52 = vmul.f32 %v849_v49, %v849_v49  ;;  %v852_v53 = vadd.f32 %v1297_v50, %v1233_v47 }
 0x11e   : > { %v1234_v54 = vpop.f32.mrb[12].mxu0 }
 0x11f   : > { %v952_v55 = vadd.f32 %v951_v43, %v937_v52  ;;  %900 = vst [vmem:[%s1579_s26 + $0x28] sm:$0xff] %v852_v53  ;;  %v915_v56 = vadd.f32 %v914_v51, %v852_v53  ;;  %v938_v57 = vmul.f32 %v852_v53, %v852_v53  ;;  %v1298_v58 = vpop.f32.mrb[12].mxu1  ;;  %v1235_v59 = vpop.f32.mrb[13].mxu0 }
 0x120   : > { %v1236_v60 = vadd.f32 %v1235_v59, %v1234_v54  ;;  %v1299_v61 = vpop.f32.mrb[13].mxu1  ;;  %v1237_v62 = vpop.f32.mrb[14].mxu0 }
 0x121   : > { %v953_v63 = vadd.f32 %v952_v55, %v938_v57  ;;  %v1300_v0 = vadd.f32 %v1299_v61, %v1298_v58  ;;  %v1301_v1 = vpop.f32.mrb[14].mxu1  ;;  %v1238_v2 = vpop.f32.mrb[15].mxu0 }
 0x122   : > { %v1239_v3 = vadd.f32 %v1238_v2, %v1237_v62  ;;  %v1302_v4 = vpop.f32.mrb[15].mxu1 }
 0x123   : > { %v857_v5 = vadd.f32 %v1300_v0, %v1236_v60  ;;  %v1303_v6 = vadd.f32 %v1302_v4, %v1301_v1 }
 0x125   : > { %901 = vst [vmem:[%s1579_s26 + $0x30] sm:$0xff] %v857_v5  ;;  %v916_v7 = vadd.f32 %v915_v56, %v857_v5  ;;  %v939_v8 = vmul.f32 %v857_v5, %v857_v5  ;;  %v860_v9 = vadd.f32 %v1303_v6, %v1239_v3 }
 0x126   : > { %v1240_v10 = vpop.f32.mrb[16].mxu0 }
 0x127   : > { %v954_v11 = vadd.f32 %v953_v63, %v939_v8  ;;  %902 = vst [vmem:[%s1579_s26 + $0x38] sm:$0xff] %v860_v9  ;;  %v917_v12 = vadd.f32 %v916_v7, %v860_v9  ;;  %v940_v13 = vmul.f32 %v860_v9, %v860_v9  ;;  %v1304_v14 = vpop.f32.mrb[16].mxu1  ;;  %v1241_v15 = vpop.f32.mrb[17].mxu0 }
 0x128   : > { %v1242_v16 = vadd.f32 %v1241_v15, %v1240_v10  ;;  %v1305_v17 = vpop.f32.mrb[17].mxu1  ;;  %v1243_v18 = vpop.f32.mrb[18].mxu0 }
 0x129   : > { %v955_v19 = vadd.f32 %v954_v11, %v940_v13  ;;  %v1306_v20 = vadd.f32 %v1305_v17, %v1304_v14  ;;  %v1307_v21 = vpop.f32.mrb[18].mxu1  ;;  %v1244_v22 = vpop.f32.mrb[19].mxu0 }
 0x12a   : > { %v1245_v23 = vadd.f32 %v1244_v22, %v1243_v18  ;;  %v1308_v24 = vpop.f32.mrb[19].mxu1 }
 0x12b   : > { %v865_v25 = vadd.f32 %v1306_v20, %v1242_v16  ;;  %v1309_v26 = vadd.f32 %v1308_v24, %v1307_v21 }
 0x12d   : > { %903 = vst [vmem:[%s1579_s26 + $0x40] sm:$0xff] %v865_v25  ;;  %v918_v27 = vadd.f32 %v917_v12, %v865_v25  ;;  %v941_v28 = vmul.f32 %v865_v25, %v865_v25  ;;  %v868_v29 = vadd.f32 %v1309_v26, %v1245_v23 }
 0x12e   : > { %v1246_v30 = vpop.f32.mrb[20].mxu0 }
 0x12f   : > { %v956_v31 = vadd.f32 %v955_v19, %v941_v28  ;;  %904 = vst [vmem:[%s1579_s26 + $0x48] sm:$0xff] %v868_v29  ;;  %v919_v32 = vadd.f32 %v918_v27, %v868_v29  ;;  %v942_v33 = vmul.f32 %v868_v29, %v868_v29  ;;  %v1310_v34 = vpop.f32.mrb[20].mxu1  ;;  %v1247_v35 = vpop.f32.mrb[21].mxu0 }
 0x130   : > { %v1248_v36 = vadd.f32 %v1247_v35, %v1246_v30  ;;  %v1311_v37 = vpop.f32.mrb[21].mxu1  ;;  %v1249_v38 = vpop.f32.mrb[22].mxu0 }
 0x131   : > { %v957_v39 = vadd.f32 %v956_v31, %v942_v33  ;;  %v1312_v40 = vadd.f32 %v1311_v37, %v1310_v34  ;;  %v1313_v41 = vpop.f32.mrb[22].mxu1  ;;  %v1250_v42 = vpop.f32.mrb[23].mxu0 }
 0x132   : > { %v1251_v43 = vadd.f32 %v1250_v42, %v1249_v38  ;;  %v1314_v44 = vpop.f32.mrb[23].mxu1 }
 0x133   : > { %v873_v45 = vadd.f32 %v1312_v40, %v1248_v36  ;;  %v1315_v46 = vadd.f32 %v1314_v44, %v1313_v41 }
 0x135   : > { %905 = vst [vmem:[%s1579_s26 + $0x50] sm:$0xff] %v873_v45  ;;  %v920_v47 = vadd.f32 %v919_v32, %v873_v45  ;;  %v943_v48 = vmul.f32 %v873_v45, %v873_v45  ;;  %v876_v49 = vadd.f32 %v1315_v46, %v1251_v43 }
 0x136   : > { %v1252_v50 = vpop.f32.mrb[24].mxu0 }
 0x137   : > { %v958_v51 = vadd.f32 %v957_v39, %v943_v48  ;;  %906 = vst [vmem:[%s1579_s26 + $0x58] sm:$0xff] %v876_v49  ;;  %v921_v52 = vadd.f32 %v920_v47, %v876_v49  ;;  %v944_v53 = vmul.f32 %v876_v49, %v876_v49  ;;  %v1316_v54 = vpop.f32.mrb[24].mxu1  ;;  %v1253_v55 = vpop.f32.mrb[25].mxu0 }
 0x138   : > { %v1254_v56 = vadd.f32 %v1253_v55, %v1252_v50  ;;  %v1317_v57 = vpop.f32.mrb[25].mxu1  ;;  %v1255_v58 = vpop.f32.mrb[26].mxu0 }
 0x139   : > { %v959_v59 = vadd.f32 %v958_v51, %v944_v53  ;;  %v1318_v60 = vadd.f32 %v1317_v57, %v1316_v54  ;;  %v1319_v61 = vpop.f32.mrb[26].mxu1  ;;  %v1256_v62 = vpop.f32.mrb[27].mxu0 }
 0x13a   : > { %v1257_v63 = vadd.f32 %v1256_v62, %v1255_v58  ;;  %v1320_v0 = vpop.f32.mrb[27].mxu1 }
 0x13b   : > { %v881_v1 = vadd.f32 %v1318_v60, %v1254_v56  ;;  %v1321_v2 = vadd.f32 %v1320_v0, %v1319_v61 }
 0x13d   : > { %907 = vst [vmem:[%s1579_s26 + $0x60] sm:$0xff] %v881_v1  ;;  %v922_v3 = vadd.f32 %v921_v52, %v881_v1  ;;  %v945_v4 = vmul.f32 %v881_v1, %v881_v1  ;;  %v884_v5 = vadd.f32 %v1321_v2, %v1257_v63 }
 0x13e   : > { %v1258_v6 = vpop.f32.mrb[28].mxu0 }
 0x13f   : > { %v960_v7 = vadd.f32 %v959_v59, %v945_v4  ;;  %908 = vst [vmem:[%s1579_s26 + $0x68] sm:$0xff] %v884_v5  ;;  %v923_v8 = vadd.f32 %v922_v3, %v884_v5  ;;  %v946_v9 = vmul.f32 %v884_v5, %v884_v5  ;;  %v1322_v10 = vpop.f32.mrb[28].mxu1  ;;  %v1259_v11 = vpop.f32.mrb[29].mxu0 }
 0x140   : > { %v1260_v12 = vadd.f32 %v1259_v11, %v1258_v6  ;;  %v1323_v13 = vpop.f32.mrb[29].mxu1  ;;  %v1261_v14 = vpop.f32.mrb[30].mxu0 }
 0x141   : > { %v961_v15 = vadd.f32 %v960_v7, %v946_v9  ;;  %v1324_v16 = vadd.f32 %v1323_v13, %v1322_v10  ;;  %v1325_v17 = vpop.f32.mrb[30].mxu1  ;;  %v1262_v18 = vpop.f32.mrb[31].mxu0 }
 0x142   : > { %v1263_v19 = vadd.f32 %v1262_v18, %v1261_v14  ;;  %v1326_v20 = vpop.f32.mrb[31].mxu1 }
 0x143   : > { %v889_v21 = vadd.f32 %v1324_v16, %v1260_v12  ;;  %v1327_v22 = vadd.f32 %v1326_v20, %v1325_v17 }
 0x145   : > { %909 = vst [vmem:[%s1579_s26 + $0x70] sm:$0xff] %v889_v21  ;;  %v924_v23 = vadd.f32 %v923_v8, %v889_v21  ;;  %v947_v24 = vmul.f32 %v889_v21, %v889_v21  ;;  %v892_v25 = vadd.f32 %v1327_v22, %v1263_v19 }
 0x147   : > { %v962_v26 = vadd.f32 %v961_v15, %v947_v24  ;;  %910 = vst [vmem:[%s1579_s26 + $0x78] sm:$0xff] %v892_v25  ;;  %v925_v27 = vadd.f32 %v924_v23, %v892_v25  ;;  %v948_v28 = vmul.f32 %v892_v25, %v892_v25 }
 0x149   : > { %v926_v29 = vrot.slane %v925_v27, 4  ;;  %v963_v30 = vadd.f32 %v962_v26, %v948_v28 }
 0x14b   : > { %v927_v31 = vadd.f32 %v926_v29, %v925_v27  ;;  %v964_v32 = vrot.slane %v963_v30, 4 }
 0x14d   : > { %v928_v33 = vrot.slane %v927_v31, 2  ;;  %v965_v34 = vadd.f32 %v964_v32, %v963_v30 }
 0x14f   : > { %v929_v35 = vadd.f32 %v928_v33, %v927_v31  ;;  %v966_v36 = vrot.slane %v965_v34, 2 }
 0x151   : > { %v930_v37 = vrot.slane %v929_v35, 1  ;;  %v967_v38 = vadd.f32 %v966_v36, %v965_v34 }
 0x153   : > { %v968_v39 = vrot.slane %v967_v38, 1  ;;  %v931_v40 = vadd.f32 %v930_v37, %v929_v35 }
 0x155   : > { %v969_v41 = vadd.f32 %v968_v39, %v967_v38 }
 0x157   : > { %v972_v42 = vsel %vm971_vm0, %v931_v40, %v969_v41 }
 0x158   : > { %v974_v43 = vsel %vm973_vm1, %v972_v42, 0.0 }
 0x159   : > { %975 = vst [vmem:[%s251_s30] sm:$0xff] %v974_v43 }
 0x15a PF: > { %s14_s14 = sadd.s32 1, %s1454_s14   ;;  %s1614_s12 = smov %s1450_s13 }
 0x15b   : > { %p11_p5 = scmp.ge.s32.totalorder %s14_s14, 6   ;;  %s1615_s13 = smov %s1617_s15 }
 0x15d   :  { %13 = sbr.rel (!%p11_p5) target bundleno = 2 (0x2), region = 73 }

// kernel: generater_forward.17
= control target key start
LH: loop header
LB: loop body
LE: loop exit
PB: predicated region body
PF: predicated region fallthrough
CT: control target
= control target key end

     0   :  { %s1437_s9 = smov 0   ;;  %s1439_s10 = smov 0   ;;  %s1635_s0 = inlined_call_operand.vmem [shape: bf16[4,400,256], index: 0, kind: input, shape index: {}]   ;;  %s1636_s1 = inlined_call_operand.vmem [shape: bf16[4,256,128], index: 1, kind: input, shape index: {}]   ;;  %s1637_s2 = inlined_call_operand.vmem [shape: f32[4,400,128], index: 2, kind: output, shape index: {}]  }
   0x1   :  { %s1441_s11 = smov 0  }
   0x2 LB: > { %s24_s12 = sadd.s32 1, %s1415_s10  ;;  %p1074_p0 = scmp.ge.s32.totalorder %s1419_s11, 1  ;;  %s1419_s11 = sphi %s1441_s11, %s12_s11   ;;  %s1415_s10 = sphi %s1439_s10, %s1639_s10   ;;  %s1411_s9 = sphi %s1437_s9, %s1638_s9  }
   0x3   : > { %p26_p1 = scmp.ge.s32.totalorder %s24_s12, 4  ;;  %p144_p2 = scmp.lt.s32.totalorder %s1419_s11, 5 }
   0x5   : > { %s1641_s12 = smov (%p26_p1, %s24_s12), 0  ;;  %p145_p3 = pnand %p1074_p0, %p144_p2 }
   0x6   : > { %p181_p4 = scmp.lt.s32.totalorder (!%p145_p3), %s1411_s9, 3  ;;  %v1421_v0 = vmov (!%p145_p3), 0  }
   0x7   : > { %148 = sbr.rel (%p145_p3) target bundleno = 403 (0x193), region = 28  ;;  %635 = vmatprep.subr.bf16.mxu0 (!%p145_p3), %v1421_v0  ;;  %1148 = vmatprep.subr.bf16.mxu1 (!%p145_p3), %v1421_v0 }
   0xe   : > { %s1643_s9 = smov (!%p181_p4, %s1411_s9), 3 }
   0xf   : > { %s1147_s13 = sshll.u32 %s1643_s9, 7  ;;  %s1180_s17 = smul.u32 400, %s1643_s9 }
  0x10   : > { %s1463_s16 = scalar_lea.vmem %s1636_s1, %s1147_s13 }
  0x11   : > { %v1206_v1 = vld [vmem:[%s1463_s16] sm:$0xff]   ;;  %v1207_v2 = vld [vmem:[%s1463_s16 + $0x8] sm:$0xff]   ;;  %v1208_v3 = vld [vmem:[%s1463_s16 + $0x10] sm:$0xff]   ;;  %s1481_s20 = scalar_lea.vmem %s1635_s0, %s1180_s17  ;;  %s1574_s23 = scalar_lea.vmem %s1637_s2, %s1180_s17 }
  0x12   : > { %636 = vmatpush1.bf16.msra.mxu0 %v1206_v1  ;;  %1164 = vmatpush1.bf16.msra.mxu1 %v1206_v1  ;;  %v1209_v4 = vld [vmem:[%s1463_s16 + $0x18] sm:$0xff]   ;;  %v1210_v5 = vld [vmem:[%s1463_s16 + $0x20] sm:$0xff]   ;;  %v1211_v7 = vld [vmem:[%s1463_s16 + $0x28] sm:$0xff]  }
  0x13   : > { %637 = vmatprep.subr.bf16.mxu0 %v1421_v0  ;;  %1149 = vmatprep.subr.bf16.mxu1 %v1421_v0  ;;  %v1224_v6 = vld [vmem:[%s1481_s20 + $0x4] ss:$8 sps:$4 sm:$0xff]   ;;  %v1227_v8 = vld [vmem:[%s1481_s20 + $0xd4] ss:$8 sps:$4 sm:$0xff]   ;;  %v1222_v19 = vld [vmem:[%s1481_s20] ss:$8 sps:$4 sm:$0xff]  }
  0x14   : > { %667 = vmatprep.mubr.bf16.mxu0 %v1224_v6  ;;  %771 = vmatprep.mubr.bf16.mxu1 %v1227_v8  ;;  %v1212_v9 = vld [vmem:[%s1463_s16 + $0x30] sm:$0xff]   ;;  %v1213_v10 = vld [vmem:[%s1463_s16 + $0x38] sm:$0xff]   ;;  %v1214_v11 = vld [vmem:[%s1463_s16 + $0x40] sm:$0xff]  }
  0x15   : > { %v1215_v12 = vld [vmem:[%s1463_s16 + $0x48] sm:$0xff]   ;;  %v1216_v13 = vld [vmem:[%s1463_s16 + $0x50] sm:$0xff]   ;;  %v1217_v14 = vld [vmem:[%s1463_s16 + $0x58] sm:$0xff]  }
  0x16   : > { %638 = vmatpush1.bf16.msra.mxu0 %v1207_v2  ;;  %1165 = vmatpush1.bf16.msra.mxu1 %v1207_v2  ;;  %v1218_v15 = vld [vmem:[%s1463_s16 + $0x60] sm:$0xff]   ;;  %v1219_v16 = vld [vmem:[%s1463_s16 + $0x68] sm:$0xff]   ;;  %v1220_v17 = vld [vmem:[%s1463_s16 + $0x70] sm:$0xff]  }
  0x17   : > { %639 = vmatprep.subr.bf16.mxu0 %v1421_v0  ;;  %1150 = vmatprep.subr.bf16.mxu1 %v1421_v0  ;;  %v1221_v18 = vld [vmem:[%s1463_s16 + $0x78] sm:$0xff]   ;;  %v1231_v22 = vld [vmem:[%s1481_s20 + $0xe4] ss:$8 sps:$4 sm:$0xff]   ;;  %v1233_v24 = vld [vmem:[%s1481_s20 + $0xe0] ss:$8 sps:$4 sm:$0xff]  }
  0x18   : > { %v1225_v20 = vld [vmem:[%s1481_s20 + $0xd0] ss:$8 sps:$4 sm:$0xff]   ;;  %v1228_v21 = vld [vmem:[%s1481_s20 + $0x14] ss:$8 sps:$4 sm:$0xff]   ;;  %v1234_v25 = vld [vmem:[%s1481_s20 + $0x24] ss:$8 sps:$4 sm:$0xff]  }
  0x19   : > { %v1230_v23 = vld [vmem:[%s1481_s20 + $0x10] ss:$8 sps:$4 sm:$0xff]   ;;  %v1237_v26 = vld [vmem:[%s1481_s20 + $0xf4] ss:$8 sps:$4 sm:$0xff]   ;;  %v1236_v27 = vld [vmem:[%s1481_s20 + $0x20] ss:$8 sps:$4 sm:$0xff]  }
  0x1a   : > { %640 = vmatpush1.bf16.msra.mxu0 %v1208_v3  ;;  %1166 = vmatpush1.bf16.msra.mxu1 %v1208_v3  ;;  %v1239_v28 = vld [vmem:[%s1481_s20 + $0xf0] ss:$8 sps:$4 sm:$0xff]   ;;  %v1240_v29 = vld [vmem:[%s1481_s20 + $0x34] ss:$8 sps:$4 sm:$0xff]   ;;  %v1243_v30 = vld [vmem:[%s1481_s20 + $0x104] ss:$8 sps:$4 sm:$0xff]  }
  0x1b   : > { %641 = vmatprep.subr.bf16.mxu0 %v1421_v0  ;;  %1151 = vmatprep.subr.bf16.mxu1 %v1421_v0  ;;  %v1242_v31 = vld [vmem:[%s1481_s20 + $0x30] ss:$8 sps:$4 sm:$0xff]   ;;  %v1245_v32 = vld [vmem:[%s1481_s20 + $0x100] ss:$8 sps:$4 sm:$0xff]   ;;  %v1246_v33 = vld [vmem:[%s1481_s20 + $0x44] ss:$8 sps:$4 sm:$0xff]  }
  0x1c   : > { %v1249_v34 = vld [vmem:[%s1481_s20 + $0x114] ss:$8 sps:$4 sm:$0xff]   ;;  %v1248_v35 = vld [vmem:[%s1481_s20 + $0x40] ss:$8 sps:$4 sm:$0xff]   ;;  %v1251_v36 = vld [vmem:[%s1481_s20 + $0x110] ss:$8 sps:$4 sm:$0xff]  }
  0x1d   : > { %v1252_v37 = vld [vmem:[%s1481_s20 + $0x54] ss:$8 sps:$4 sm:$0xff]   ;;  %v1255_v38 = vld [vmem:[%s1481_s20 + $0x124] ss:$8 sps:$4 sm:$0xff]   ;;  %v1254_v39 = vld [vmem:[%s1481_s20 + $0x50] ss:$8 sps:$4 sm:$0xff]  }
  0x1e   : > { %642 = vmatpush1.bf16.msra.mxu0 %v1209_v4  ;;  %1167 = vmatpush1.bf16.msra.mxu1 %v1209_v4  ;;  %v1257_v40 = vld [vmem:[%s1481_s20 + $0x120] ss:$8 sps:$4 sm:$0xff]   ;;  %v1258_v41 = vld [vmem:[%s1481_s20 + $0x64] ss:$8 sps:$4 sm:$0xff]   ;;  %v1261_v42 = vld [vmem:[%s1481_s20 + $0x134] ss:$8 sps:$4 sm:$0xff]  }
  0x1f   : > { %643 = vmatprep.subr.bf16.mxu0 %v1421_v0  ;;  %1152 = vmatprep.subr.bf16.mxu1 %v1421_v0  ;;  %v1260_v43 = vld [vmem:[%s1481_s20 + $0x60] ss:$8 sps:$4 sm:$0xff]   ;;  %v1263_v44 = vld [vmem:[%s1481_s20 + $0x130] ss:$8 sps:$4 sm:$0xff]   ;;  %v1264_v45 = vld [vmem:[%s1481_s20 + $0x74] ss:$8 sps:$4 sm:$0xff]  }
  0x20   : > { %v1267_v46 = vld [vmem:[%s1481_s20 + $0x144] ss:$8 sps:$4 sm:$0xff]   ;;  %v1266_v47 = vld [vmem:[%s1481_s20 + $0x70] ss:$8 sps:$4 sm:$0xff]   ;;  %v1269_v48 = vld [vmem:[%s1481_s20 + $0x140] ss:$8 sps:$4 sm:$0xff]  }
  0x21   : > { %v1270_v49 = vld [vmem:[%s1481_s20 + $0x84] ss:$8 sps:$4 sm:$0xff]   ;;  %v1273_v50 = vld [vmem:[%s1481_s20 + $0x154] ss:$8 sps:$4 sm:$0xff]   ;;  %v1272_v51 = vld [vmem:[%s1481_s20 + $0x80] ss:$8 sps:$4 sm:$0xff]  }
  0x22   : > { %644 = vmatpush1.bf16.msra.mxu0 %v1210_v5  ;;  %1168 = vmatpush1.bf16.msra.mxu1 %v1210_v5  ;;  %v1275_v52 = vld [vmem:[%s1481_s20 + $0x150] ss:$8 sps:$4 sm:$0xff]   ;;  %v1276_v53 = vld [vmem:[%s1481_s20 + $0x94] ss:$8 sps:$4 sm:$0xff]   ;;  %v1279_v54 = vld [vmem:[%s1481_s20 + $0x164] ss:$8 sps:$4 sm:$0xff]  }
  0x23   : > { %645 = vmatprep.subr.bf16.mxu0 %v1421_v0  ;;  %1153 = vmatprep.subr.bf16.mxu1 %v1421_v0  ;;  %v1278_v55 = vld [vmem:[%s1481_s20 + $0x90] ss:$8 sps:$4 sm:$0xff]   ;;  %v1281_v56 = vld [vmem:[%s1481_s20 + $0x160] ss:$8 sps:$4 sm:$0xff]   ;;  %v1282_v57 = vld [vmem:[%s1481_s20 + $0xa4] ss:$8 sps:$4 sm:$0xff]  }
  0x24   : > { %v1285_v58 = vld [vmem:[%s1481_s20 + $0x174] ss:$8 sps:$4 sm:$0xff]   ;;  %v1284_v59 = vld [vmem:[%s1481_s20 + $0xa0] ss:$8 sps:$4 sm:$0xff]   ;;  %v1287_v60 = vld [vmem:[%s1481_s20 + $0x170] ss:$8 sps:$4 sm:$0xff]  }
  0x25   : > { %v1288_v61 = vld [vmem:[%s1481_s20 + $0xb4] ss:$8 sps:$4 sm:$0xff]   ;;  %v1291_v62 = vld [vmem:[%s1481_s20 + $0x184] ss:$8 sps:$4 sm:$0xff]   ;;  %v1290_v63 = vld [vmem:[%s1481_s20 + $0xb0] ss:$8 sps:$4 sm:$0xff]  }
  0x26   : > { %646 = vmatpush1.bf16.msra.mxu0 %v1211_v7  ;;  %1169 = vmatpush1.bf16.msra.mxu1 %v1211_v7  ;;  %v1294_v1 = vld [vmem:[%s1481_s20 + $0xc4] ss:$8 sps:$4 sm:$0xff]   ;;  %v1296_v2 = vld [vmem:[%s1481_s20 + $0xc0] ss:$8 sps:$4 sm:$0xff]  }
  0x27   : > { %647 = vmatprep.subr.bf16.mxu0 %v1421_v0  ;;  %1154 = vmatprep.subr.bf16.mxu1 %v1421_v0 }
  0x2a   : > { %648 = vmatpush1.bf16.msra.mxu0 %v1212_v9  ;;  %1170 = vmatpush1.bf16.msra.mxu1 %v1212_v9 }
  0x2b   : > { %649 = vmatprep.subr.bf16.mxu0 %v1421_v0  ;;  %1155 = vmatprep.subr.bf16.mxu1 %v1421_v0 }
  0x2e   : > { %650 = vmatpush1.bf16.msra.mxu0 %v1213_v10  ;;  %1171 = vmatpush1.bf16.msra.mxu1 %v1213_v10 }
  0x2f   : > { %651 = vmatprep.subr.bf16.mxu0 %v1421_v0  ;;  %1156 = vmatprep.subr.bf16.mxu1 %v1421_v0 }
  0x32   : > { %652 = vmatpush1.bf16.msra.mxu0 %v1214_v11  ;;  %1172 = vmatpush1.bf16.msra.mxu1 %v1214_v11 }
  0x33   : > { %653 = vmatprep.subr.bf16.mxu0 %v1421_v0  ;;  %1157 = vmatprep.subr.bf16.mxu1 %v1421_v0 }
  0x36   : > { %654 = vmatpush1.bf16.msra.mxu0 %v1215_v12  ;;  %1173 = vmatpush1.bf16.msra.mxu1 %v1215_v12 }
  0x37   : > { %655 = vmatprep.subr.bf16.mxu0 %v1421_v0  ;;  %1158 = vmatprep.subr.bf16.mxu1 %v1421_v0 }
  0x3a   : > { %656 = vmatpush1.bf16.msra.mxu0 %v1216_v13  ;;  %1174 = vmatpush1.bf16.msra.mxu1 %v1216_v13 }
  0x3b   : > { %657 = vmatprep.subr.bf16.mxu0 %v1421_v0  ;;  %1159 = vmatprep.subr.bf16.mxu1 %v1421_v0 }
  0x3e   : > { %658 = vmatpush1.bf16.msra.mxu0 %v1217_v14  ;;  %1175 = vmatpush1.bf16.msra.mxu1 %v1217_v14 }
  0x3f   : > { %659 = vmatprep.subr.bf16.mxu0 %v1421_v0  ;;  %1160 = vmatprep.subr.bf16.mxu1 %v1421_v0 }
  0x42   : > { %660 = vmatpush1.bf16.msra.mxu0 %v1218_v15  ;;  %1176 = vmatpush1.bf16.msra.mxu1 %v1218_v15 }
  0x43   : > { %661 = vmatprep.subr.bf16.mxu0 %v1421_v0  ;;  %1161 = vmatprep.subr.bf16.mxu1 %v1421_v0 }
  0x46   : > { %662 = vmatpush1.bf16.msra.mxu0 %v1219_v16  ;;  %1177 = vmatpush1.bf16.msra.mxu1 %v1219_v16 }
  0x47   : > { %663 = vmatprep.subr.bf16.mxu0 %v1421_v0  ;;  %1162 = vmatprep.subr.bf16.mxu1 %v1421_v0 }
  0x4a   : > { %664 = vmatpush1.bf16.msra.mxu0 %v1220_v17  ;;  %1178 = vmatpush1.bf16.msra.mxu1 %v1220_v17 }
  0x4b   : > { %665 = vmatprep.subr.bf16.mxu0 %v1421_v0  ;;  %1163 = vmatprep.subr.bf16.mxu1 %v1421_v0  ;;  %v1293_v0 = vld [vmem:[%s1481_s20 + $0x180] ss:$8 sps:$4 sm:$0xff]  }
  0x4e   : > { %666 = vmatpush1.bf16.msra.mxu0 %v1221_v18  ;;  %1179 = vmatpush1.bf16.msra.mxu1 %v1221_v18 }
  0x51   : > { %668 = vmatmul.mubr.bf16.vlgmr.msra.gmra.mrb[0].mxu0 %v1222_v19  ;;  %772 = vmatmul.mubr.bf16.vlgmr.msra.gmra.mrb[0].mxu1 %v1225_v20 }
  0x52   : > { %675 = vmatprep.mubr.bf16.mxu0 %v1228_v21  ;;  %779 = vmatprep.mubr.bf16.mxu1 %v1231_v22 }
  0x59   : > { %676 = vmatmul.mubr.bf16.gmra.mrb[4].mxu0 %v1230_v23  ;;  %780 = vmatmul.mubr.bf16.gmra.mrb[4].mxu1 %v1233_v24 }
  0x5a   : > { %683 = vmatprep.mubr.bf16.mxu0 %v1234_v25  ;;  %787 = vmatprep.mubr.bf16.mxu1 %v1237_v26 }
  0x61   : > { %684 = vmatmul.mubr.bf16.gmra.mrb[8].mxu0 %v1236_v27  ;;  %788 = vmatmul.mubr.bf16.gmra.mrb[8].mxu1 %v1239_v28 }
  0x62   : > { %691 = vmatprep.mubr.bf16.mxu0 %v1240_v29  ;;  %795 = vmatprep.mubr.bf16.mxu1 %v1243_v30 }
  0x69   : > { %692 = vmatmul.mubr.bf16.gmra.mrb[12].mxu0 %v1242_v31  ;;  %796 = vmatmul.mubr.bf16.gmra.mrb[12].mxu1 %v1245_v32 }
  0x6a   : > { %699 = vmatprep.mubr.bf16.mxu0 %v1246_v33  ;;  %803 = vmatprep.mubr.bf16.mxu1 %v1249_v34 }
  0x71   : > { %700 = vmatmul.mubr.bf16.gmra.mrb[16].mxu0 %v1248_v35  ;;  %804 = vmatmul.mubr.bf16.gmra.mrb[16].mxu1 %v1251_v36 }
  0x72   : > { %707 = vmatprep.mubr.bf16.mxu0 %v1252_v37  ;;  %811 = vmatprep.mubr.bf16.mxu1 %v1255_v38 }
  0x79   : > { %708 = vmatmul.mubr.bf16.gmra.mrb[20].mxu0 %v1254_v39  ;;  %812 = vmatmul.mubr.bf16.gmra.mrb[20].mxu1 %v1257_v40 }
  0x7a   : > { %715 = vmatprep.mubr.bf16.mxu0 %v1258_v41  ;;  %819 = vmatprep.mubr.bf16.mxu1 %v1261_v42 }
  0x81   : > { %716 = vmatmul.mubr.bf16.gmra.mrb[24].mxu0 %v1260_v43  ;;  %820 = vmatmul.mubr.bf16.gmra.mrb[24].mxu1 %v1263_v44 }
  0x82   : > { %723 = vmatprep.mubr.bf16.mxu0 %v1264_v45  ;;  %827 = vmatprep.mubr.bf16.mxu1 %v1267_v46 }
  0x89   : > { %724 = vmatmul.mubr.bf16.gmra.mrb[28].mxu0 %v1266_v47  ;;  %828 = vmatmul.mubr.bf16.gmra.mrb[28].mxu1 %v1269_v48 }
  0x8a   : > { %731 = vmatprep.mubr.bf16.mxu0 %v1270_v49  ;;  %835 = vmatprep.mubr.bf16.mxu1 %v1273_v50 }
  0x91   : > { %732 = vmatmul.mubr.bf16.gmra.mrb[32].mxu0 %v1272_v51  ;;  %836 = vmatmul.mubr.bf16.gmra.mrb[32].mxu1 %v1275_v52 }
  0x92   : > { %739 = vmatprep.mubr.bf16.mxu0 %v1276_v53  ;;  %843 = vmatprep.mubr.bf16.mxu1 %v1279_v54 }
  0x99   : > { %740 = vmatmul.mubr.bf16.gmra.mrb[36].mxu0 %v1278_v55  ;;  %844 = vmatmul.mubr.bf16.gmra.mrb[36].mxu1 %v1281_v56 }
  0x9a   : > { %747 = vmatprep.mubr.bf16.mxu0 %v1282_v57  ;;  %851 = vmatprep.mubr.bf16.mxu1 %v1285_v58 }
  0xa1   : > { %748 = vmatmul.mubr.bf16.gmra.mrb[40].mxu0 %v1284_v59  ;;  %852 = vmatmul.mubr.bf16.gmra.mrb[40].mxu1 %v1287_v60 }
  0xa2   : > { %755 = vmatprep.mubr.bf16.mxu0 %v1288_v61  ;;  %859 = vmatprep.mubr.bf16.mxu1 %v1291_v62 }
  0xa9   : > { %756 = vmatmul.mubr.bf16.gmra.mrb[44].mxu0 %v1290_v63  ;;  %860 = vmatmul.mubr.bf16.gmra.mrb[44].mxu1 %v1293_v0 }
  0xaa   : > { %763 = vmatprep.mubr.bf16.mxu0 %v1294_v1 }
  0xb1   : > { %764 = vmatmul.mubr.bf16.gmra.mrb[48].mxu0 %v1296_v2 }
 0x124   : > { %v669_v3 = vpop.f32.mrb[0].mxu0  ;;  %v773_v4 = vpop.f32.mrb[0].mxu1 }
 0x125   : > { %1297 = vtanh.f32 %v669_v3  ;;  %v671_v5 = vpop.f32.mrb[1].mxu0  ;;  %v775_v6 = vpop.f32.mrb[1].mxu1 }
 0x126   : > { %v672_v7 = vpop.f32.mrb[2].mxu0  ;;  %1299 = vtanh.f32 %v773_v4  ;;  %v776_v8 = vpop.f32.mrb[2].mxu1 }
 0x127   : > { %1301 = vtanh.f32 %v672_v7  ;;  %v674_v9 = vpop.f32.mrb[3].mxu0  ;;  %v778_v10 = vpop.f32.mrb[3].mxu1 }
 0x128   : > { %1303 = vtanh.f32 %v776_v8 }
 0x12c   : > { %v677_v11 = vpop.f32.mrb[4].mxu0  ;;  %v781_v12 = vpop.f32.mrb[4].mxu1 }
 0x12d   : > { %1305 = vtanh.f32 %v677_v11  ;;  %v679_v13 = vpop.f32.mrb[5].mxu0  ;;  %v783_v14 = vpop.f32.mrb[5].mxu1 }
 0x12e   : > { %v680_v15 = vpop.f32.mrb[6].mxu0  ;;  %1307 = vtanh.f32 %v781_v12  ;;  %v784_v16 = vpop.f32.mrb[6].mxu1 }
 0x12f   : > { %v1298_v17 = vpop.eup %1297  ;;  %1309 = vtanh.f32 %v680_v15  ;;  %v682_v18 = vpop.f32.mrb[7].mxu0 }
 0x130   : > { %v786_v19 = vpop.f32.mrb[7].mxu1  ;;  %v1300_v20 = vpop.eup %1299  ;;  %918 = vst [vmem:[%s1574_s23] sm:$0xff] %v1298_v17  ;;  %1311 = vtanh.f32 %v784_v16 }
 0x131   : > { %v1302_v21 = vpop.eup %1301  ;;  %944 = vst [vmem:[%s1574_s23 + $0xd0] sm:$0xff] %v1300_v20 }
 0x132   : > { %v1304_v22 = vpop.eup %1303  ;;  %919 = vst [vmem:[%s1574_s23 + $0x8] sm:$0xff] %v1302_v21 }
 0x133   : > { %945 = vst [vmem:[%s1574_s23 + $0xd8] sm:$0xff] %v1304_v22 }
 0x134   : > { %v685_v23 = vpop.f32.mrb[8].mxu0  ;;  %v789_v24 = vpop.f32.mrb[8].mxu1 }
 0x135   : > { %1313 = vtanh.f32 %v685_v23  ;;  %v687_v25 = vpop.f32.mrb[9].mxu0  ;;  %v791_v26 = vpop.f32.mrb[9].mxu1 }
 0x136   : > { %v688_v27 = vpop.f32.mrb[10].mxu0  ;;  %1315 = vtanh.f32 %v789_v24  ;;  %v792_v28 = vpop.f32.mrb[10].mxu1 }
 0x137   : > { %v1306_v29 = vpop.eup %1305  ;;  %1317 = vtanh.f32 %v688_v27  ;;  %v690_v30 = vpop.f32.mrb[11].mxu0 }
 0x138   : > { %v794_v31 = vpop.f32.mrb[11].mxu1  ;;  %v1308_v32 = vpop.eup %1307  ;;  %920 = vst [vmem:[%s1574_s23 + $0x10] sm:$0xff] %v1306_v29  ;;  %1319 = vtanh.f32 %v792_v28 }
 0x139   : > { %v1310_v33 = vpop.eup %1309  ;;  %946 = vst [vmem:[%s1574_s23 + $0xe0] sm:$0xff] %v1308_v32 }
 0x13a   : > { %v1312_v34 = vpop.eup %1311  ;;  %921 = vst [vmem:[%s1574_s23 + $0x18] sm:$0xff] %v1310_v33 }
 0x13b   : > { %947 = vst [vmem:[%s1574_s23 + $0xe8] sm:$0xff] %v1312_v34 }
 0x13c   : > { %v693_v35 = vpop.f32.mrb[12].mxu0  ;;  %v797_v36 = vpop.f32.mrb[12].mxu1 }
 0x13d   : > { %1321 = vtanh.f32 %v693_v35  ;;  %v695_v37 = vpop.f32.mrb[13].mxu0  ;;  %v799_v38 = vpop.f32.mrb[13].mxu1 }
 0x13e   : > { %v696_v39 = vpop.f32.mrb[14].mxu0  ;;  %1323 = vtanh.f32 %v797_v36  ;;  %v800_v40 = vpop.f32.mrb[14].mxu1 }
 0x13f   : > { %v1314_v41 = vpop.eup %1313  ;;  %1325 = vtanh.f32 %v696_v39  ;;  %v698_v42 = vpop.f32.mrb[15].mxu0 }
 0x140   : > { %v802_v43 = vpop.f32.mrb[15].mxu1  ;;  %v1316_v44 = vpop.eup %1315  ;;  %922 = vst [vmem:[%s1574_s23 + $0x20] sm:$0xff] %v1314_v41  ;;  %1327 = vtanh.f32 %v800_v40 }
 0x141   : > { %v1318_v45 = vpop.eup %1317  ;;  %948 = vst [vmem:[%s1574_s23 + $0xf0] sm:$0xff] %v1316_v44 }
 0x142   : > { %v1320_v46 = vpop.eup %1319  ;;  %923 = vst [vmem:[%s1574_s23 + $0x28] sm:$0xff] %v1318_v45 }
 0x143   : > { %949 = vst [vmem:[%s1574_s23 + $0xf8] sm:$0xff] %v1320_v46 }
 0x144   : > { %v701_v47 = vpop.f32.mrb[16].mxu0  ;;  %v805_v48 = vpop.f32.mrb[16].mxu1 }
 0x145   : > { %1329 = vtanh.f32 %v701_v47  ;;  %v703_v49 = vpop.f32.mrb[17].mxu0  ;;  %v807_v50 = vpop.f32.mrb[17].mxu1 }
 0x146   : > { %v704_v51 = vpop.f32.mrb[18].mxu0  ;;  %1331 = vtanh.f32 %v805_v48  ;;  %v808_v52 = vpop.f32.mrb[18].mxu1 }
 0x147   : > { %v1322_v53 = vpop.eup %1321  ;;  %1333 = vtanh.f32 %v704_v51  ;;  %v706_v54 = vpop.f32.mrb[19].mxu0 }
 0x148   : > { %v810_v55 = vpop.f32.mrb[19].mxu1  ;;  %v1324_v56 = vpop.eup %1323  ;;  %924 = vst [vmem:[%s1574_s23 + $0x30] sm:$0xff] %v1322_v53  ;;  %1335 = vtanh.f32 %v808_v52 }
 0x149   : > { %v1326_v57 = vpop.eup %1325  ;;  %950 = vst [vmem:[%s1574_s23 + $0x100] sm:$0xff] %v1324_v56 }
 0x14a   : > { %v1328_v58 = vpop.eup %1327  ;;  %925 = vst [vmem:[%s1574_s23 + $0x38] sm:$0xff] %v1326_v57 }
 0x14b   : > { %951 = vst [vmem:[%s1574_s23 + $0x108] sm:$0xff] %v1328_v58 }
 0x14c   : > { %v709_v59 = vpop.f32.mrb[20].mxu0  ;;  %v813_v60 = vpop.f32.mrb[20].mxu1 }
 0x14d   : > { %1337 = vtanh.f32 %v709_v59  ;;  %v711_v61 = vpop.f32.mrb[21].mxu0  ;;  %v815_v62 = vpop.f32.mrb[21].mxu1 }
 0x14e   : > { %v712_v63 = vpop.f32.mrb[22].mxu0  ;;  %1339 = vtanh.f32 %v813_v60  ;;  %v816_v0 = vpop.f32.mrb[22].mxu1 }
 0x14f   : > { %v1330_v1 = vpop.eup %1329  ;;  %1341 = vtanh.f32 %v712_v63  ;;  %v714_v2 = vpop.f32.mrb[23].mxu0 }
 0x150   : > { %v818_v3 = vpop.f32.mrb[23].mxu1  ;;  %v1332_v4 = vpop.eup %1331  ;;  %926 = vst [vmem:[%s1574_s23 + $0x40] sm:$0xff] %v1330_v1  ;;  %1343 = vtanh.f32 %v816_v0 }
 0x151   : > { %v1334_v5 = vpop.eup %1333  ;;  %952 = vst [vmem:[%s1574_s23 + $0x110] sm:$0xff] %v1332_v4 }
 0x152   : > { %v1336_v6 = vpop.eup %1335  ;;  %927 = vst [vmem:[%s1574_s23 + $0x48] sm:$0xff] %v1334_v5 }
 0x153   : > { %953 = vst [vmem:[%s1574_s23 + $0x118] sm:$0xff] %v1336_v6 }
 0x154   : > { %v717_v7 = vpop.f32.mrb[24].mxu0  ;;  %v821_v8 = vpop.f32.mrb[24].mxu1 }
 0x155   : > { %1345 = vtanh.f32 %v717_v7  ;;  %v719_v9 = vpop.f32.mrb[25].mxu0  ;;  %v823_v10 = vpop.f32.mrb[25].mxu1 }
 0x156   : > { %v720_v11 = vpop.f32.mrb[26].mxu0  ;;  %1347 = vtanh.f32 %v821_v8  ;;  %v824_v12 = vpop.f32.mrb[26].mxu1 }
 0x157   : > { %v1338_v13 = vpop.eup %1337  ;;  %1349 = vtanh.f32 %v720_v11  ;;  %v722_v14 = vpop.f32.mrb[27].mxu0 }
 0x158   : > { %v826_v15 = vpop.f32.mrb[27].mxu1  ;;  %v1340_v16 = vpop.eup %1339  ;;  %928 = vst [vmem:[%s1574_s23 + $0x50] sm:$0xff] %v1338_v13  ;;  %1351 = vtanh.f32 %v824_v12 }
 0x159   : > { %v1342_v17 = vpop.eup %1341  ;;  %954 = vst [vmem:[%s1574_s23 + $0x120] sm:$0xff] %v1340_v16 }
 0x15a   : > { %v1344_v18 = vpop.eup %1343  ;;  %929 = vst [vmem:[%s1574_s23 + $0x58] sm:$0xff] %v1342_v17 }
 0x15b   : > { %955 = vst [vmem:[%s1574_s23 + $0x128] sm:$0xff] %v1344_v18 }
 0x15c   : > { %v725_v19 = vpop.f32.mrb[28].mxu0  ;;  %v829_v20 = vpop.f32.mrb[28].mxu1 }
 0x15d   : > { %1353 = vtanh.f32 %v725_v19  ;;  %v727_v21 = vpop.f32.mrb[29].mxu0  ;;  %v831_v22 = vpop.f32.mrb[29].mxu1 }
 0x15e   : > { %v728_v23 = vpop.f32.mrb[30].mxu0  ;;  %1355 = vtanh.f32 %v829_v20  ;;  %v832_v24 = vpop.f32.mrb[30].mxu1 }
 0x15f   : > { %v1346_v25 = vpop.eup %1345  ;;  %1357 = vtanh.f32 %v728_v23  ;;  %v730_v26 = vpop.f32.mrb[31].mxu0 }
 0x160   : > { %v834_v27 = vpop.f32.mrb[31].mxu1  ;;  %v1348_v28 = vpop.eup %1347  ;;  %930 = vst [vmem:[%s1574_s23 + $0x60] sm:$0xff] %v1346_v25  ;;  %1359 = vtanh.f32 %v832_v24 }
 0x161   : > { %v1350_v29 = vpop.eup %1349  ;;  %956 = vst [vmem:[%s1574_s23 + $0x130] sm:$0xff] %v1348_v28 }
 0x162   : > { %v1352_v30 = vpop.eup %1351  ;;  %931 = vst [vmem:[%s1574_s23 + $0x68] sm:$0xff] %v1350_v29 }
 0x163   : > { %957 = vst [vmem:[%s1574_s23 + $0x138] sm:$0xff] %v1352_v30 }
 0x164   : > { %v733_v31 = vpop.f32.mrb[32].mxu0  ;;  %v837_v32 = vpop.f32.mrb[32].mxu1 }
 0x165   : > { %1361 = vtanh.f32 %v733_v31  ;;  %v735_v33 = vpop.f32.mrb[33].mxu0  ;;  %v839_v34 = vpop.f32.mrb[33].mxu1 }
 0x166   : > { %v736_v35 = vpop.f32.mrb[34].mxu0  ;;  %1363 = vtanh.f32 %v837_v32  ;;  %v840_v36 = vpop.f32.mrb[34].mxu1 }
 0x167   : > { %v1354_v37 = vpop.eup %1353  ;;  %1365 = vtanh.f32 %v736_v35  ;;  %v738_v38 = vpop.f32.mrb[35].mxu0 }
 0x168   : > { %v842_v39 = vpop.f32.mrb[35].mxu1  ;;  %v1356_v40 = vpop.eup %1355  ;;  %932 = vst [vmem:[%s1574_s23 + $0x70] sm:$0xff] %v1354_v37  ;;  %1367 = vtanh.f32 %v840_v36 }
 0x169   : > { %v1358_v41 = vpop.eup %1357  ;;  %958 = vst [vmem:[%s1574_s23 + $0x140] sm:$0xff] %v1356_v40 }
 0x16a   : > { %v1360_v42 = vpop.eup %1359  ;;  %933 = vst [vmem:[%s1574_s23 + $0x78] sm:$0xff] %v1358_v41 }
 0x16b   : > { %959 = vst [vmem:[%s1574_s23 + $0x148] sm:$0xff] %v1360_v42 }
 0x16c   : > { %v741_v43 = vpop.f32.mrb[36].mxu0  ;;  %v845_v44 = vpop.f32.mrb[36].mxu1 }
 0x16d   : > { %1369 = vtanh.f32 %v741_v43  ;;  %v743_v45 = vpop.f32.mrb[37].mxu0  ;;  %v847_v46 = vpop.f32.mrb[37].mxu1 }
 0x16e   : > { %v744_v47 = vpop.f32.mrb[38].mxu0  ;;  %1371 = vtanh.f32 %v845_v44  ;;  %v848_v48 = vpop.f32.mrb[38].mxu1 }
 0x16f   : > { %v1362_v49 = vpop.eup %1361  ;;  %1373 = vtanh.f32 %v744_v47  ;;  %v746_v50 = vpop.f32.mrb[39].mxu0 }
 0x170   : > { %v850_v51 = vpop.f32.mrb[39].mxu1  ;;  %v1364_v52 = vpop.eup %1363  ;;  %934 = vst [vmem:[%s1574_s23 + $0x80] sm:$0xff] %v1362_v49  ;;  %1375 = vtanh.f32 %v848_v48 }
 0x171   : > { %v1366_v53 = vpop.eup %1365  ;;  %960 = vst [vmem:[%s1574_s23 + $0x150] sm:$0xff] %v1364_v52 }
 0x172   : > { %v1368_v54 = vpop.eup %1367  ;;  %935 = vst [vmem:[%s1574_s23 + $0x88] sm:$0xff] %v1366_v53 }
 0x173   : > { %961 = vst [vmem:[%s1574_s23 + $0x158] sm:$0xff] %v1368_v54 }
 0x174   : > { %v749_v55 = vpop.f32.mrb[40].mxu0  ;;  %v853_v56 = vpop.f32.mrb[40].mxu1 }
 0x175   : > { %1377 = vtanh.f32 %v749_v55  ;;  %v751_v57 = vpop.f32.mrb[41].mxu0  ;;  %v855_v58 = vpop.f32.mrb[41].mxu1 }
 0x176   : > { %v752_v59 = vpop.f32.mrb[42].mxu0  ;;  %1379 = vtanh.f32 %v853_v56  ;;  %v856_v60 = vpop.f32.mrb[42].mxu1 }
 0x177   : > { %v1370_v61 = vpop.eup %1369  ;;  %1381 = vtanh.f32 %v752_v59  ;;  %v754_v62 = vpop.f32.mrb[43].mxu0 }
 0x178   : > { %v858_v63 = vpop.f32.mrb[43].mxu1  ;;  %v1372_v0 = vpop.eup %1371  ;;  %936 = vst [vmem:[%s1574_s23 + $0x90] sm:$0xff] %v1370_v61  ;;  %1383 = vtanh.f32 %v856_v60 }
 0x179   : > { %v1374_v1 = vpop.eup %1373  ;;  %962 = vst [vmem:[%s1574_s23 + $0x160] sm:$0xff] %v1372_v0 }
 0x17a   : > { %v1376_v2 = vpop.eup %1375  ;;  %937 = vst [vmem:[%s1574_s23 + $0x98] sm:$0xff] %v1374_v1 }
 0x17b   : > { %963 = vst [vmem:[%s1574_s23 + $0x168] sm:$0xff] %v1376_v2 }
 0x17c   : > { %v757_v3 = vpop.f32.mrb[44].mxu0  ;;  %v861_v4 = vpop.f32.mrb[44].mxu1 }
 0x17d   : > { %1385 = vtanh.f32 %v757_v3  ;;  %v759_v5 = vpop.f32.mrb[45].mxu0  ;;  %v863_v6 = vpop.f32.mrb[45].mxu1 }
 0x17e   : > { %v760_v7 = vpop.f32.mrb[46].mxu0  ;;  %1387 = vtanh.f32 %v861_v4  ;;  %v864_v8 = vpop.f32.mrb[46].mxu1 }
 0x17f   : > { %v1378_v9 = vpop.eup %1377  ;;  %1389 = vtanh.f32 %v760_v7  ;;  %v762_v10 = vpop.f32.mrb[47].mxu0 }
 0x180   : > { %v866_v11 = vpop.f32.mrb[47].mxu1  ;;  %v1380_v12 = vpop.eup %1379  ;;  %938 = vst [vmem:[%s1574_s23 + $0xa0] sm:$0xff] %v1378_v9  ;;  %1391 = vtanh.f32 %v864_v8 }
 0x181   : > { %v1382_v13 = vpop.eup %1381  ;;  %964 = vst [vmem:[%s1574_s23 + $0x170] sm:$0xff] %v1380_v12 }
 0x182   : > { %v1384_v14 = vpop.eup %1383  ;;  %939 = vst [vmem:[%s1574_s23 + $0xa8] sm:$0xff] %v1382_v13 }
 0x183   : > { %965 = vst [vmem:[%s1574_s23 + $0x178] sm:$0xff] %v1384_v14 }
 0x184   : > { %v765_v15 = vpop.f32.mrb[48].mxu0 }
 0x185   : > { %1393 = vtanh.f32 %v765_v15  ;;  %v767_v16 = vpop.f32.mrb[49].mxu0 }
 0x186   : > { %v768_v17 = vpop.f32.mrb[50].mxu0 }
 0x187   : > { %v1386_v18 = vpop.eup %1385  ;;  %1395 = vtanh.f32 %v768_v17  ;;  %v770_v19 = vpop.f32.mrb[51].mxu0 }
 0x188   : > { %v1388_v20 = vpop.eup %1387  ;;  %940 = vst [vmem:[%s1574_s23 + $0xb0] sm:$0xff] %v1386_v18 }
 0x189   : > { %v1390_v21 = vpop.eup %1389  ;;  %966 = vst [vmem:[%s1574_s23 + $0x180] sm:$0xff] %v1388_v20 }
 0x18a   : > { %v1392_v22 = vpop.eup %1391  ;;  %941 = vst [vmem:[%s1574_s23 + $0xb8] sm:$0xff] %v1390_v21 }
 0x18b   : > { %967 = vst [vmem:[%s1574_s23 + $0x188] sm:$0xff] %v1392_v22 }
 0x18f   : > { %v1394_v23 = vpop.eup %1393 }
 0x190   : > { %942 = vst [vmem:[%s1574_s23 + $0xc0] sm:$0xff] %v1394_v23 }
 0x191   : > { %v1396_v24 = vpop.eup %1395 }
 0x192   : > { %943 = vst [vmem:[%s1574_s23 + $0xc8] sm:$0xff] %v1396_v24 }
 0x193 PF: > { %s12_s11 = sadd.s32 1, %s1419_s11   ;;  %s1638_s9 = smov %s1415_s10 }
 0x194   : > { %p9_p5 = scmp.ge.s32.totalorder %s12_s11, 6   ;;  %s1639_s10 = smov %s1641_s12 }
 0x196   :  { %11 = sbr.rel (!%p9_p5) target bundleno = 2 (0x2), region = 61 }

</bundles_post_ra>
